<compile_context>
chip_gen: v5e
topology: v5e:2x2
jax: 0.10.0
libtpu: 0.0.40
codegen_flags: <defaults>
</compile_context>

<pallas_src>
import math
import jax
import jax.numpy as jnp
from jax.experimental import pallas as pl
from jax.experimental.pallas import tpu as pltpu

REACH = 2
NLAYERS = 16
BLOCK = 32
CI = 2 * (REACH + 1) * REACH          # 12 causal neighbours
NCH = CI                              # hidden width 12
CO = 1
NAUG = NCH + 1                        # 13 = hidden width + constant-ones row
NIN = NAUG + 1                        # 14 = 12 neighbours + ones + target
NEG_SLOPE = 0.01                      # torch leaky_relu default
TILE_MAX = 16384                      # pixels per grid step (multiple of 128)


# ----------------------------- Pallas kernel ------------------------------ #
def _codec_kernel(nb_ref, wh_ref, wo_ref, delta_ref):
    # nb_ref: (NIN, TILE)   rows 0..11 neighbours, row 12 ones, row 13 target
    # wh_ref: (NLAYERS-1, NAUG, NAUG) augmented hidden weights (bias folded)
    # wo_ref: (1, NAUG)               augmented output weights (bias folded)
    h = nb_ref[0:NAUG, :]                     # (13, TILE) activations (+ones)
    t = nb_ref[NAUG:NIN, :]                   # (1, TILE)  target pixels
    for l in range(NLAYERS - 1):              # 15 hidden layers, unrolled
        h = jnp.dot(wh_ref[l], h, preferred_element_type=jnp.float32)
        h = jnp.where(h > 0, h, NEG_SLOPE * h)        # leaky_relu; row 12 stays 1
    pred = jnp.dot(wo_ref[...], h, preferred_element_type=jnp.float32)  # (1, TILE)
    pred = jnp.clip(pred, -1.0, 1.0)
    delta = t - pred
    delta_ref[...] = jnp.fmod(delta + 1.0, 2.0) - 1.0     # torch.fmod semantics


def _choose_tile(p):
    # P is always a multiple of 1024 (one 32x32 block); cap at TILE_MAX.
    return p if p <= TILE_MAX else TILE_MAX


def run_predictor(nb_aug, wh_aug, wo_aug):
    """nb_aug: (NIN, P) pixel-major slab -> residual delta (1, P)."""
    _, P = nb_aug.shape
    tile = _choose_tile(P)
    p_pad = ((P + tile - 1) // tile) * tile
    if p_pad != P:
        nb_aug = jnp.pad(nb_aug, ((0, 0), (0, p_pad - P)))
    grid = (p_pad // tile,)
    delta = pl.pallas_call(
        _codec_kernel,
        out_shape=jax.ShapeDtypeStruct((1, p_pad), jnp.float32),
        grid_spec=pltpu.PrefetchScalarGridSpec(
            num_scalar_prefetch=0,
            grid=grid,
            in_specs=[
                pl.BlockSpec((NIN, tile), lambda i: (0, i)),
                pl.BlockSpec((NLAYERS - 1, NAUG, NAUG), lambda i: (0, 0, 0)),
                pl.BlockSpec((1, NAUG), lambda i: (0, 0)),
            ],
            out_specs=pl.BlockSpec((1, tile), lambda i: (0, i)),
        ),
        compiler_params=pltpu.CompilerParams(
            dimension_semantics=("parallel",)),
    )(nb_aug, wh_aug, wo_aug)
    return delta[:, :P]


# ------------------------------- JAX glue --------------------------------- #
# TODO(synk): fuse the causal-neighbourhood gather into the kernel (DMA padded
# 32x32 blocks and build the 12 shifted views in VMEM) to avoid the 12x HBM
# expansion of the neighbour slab for large images.
def build_inputs(xb):
    """xb: (nbc, 32, 32) -> (NIN, P): 12 neighbours, ones row, target row."""
    nbc = xb.shape[0]
    P = nbc * BLOCK * BLOCK
    xp = jnp.pad(xb, ((0, 0), (REACH, REACH), (REACH, REACH)))
    offsets = [(dy, dx) for dy in range(-REACH, 0) for dx in range(-REACH, REACH + 1)]
    offsets += [(0, dx) for dx in range(-REACH, 0)]           # same order as get_nb
    planes = [xp[:, REACH + dy:REACH + dy + BLOCK,
                 REACH + dx:REACH + dx + BLOCK].reshape(P)
              for dy, dx in offsets]
    planes.append(jnp.ones((P,), jnp.float32))                # ones row (bias)
    planes.append(xb.reshape(P).astype(jnp.float32))          # target row
    return jnp.stack(planes, axis=0)                          # (14, P)


def calc_RMSE(x):
    return 255.0 * jnp.sqrt(jnp.mean(jnp.square(x)))


def calc_invCR(x):
    """x: (nch, res) -> mean per-channel entropy / 8 (torch.histc over [-1, 1])."""
    nch, res = x.shape
    width = 2.0 / 256.0
    idx = jnp.clip(jnp.floor((x + 1.0) / width).astype(jnp.int32), 0, 255)
    in_range = (x >= -1.0) & (x <= 1.0)
    seg = jnp.where(in_range,
                    idx + 256 * jnp.arange(nch, dtype=jnp.int32)[:, None],
                    nch * 256)                                 # out-of-range bucket
    counts = jnp.bincount(seg.reshape(-1), length=nch * 256 + 1)[:nch * 256]
    prob = counts.reshape(nch, 256).astype(jnp.float32) / res
    log2p = jnp.where(prob > 0, jnp.log2(jnp.where(prob > 0, prob, 1.0)), 0.0)
    return jnp.sum(-prob * log2p) / (8.0 * nch)


def safe_inv(x):
    if x != 0:
        return 1.0 / x
    return math.inf


def init_params(key):
    """Deterministic synthetic init matching PixelPred(16, 12, 12, 1) shapes,
    pre-transposed and bias-augmented for the pixels-on-lanes kernel."""
    ks = jax.random.split(key, 4)
    lim = 1.0 / math.sqrt(CI)
    wh = jax.random.uniform(ks[0], (NLAYERS - 1, NCH, NCH), jnp.float32, -lim, lim)  # (out,in)
    bh = jax.random.uniform(ks[1], (NLAYERS - 1, NCH), jnp.float32, -lim, lim)
    wo = jax.random.uniform(ks[2], (CO, NCH), jnp.float32, -lim, lim)                # (out,in)
    bo = jax.random.uniform(ks[3], (CO,), jnp.float32, -lim, lim)
    # augmented 13x13 weights: last column = bias, last row = e12 (ones passthrough)
    wh_aug = jnp.zeros((NLAYERS - 1, NAUG, NAUG), jnp.float32)
    wh_aug = wh_aug.at[:, :NCH, :NCH].set(wh)
    wh_aug = wh_aug.at[:, :NCH, NCH].set(bh)
    wh_aug = wh_aug.at[:, NCH, NCH].set(1.0)
    wo_aug = jnp.concatenate([wo, bo[:, None]], axis=1)        # (1, 13)
    return wh_aug, wo_aug


def _forward_fn(x, wh_aug, wo_aug):
    b, c, H, W = x.shape
    Hc = H // BLOCK * BLOCK
    Wc = W // BLOCK * BLOCK
    x = x[:, :, :Hc, :Wc].astype(jnp.float32)
    res = Hc * Wc
    blockarea = BLOCK * BLOCK
    nblocks = res // blockarea
    nbc = b * c * nblocks
    # unfold into (nbc, 32, 32) blocks (same ordering as torch.unfold)
    xb = x.reshape(b, c, Hc // BLOCK, BLOCK, Wc // BLOCK, BLOCK)
    xb = xb.transpose(0, 1, 2, 4, 3, 5).reshape(nbc, BLOCK, BLOCK)

    nb_aug = build_inputs(xb)                                  # (14, P)
    delta = run_predictor(nb_aug, wh_aug, wo_aug)              # (1, P)

    x_flat = xb.reshape(b * c, res)
    d_flat = delta.reshape(b * c, res)
    loss0 = calc_RMSE(x_flat)
    loss1 = calc_RMSE(d_flat)
    invCR0 = calc_invCR(x_flat)
    invCR1 = calc_invCR(d_flat)
    return loss0, loss1, invCR0, invCR1


_forward_jit = jax.jit(_forward_fn)


class Codec:
    def __init__(self, key):
        self.reach = REACH
        self.nlayers = NLAYERS
        self.blocksize = BLOCK
        self.wh_aug, self.wo_aug = init_params(key)
        self.esum0 = 0.0
        self.esum1 = 0.0
        self.csum0 = 0.0
        self.csum1 = 0.0
        self.count = 0

    def forward(self, x):
        b = x.shape[0]
        loss0_d, loss1_d, invCR0_d, invCR1_d = _forward_jit(x, self.wh_aug, self.wo_aug)
        # single host sync per batch (needed for the formatted message)
        loss0, loss1, invCR0, invCR1 = (
            float(v) for v in jax.device_get((loss0_d, loss1_d, invCR0_d, invCR1_d)))
        self.esum0 += loss0 * b
        self.esum1 += loss1 * b
        self.csum0 += invCR0 * b
        self.csum1 += invCR1 * b
        self.count += b
        msg = 'RMSE%7.2lf ->%7.2f  CR%7.2f ->%7.2f' % (
            loss0, loss1, safe_inv(invCR0), safe_inv(invCR1))
        return loss1_d, msg

    def epoch_start(self):
        self.esum0 = self.esum1 = self.csum0 = self.csum1 = 0.0
        self.count = 0

    def epoch_end(self):
        invCR0 = self.csum0 / self.count
        invCR1 = self.csum1 / self.count
        rmse0 = self.esum0 / self.count
        rmse1 = self.esum1 / self.count
        return (invCR1, 'RMSE%9.4lf %9.4f  CR%9.4f %9.4f' % (
            rmse0, rmse1, safe_inv(invCR0), safe_inv(invCR1)))


if __name__ == "__main__":
    key = jax.random.PRNGKey(0)
    kparam, kdata = jax.random.split(key)
    codec = Codec(kparam)
    # small shape consistent with blocksize=32: b=2, c=2, h=w=32 -> 4 blocks
    x = jax.random.uniform(kdata, (2, 2, 32, 32), jnp.float32, -1.0, 1.0)
    loss1, msg = codec.forward(x)
    jax.block_until_ready(loss1)
    print("KERNEL_OK")
</pallas_src>

<mosaic_0001>
module attributes {stable_mosaic.version = 11 : i64} {
  func.func @_codec_kernel(%arg0: i32, %arg1: memref<14x4096xf32, #tpu.memory_space<vmem>>, %arg2: memref<15x13x13xf32, #tpu.memory_space<vmem>>, %arg3: memref<1x13xf32, #tpu.memory_space<vmem>>, %arg4: memref<1x4096xf32, #tpu.memory_space<vmem>>) attributes {dimension_semantics = [#tpu.dimension_semantics<parallel>], iteration_bounds = array<i64: 1>, scalar_prefetch = 0 : i64, scratch_operands = 0 : i64, tpu.core_type = #tpu.core_type<tc>, window_params = [{transform_indices = @transform_0, window_bounds = array<i64: 14, 4096>}, {pipeline_mode = #tpu.pipeline_mode<synchronous>, transform_indices = @transform_1, window_bounds = array<i64: 15, 13, 13>}, {pipeline_mode = #tpu.pipeline_mode<synchronous>, transform_indices = @transform_2, window_bounds = array<i64: 1, 13>}, {transform_indices = @transform_3, window_bounds = array<i64: 1, 4096>}]} {
    %c0 = arith.constant 0 : index
    %c0_0 = arith.constant 0 : index
    %0 = vector.load %arg1[%c0, %c0_0] : memref<14x4096xf32, #tpu.memory_space<vmem>>, vector<13x4096xf32>
    %c13 = arith.constant 13 : index
    %c0_1 = arith.constant 0 : index
    %1 = vector.load %arg1[%c13, %c0_1] : memref<14x4096xf32, #tpu.memory_space<vmem>>, vector<1x4096xf32>
    %c0_2 = arith.constant 0 : index
    %c0_3 = arith.constant 0 : index
    %c0_4 = arith.constant 0 : index
    %2 = vector.load %arg2[%c0_2, %c0_3, %c0_4] : memref<15x13x13xf32, #tpu.memory_space<vmem>>, vector<1x13x13xf32>
    %3 = vector.shape_cast %2 : vector<1x13x13xf32> to vector<13x13xf32>
    %cst = arith.constant dense<0.000000e+00> : vector<13x4096xf32>
    %4 = tpu.matmul %3, %0, %cst {dimension_numbers = #tpu.dot_dimension_numbers<[1], [0], [0], [1], [0, 0, 1, 1], [], []>} : vector<13x13xf32>, vector<13x4096xf32>, vector<13x4096xf32> -> vector<13x4096xf32>
    %cst_5 = arith.constant 0.000000e+00 : f32
    %5 = vector.broadcast %cst_5 : f32 to vector<13x4096xf32>
    %6 = arith.cmpf ogt, %4, %5 : vector<13x4096xf32>
    %cst_6 = arith.constant 0.00999999977 : f32
    %7 = vector.broadcast %cst_6 : f32 to vector<13x4096xf32>
    %8 = arith.mulf %7, %4 : vector<13x4096xf32>
    %9 = arith.select %6, %4, %8 : vector<13x4096xi1>, vector<13x4096xf32>
    %c1 = arith.constant 1 : index
    %c0_7 = arith.constant 0 : index
    %c0_8 = arith.constant 0 : index
    %10 = vector.load %arg2[%c1, %c0_7, %c0_8] : memref<15x13x13xf32, #tpu.memory_space<vmem>>, vector<1x13x13xf32>
    %11 = vector.shape_cast %10 : vector<1x13x13xf32> to vector<13x13xf32>
    %cst_9 = arith.constant dense<0.000000e+00> : vector<13x4096xf32>
    %12 = tpu.matmul %11, %9, %cst_9 {dimension_numbers = #tpu.dot_dimension_numbers<[1], [0], [0], [1], [0, 0, 1, 1], [], []>} : vector<13x13xf32>, vector<13x4096xf32>, vector<13x4096xf32> -> vector<13x4096xf32>
    %cst_10 = arith.constant 0.000000e+00 : f32
    %13 = vector.broadcast %cst_10 : f32 to vector<13x4096xf32>
    %14 = arith.cmpf ogt, %12, %13 : vector<13x4096xf32>
    %cst_11 = arith.constant 0.00999999977 : f32
    %15 = vector.broadcast %cst_11 : f32 to vector<13x4096xf32>
    %16 = arith.mulf %15, %12 : vector<13x4096xf32>
    %17 = arith.select %14, %12, %16 : vector<13x4096xi1>, vector<13x4096xf32>
    %c2 = arith.constant 2 : index
    %c0_12 = arith.constant 0 : index
    %c0_13 = arith.constant 0 : index
    %18 = vector.load %arg2[%c2, %c0_12, %c0_13] : memref<15x13x13xf32, #tpu.memory_space<vmem>>, vector<1x13x13xf32>
    %19 = vector.shape_cast %18 : vector<1x13x13xf32> to vector<13x13xf32>
    %cst_14 = arith.constant dense<0.000000e+00> : vector<13x4096xf32>
    %20 = tpu.matmul %19, %17, %cst_14 {dimension_numbers = #tpu.dot_dimension_numbers<[1], [0], [0], [1], [0, 0, 1, 1], [], []>} : vector<13x13xf32>, vector<13x4096xf32>, vector<13x4096xf32> -> vector<13x4096xf32>
    %cst_15 = arith.constant 0.000000e+00 : f32
    %21 = vector.broadcast %cst_15 : f32 to vector<13x4096xf32>
    %22 = arith.cmpf ogt, %20, %21 : vector<13x4096xf32>
    %cst_16 = arith.constant 0.00999999977 : f32
    %23 = vector.broadcast %cst_16 : f32 to vector<13x4096xf32>
    %24 = arith.mulf %23, %20 : vector<13x4096xf32>
    %25 = arith.select %22, %20, %24 : vector<13x4096xi1>, vector<13x4096xf32>
    %c3 = arith.constant 3 : index
    %c0_17 = arith.constant 0 : index
    %c0_18 = arith.constant 0 : index
    %26 = vector.load %arg2[%c3, %c0_17, %c0_18] : memref<15x13x13xf32, #tpu.memory_space<vmem>>, vector<1x13x13xf32>
    %27 = vector.shape_cast %26 : vector<1x13x13xf32> to vector<13x13xf32>
    %cst_19 = arith.constant dense<0.000000e+00> : vector<13x4096xf32>
    %28 = tpu.matmul %27, %25, %cst_19 {dimension_numbers = #tpu.dot_dimension_numbers<[1], [0], [0], [1], [0, 0, 1, 1], [], []>} : vector<13x13xf32>, vector<13x4096xf32>, vector<13x4096xf32> -> vector<13x4096xf32>
    %cst_20 = arith.constant 0.000000e+00 : f32
    %29 = vector.broadcast %cst_20 : f32 to vector<13x4096xf32>
    %30 = arith.cmpf ogt, %28, %29 : vector<13x4096xf32>
    %cst_21 = arith.constant 0.00999999977 : f32
    %31 = vector.broadcast %cst_21 : f32 to vector<13x4096xf32>
    %32 = arith.mulf %31, %28 : vector<13x4096xf32>
    %33 = arith.select %30, %28, %32 : vector<13x4096xi1>, vector<13x4096xf32>
    %c4 = arith.constant 4 : index
    %c0_22 = arith.constant 0 : index
    %c0_23 = arith.constant 0 : index
    %34 = vector.load %arg2[%c4, %c0_22, %c0_23] : memref<15x13x13xf32, #tpu.memory_space<vmem>>, vector<1x13x13xf32>
    %35 = vector.shape_cast %34 : vector<1x13x13xf32> to vector<13x13xf32>
    %cst_24 = arith.constant dense<0.000000e+00> : vector<13x4096xf32>
    %36 = tpu.matmul %35, %33, %cst_24 {dimension_numbers = #tpu.dot_dimension_numbers<[1], [0], [0], [1], [0, 0, 1, 1], [], []>} : vector<13x13xf32>, vector<13x4096xf32>, vector<13x4096xf32> -> vector<13x4096xf32>
    %cst_25 = arith.constant 0.000000e+00 : f32
    %37 = vector.broadcast %cst_25 : f32 to vector<13x4096xf32>
    %38 = arith.cmpf ogt, %36, %37 : vector<13x4096xf32>
    %cst_26 = arith.constant 0.00999999977 : f32
    %39 = vector.broadcast %cst_26 : f32 to vector<13x4096xf32>
    %40 = arith.mulf %39, %36 : vector<13x4096xf32>
    %41 = arith.select %38, %36, %40 : vector<13x4096xi1>, vector<13x4096xf32>
    %c5 = arith.constant 5 : index
    %c0_27 = arith.constant 0 : index
    %c0_28 = arith.constant 0 : index
    %42 = vector.load %arg2[%c5, %c0_27, %c0_28] : memref<15x13x13xf32, #tpu.memory_space<vmem>>, vector<1x13x13xf32>
    %43 = vector.shape_cast %42 : vector<1x13x13xf32> to vector<13x13xf32>
    %cst_29 = arith.constant dense<0.000000e+00> : vector<13x4096xf32>
    %44 = tpu.matmul %43, %41, %cst_29 {dimension_numbers = #tpu.dot_dimension_numbers<[1], [0], [0], [1], [0, 0, 1, 1], [], []>} : vector<13x13xf32>, vector<13x4096xf32>, vector<13x4096xf32> -> vector<13x4096xf32>
    %cst_30 = arith.constant 0.000000e+00 : f32
    %45 = vector.broadcast %cst_30 : f32 to vector<13x4096xf32>
    %46 = arith.cmpf ogt, %44, %45 : vector<13x4096xf32>
    %cst_31 = arith.constant 0.00999999977 : f32
    %47 = vector.broadcast %cst_31 : f32 to vector<13x4096xf32>
    %48 = arith.mulf %47, %44 : vector<13x4096xf32>
    %49 = arith.select %46, %44, %48 : vector<13x4096xi1>, vector<13x4096xf32>
    %c6 = arith.constant 6 : index
    %c0_32 = arith.constant 0 : index
    %c0_33 = arith.constant 0 : index
    %50 = vector.load %arg2[%c6, %c0_32, %c0_33] : memref<15x13x13xf32, #tpu.memory_space<vmem>>, vector<1x13x13xf32>
    %51 = vector.shape_cast %50 : vector<1x13x13xf32> to vector<13x13xf32>
    %cst_34 = arith.constant dense<0.000000e+00> : vector<13x4096xf32>
    %52 = tpu.matmul %51, %49, %cst_34 {dimension_numbers = #tpu.dot_dimension_numbers<[1], [0], [0], [1], [0, 0, 1, 1], [], []>} : vector<13x13xf32>, vector<13x4096xf32>, vector<13x4096xf32> -> vector<13x4096xf32>
    %cst_35 = arith.constant 0.000000e+00 : f32
    %53 = vector.broadcast %cst_35 : f32 to vector<13x4096xf32>
    %54 = arith.cmpf ogt, %52, %53 : vector<13x4096xf32>
    %cst_36 = arith.constant 0.00999999977 : f32
    %55 = vector.broadcast %cst_36 : f32 to vector<13x4096xf32>
    %56 = arith.mulf %55, %52 : vector<13x4096xf32>
    %57 = arith.select %54, %52, %56 : vector<13x4096xi1>, vector<13x4096xf32>
    %c7 = arith.constant 7 : index
    %c0_37 = arith.constant 0 : index
    %c0_38 = arith.constant 0 : index
    %58 = vector.load %arg2[%c7, %c0_37, %c0_38] : memref<15x13x13xf32, #tpu.memory_space<vmem>>, vector<1x13x13xf32>
    %59 = vector.shape_cast %58 : vector<1x13x13xf32> to vector<13x13xf32>
    %cst_39 = arith.constant dense<0.000000e+00> : vector<13x4096xf32>
    %60 = tpu.matmul %59, %57, %cst_39 {dimension_numbers = #tpu.dot_dimension_numbers<[1], [0], [0], [1], [0, 0, 1, 1], [], []>} : vector<13x13xf32>, vector<13x4096xf32>, vector<13x4096xf32> -> vector<13x4096xf32>
    %cst_40 = arith.constant 0.000000e+00 : f32
    %61 = vector.broadcast %cst_40 : f32 to vector<13x4096xf32>
    %62 = arith.cmpf ogt, %60, %61 : vector<13x4096xf32>
    %cst_41 = arith.constant 0.00999999977 : f32
    %63 = vector.broadcast %cst_41 : f32 to vector<13x4096xf32>
    %64 = arith.mulf %63, %60 : vector<13x4096xf32>
    %65 = arith.select %62, %60, %64 : vector<13x4096xi1>, vector<13x4096xf32>
    %c8 = arith.constant 8 : index
    %c0_42 = arith.constant 0 : index
    %c0_43 = arith.constant 0 : index
    %66 = vector.load %arg2[%c8, %c0_42, %c0_43] : memref<15x13x13xf32, #tpu.memory_space<vmem>>, vector<1x13x13xf32>
    %67 = vector.shape_cast %66 : vector<1x13x13xf32> to vector<13x13xf32>
    %cst_44 = arith.constant dense<0.000000e+00> : vector<13x4096xf32>
    %68 = tpu.matmul %67, %65, %cst_44 {dimension_numbers = #tpu.dot_dimension_numbers<[1], [0], [0], [1], [0, 0, 1, 1], [], []>} : vector<13x13xf32>, vector<13x4096xf32>, vector<13x4096xf32> -> vector<13x4096xf32>
    %cst_45 = arith.constant 0.000000e+00 : f32
    %69 = vector.broadcast %cst_45 : f32 to vector<13x4096xf32>
    %70 = arith.cmpf ogt, %68, %69 : vector<13x4096xf32>
    %cst_46 = arith.constant 0.00999999977 : f32
    %71 = vector.broadcast %cst_46 : f32 to vector<13x4096xf32>
    %72 = arith.mulf %71, %68 : vector<13x4096xf32>
    %73 = arith.select %70, %68, %72 : vector<13x4096xi1>, vector<13x4096xf32>
    %c9 = arith.constant 9 : index
    %c0_47 = arith.constant 0 : index
    %c0_48 = arith.constant 0 : index
    %74 = vector.load %arg2[%c9, %c0_47, %c0_48] : memref<15x13x13xf32, #tpu.memory_space<vmem>>, vector<1x13x13xf32>
    %75 = vector.shape_cast %74 : vector<1x13x13xf32> to vector<13x13xf32>
    %cst_49 = arith.constant dense<0.000000e+00> : vector<13x4096xf32>
    %76 = tpu.matmul %75, %73, %cst_49 {dimension_numbers = #tpu.dot_dimension_numbers<[1], [0], [0], [1], [0, 0, 1, 1], [], []>} : vector<13x13xf32>, vector<13x4096xf32>, vector<13x4096xf32> -> vector<13x4096xf32>
    %cst_50 = arith.constant 0.000000e+00 : f32
    %77 = vector.broadcast %cst_50 : f32 to vector<13x4096xf32>
    %78 = arith.cmpf ogt, %76, %77 : vector<13x4096xf32>
    %cst_51 = arith.constant 0.00999999977 : f32
    %79 = vector.broadcast %cst_51 : f32 to vector<13x4096xf32>
    %80 = arith.mulf %79, %76 : vector<13x4096xf32>
    %81 = arith.select %78, %76, %80 : vector<13x4096xi1>, vector<13x4096xf32>
    %c10 = arith.constant 10 : index
    %c0_52 = arith.constant 0 : index
    %c0_53 = arith.constant 0 : index
    %82 = vector.load %arg2[%c10, %c0_52, %c0_53] : memref<15x13x13xf32, #tpu.memory_space<vmem>>, vector<1x13x13xf32>
    %83 = vector.shape_cast %82 : vector<1x13x13xf32> to vector<13x13xf32>
    %cst_54 = arith.constant dense<0.000000e+00> : vector<13x4096xf32>
    %84 = tpu.matmul %83, %81, %cst_54 {dimension_numbers = #tpu.dot_dimension_numbers<[1], [0], [0], [1], [0, 0, 1, 1], [], []>} : vector<13x13xf32>, vector<13x4096xf32>, vector<13x4096xf32> -> vector<13x4096xf32>
    %cst_55 = arith.constant 0.000000e+00 : f32
    %85 = vector.broadcast %cst_55 : f32 to vector<13x4096xf32>
    %86 = arith.cmpf ogt, %84, %85 : vector<13x4096xf32>
    %cst_56 = arith.constant 0.00999999977 : f32
    %87 = vector.broadcast %cst_56 : f32 to vector<13x4096xf32>
    %88 = arith.mulf %87, %84 : vector<13x4096xf32>
    %89 = arith.select %86, %84, %88 : vector<13x4096xi1>, vector<13x4096xf32>
    %c11 = arith.constant 11 : index
    %c0_57 = arith.constant 0 : index
    %c0_58 = arith.constant 0 : index
    %90 = vector.load %arg2[%c11, %c0_57, %c0_58] : memref<15x13x13xf32, #tpu.memory_space<vmem>>, vector<1x13x13xf32>
    %91 = vector.shape_cast %90 : vector<1x13x13xf32> to vector<13x13xf32>
    %cst_59 = arith.constant dense<0.000000e+00> : vector<13x4096xf32>
    %92 = tpu.matmul %91, %89, %cst_59 {dimension_numbers = #tpu.dot_dimension_numbers<[1], [0], [0], [1], [0, 0, 1, 1], [], []>} : vector<13x13xf32>, vector<13x4096xf32>, vector<13x4096xf32> -> vector<13x4096xf32>
    %cst_60 = arith.constant 0.000000e+00 : f32
    %93 = vector.broadcast %cst_60 : f32 to vector<13x4096xf32>
    %94 = arith.cmpf ogt, %92, %93 : vector<13x4096xf32>
    %cst_61 = arith.constant 0.00999999977 : f32
    %95 = vector.broadcast %cst_61 : f32 to vector<13x4096xf32>
    %96 = arith.mulf %95, %92 : vector<13x4096xf32>
    %97 = arith.select %94, %92, %96 : vector<13x4096xi1>, vector<13x4096xf32>
    %c12 = arith.constant 12 : index
    %c0_62 = arith.constant 0 : index
    %c0_63 = arith.constant 0 : index
    %98 = vector.load %arg2[%c12, %c0_62, %c0_63] : memref<15x13x13xf32, #tpu.memory_space<vmem>>, vector<1x13x13xf32>
    %99 = vector.shape_cast %98 : vector<1x13x13xf32> to vector<13x13xf32>
    %cst_64 = arith.constant dense<0.000000e+00> : vector<13x4096xf32>
    %100 = tpu.matmul %99, %97, %cst_64 {dimension_numbers = #tpu.dot_dimension_numbers<[1], [0], [0], [1], [0, 0, 1, 1], [], []>} : vector<13x13xf32>, vector<13x4096xf32>, vector<13x4096xf32> -> vector<13x4096xf32>
    %cst_65 = arith.constant 0.000000e+00 : f32
    %101 = vector.broadcast %cst_65 : f32 to vector<13x4096xf32>
    %102 = arith.cmpf ogt, %100, %101 : vector<13x4096xf32>
    %cst_66 = arith.constant 0.00999999977 : f32
    %103 = vector.broadcast %cst_66 : f32 to vector<13x4096xf32>
    %104 = arith.mulf %103, %100 : vector<13x4096xf32>
    %105 = arith.select %102, %100, %104 : vector<13x4096xi1>, vector<13x4096xf32>
    %c13_67 = arith.constant 13 : index
    %c0_68 = arith.constant 0 : index
    %c0_69 = arith.constant 0 : index
    %106 = vector.load %arg2[%c13_67, %c0_68, %c0_69] : memref<15x13x13xf32, #tpu.memory_space<vmem>>, vector<1x13x13xf32>
    %107 = vector.shape_cast %106 : vector<1x13x13xf32> to vector<13x13xf32>
    %cst_70 = arith.constant dense<0.000000e+00> : vector<13x4096xf32>
    %108 = tpu.matmul %107, %105, %cst_70 {dimension_numbers = #tpu.dot_dimension_numbers<[1], [0], [0], [1], [0, 0, 1, 1], [], []>} : vector<13x13xf32>, vector<13x4096xf32>, vector<13x4096xf32> -> vector<13x4096xf32>
    %cst_71 = arith.constant 0.000000e+00 : f32
    %109 = vector.broadcast %cst_71 : f32 to vector<13x4096xf32>
    %110 = arith.cmpf ogt, %108, %109 : vector<13x4096xf32>
    %cst_72 = arith.constant 0.00999999977 : f32
    %111 = vector.broadcast %cst_72 : f32 to vector<13x4096xf32>
    %112 = arith.mulf %111, %108 : vector<13x4096xf32>
    %113 = arith.select %110, %108, %112 : vector<13x4096xi1>, vector<13x4096xf32>
    %c14 = arith.constant 14 : index
    %c0_73 = arith.constant 0 : index
    %c0_74 = arith.constant 0 : index
    %114 = vector.load %arg2[%c14, %c0_73, %c0_74] : memref<15x13x13xf32, #tpu.memory_space<vmem>>, vector<1x13x13xf32>
    %115 = vector.shape_cast %114 : vector<1x13x13xf32> to vector<13x13xf32>
    %cst_75 = arith.constant dense<0.000000e+00> : vector<13x4096xf32>
    %116 = tpu.matmul %115, %113, %cst_75 {dimension_numbers = #tpu.dot_dimension_numbers<[1], [0], [0], [1], [0, 0, 1, 1], [], []>} : vector<13x13xf32>, vector<13x4096xf32>, vector<13x4096xf32> -> vector<13x4096xf32>
    %cst_76 = arith.constant 0.000000e+00 : f32
    %117 = vector.broadcast %cst_76 : f32 to vector<13x4096xf32>
    %118 = arith.cmpf ogt, %116, %117 : vector<13x4096xf32>
    %cst_77 = arith.constant 0.00999999977 : f32
    %119 = vector.broadcast %cst_77 : f32 to vector<13x4096xf32>
    %120 = arith.mulf %119, %116 : vector<13x4096xf32>
    %121 = arith.select %118, %116, %120 : vector<13x4096xi1>, vector<13x4096xf32>
    %c0_78 = arith.constant 0 : index
    %c0_79 = arith.constant 0 : index
    %122 = vector.load %arg3[%c0_78, %c0_79] : memref<1x13xf32, #tpu.memory_space<vmem>>, vector<1x13xf32>
    %cst_80 = arith.constant dense<0.000000e+00> : vector<1x4096xf32>
    %123 = tpu.matmul %122, %121, %cst_80 {dimension_numbers = #tpu.dot_dimension_numbers<[1], [0], [0], [1], [0, 0, 1, 1], [], []>} : vector<1x13xf32>, vector<13x4096xf32>, vector<1x4096xf32> -> vector<1x4096xf32>
    %cst_81 = arith.constant -1.000000e+00 : f32
    %cst_82 = arith.constant 1.000000e+00 : f32
    %124 = vector.broadcast %cst_81 : f32 to vector<1x4096xf32>
    %125 = arith.maximumf %124, %123 : vector<1x4096xf32>
    %126 = vector.broadcast %cst_82 : f32 to vector<1x4096xf32>
    %127 = arith.minimumf %126, %125 : vector<1x4096xf32>
    %128 = arith.subf %1, %127 : vector<1x4096xf32>
    %cst_83 = arith.constant 1.000000e+00 : f32
    %129 = vector.broadcast %cst_83 : f32 to vector<1x4096xf32>
    %130 = arith.addf %128, %129 : vector<1x4096xf32>
    %cst_84 = arith.constant 2.000000e+00 : f32
    %131 = vector.broadcast %cst_84 : f32 to vector<1x4096xf32>
    %132 = arith.remf %130, %131 : vector<1x4096xf32>
    %cst_85 = arith.constant 1.000000e+00 : f32
    %133 = vector.broadcast %cst_85 : f32 to vector<1x4096xf32>
    %134 = arith.subf %132, %133 : vector<1x4096xf32>
    %c0_86 = arith.constant 0 : index
    %c0_87 = arith.constant 0 : index
    %135 = vector.load %arg4[%c0_86, %c0_87] : memref<1x4096xf32, #tpu.memory_space<vmem>>, vector<1x4096xf32>
    tpu.vector_store %arg4[%c0_86, %c0_87], %134 {strides = array<i32>} : memref<1x4096xf32, #tpu.memory_space<vmem>>, vector<1x4096xf32>,
    return
  }
  func.func @transform_0(%arg0: i32) -> (i32, i32) {
    %c0_i32 = arith.constant 0 : i32
    %c0_i32_0 = arith.constant 0 : i32
    return %c0_i32, %arg0 : i32, i32
  }
  func.func @transform_1(%arg0: i32) -> (i32, i32, i32) {
    %c0_i32 = arith.constant 0 : i32
    %c0_i32_0 = arith.constant 0 : i32
    %c0_i32_1 = arith.constant 0 : i32
    %c0_i32_2 = arith.constant 0 : i32
    return %c0_i32, %c0_i32_0, %c0_i32_1 : i32, i32, i32
  }
  func.func @transform_2(%arg0: i32) -> (i32, i32) {
    %c0_i32 = arith.constant 0 : i32
    %c0_i32_0 = arith.constant 0 : i32
    %c0_i32_1 = arith.constant 0 : i32
    return %c0_i32, %c0_i32_0 : i32, i32
  }
  func.func @transform_3(%arg0: i32) -> (i32, i32) {
    %c0_i32 = arith.constant 0 : i32
    %c0_i32_0 = arith.constant 0 : i32
    return %c0_i32, %arg0 : i32, i32
  }
}

</mosaic_0001>

<bundles_post_ra>
// kernel: _forward_fn.1
= control target key start
LH: loop header
LB: loop body
LE: loop exit
PB: predicated region body
PF: predicated region fallthrough
CT: control target
= control target key end

     0   :  { %vm103_vm0 = vcmask 1044480   ;;  %vm96_vm1 = vcmask 105472   ;;  %s21285_s0 = inlined_call_operand.vmem [shape: f32[14,4096], index: 0, kind: input, shape index: {}]   ;;  %s21286_s1 = inlined_call_operand.vmem [shape: f32[15,13,13], index: 1, kind: input, shape index: {}]   ;;  %s21287_s2 = inlined_call_operand.vmem [shape: f32[1,13], index: 2, kind: input, shape index: {}]   ;;  %s21288_s3 = inlined_call_operand.vmem [shape: f32[1,4096], index: 3, kind: output, shape index: {}]  }
   0x1   :  { %v48_v0 = vld [vmem:[%s21285_s0 + $0x110] sm:$0x1f]  ;;  %v49_v1 = vld [vmem:[%s21285_s0 + $0x118] sm:$0x1f]  ;;  %v18198_v4 = vld [vmem:[%s21286_s1] sm:$0xff] }
   0x2   :  { %v16_v2 = vld [vmem:[%s21285_s0 + $0x10] sm:$0xff]  ;;  %16595 = vmatpush.msk.msra.mxu2 %vm103_vm0, %v48_v0  ;;  %16598 = vmatpush.msk.msra.mxu3 %vm103_vm0, %v49_v1  ;;  %v17_v3 = vld [vmem:[%s21285_s0 + $0x18] sm:$0xff]  ;;  %v18235_v13 = vld [vmem:[%s21286_s1 + $0x8] sm:$0x1f] }
   0x3   :  { %v52_v5 = vld [vmem:[%s21285_s0 + $0x130] sm:$0x1f]  ;;  %v53_v6 = vld [vmem:[%s21285_s0 + $0x138] sm:$0x1f]  ;;  %v46_v26 = vld [vmem:[%s21285_s0 + $0x100] sm:$0x1f] }
   0x4   :  { %261 = vmatpush.msra.mxu2 %v16_v2  ;;  %284 = vmatpush.msra.mxu3 %v17_v3  ;;  %v20_v7 = vld [vmem:[%s21285_s0 + $0x30] sm:$0xff]  ;;  %v21_v8 = vld [vmem:[%s21285_s0 + $0x38] sm:$0xff]  ;;  %v47_v27 = vld [vmem:[%s21285_s0 + $0x108] sm:$0x1f] }
   0x5   :  { %16596 = vmatmul.msk.f32.vlgmr.msra.gmra.mxu2 %vm96_vm1, %v18198_v4  ;;  %16599 = vmatmul.msk.f32.vlgmr.msra.gmra.mxu3 %vm96_vm1, %v18198_v4  ;;  %v56_v9 = vld [vmem:[%s21285_s0 + $0x150] sm:$0x1f]  ;;  %v57_v10 = vld [vmem:[%s21285_s0 + $0x158] sm:$0x1f]  ;;  %v14_v28 = vld [vmem:[%s21285_s0] sm:$0xff] }
   0x6   :  { %16607 = vmatpush.msk.msrb.mxu2 %vm103_vm0, %v52_v5  ;;  %16610 = vmatpush.msk.msrb.mxu3 %vm103_vm0, %v53_v6  ;;  %v24_v11 = vld [vmem:[%s21285_s0 + $0x50] sm:$0xff]  ;;  %v25_v12 = vld [vmem:[%s21285_s0 + $0x58] sm:$0xff]  ;;  %v15_v29 = vld [vmem:[%s21285_s0 + $0x8] sm:$0xff] }
   0x7   :  { %v60_v14 = vld [vmem:[%s21285_s0 + $0x170] sm:$0x1f]  ;;  %v61_v15 = vld [vmem:[%s21285_s0 + $0x178] sm:$0x1f]  ;;  %16589 = vmatpush.msk.msra.mxu0 %vm103_vm0, %v46_v26  ;;  %16592 = vmatpush.msk.msra.mxu1 %vm103_vm0, %v47_v27  ;;  %v50_v34 = vld [vmem:[%s21285_s0 + $0x120] sm:$0x1f] }
   0x8   :  { %353 = vmatpush.msrb.mxu2 %v20_v7  ;;  %376 = vmatpush.msrb.mxu3 %v21_v8  ;;  %v28_v16 = vld [vmem:[%s21285_s0 + $0x70] sm:$0xff]  ;;  %v29_v17 = vld [vmem:[%s21285_s0 + $0x78] sm:$0xff]  ;;  %v51_v35 = vld [vmem:[%s21285_s0 + $0x128] sm:$0x1f] }
   0x9   :  { %v64_v18 = vld [vmem:[%s21285_s0 + $0x190] sm:$0x1f]  ;;  %v65_v19 = vld [vmem:[%s21285_s0 + $0x198] sm:$0x1f]  ;;  %215 = vmatpush.msra.mxu0 %v14_v28  ;;  %238 = vmatpush.msra.mxu1 %v15_v29  ;;  %v18_v36 = vld [vmem:[%s21285_s0 + $0x20] sm:$0xff] }
   0xa   :  { %16619 = vmatpush.msk.msra.mxu2 %vm103_vm0, %v56_v9  ;;  %16622 = vmatpush.msk.msra.mxu3 %vm103_vm0, %v57_v10  ;;  %v32_v20 = vld [vmem:[%s21285_s0 + $0x90] sm:$0xff]  ;;  %v33_v21 = vld [vmem:[%s21285_s0 + $0x98] sm:$0xff]  ;;  %v19_v37 = vld [vmem:[%s21285_s0 + $0x28] sm:$0xff] }
   0xb   :  { %v68_v22 = vld [vmem:[%s21285_s0 + $0x1b0] sm:$0x1f]  ;;  %v69_v23 = vld [vmem:[%s21285_s0 + $0x1b8] sm:$0x1f]  ;;  %16590 = vmatmul.msk.f32.vlgmr.msra.gmra.mxu0 %vm96_vm1, %v18198_v4  ;;  %16593 = vmatmul.msk.f32.vlgmr.msra.gmra.mxu1 %vm96_vm1, %v18198_v4  ;;  %v54_v42 = vld [vmem:[%s21285_s0 + $0x140] sm:$0x1f] }
   0xc   :  { %445 = vmatpush.msra.mxu2 %v24_v11  ;;  %468 = vmatpush.msra.mxu3 %v25_v12  ;;  %v36_v24 = vld [vmem:[%s21285_s0 + $0xb0] sm:$0xff]  ;;  %v37_v25 = vld [vmem:[%s21285_s0 + $0xb8] sm:$0xff]  ;;  %v55_v43 = vld [vmem:[%s21285_s0 + $0x148] sm:$0x1f] }
   0xd   :  { %16597 = vmatmul.msk.f32.gmra.mxu2 %vm96_vm1, %v18235_v13  ;;  %16600 = vmatmul.msk.f32.gmra.mxu3 %vm96_vm1, %v18235_v13  ;;  %v72_v30 = vld [vmem:[%s21285_s0 + $0x1d0] sm:$0x1f]  ;;  %v73_v31 = vld [vmem:[%s21285_s0 + $0x1d8] sm:$0x1f]  ;;  %v22_v44 = vld [vmem:[%s21285_s0 + $0x40] sm:$0xff] }
   0xe   :  { %v40_v32 = vld [vmem:[%s21285_s0 + $0xd0] sm:$0xff]  ;;  %v41_v33 = vld [vmem:[%s21285_s0 + $0xd8] sm:$0xff]  ;;  %16601 = vmatpush.msk.msrb.mxu0 %vm103_vm0, %v50_v34  ;;  %16604 = vmatpush.msk.msrb.mxu1 %vm103_vm0, %v51_v35  ;;  %v23_v45 = vld [vmem:[%s21285_s0 + $0x48] sm:$0xff] }
   0xf   :  { %v76_v38 = vld [vmem:[%s21285_s0 + $0x1f0] sm:$0x1f]  ;;  %v77_v39 = vld [vmem:[%s21285_s0 + $0x1f8] sm:$0x1f]  ;;  %v58_v46 = vld [vmem:[%s21285_s0 + $0x160] sm:$0x1f] }
  0x10   :  { %307 = vmatpush.msrb.mxu0 %v18_v36  ;;  %330 = vmatpush.msrb.mxu1 %v19_v37  ;;  %v44_v40 = vld [vmem:[%s21285_s0 + $0xf0] sm:$0xff]  ;;  %v45_v41 = vld [vmem:[%s21285_s0 + $0xf8] sm:$0xff]  ;;  %v59_v47 = vld [vmem:[%s21285_s0 + $0x168] sm:$0x1f] }
  0x11   :  { %v26_v48 = vld [vmem:[%s21285_s0 + $0x60] sm:$0xff]  ;;  %v27_v49 = vld [vmem:[%s21285_s0 + $0x68] sm:$0xff]  ;;  %v18504_v5 = vld [vmem:[%s21286_s1 + $0x10] sm:$0xff] }
  0x12   :  { %16613 = vmatpush.msk.msra.mxu0 %vm103_vm0, %v54_v42  ;;  %16616 = vmatpush.msk.msra.mxu1 %vm103_vm0, %v55_v43  ;;  %v62_v50 = vld [vmem:[%s21285_s0 + $0x180] sm:$0x1f]  ;;  %v63_v51 = vld [vmem:[%s21285_s0 + $0x188] sm:$0x1f] }
  0x13   :  { %16591 = vmatmul.msk.f32.gmra.mxu0 %vm96_vm1, %v18235_v13  ;;  %16594 = vmatmul.msk.f32.gmra.mxu1 %vm96_vm1, %v18235_v13  ;;  %v30_v52 = vld [vmem:[%s21285_s0 + $0x80] sm:$0xff]  ;;  %v31_v53 = vld [vmem:[%s21285_s0 + $0x88] sm:$0xff] }
  0x14   :  { %399 = vmatpush.msra.mxu0 %v22_v44  ;;  %422 = vmatpush.msra.mxu1 %v23_v45  ;;  %v66_v54 = vld [vmem:[%s21285_s0 + $0x1a0] sm:$0x1f]  ;;  %v67_v55 = vld [vmem:[%s21285_s0 + $0x1a8] sm:$0x1f] }
  0x15   :  { %16608 = vmatmul.msk.f32.vlgmr.msrb.gmra.mxu2 %vm96_vm1, %v18198_v4  ;;  %16611 = vmatmul.msk.f32.vlgmr.msrb.gmra.mxu3 %vm96_vm1, %v18198_v4  ;;  %v34_v56 = vld [vmem:[%s21285_s0 + $0xa0] sm:$0xff]  ;;  %v35_v57 = vld [vmem:[%s21285_s0 + $0xa8] sm:$0xff] }
  0x16   :  { %16631 = vmatpush.msk.msrb.mxu2 %vm103_vm0, %v60_v14  ;;  %16634 = vmatpush.msk.msrb.mxu3 %vm103_vm0, %v61_v15  ;;  %v70_v6 = vld [vmem:[%s21285_s0 + $0x1c0] sm:$0x1f]  ;;  %v71_v7 = vld [vmem:[%s21285_s0 + $0x1c8] sm:$0x1f]  ;;  %v18531_v15 = vld [vmem:[%s21286_s1 + $0x18] sm:$0x1f] }
  0x17   :  { %v38_v10 = vld [vmem:[%s21285_s0 + $0xc0] sm:$0xff]  ;;  %v39_v11 = vld [vmem:[%s21285_s0 + $0xc8] sm:$0xff] }
  0x18   :  { %537 = vmatpush.msrb.mxu2 %v28_v16  ;;  %560 = vmatpush.msrb.mxu3 %v29_v17  ;;  %v42_v28 = vld [vmem:[%s21285_s0 + $0xe0] sm:$0xff]  ;;  %v43_v29 = vld [vmem:[%s21285_s0 + $0xe8] sm:$0xff] }
  0x1b   :  { %16602 = vmatmul.msk.f32.vlgmr.msrb.gmra.mxu0 %vm96_vm1, %v18198_v4  ;;  %16605 = vmatmul.msk.f32.vlgmr.msrb.gmra.mxu1 %vm96_vm1, %v18198_v4 }
  0x1c   :  { %16625 = vmatpush.msk.msrb.mxu0 %vm103_vm0, %v58_v46  ;;  %16628 = vmatpush.msk.msrb.mxu1 %vm103_vm0, %v59_v47 }
  0x1d   :  { %16609 = vmatmul.msk.f32.gmra.mxu2 %vm96_vm1, %v18235_v13  ;;  %16612 = vmatmul.msk.f32.gmra.mxu3 %vm96_vm1, %v18235_v13 }
  0x1e   :  { %491 = vmatpush.msrb.mxu0 %v26_v48  ;;  %514 = vmatpush.msrb.mxu1 %v27_v49 }
  0x23   :  { %16603 = vmatmul.msk.f32.gmra.mxu0 %vm96_vm1, %v18235_v13  ;;  %16606 = vmatmul.msk.f32.gmra.mxu1 %vm96_vm1, %v18235_v13 }
  0x25   :  { %16620 = vmatmul.msk.f32.vlgmr.msra.gmra.mxu2 %vm96_vm1, %v18198_v4  ;;  %16623 = vmatmul.msk.f32.vlgmr.msra.gmra.mxu3 %vm96_vm1, %v18198_v4 }
  0x26   :  { %16643 = vmatpush.msk.msra.mxu2 %vm103_vm0, %v64_v18  ;;  %16646 = vmatpush.msk.msra.mxu3 %vm103_vm0, %v65_v19 }
  0x28   :  { %629 = vmatpush.msra.mxu2 %v32_v20  ;;  %652 = vmatpush.msra.mxu3 %v33_v21 }
  0x2b   :  { %16614 = vmatmul.msk.f32.vlgmr.msra.gmra.mxu0 %vm96_vm1, %v18198_v4  ;;  %16617 = vmatmul.msk.f32.vlgmr.msra.gmra.mxu1 %vm96_vm1, %v18198_v4 }
  0x2c   :  { %16637 = vmatpush.msk.msra.mxu0 %vm103_vm0, %v62_v50  ;;  %16640 = vmatpush.msk.msra.mxu1 %vm103_vm0, %v63_v51 }
  0x2d   :  { %16621 = vmatmul.msk.f32.gmra.mxu2 %vm96_vm1, %v18235_v13  ;;  %16624 = vmatmul.msk.f32.gmra.mxu3 %vm96_vm1, %v18235_v13 }
  0x2e   :  { %583 = vmatpush.msra.mxu0 %v30_v52  ;;  %606 = vmatpush.msra.mxu1 %v31_v53 }
  0x33   :  { %16615 = vmatmul.msk.f32.gmra.mxu0 %vm96_vm1, %v18235_v13  ;;  %16618 = vmatmul.msk.f32.gmra.mxu1 %vm96_vm1, %v18235_v13 }
  0x35   :  { %16632 = vmatmul.msk.f32.vlgmr.msrb.gmra.mxu2 %vm96_vm1, %v18198_v4  ;;  %16635 = vmatmul.msk.f32.vlgmr.msrb.gmra.mxu3 %vm96_vm1, %v18198_v4 }
  0x36   :  { %16655 = vmatpush.msk.msrb.mxu2 %vm103_vm0, %v68_v22  ;;  %16658 = vmatpush.msk.msrb.mxu3 %vm103_vm0, %v69_v23 }
  0x38   :  { %721 = vmatpush.msrb.mxu2 %v36_v24  ;;  %744 = vmatpush.msrb.mxu3 %v37_v25  ;;  %v74_v24 = vld [vmem:[%s21285_s0 + $0x1e0] sm:$0x1f]  ;;  %v75_v25 = vld [vmem:[%s21285_s0 + $0x1e8] sm:$0x1f] }
  0x3b   :  { %16626 = vmatmul.msk.f32.vlgmr.msrb.gmra.mxu0 %vm96_vm1, %v18198_v4  ;;  %16629 = vmatmul.msk.f32.vlgmr.msrb.gmra.mxu1 %vm96_vm1, %v18198_v4 }
  0x3c   :  { %16649 = vmatpush.msk.msrb.mxu0 %vm103_vm0, %v66_v54  ;;  %16652 = vmatpush.msk.msrb.mxu1 %vm103_vm0, %v67_v55 }
  0x3d   :  { %16633 = vmatmul.msk.f32.gmra.mxu2 %vm96_vm1, %v18235_v13  ;;  %16636 = vmatmul.msk.f32.gmra.mxu3 %vm96_vm1, %v18235_v13 }
  0x3e   :  { %675 = vmatpush.msrb.mxu0 %v34_v56  ;;  %698 = vmatpush.msrb.mxu1 %v35_v57 }
  0x43   :  { %16627 = vmatmul.msk.f32.gmra.mxu0 %vm96_vm1, %v18235_v13  ;;  %16630 = vmatmul.msk.f32.gmra.mxu1 %vm96_vm1, %v18235_v13 }
  0x45   :  { %16644 = vmatmul.msk.f32.vlgmr.msra.gmra.mxu2 %vm96_vm1, %v18198_v4  ;;  %16647 = vmatmul.msk.f32.vlgmr.msra.gmra.mxu3 %vm96_vm1, %v18198_v4 }
  0x46   :  { %16667 = vmatpush.msk.msra.mxu2 %vm103_vm0, %v72_v30  ;;  %16670 = vmatpush.msk.msra.mxu3 %vm103_vm0, %v73_v31 }
  0x48   :  { %813 = vmatpush.msra.mxu2 %v40_v32  ;;  %836 = vmatpush.msra.mxu3 %v41_v33 }
  0x4b   :  { %16638 = vmatmul.msk.f32.vlgmr.msra.gmra.mxu0 %vm96_vm1, %v18198_v4  ;;  %16641 = vmatmul.msk.f32.vlgmr.msra.gmra.mxu1 %vm96_vm1, %v18198_v4 }
  0x4c   :  { %16661 = vmatpush.msk.msra.mxu0 %vm103_vm0, %v70_v6  ;;  %16664 = vmatpush.msk.msra.mxu1 %vm103_vm0, %v71_v7 }
  0x4d   :  { %16645 = vmatmul.msk.f32.gmra.mxu2 %vm96_vm1, %v18235_v13  ;;  %16648 = vmatmul.msk.f32.gmra.mxu3 %vm96_vm1, %v18235_v13 }
  0x4e   :  { %767 = vmatpush.msra.mxu0 %v38_v10  ;;  %790 = vmatpush.msra.mxu1 %v39_v11 }
  0x53   :  { %16639 = vmatmul.msk.f32.gmra.mxu0 %vm96_vm1, %v18235_v13  ;;  %16642 = vmatmul.msk.f32.gmra.mxu1 %vm96_vm1, %v18235_v13 }
  0x55   :  { %16656 = vmatmul.msk.f32.vlgmr.msrb.gmra.mxu2 %vm96_vm1, %v18198_v4  ;;  %16659 = vmatmul.msk.f32.vlgmr.msrb.gmra.mxu3 %vm96_vm1, %v18198_v4 }
  0x56   :  { %16679 = vmatpush.msk.msrb.mxu2 %vm103_vm0, %v76_v38  ;;  %16682 = vmatpush.msk.msrb.mxu3 %vm103_vm0, %v77_v39 }
  0x58   :  { %905 = vmatpush.msrb.mxu2 %v44_v40  ;;  %928 = vmatpush.msrb.mxu3 %v45_v41 }
  0x5b   :  { %16650 = vmatmul.msk.f32.vlgmr.msrb.gmra.mxu0 %vm96_vm1, %v18198_v4  ;;  %16653 = vmatmul.msk.f32.vlgmr.msrb.gmra.mxu1 %vm96_vm1, %v18198_v4 }
  0x5c   :  { %16673 = vmatpush.msk.msrb.mxu0 %vm103_vm0, %v74_v24  ;;  %16676 = vmatpush.msk.msrb.mxu1 %vm103_vm0, %v75_v25 }
  0x5d   :  { %16657 = vmatmul.msk.f32.gmra.mxu2 %vm96_vm1, %v18235_v13  ;;  %16660 = vmatmul.msk.f32.gmra.mxu3 %vm96_vm1, %v18235_v13 }
  0x5e   :  { %859 = vmatpush.msrb.mxu0 %v42_v28  ;;  %882 = vmatpush.msrb.mxu1 %v43_v29 }
  0x63   :  { %16651 = vmatmul.msk.f32.gmra.mxu0 %vm96_vm1, %v18235_v13  ;;  %16654 = vmatmul.msk.f32.gmra.mxu1 %vm96_vm1, %v18235_v13 }
  0x65   :  { %16668 = vmatmul.msk.f32.vlgmr.msra.gmra.mxu2 %vm96_vm1, %v18198_v4  ;;  %16671 = vmatmul.msk.f32.vlgmr.msra.gmra.mxu3 %vm96_vm1, %v18198_v4 }
  0x6b   :  { %16662 = vmatmul.msk.f32.vlgmr.msra.gmra.mxu0 %vm96_vm1, %v18198_v4  ;;  %16665 = vmatmul.msk.f32.vlgmr.msra.gmra.mxu1 %vm96_vm1, %v18198_v4 }
  0x6d   :  { %16669 = vmatmul.msk.f32.gmra.mxu2 %vm96_vm1, %v18235_v13  ;;  %16672 = vmatmul.msk.f32.gmra.mxu3 %vm96_vm1, %v18235_v13 }
  0x73   :  { %16663 = vmatmul.msk.f32.gmra.mxu0 %vm96_vm1, %v18235_v13  ;;  %16666 = vmatmul.msk.f32.gmra.mxu1 %vm96_vm1, %v18235_v13 }
  0x75   :  { %16680 = vmatmul.msk.f32.vlgmr.msrb.gmra.mxu2 %vm96_vm1, %v18198_v4  ;;  %16683 = vmatmul.msk.f32.vlgmr.msrb.gmra.mxu3 %vm96_vm1, %v18198_v4 }
  0x7b   :  { %16674 = vmatmul.msk.f32.vlgmr.msrb.gmra.mxu0 %vm96_vm1, %v18198_v4  ;;  %16677 = vmatmul.msk.f32.vlgmr.msrb.gmra.mxu1 %vm96_vm1, %v18198_v4 }
  0x7d   :  { %16681 = vmatmul.msk.f32.gmra.mxu2 %vm96_vm1, %v18235_v13  ;;  %16684 = vmatmul.msk.f32.gmra.mxu3 %vm96_vm1, %v18235_v13 }
  0x83   :  { %16675 = vmatmul.msk.f32.gmra.mxu0 %vm96_vm1, %v18235_v13  ;;  %16678 = vmatmul.msk.f32.gmra.mxu1 %vm96_vm1, %v18235_v13 }
  0x88   :  { %v263_v58 = vpop.f32.mrf.mxu2  ;;  %v286_v59 = vpop.f32.mrf.mxu3 }
  0x89   :  { %v1002_v60 = vmul.f32 0.01, %v263_v58  ;;  %v1003_v61 = vmul.f32 0.01, %v286_v59  ;;  %vm938_vm4 = vcmp.gt.f32.partialorder %v263_v58, 0.0  ;;  %vm939_vm5 = vcmp.gt.f32.partialorder %v286_v59, 0.0  ;;  %v217_v41 = vpop.f32.mrf.mxu0  ;;  %v240_v42 = vpop.f32.mrf.mxu1 }
  0x8a   :  { %v1000_v44 = vmul.f32 0.01, %v217_v41  ;;  %v1001_v45 = vmul.f32 0.01, %v240_v42 }
  0x8b   :  { %v1066_v8 = vsel %vm938_vm4, %v263_v58, %v1002_v60  ;;  %v1067_v9 = vsel %vm939_vm5, %v286_v59, %v1003_v61 }
  0x90   :  { %v266_v62 = vpop.f32.mrf.mxu2  ;;  %v289_v63 = vpop.f32.mrf.mxu3 }
  0x91   :  { %vm970_vm2 = vcmp.gt.f32.partialorder %v266_v62, 0.0  ;;  %v1034_v0 = vmul.f32 0.01, %v266_v62  ;;  %vm971_vm3 = vcmp.gt.f32.partialorder %v289_v63, 0.0  ;;  %v1035_v1 = vmul.f32 0.01, %v289_v63  ;;  %v220_v48 = vpop.f32.mrf.mxu0  ;;  %v243_v49 = vpop.f32.mrf.mxu1 }
  0x92   :  { %v1032_v52 = vmul.f32 0.01, %v220_v48  ;;  %v1033_v53 = vmul.f32 0.01, %v243_v49 }
  0x93   :  { %v1098_v2 = vsel %vm970_vm2, %v266_v62, %v1034_v0  ;;  %v1099_v3 = vsel %vm971_vm3, %v289_v63, %v1035_v1  ;;  %vm968_vm2 = vcmp.gt.f32.partialorder %v220_v48, 0.0  ;;  %vm969_vm3 = vcmp.gt.f32.partialorder %v243_v49, 0.0 }
  0x94   :  { %16693 = vmatpush.msk.msra.mxu2 %vm103_vm0, %v1098_v2  ;;  %16696 = vmatpush.msk.msra.mxu3 %vm103_vm0, %v1099_v3  ;;  %v1096_v56 = vsel %vm968_vm2, %v220_v48, %v1032_v52  ;;  %v1097_v57 = vsel %vm969_vm3, %v243_v49, %v1033_v53 }
  0x95   :  { %16687 = vmatpush.msk.msra.mxu0 %vm103_vm0, %v1096_v56  ;;  %16690 = vmatpush.msk.msra.mxu1 %vm103_vm0, %v1097_v57 }
  0x96   :  { %1294 = vmatpush.msra.mxu2 %v1066_v8  ;;  %1317 = vmatpush.msra.mxu3 %v1067_v9 }
  0x97   :  { %16694 = vmatmul.msk.f32.vlgmr.msra.gmra.mxu2 %vm96_vm1, %v18504_v5  ;;  %16697 = vmatmul.msk.f32.vlgmr.msra.gmra.mxu3 %vm96_vm1, %v18504_v5 }
  0x98   :  { %v355_v12 = vpop.f32.mrf.mxu2  ;;  %v378_v14 = vpop.f32.mrf.mxu3 }
  0x99   :  { %v1006_v16 = vmul.f32 0.01, %v355_v12  ;;  %v1007_v17 = vmul.f32 0.01, %v378_v14  ;;  %vm942_vm8 = vcmp.gt.f32.partialorder %v355_v12, 0.0  ;;  %vm943_vm9 = vcmp.gt.f32.partialorder %v378_v14, 0.0  ;;  %v309_v0 = vpop.f32.mrf.mxu0  ;;  %v332_v1 = vpop.f32.mrf.mxu1 }
  0x9a   :  { %v1004_v6 = vmul.f32 0.01, %v309_v0  ;;  %v1005_v7 = vmul.f32 0.01, %v332_v1 }
  0x9b   :  { %v1070_v26 = vsel %vm942_vm8, %v355_v12, %v1006_v16  ;;  %v1071_v27 = vsel %vm943_vm9, %v378_v14, %v1007_v17 }
  0x9f   :  { %16695 = vmatmul.msk.f32.gmra.mxu2 %vm96_vm1, %v18531_v15  ;;  %16698 = vmatmul.msk.f32.gmra.mxu3 %vm96_vm1, %v18531_v15 }
  0xa0   :  { %v358_v18 = vpop.f32.mrf.mxu2  ;;  %v381_v19 = vpop.f32.mrf.mxu3 }
  0xa1   :  { %vm974_vm6 = vcmp.gt.f32.partialorder %v358_v18, 0.0  ;;  %v1038_v20 = vmul.f32 0.01, %v358_v18  ;;  %vm975_vm7 = vcmp.gt.f32.partialorder %v381_v19, 0.0  ;;  %v1039_v21 = vmul.f32 0.01, %v381_v19  ;;  %v312_v10 = vpop.f32.mrf.mxu0  ;;  %v335_v11 = vpop.f32.mrf.mxu1 }
  0xa2   :  { %v1036_v16 = vmul.f32 0.01, %v312_v10  ;;  %v1037_v17 = vmul.f32 0.01, %v335_v11 }
  0xa3   :  { %v1102_v22 = vsel %vm974_vm6, %v358_v18, %v1038_v20  ;;  %v1103_v23 = vsel %vm975_vm7, %v381_v19, %v1039_v21  ;;  %vm936_vm6 = vcmp.gt.f32.partialorder %v217_v41, 0.0  ;;  %vm937_vm7 = vcmp.gt.f32.partialorder %v240_v42, 0.0 }
  0xa4   :  { %16705 = vmatpush.msk.msrb.mxu2 %vm103_vm0, %v1102_v22  ;;  %16708 = vmatpush.msk.msrb.mxu3 %vm103_vm0, %v1103_v23  ;;  %v1064_v60 = vsel %vm936_vm6, %v217_v41, %v1000_v44  ;;  %v1065_v61 = vsel %vm937_vm7, %v240_v42, %v1001_v45 }
  0xa5   :  { %1248 = vmatpush.msra.mxu0 %v1064_v60  ;;  %1271 = vmatpush.msra.mxu1 %v1065_v61 }
  0xa6   :  { %1386 = vmatpush.msrb.mxu2 %v1070_v26  ;;  %1409 = vmatpush.msrb.mxu3 %v1071_v27 }
  0xa7   :  { %16706 = vmatmul.msk.f32.vlgmr.msrb.gmra.mxu2 %vm96_vm1, %v18504_v5  ;;  %16709 = vmatmul.msk.f32.vlgmr.msrb.gmra.mxu3 %vm96_vm1, %v18504_v5 }
  0xa8   :  { %v447_v30 = vpop.f32.mrf.mxu2  ;;  %v470_v31 = vpop.f32.mrf.mxu3  ;;  %16688 = vmatmul.msk.f32.vlgmr.msra.gmra.mxu0 %vm96_vm1, %v18504_v5  ;;  %16691 = vmatmul.msk.f32.vlgmr.msra.gmra.mxu1 %vm96_vm1, %v18504_v5 }
  0xa9   :  { %v1010_v32 = vmul.f32 0.01, %v447_v30  ;;  %v1011_v33 = vmul.f32 0.01, %v470_v31  ;;  %vm946_vm12 = vcmp.gt.f32.partialorder %v447_v30, 0.0  ;;  %vm947_vm13 = vcmp.gt.f32.partialorder %v470_v31, 0.0  ;;  %v401_v28 = vpop.f32.mrf.mxu0  ;;  %v424_v29 = vpop.f32.mrf.mxu1 }
  0xab   :  { %v1074_v39 = vsel %vm946_vm12, %v447_v30, %v1010_v32  ;;  %v1075_v40 = vsel %vm947_vm13, %v470_v31, %v1011_v33  ;;  %v1008_v32 = vmul.f32 0.01, %v401_v28  ;;  %v1009_v33 = vmul.f32 0.01, %v424_v29 }
  0xaf   :  { %16707 = vmatmul.msk.f32.gmra.mxu2 %vm96_vm1, %v18531_v15  ;;  %16710 = vmatmul.msk.f32.gmra.mxu3 %vm96_vm1, %v18531_v15 }
  0xb0   :  { %v450_v34 = vpop.f32.mrf.mxu2  ;;  %v473_v35 = vpop.f32.mrf.mxu3  ;;  %16689 = vmatmul.msk.f32.gmra.mxu0 %vm96_vm1, %v18531_v15  ;;  %16692 = vmatmul.msk.f32.gmra.mxu1 %vm96_vm1, %v18531_v15 }
  0xb1   :  { %vm978_vm10 = vcmp.gt.f32.partialorder %v450_v34, 0.0  ;;  %v1042_v36 = vmul.f32 0.01, %v450_v34  ;;  %vm979_vm11 = vcmp.gt.f32.partialorder %v473_v35, 0.0  ;;  %v1043_v37 = vmul.f32 0.01, %v473_v35 }
  0xb3   :  { %v1106_v4 = vsel %vm978_vm10, %v450_v34, %v1042_v36  ;;  %v1107_v38 = vsel %vm979_vm11, %v473_v35, %v1043_v37  ;;  %vm972_vm10 = vcmp.gt.f32.partialorder %v312_v10, 0.0  ;;  %vm973_vm11 = vcmp.gt.f32.partialorder %v335_v11, 0.0  ;;  %v404_v36 = vpop.f32.mrf.mxu0  ;;  %v427_v37 = vpop.f32.mrf.mxu1 }
  0xb4   :  { %16717 = vmatpush.msk.msra.mxu2 %vm103_vm0, %v1106_v4  ;;  %16720 = vmatpush.msk.msra.mxu3 %vm103_vm0, %v1107_v38  ;;  %v1100_v20 = vsel %vm972_vm10, %v312_v10, %v1036_v16  ;;  %v1101_v21 = vsel %vm973_vm11, %v335_v11, %v1037_v17 }
  0xb5   :  { %16699 = vmatpush.msk.msrb.mxu0 %vm103_vm0, %v1100_v20  ;;  %16702 = vmatpush.msk.msrb.mxu1 %vm103_vm0, %v1101_v21 }
  0xb6   :  { %1478 = vmatpush.msra.mxu2 %v1074_v39  ;;  %1501 = vmatpush.msra.mxu3 %v1075_v40  ;;  %v1040_v39 = vmul.f32 0.01, %v404_v36  ;;  %v1041_v40 = vmul.f32 0.01, %v427_v37 }
  0xb7   :  { %16718 = vmatmul.msk.f32.vlgmr.msra.gmra.mxu2 %vm96_vm1, %v18504_v5  ;;  %16721 = vmatmul.msk.f32.vlgmr.msra.gmra.mxu3 %vm96_vm1, %v18504_v5 }
  0xb8   :  { %v539_v43 = vpop.f32.mrf.mxu2  ;;  %v562_v13 = vpop.f32.mrf.mxu3 }
  0xb9   :  { %v1014_v46 = vmul.f32 0.01, %v539_v43  ;;  %v1015_v47 = vmul.f32 0.01, %v562_v13  ;;  %vm950_vm14 = vcmp.gt.f32.partialorder %v539_v43, 0.0  ;;  %vm951_vm15 = vcmp.gt.f32.partialorder %v562_v13, 0.0 }
  0xbb   :  { %v1078_v62 = vsel %vm950_vm14, %v539_v43, %v1014_v46  ;;  %v1079_v63 = vsel %vm951_vm15, %v562_v13, %v1015_v47  ;;  %vm940_vm14 = vcmp.gt.f32.partialorder %v309_v0, 0.0  ;;  %vm941_vm15 = vcmp.gt.f32.partialorder %v332_v1, 0.0 }
  0xbc   :  { %v1068_v24 = vsel %vm940_vm14, %v309_v0, %v1004_v6  ;;  %v1069_v25 = vsel %vm941_vm15, %v332_v1, %v1005_v7 }
  0xbd   :  { %1340 = vmatpush.msrb.mxu0 %v1068_v24  ;;  %1363 = vmatpush.msrb.mxu1 %v1069_v25 }
  0xbe   :  { %16700 = vmatmul.msk.f32.vlgmr.msrb.gmra.mxu0 %vm96_vm1, %v18504_v5  ;;  %16703 = vmatmul.msk.f32.vlgmr.msrb.gmra.mxu1 %vm96_vm1, %v18504_v5 }
  0xbf   :  { %16719 = vmatmul.msk.f32.gmra.mxu2 %vm96_vm1, %v18531_v15  ;;  %16722 = vmatmul.msk.f32.gmra.mxu3 %vm96_vm1, %v18531_v15 }
  0xc0   :  { %v542_v50 = vpop.f32.mrf.mxu2  ;;  %v565_v51 = vpop.f32.mrf.mxu3 }
  0xc1   :  { %vm982_vm4 = vcmp.gt.f32.partialorder %v542_v50, 0.0  ;;  %v1046_v54 = vmul.f32 0.01, %v542_v50  ;;  %vm983_vm5 = vcmp.gt.f32.partialorder %v565_v51, 0.0  ;;  %v1047_v55 = vmul.f32 0.01, %v565_v51 }
  0xc3   :  { %v1110_v58 = vsel %vm982_vm4, %v542_v50, %v1046_v54  ;;  %v1111_v59 = vsel %vm983_vm5, %v565_v51, %v1047_v55  ;;  %vm976_vm4 = vcmp.gt.f32.partialorder %v404_v36, 0.0  ;;  %vm977_vm5 = vcmp.gt.f32.partialorder %v427_v37, 0.0  ;;  %v493_v50 = vpop.f32.mrf.mxu0  ;;  %v516_v51 = vpop.f32.mrf.mxu1 }
  0xc4   :  { %16729 = vmatpush.msk.msrb.mxu2 %vm103_vm0, %v1110_v58  ;;  %16732 = vmatpush.msk.msrb.mxu3 %vm103_vm0, %v1111_v59  ;;  %v1104_v43 = vsel %vm976_vm4, %v404_v36, %v1040_v39  ;;  %v1105_v13 = vsel %vm977_vm5, %v427_v37, %v1041_v40  ;;  %v1012_v54 = vmul.f32 0.01, %v493_v50  ;;  %v1013_v57 = vmul.f32 0.01, %v516_v51 }
  0xc5   :  { %16711 = vmatpush.msk.msra.mxu0 %vm103_vm0, %v1104_v43  ;;  %16714 = vmatpush.msk.msra.mxu1 %vm103_vm0, %v1105_v13 }
  0xc6   :  { %1570 = vmatpush.msrb.mxu2 %v1078_v62  ;;  %1593 = vmatpush.msrb.mxu3 %v1079_v63 }
  0xc7   :  { %16730 = vmatmul.msk.f32.vlgmr.msrb.gmra.mxu2 %vm96_vm1, %v18504_v5  ;;  %16733 = vmatmul.msk.f32.vlgmr.msrb.gmra.mxu3 %vm96_vm1, %v18504_v5 }
  0xc8   :  { %v631_v2 = vpop.f32.mrf.mxu2  ;;  %v654_v3 = vpop.f32.mrf.mxu3  ;;  %16701 = vmatmul.msk.f32.gmra.mxu0 %vm96_vm1, %v18531_v15  ;;  %16704 = vmatmul.msk.f32.gmra.mxu1 %vm96_vm1, %v18531_v15 }
  0xc9   :  { %v1018_v8 = vmul.f32 0.01, %v631_v2  ;;  %v1019_v9 = vmul.f32 0.01, %v654_v3  ;;  %vm954_vm8 = vcmp.gt.f32.partialorder %v631_v2, 0.0  ;;  %vm955_vm9 = vcmp.gt.f32.partialorder %v654_v3, 0.0 }
  0xcb   :  { %v1082_v26 = vsel %vm954_vm8, %v631_v2, %v1018_v8  ;;  %v1083_v27 = vsel %vm955_vm9, %v654_v3, %v1019_v9  ;;  %vm944_vm8 = vcmp.gt.f32.partialorder %v401_v28, 0.0  ;;  %vm945_vm9 = vcmp.gt.f32.partialorder %v424_v29, 0.0  ;;  %v496_v58 = vpop.f32.mrf.mxu0  ;;  %v519_v59 = vpop.f32.mrf.mxu1 }
  0xcc   :  { %v1072_v46 = vsel %vm944_vm8, %v401_v28, %v1008_v32  ;;  %v1073_v47 = vsel %vm945_vm9, %v424_v29, %v1009_v33  ;;  %vm980_vm14 = vcmp.gt.f32.partialorder %v496_v58, 0.0  ;;  %v1044_v62 = vmul.f32 0.01, %v496_v58 }
  0xcd   :  { %1432 = vmatpush.msra.mxu0 %v1072_v46  ;;  %1455 = vmatpush.msra.mxu1 %v1073_v47  ;;  %vm981_vm15 = vcmp.gt.f32.partialorder %v519_v59, 0.0  ;;  %v1045_v63 = vmul.f32 0.01, %v519_v59 }
  0xce   :  { %v1108_v2 = vsel %vm980_vm14, %v496_v58, %v1044_v62 }
  0xcf   :  { %16731 = vmatmul.msk.f32.gmra.mxu2 %vm96_vm1, %v18531_v15  ;;  %16734 = vmatmul.msk.f32.gmra.mxu3 %vm96_vm1, %v18531_v15  ;;  %v1109_v3 = vsel %vm981_vm15, %v519_v59, %v1045_v63 }
  0xd0   :  { %v634_v12 = vpop.f32.mrf.mxu2  ;;  %v657_v14 = vpop.f32.mrf.mxu3  ;;  %16712 = vmatmul.msk.f32.vlgmr.msra.gmra.mxu0 %vm96_vm1, %v18504_v5  ;;  %16715 = vmatmul.msk.f32.vlgmr.msra.gmra.mxu1 %vm96_vm1, %v18504_v5 }
  0xd1   :  { %vm986_vm12 = vcmp.gt.f32.partialorder %v634_v12, 0.0  ;;  %v1050_v18 = vmul.f32 0.01, %v634_v12  ;;  %vm987_vm13 = vcmp.gt.f32.partialorder %v657_v14, 0.0  ;;  %v1051_v19 = vmul.f32 0.01, %v657_v14  ;;  %16723 = vmatpush.msk.msrb.mxu0 %vm103_vm0, %v1108_v2  ;;  %16726 = vmatpush.msk.msrb.mxu1 %vm103_vm0, %v1109_v3 }
  0xd3   :  { %v1114_v22 = vsel %vm986_vm12, %v634_v12, %v1050_v18  ;;  %v1115_v23 = vsel %vm987_vm13, %v657_v14, %v1051_v19  ;;  %vm948_vm12 = vcmp.gt.f32.partialorder %v493_v50, 0.0  ;;  %vm949_vm13 = vcmp.gt.f32.partialorder %v516_v51, 0.0  ;;  %v585_v12 = vpop.f32.mrf.mxu0  ;;  %v608_v14 = vpop.f32.mrf.mxu1 }
  0xd4   :  { %16741 = vmatpush.msk.msra.mxu2 %vm103_vm0, %v1114_v22  ;;  %16744 = vmatpush.msk.msra.mxu3 %vm103_vm0, %v1115_v23  ;;  %v1076_v6 = vsel %vm948_vm12, %v493_v50, %v1012_v54  ;;  %v1077_v7 = vsel %vm949_vm13, %v516_v51, %v1013_v57  ;;  %v1016_v18 = vmul.f32 0.01, %v585_v12  ;;  %v1017_v19 = vmul.f32 0.01, %v608_v14 }
  0xd5   :  { %1524 = vmatpush.msrb.mxu0 %v1076_v6  ;;  %1547 = vmatpush.msrb.mxu1 %v1077_v7 }
  0xd6   :  { %1662 = vmatpush.msra.mxu2 %v1082_v26  ;;  %1685 = vmatpush.msra.mxu3 %v1083_v27 }
  0xd7   :  { %16742 = vmatmul.msk.f32.vlgmr.msra.gmra.mxu2 %vm96_vm1, %v18504_v5  ;;  %16745 = vmatmul.msk.f32.vlgmr.msra.gmra.mxu3 %vm96_vm1, %v18504_v5 }
  0xd8   :  { %v723_v30 = vpop.f32.mrf.mxu2  ;;  %v746_v31 = vpop.f32.mrf.mxu3  ;;  %16713 = vmatmul.msk.f32.gmra.mxu0 %vm96_vm1, %v18531_v15  ;;  %16716 = vmatmul.msk.f32.gmra.mxu1 %vm96_vm1, %v18531_v15 }
  0xd9   :  { %v1022_v34 = vmul.f32 0.01, %v723_v30  ;;  %v1023_v35 = vmul.f32 0.01, %v746_v31  ;;  %vm958_vm2 = vcmp.gt.f32.partialorder %v723_v30, 0.0  ;;  %vm959_vm3 = vcmp.gt.f32.partialorder %v746_v31, 0.0 }
  0xdb   :  { %v1086_v48 = vsel %vm958_vm2, %v723_v30, %v1022_v34  ;;  %v1087_v49 = vsel %vm959_vm3, %v746_v31, %v1023_v35  ;;  %v588_v22 = vpop.f32.mrf.mxu0  ;;  %v611_v23 = vpop.f32.mrf.mxu1 }
  0xdc   :  { %v1048_v26 = vmul.f32 0.01, %v588_v22  ;;  %v1049_v27 = vmul.f32 0.01, %v611_v23 }
  0xdf   :  { %16743 = vmatmul.msk.f32.gmra.mxu2 %vm96_vm1, %v18531_v15  ;;  %16746 = vmatmul.msk.f32.gmra.mxu3 %vm96_vm1, %v18531_v15 }
  0xe0   :  { %v726_v4 = vpop.f32.mrf.mxu2  ;;  %v749_v38 = vpop.f32.mrf.mxu3  ;;  %16724 = vmatmul.msk.f32.vlgmr.msrb.gmra.mxu0 %vm96_vm1, %v18504_v5  ;;  %16727 = vmatmul.msk.f32.vlgmr.msrb.gmra.mxu1 %vm96_vm1, %v18504_v5 }
  0xe1   :  { %vm990_vm6 = vcmp.gt.f32.partialorder %v726_v4, 0.0  ;;  %v1054_v41 = vmul.f32 0.01, %v726_v4  ;;  %vm991_vm7 = vcmp.gt.f32.partialorder %v749_v38, 0.0  ;;  %v1055_v42 = vmul.f32 0.01, %v749_v38 }
  0xe3   :  { %v1118_v44 = vsel %vm990_vm6, %v726_v4, %v1054_v41  ;;  %v1119_v45 = vsel %vm991_vm7, %v749_v38, %v1055_v42  ;;  %vm984_vm6 = vcmp.gt.f32.partialorder %v588_v22, 0.0  ;;  %vm985_vm7 = vcmp.gt.f32.partialorder %v611_v23, 0.0  ;;  %v677_v4 = vpop.f32.mrf.mxu0  ;;  %v700_v38 = vpop.f32.mrf.mxu1 }
  0xe4   :  { %16753 = vmatpush.msk.msrb.mxu2 %vm103_vm0, %v1118_v44  ;;  %16756 = vmatpush.msk.msrb.mxu3 %vm103_vm0, %v1119_v45  ;;  %v1112_v30 = vsel %vm984_vm6, %v588_v22, %v1048_v26  ;;  %v1113_v31 = vsel %vm985_vm7, %v611_v23, %v1049_v27  ;;  %v1020_v39 = vmul.f32 0.01, %v677_v4  ;;  %v1021_v40 = vmul.f32 0.01, %v700_v38 }
  0xe5   :  { %16735 = vmatpush.msk.msra.mxu0 %vm103_vm0, %v1112_v30  ;;  %16738 = vmatpush.msk.msra.mxu1 %vm103_vm0, %v1113_v31  ;;  %vm956_vm14 = vcmp.gt.f32.partialorder %v677_v4, 0.0  ;;  %vm957_vm15 = vcmp.gt.f32.partialorder %v700_v38, 0.0 }
  0xe6   :  { %1754 = vmatpush.msrb.mxu2 %v1086_v48  ;;  %1777 = vmatpush.msrb.mxu3 %v1087_v49  ;;  %v1084_v46 = vsel %vm956_vm14, %v677_v4, %v1020_v39  ;;  %v1085_v47 = vsel %vm957_vm15, %v700_v38, %v1021_v40 }
  0xe7   :  { %16754 = vmatmul.msk.f32.vlgmr.msrb.gmra.mxu2 %vm96_vm1, %v18504_v5  ;;  %16757 = vmatmul.msk.f32.vlgmr.msrb.gmra.mxu3 %vm96_vm1, %v18504_v5 }
  0xe8   :  { %v815_v52 = vpop.f32.mrf.mxu2  ;;  %v838_v53 = vpop.f32.mrf.mxu3  ;;  %16725 = vmatmul.msk.f32.gmra.mxu0 %vm96_vm1, %v18531_v15  ;;  %16728 = vmatmul.msk.f32.gmra.mxu1 %vm96_vm1, %v18531_v15 }
  0xe9   :  { %v1026_v55 = vmul.f32 0.01, %v815_v52  ;;  %v1027_v56 = vmul.f32 0.01, %v838_v53  ;;  %vm962_vm10 = vcmp.gt.f32.partialorder %v815_v52, 0.0  ;;  %vm963_vm11 = vcmp.gt.f32.partialorder %v838_v53, 0.0 }
  0xeb   :  { %v1090_v10 = vsel %vm962_vm10, %v815_v52, %v1026_v55  ;;  %v1091_v11 = vsel %vm963_vm11, %v838_v53, %v1027_v56  ;;  %vm952_vm10 = vcmp.gt.f32.partialorder %v585_v12, 0.0  ;;  %vm953_vm11 = vcmp.gt.f32.partialorder %v608_v14, 0.0  ;;  %v680_v41 = vpop.f32.mrf.mxu0  ;;  %v703_v42 = vpop.f32.mrf.mxu1 }
  0xec   :  { %v1080_v34 = vsel %vm952_vm10, %v585_v12, %v1016_v18  ;;  %v1081_v35 = vsel %vm953_vm11, %v608_v14, %v1017_v19  ;;  %vm988_vm12 = vcmp.gt.f32.partialorder %v680_v41, 0.0  ;;  %v1052_v43 = vmul.f32 0.01, %v680_v41 }
  0xed   :  { %1616 = vmatpush.msra.mxu0 %v1080_v34  ;;  %1639 = vmatpush.msra.mxu1 %v1081_v35  ;;  %vm989_vm13 = vcmp.gt.f32.partialorder %v703_v42, 0.0  ;;  %v1053_v13 = vmul.f32 0.01, %v703_v42 }
  0xee   :  { %v1116_v44 = vsel %vm988_vm12, %v680_v41, %v1052_v43 }
  0xef   :  { %16755 = vmatmul.msk.f32.gmra.mxu2 %vm96_vm1, %v18531_v15  ;;  %16758 = vmatmul.msk.f32.gmra.mxu3 %vm96_vm1, %v18531_v15  ;;  %v1117_v45 = vsel %vm989_vm13, %v703_v42, %v1053_v13 }
  0xf0   :  { %v818_v60 = vpop.f32.mrf.mxu2  ;;  %v841_v61 = vpop.f32.mrf.mxu3  ;;  %16736 = vmatmul.msk.f32.vlgmr.msra.gmra.mxu0 %vm96_vm1, %v18504_v5  ;;  %16739 = vmatmul.msk.f32.vlgmr.msra.gmra.mxu1 %vm96_vm1, %v18504_v5 }
  0xf1   :  { %vm994_vm2 = vcmp.gt.f32.partialorder %v818_v60, 0.0  ;;  %v1058_v0 = vmul.f32 0.01, %v818_v60  ;;  %vm995_vm3 = vcmp.gt.f32.partialorder %v841_v61, 0.0  ;;  %v1059_v1 = vmul.f32 0.01, %v841_v61  ;;  %16747 = vmatpush.msk.msrb.mxu0 %vm103_vm0, %v1116_v44  ;;  %16750 = vmatpush.msk.msrb.mxu1 %vm103_vm0, %v1117_v45 }
  0xf3   :  { %v1122_v8 = vsel %vm994_vm2, %v818_v60, %v1058_v0  ;;  %v1123_v9 = vsel %vm995_vm3, %v841_v61, %v1059_v1  ;;  %1708 = vmatpush.msrb.mxu0 %v1084_v46  ;;  %1731 = vmatpush.msrb.mxu1 %v1085_v47  ;;  %v769_v48 = vpop.f32.mrf.mxu0  ;;  %v792_v49 = vpop.f32.mrf.mxu1 }
  0xf4   :  { %16765 = vmatpush.msk.msra.mxu2 %vm103_vm0, %v1122_v8  ;;  %16768 = vmatpush.msk.msra.mxu3 %vm103_vm0, %v1123_v9  ;;  %v1024_v52 = vmul.f32 0.01, %v769_v48  ;;  %v1025_v53 = vmul.f32 0.01, %v792_v49  ;;  %v18712_v8 = vld [vmem:[%s21286_s1 + $0x20] sm:$0xff] }
  0xf6   :  { %1846 = vmatpush.msra.mxu2 %v1090_v10  ;;  %1869 = vmatpush.msra.mxu3 %v1091_v11 }
  0xf7   :  { %16766 = vmatmul.msk.f32.vlgmr.msra.gmra.mxu2 %vm96_vm1, %v18504_v5  ;;  %16769 = vmatmul.msk.f32.vlgmr.msra.gmra.mxu3 %vm96_vm1, %v18504_v5 }
  0xf8   :  { %v907_v16 = vpop.f32.mrf.mxu2  ;;  %v930_v17 = vpop.f32.mrf.mxu3  ;;  %16737 = vmatmul.msk.f32.gmra.mxu0 %vm96_vm1, %v18531_v15  ;;  %16740 = vmatmul.msk.f32.gmra.mxu1 %vm96_vm1, %v18531_v15 }
  0xf9   :  { %v1030_v20 = vmul.f32 0.01, %v907_v16  ;;  %v1031_v21 = vmul.f32 0.01, %v930_v17  ;;  %vm966_vm4 = vcmp.gt.f32.partialorder %v907_v16, 0.0  ;;  %vm967_vm5 = vcmp.gt.f32.partialorder %v930_v17, 0.0 }
  0xfb   :  { %v1094_v36 = vsel %vm966_vm4, %v907_v16, %v1030_v20  ;;  %v1095_v37 = vsel %vm967_vm5, %v930_v17, %v1031_v21  ;;  %v772_v54 = vpop.f32.mrf.mxu0  ;;  %v795_v55 = vpop.f32.mrf.mxu1  ;;  %vm960_vm4 = vcmp.gt.f32.partialorder %v769_v48, 0.0  ;;  %vm961_vm5 = vcmp.gt.f32.partialorder %v792_v49, 0.0  ;;  %v18725_v17 = vld [vmem:[%s21286_s1 + $0x28] sm:$0x1f] }
  0xfc   :  { %vm992_vm2 = vcmp.gt.f32.partialorder %v772_v54, 0.0  ;;  %v1056_v56 = vmul.f32 0.01, %v772_v54  ;;  %vm993_vm3 = vcmp.gt.f32.partialorder %v795_v55, 0.0  ;;  %v1057_v57 = vmul.f32 0.01, %v795_v55 }
  0xfd   :  { %v1088_v2 = vsel %vm960_vm4, %v769_v48, %v1024_v52  ;;  %v1089_v3 = vsel %vm961_vm5, %v792_v49, %v1025_v53 }
  0xfe   :  { %v1120_v62 = vsel %vm992_vm2, %v772_v54, %v1056_v56  ;;  %v1121_v63 = vsel %vm993_vm3, %v795_v55, %v1057_v57 }
  0xff   :  { %16767 = vmatmul.msk.f32.gmra.mxu2 %vm96_vm1, %v18531_v15  ;;  %16770 = vmatmul.msk.f32.gmra.mxu3 %vm96_vm1, %v18531_v15 }
 0x100   :  { %v910_v24 = vpop.f32.mrf.mxu2  ;;  %v933_v25 = vpop.f32.mrf.mxu3  ;;  %16748 = vmatmul.msk.f32.vlgmr.msrb.gmra.mxu0 %vm96_vm1, %v18504_v5  ;;  %16751 = vmatmul.msk.f32.vlgmr.msrb.gmra.mxu1 %vm96_vm1, %v18504_v5 }
 0x101   :  { %vm998_vm8 = vcmp.gt.f32.partialorder %v910_v24, 0.0  ;;  %v1062_v28 = vmul.f32 0.01, %v910_v24  ;;  %vm999_vm9 = vcmp.gt.f32.partialorder %v933_v25, 0.0  ;;  %v1063_v29 = vmul.f32 0.01, %v933_v25  ;;  %16759 = vmatpush.msk.msra.mxu0 %vm103_vm0, %v1120_v62  ;;  %16762 = vmatpush.msk.msra.mxu1 %vm103_vm0, %v1121_v63 }
 0x103   :  { %v1126_v32 = vsel %vm998_vm8, %v910_v24, %v1062_v28  ;;  %v1127_v33 = vsel %vm999_vm9, %v933_v25, %v1063_v29  ;;  %1800 = vmatpush.msra.mxu0 %v1088_v2  ;;  %1823 = vmatpush.msra.mxu1 %v1089_v3  ;;  %v861_v11 = vpop.f32.mrf.mxu0  ;;  %v884_v12 = vpop.f32.mrf.mxu1 }
 0x104   :  { %16777 = vmatpush.msk.msrb.mxu2 %vm103_vm0, %v1126_v32  ;;  %16780 = vmatpush.msk.msrb.mxu3 %vm103_vm0, %v1127_v33  ;;  %v1028_v18 = vmul.f32 0.01, %v861_v11  ;;  %v1029_v19 = vmul.f32 0.01, %v884_v12  ;;  %vm964_vm12 = vcmp.gt.f32.partialorder %v861_v11, 0.0  ;;  %vm965_vm13 = vcmp.gt.f32.partialorder %v884_v12, 0.0 }
 0x106   :  { %1938 = vmatpush.msrb.mxu2 %v1094_v36  ;;  %1961 = vmatpush.msrb.mxu3 %v1095_v37  ;;  %v1092_v32 = vsel %vm964_vm12, %v861_v11, %v1028_v18  ;;  %v1093_v33 = vsel %vm965_vm13, %v884_v12, %v1029_v19 }
 0x107   :  { %16778 = vmatmul.msk.f32.vlgmr.msrb.gmra.mxu2 %vm96_vm1, %v18504_v5  ;;  %16781 = vmatmul.msk.f32.vlgmr.msrb.gmra.mxu3 %vm96_vm1, %v18504_v5 }
 0x108   :  { %16749 = vmatmul.msk.f32.gmra.mxu0 %vm96_vm1, %v18531_v15  ;;  %16752 = vmatmul.msk.f32.gmra.mxu1 %vm96_vm1, %v18531_v15 }
 0x10b   :  { %v864_v20 = vpop.f32.mrf.mxu0  ;;  %v887_v21 = vpop.f32.mrf.mxu1 }
 0x10c   :  { %vm996_vm10 = vcmp.gt.f32.partialorder %v864_v20, 0.0  ;;  %v1060_v22 = vmul.f32 0.01, %v864_v20  ;;  %vm997_vm11 = vcmp.gt.f32.partialorder %v887_v21, 0.0  ;;  %v1061_v23 = vmul.f32 0.01, %v887_v21 }
 0x10e   :  { %v1124_v28 = vsel %vm996_vm10, %v864_v20, %v1060_v22  ;;  %v1125_v29 = vsel %vm997_vm11, %v887_v21, %v1061_v23 }
 0x10f   :  { %16779 = vmatmul.msk.f32.gmra.mxu2 %vm96_vm1, %v18531_v15  ;;  %16782 = vmatmul.msk.f32.gmra.mxu3 %vm96_vm1, %v18531_v15 }
 0x110   :  { %16760 = vmatmul.msk.f32.vlgmr.msra.gmra.mxu0 %vm96_vm1, %v18504_v5  ;;  %16763 = vmatmul.msk.f32.vlgmr.msra.gmra.mxu1 %vm96_vm1, %v18504_v5 }
 0x111   :  { %16771 = vmatpush.msk.msrb.mxu0 %vm103_vm0, %v1124_v28  ;;  %16774 = vmatpush.msk.msrb.mxu1 %vm103_vm0, %v1125_v29 }
 0x113   :  { %1892 = vmatpush.msrb.mxu0 %v1092_v32  ;;  %1915 = vmatpush.msrb.mxu1 %v1093_v33 }
 0x118   :  { %16761 = vmatmul.msk.f32.gmra.mxu0 %vm96_vm1, %v18531_v15  ;;  %16764 = vmatmul.msk.f32.gmra.mxu1 %vm96_vm1, %v18531_v15 }
 0x11a   :  { %v1296_v50 = vpop.f32.mrf.mxu2  ;;  %v1319_v51 = vpop.f32.mrf.mxu3 }
 0x11b   :  { %v2035_v58 = vmul.f32 0.01, %v1296_v50  ;;  %v2036_v59 = vmul.f32 0.01, %v1319_v51  ;;  %vm1971_vm8 = vcmp.gt.f32.partialorder %v1296_v50, 0.0  ;;  %vm1972_vm9 = vcmp.gt.f32.partialorder %v1319_v51, 0.0 }
 0x11d   :  { %v2099_v9 = vsel %vm1971_vm8, %v1296_v50, %v2035_v58  ;;  %v2100_v10 = vsel %vm1972_vm9, %v1319_v51, %v2036_v59 }
 0x120   :  { %16772 = vmatmul.msk.f32.vlgmr.msrb.gmra.mxu0 %vm96_vm1, %v18504_v5  ;;  %16775 = vmatmul.msk.f32.vlgmr.msrb.gmra.mxu1 %vm96_vm1, %v18504_v5 }
 0x122   :  { %v1299_v60 = vpop.f32.mrf.mxu2  ;;  %v1322_v61 = vpop.f32.mrf.mxu3 }
 0x123   :  { %vm2003_vm6 = vcmp.gt.f32.partialorder %v1299_v60, 0.0  ;;  %v2067_v0 = vmul.f32 0.01, %v1299_v60  ;;  %vm2004_vm7 = vcmp.gt.f32.partialorder %v1322_v61, 0.0  ;;  %v2068_v1 = vmul.f32 0.01, %v1322_v61 }
 0x125   :  { %v2131_v6 = vsel %vm2003_vm6, %v1299_v60, %v2067_v0  ;;  %v2132_v7 = vsel %vm2004_vm7, %v1322_v61, %v2068_v1  ;;  %v1250_v45 = vpop.f32.mrf.mxu0  ;;  %v1273_v46 = vpop.f32.mrf.mxu1 }
 0x126   :  { %16791 = vmatpush.msk.msra.mxu2 %vm103_vm0, %v2131_v6  ;;  %16794 = vmatpush.msk.msra.mxu3 %vm103_vm0, %v2132_v7  ;;  %v2033_v50 = vmul.f32 0.01, %v1250_v45  ;;  %v2034_v51 = vmul.f32 0.01, %v1273_v46  ;;  %vm1969_vm8 = vcmp.gt.f32.partialorder %v1250_v45, 0.0  ;;  %vm1970_vm9 = vcmp.gt.f32.partialorder %v1273_v46, 0.0 }
 0x128   :  { %2327 = vmatpush.msra.mxu2 %v2099_v9  ;;  %2350 = vmatpush.msra.mxu3 %v2100_v10  ;;  %v2097_v58 = vsel %vm1969_vm8, %v1250_v45, %v2033_v50  ;;  %v2098_v59 = vsel %vm1970_vm9, %v1273_v46, %v2034_v51 }
 0x129   :  { %16792 = vmatmul.msk.f32.vlgmr.msra.gmra.mxu2 %vm96_vm1, %v18712_v8  ;;  %16795 = vmatmul.msk.f32.vlgmr.msra.gmra.mxu3 %vm96_vm1, %v18712_v8 }
 0x12a   :  { %v1388_v14 = vpop.f32.mrf.mxu2  ;;  %v1411_v16 = vpop.f32.mrf.mxu3  ;;  %16773 = vmatmul.msk.f32.gmra.mxu0 %vm96_vm1, %v18531_v15  ;;  %16776 = vmatmul.msk.f32.gmra.mxu1 %vm96_vm1, %v18531_v15 }
 0x12b   :  { %v2039_v24 = vmul.f32 0.01, %v1388_v14  ;;  %v2040_v25 = vmul.f32 0.01, %v1411_v16  ;;  %vm1975_vm2 = vcmp.gt.f32.partialorder %v1388_v14, 0.0  ;;  %vm1976_vm3 = vcmp.gt.f32.partialorder %v1411_v16, 0.0 }
 0x12d   :  { %v2103_v36 = vsel %vm1975_vm2, %v1388_v14, %v2039_v24  ;;  %v2104_v37 = vsel %vm1976_vm3, %v1411_v16, %v2040_v25  ;;  %v1253_v52 = vpop.f32.mrf.mxu0  ;;  %v1276_v53 = vpop.f32.mrf.mxu1 }
 0x12e   :  { %vm2001_vm10 = vcmp.gt.f32.partialorder %v1253_v52, 0.0  ;;  %v2065_v54 = vmul.f32 0.01, %v1253_v52  ;;  %vm2002_vm11 = vcmp.gt.f32.partialorder %v1276_v53, 0.0  ;;  %v2066_v55 = vmul.f32 0.01, %v1276_v53 }
 0x130   :  { %v2129_v56 = vsel %vm2001_vm10, %v1253_v52, %v2065_v54  ;;  %v2130_v57 = vsel %vm2002_vm11, %v1276_v53, %v2066_v55 }
 0x131   :  { %16793 = vmatmul.msk.f32.gmra.mxu2 %vm96_vm1, %v18725_v17  ;;  %16796 = vmatmul.msk.f32.gmra.mxu3 %vm96_vm1, %v18725_v17 }
 0x132   :  { %v1391_v26 = vpop.f32.mrf.mxu2  ;;  %v1414_v27 = vpop.f32.mrf.mxu3  ;;  %16785 = vmatpush.msk.msra.mxu0 %vm103_vm0, %v2129_v56  ;;  %16788 = vmatpush.msk.msra.mxu1 %vm103_vm0, %v2130_v57 }
 0x133   :  { %vm2007_vm14 = vcmp.gt.f32.partialorder %v1391_v26, 0.0  ;;  %v2071_v30 = vmul.f32 0.01, %v1391_v26  ;;  %vm2008_vm15 = vcmp.gt.f32.partialorder %v1414_v27, 0.0  ;;  %v2072_v31 = vmul.f32 0.01, %v1414_v27 }
 0x134   :  { %2281 = vmatpush.msra.mxu0 %v2097_v58  ;;  %2304 = vmatpush.msra.mxu1 %v2098_v59 }
 0x135   :  { %v2135_v34 = vsel %vm2007_vm14, %v1391_v26, %v2071_v30  ;;  %v2136_v35 = vsel %vm2008_vm15, %v1414_v27, %v2072_v31  ;;  %16786 = vmatmul.msk.f32.vlgmr.msra.gmra.mxu0 %vm96_vm1, %v18712_v8  ;;  %16789 = vmatmul.msk.f32.vlgmr.msra.gmra.mxu1 %vm96_vm1, %v18712_v8 }
 0x136   :  { %16803 = vmatpush.msk.msrb.mxu2 %vm103_vm0, %v2135_v34  ;;  %16806 = vmatpush.msk.msrb.mxu3 %vm103_vm0, %v2136_v35 }
 0x138   :  { %2419 = vmatpush.msrb.mxu2 %v2103_v36  ;;  %2442 = vmatpush.msrb.mxu3 %v2104_v37 }
 0x139   :  { %16804 = vmatmul.msk.f32.vlgmr.msrb.gmra.mxu2 %vm96_vm1, %v18712_v8  ;;  %16807 = vmatmul.msk.f32.vlgmr.msrb.gmra.mxu3 %vm96_vm1, %v18712_v8 }
 0x13a   :  { %v1480_v4 = vpop.f32.mrf.mxu2  ;;  %v1503_v38 = vpop.f32.mrf.mxu3 }
 0x13b   :  { %v2043_v39 = vmul.f32 0.01, %v1480_v4  ;;  %v2044_v40 = vmul.f32 0.01, %v1503_v38  ;;  %vm1979_vm6 = vcmp.gt.f32.partialorder %v1480_v4, 0.0  ;;  %vm1980_vm7 = vcmp.gt.f32.partialorder %v1503_v38, 0.0  ;;  %v1342_v6 = vpop.f32.mrf.mxu0  ;;  %v1365_v7 = vpop.f32.mrf.mxu1 }
 0x13c   :  { %v2037_v14 = vmul.f32 0.01, %v1342_v6  ;;  %v2038_v16 = vmul.f32 0.01, %v1365_v7  ;;  %vm1973_vm2 = vcmp.gt.f32.partialorder %v1342_v6, 0.0  ;;  %vm1974_vm3 = vcmp.gt.f32.partialorder %v1365_v7, 0.0 }
 0x13d   :  { %v2107_v47 = vsel %vm1979_vm6, %v1480_v4, %v2043_v39  ;;  %v2108_v48 = vsel %vm1980_vm7, %v1503_v38, %v2044_v40  ;;  %16787 = vmatmul.msk.f32.gmra.mxu0 %vm96_vm1, %v18725_v17  ;;  %16790 = vmatmul.msk.f32.gmra.mxu1 %vm96_vm1, %v18725_v17 }
 0x13e   :  { %v2101_v24 = vsel %vm1973_vm2, %v1342_v6, %v2037_v14  ;;  %v2102_v25 = vsel %vm1974_vm3, %v1365_v7, %v2038_v16 }
 0x141   :  { %16805 = vmatmul.msk.f32.gmra.mxu2 %vm96_vm1, %v18725_v17  ;;  %16808 = vmatmul.msk.f32.gmra.mxu3 %vm96_vm1, %v18725_v17 }
 0x142   :  { %v1483_v41 = vpop.f32.mrf.mxu2  ;;  %v1506_v42 = vpop.f32.mrf.mxu3 }
 0x143   :  { %vm2011_vm4 = vcmp.gt.f32.partialorder %v1483_v41, 0.0  ;;  %v2075_v43 = vmul.f32 0.01, %v1483_v41  ;;  %vm2012_vm5 = vcmp.gt.f32.partialorder %v1506_v42, 0.0  ;;  %v2076_v5 = vmul.f32 0.01, %v1506_v42 }
 0x145   :  { %v2139_v13 = vsel %vm2011_vm4, %v1483_v41, %v2075_v43  ;;  %v2140_v44 = vsel %vm2012_vm5, %v1506_v42, %v2076_v5  ;;  %v1345_v18 = vpop.f32.mrf.mxu0  ;;  %v1368_v19 = vpop.f32.mrf.mxu1 }
 0x146   :  { %16815 = vmatpush.msk.msra.mxu2 %vm103_vm0, %v2139_v13  ;;  %16818 = vmatpush.msk.msra.mxu3 %vm103_vm0, %v2140_v44  ;;  %vm2005_vm4 = vcmp.gt.f32.partialorder %v1345_v18, 0.0  ;;  %v2069_v20 = vmul.f32 0.01, %v1345_v18  ;;  %vm2006_vm5 = vcmp.gt.f32.partialorder %v1368_v19, 0.0  ;;  %v2070_v21 = vmul.f32 0.01, %v1368_v19 }
 0x148   :  { %2511 = vmatpush.msra.mxu2 %v2107_v47  ;;  %2534 = vmatpush.msra.mxu3 %v2108_v48  ;;  %v2133_v22 = vsel %vm2005_vm4, %v1345_v18, %v2069_v20  ;;  %v2134_v23 = vsel %vm2006_vm5, %v1368_v19, %v2070_v21 }
 0x149   :  { %16816 = vmatmul.msk.f32.vlgmr.msra.gmra.mxu2 %vm96_vm1, %v18712_v8  ;;  %16819 = vmatmul.msk.f32.vlgmr.msra.gmra.mxu3 %vm96_vm1, %v18712_v8 }
 0x14a   :  { %v1572_v15 = vpop.f32.mrf.mxu2  ;;  %v1595_v49 = vpop.f32.mrf.mxu3  ;;  %16797 = vmatpush.msk.msrb.mxu0 %vm103_vm0, %v2133_v22  ;;  %16800 = vmatpush.msk.msrb.mxu1 %vm103_vm0, %v2134_v23 }
 0x14b   :  { %v2047_v60 = vmul.f32 0.01, %v1572_v15  ;;  %v2048_v61 = vmul.f32 0.01, %v1595_v49  ;;  %vm1983_vm14 = vcmp.gt.f32.partialorder %v1572_v15, 0.0  ;;  %vm1984_vm15 = vcmp.gt.f32.partialorder %v1595_v49, 0.0 }
 0x14c   :  { %2373 = vmatpush.msrb.mxu0 %v2101_v24  ;;  %2396 = vmatpush.msrb.mxu1 %v2102_v25 }
 0x14d   :  { %v2111_v9 = vsel %vm1983_vm14, %v1572_v15, %v2047_v60  ;;  %v2112_v10 = vsel %vm1984_vm15, %v1595_v49, %v2048_v61  ;;  %16798 = vmatmul.msk.f32.vlgmr.msrb.gmra.mxu0 %vm96_vm1, %v18712_v8  ;;  %16801 = vmatmul.msk.f32.vlgmr.msrb.gmra.mxu1 %vm96_vm1, %v18712_v8  ;;  %v1434_v34 = vpop.f32.mrf.mxu0  ;;  %v1457_v35 = vpop.f32.mrf.mxu1 }
 0x14e   :  { %v2041_v39 = vmul.f32 0.01, %v1434_v34  ;;  %v2042_v40 = vmul.f32 0.01, %v1457_v35  ;;  %vm1977_vm10 = vcmp.gt.f32.partialorder %v1434_v34, 0.0  ;;  %vm1978_vm11 = vcmp.gt.f32.partialorder %v1457_v35, 0.0 }
 0x150   :  { %v2105_v45 = vsel %vm1977_vm10, %v1434_v34, %v2041_v39  ;;  %v2106_v46 = vsel %vm1978_vm11, %v1457_v35, %v2042_v40 }
 0x151   :  { %16817 = vmatmul.msk.f32.gmra.mxu2 %vm96_vm1, %v18725_v17  ;;  %16820 = vmatmul.msk.f32.gmra.mxu3 %vm96_vm1, %v18725_v17 }
 0x152   :  { %v1575_v62 = vpop.f32.mrf.mxu2  ;;  %v1598_v63 = vpop.f32.mrf.mxu3 }
 0x153   :  { %vm2015_vm12 = vcmp.gt.f32.partialorder %v1575_v62, 0.0  ;;  %v2079_v0 = vmul.f32 0.01, %v1575_v62  ;;  %vm2016_vm13 = vcmp.gt.f32.partialorder %v1598_v63, 0.0  ;;  %v2080_v1 = vmul.f32 0.01, %v1598_v63 }
 0x155   :  { %v2143_v2 = vsel %vm2015_vm12, %v1575_v62, %v2079_v0  ;;  %v2144_v3 = vsel %vm2016_vm13, %v1598_v63, %v2080_v1  ;;  %16799 = vmatmul.msk.f32.gmra.mxu0 %vm96_vm1, %v18725_v17  ;;  %16802 = vmatmul.msk.f32.gmra.mxu1 %vm96_vm1, %v18725_v17  ;;  %v1437_v41 = vpop.f32.mrf.mxu0  ;;  %v1460_v42 = vpop.f32.mrf.mxu1 }
 0x156   :  { %16827 = vmatpush.msk.msrb.mxu2 %vm103_vm0, %v2143_v2  ;;  %16830 = vmatpush.msk.msrb.mxu3 %vm103_vm0, %v2144_v3  ;;  %vm2009_vm12 = vcmp.gt.f32.partialorder %v1437_v41, 0.0  ;;  %v2073_v43 = vmul.f32 0.01, %v1437_v41  ;;  %vm2010_vm13 = vcmp.gt.f32.partialorder %v1460_v42, 0.0  ;;  %v2074_v5 = vmul.f32 0.01, %v1460_v42 }
 0x158   :  { %2603 = vmatpush.msrb.mxu2 %v2111_v9  ;;  %2626 = vmatpush.msrb.mxu3 %v2112_v10  ;;  %v2137_v13 = vsel %vm2009_vm12, %v1437_v41, %v2073_v43  ;;  %v2138_v44 = vsel %vm2010_vm13, %v1460_v42, %v2074_v5 }
 0x159   :  { %16828 = vmatmul.msk.f32.vlgmr.msrb.gmra.mxu2 %vm96_vm1, %v18712_v8  ;;  %16831 = vmatmul.msk.f32.vlgmr.msrb.gmra.mxu3 %vm96_vm1, %v18712_v8 }
 0x15a   :  { %v1664_v11 = vpop.f32.mrf.mxu2  ;;  %v1687_v12 = vpop.f32.mrf.mxu3  ;;  %16809 = vmatpush.msk.msra.mxu0 %vm103_vm0, %v2137_v13  ;;  %16812 = vmatpush.msk.msra.mxu1 %vm103_vm0, %v2138_v44 }
 0x15b   :  { %v2051_v26 = vmul.f32 0.01, %v1664_v11  ;;  %v2052_v27 = vmul.f32 0.01, %v1687_v12  ;;  %vm1987_vm8 = vcmp.gt.f32.partialorder %v1664_v11, 0.0  ;;  %vm1988_vm9 = vcmp.gt.f32.partialorder %v1687_v12, 0.0 }
 0x15c   :  { %2465 = vmatpush.msra.mxu0 %v2105_v45  ;;  %2488 = vmatpush.msra.mxu1 %v2106_v46 }
 0x15d   :  { %v2115_v36 = vsel %vm1987_vm8, %v1664_v11, %v2051_v26  ;;  %v2116_v37 = vsel %vm1988_vm9, %v1687_v12, %v2052_v27  ;;  %16810 = vmatmul.msk.f32.vlgmr.msra.gmra.mxu0 %vm96_vm1, %v18712_v8  ;;  %16813 = vmatmul.msk.f32.vlgmr.msra.gmra.mxu1 %vm96_vm1, %v18712_v8  ;;  %v1526_v54 = vpop.f32.mrf.mxu0  ;;  %v1549_v55 = vpop.f32.mrf.mxu1 }
 0x15e   :  { %v2045_v60 = vmul.f32 0.01, %v1526_v54  ;;  %v2046_v61 = vmul.f32 0.01, %v1549_v55  ;;  %vm1981_vm4 = vcmp.gt.f32.partialorder %v1526_v54, 0.0  ;;  %vm1982_vm5 = vcmp.gt.f32.partialorder %v1549_v55, 0.0 }
 0x160   :  { %v2109_v6 = vsel %vm1981_vm4, %v1526_v54, %v2045_v60  ;;  %v2110_v7 = vsel %vm1982_vm5, %v1549_v55, %v2046_v61 }
 0x161   :  { %16829 = vmatmul.msk.f32.gmra.mxu2 %vm96_vm1, %v18725_v17  ;;  %16832 = vmatmul.msk.f32.gmra.mxu3 %vm96_vm1, %v18725_v17 }
 0x162   :  { %v1667_v28 = vpop.f32.mrf.mxu2  ;;  %v1690_v29 = vpop.f32.mrf.mxu3 }
 0x163   :  { %vm2019_vm6 = vcmp.gt.f32.partialorder %v1667_v28, 0.0  ;;  %v2083_v30 = vmul.f32 0.01, %v1667_v28  ;;  %vm2020_vm7 = vcmp.gt.f32.partialorder %v1690_v29, 0.0  ;;  %v2084_v31 = vmul.f32 0.01, %v1690_v29 }
 0x165   :  { %v2147_v32 = vsel %vm2019_vm6, %v1667_v28, %v2083_v30  ;;  %v2148_v33 = vsel %vm2020_vm7, %v1690_v29, %v2084_v31  ;;  %16811 = vmatmul.msk.f32.gmra.mxu0 %vm96_vm1, %v18725_v17  ;;  %16814 = vmatmul.msk.f32.gmra.mxu1 %vm96_vm1, %v18725_v17  ;;  %v1529_v62 = vpop.f32.mrf.mxu0  ;;  %v1552_v63 = vpop.f32.mrf.mxu1 }
 0x166   :  { %16839 = vmatpush.msk.msra.mxu2 %vm103_vm0, %v2147_v32  ;;  %16842 = vmatpush.msk.msra.mxu3 %vm103_vm0, %v2148_v33  ;;  %vm2013_vm6 = vcmp.gt.f32.partialorder %v1529_v62, 0.0  ;;  %v2077_v0 = vmul.f32 0.01, %v1529_v62  ;;  %vm2014_vm7 = vcmp.gt.f32.partialorder %v1552_v63, 0.0  ;;  %v2078_v1 = vmul.f32 0.01, %v1552_v63 }
 0x168   :  { %2695 = vmatpush.msra.mxu2 %v2115_v36  ;;  %2718 = vmatpush.msra.mxu3 %v2116_v37  ;;  %v2141_v2 = vsel %vm2013_vm6, %v1529_v62, %v2077_v0  ;;  %v2142_v3 = vsel %vm2014_vm7, %v1552_v63, %v2078_v1 }
 0x169   :  { %16840 = vmatmul.msk.f32.vlgmr.msra.gmra.mxu2 %vm96_vm1, %v18712_v8  ;;  %16843 = vmatmul.msk.f32.vlgmr.msra.gmra.mxu3 %vm96_vm1, %v18712_v8 }
 0x16a   :  { %v1756_v4 = vpop.f32.mrf.mxu2  ;;  %v1779_v38 = vpop.f32.mrf.mxu3  ;;  %16821 = vmatpush.msk.msrb.mxu0 %vm103_vm0, %v2141_v2  ;;  %16824 = vmatpush.msk.msrb.mxu1 %vm103_vm0, %v2142_v3 }
 0x16b   :  { %v2055_v47 = vmul.f32 0.01, %v1756_v4  ;;  %v2056_v48 = vmul.f32 0.01, %v1779_v38  ;;  %vm1991_vm2 = vcmp.gt.f32.partialorder %v1756_v4, 0.0  ;;  %vm1992_vm3 = vcmp.gt.f32.partialorder %v1779_v38, 0.0 }
 0x16c   :  { %2557 = vmatpush.msrb.mxu0 %v2109_v6  ;;  %2580 = vmatpush.msrb.mxu1 %v2110_v7 }
 0x16d   :  { %v2119_v56 = vsel %vm1991_vm2, %v1756_v4, %v2055_v47  ;;  %v2120_v57 = vsel %vm1992_vm3, %v1779_v38, %v2056_v48  ;;  %16822 = vmatmul.msk.f32.vlgmr.msrb.gmra.mxu0 %vm96_vm1, %v18712_v8  ;;  %16825 = vmatmul.msk.f32.vlgmr.msrb.gmra.mxu1 %vm96_vm1, %v18712_v8  ;;  %v1618_v20 = vpop.f32.mrf.mxu0  ;;  %v1641_v21 = vpop.f32.mrf.mxu1 }
 0x16e   :  { %v2049_v26 = vmul.f32 0.01, %v1618_v20  ;;  %v2050_v27 = vmul.f32 0.01, %v1641_v21  ;;  %vm1985_vm12 = vcmp.gt.f32.partialorder %v1618_v20, 0.0  ;;  %vm1986_vm13 = vcmp.gt.f32.partialorder %v1641_v21, 0.0 }
 0x170   :  { %v2113_v34 = vsel %vm1985_vm12, %v1618_v20, %v2049_v26  ;;  %v2114_v35 = vsel %vm1986_vm13, %v1641_v21, %v2050_v27  ;;  %v18886_v20 = vld [vmem:[%s21286_s1 + $0x30] sm:$0xff] }
 0x171   :  { %16841 = vmatmul.msk.f32.gmra.mxu2 %vm96_vm1, %v18725_v17  ;;  %16844 = vmatmul.msk.f32.gmra.mxu3 %vm96_vm1, %v18725_v17 }
 0x172   :  { %v1759_v15 = vpop.f32.mrf.mxu2  ;;  %v1782_v49 = vpop.f32.mrf.mxu3 }
 0x173   :  { %vm2023_vm14 = vcmp.gt.f32.partialorder %v1759_v15, 0.0  ;;  %v2087_v50 = vmul.f32 0.01, %v1759_v15  ;;  %vm2024_vm15 = vcmp.gt.f32.partialorder %v1782_v49, 0.0  ;;  %v2088_v51 = vmul.f32 0.01, %v1782_v49 }
 0x175   :  { %v2151_v52 = vsel %vm2023_vm14, %v1759_v15, %v2087_v50  ;;  %v2152_v53 = vsel %vm2024_vm15, %v1782_v49, %v2088_v51  ;;  %16823 = vmatmul.msk.f32.gmra.mxu0 %vm96_vm1, %v18725_v17  ;;  %16826 = vmatmul.msk.f32.gmra.mxu1 %vm96_vm1, %v18725_v17  ;;  %v1621_v28 = vpop.f32.mrf.mxu0  ;;  %v1644_v29 = vpop.f32.mrf.mxu1 }
 0x176   :  { %16851 = vmatpush.msk.msrb.mxu2 %vm103_vm0, %v2151_v52  ;;  %16854 = vmatpush.msk.msrb.mxu3 %vm103_vm0, %v2152_v53  ;;  %vm2017_vm14 = vcmp.gt.f32.partialorder %v1621_v28, 0.0  ;;  %v2081_v30 = vmul.f32 0.01, %v1621_v28  ;;  %vm2018_vm15 = vcmp.gt.f32.partialorder %v1644_v29, 0.0  ;;  %v2082_v31 = vmul.f32 0.01, %v1644_v29 }
 0x178   :  { %2787 = vmatpush.msrb.mxu2 %v2119_v56  ;;  %2810 = vmatpush.msrb.mxu3 %v2120_v57  ;;  %v2145_v32 = vsel %vm2017_vm14, %v1621_v28, %v2081_v30  ;;  %v2146_v33 = vsel %vm2018_vm15, %v1644_v29, %v2082_v31 }
 0x179   :  { %16852 = vmatmul.msk.f32.vlgmr.msrb.gmra.mxu2 %vm96_vm1, %v18712_v8  ;;  %16855 = vmatmul.msk.f32.vlgmr.msrb.gmra.mxu3 %vm96_vm1, %v18712_v8 }
 0x17a   :  { %v1848_v58 = vpop.f32.mrf.mxu2  ;;  %v1871_v59 = vpop.f32.mrf.mxu3  ;;  %16833 = vmatpush.msk.msra.mxu0 %vm103_vm0, %v2145_v32  ;;  %16836 = vmatpush.msk.msra.mxu1 %vm103_vm0, %v2146_v33 }
 0x17b   :  { %v2059_v9 = vmul.f32 0.01, %v1848_v58  ;;  %v2060_v10 = vmul.f32 0.01, %v1871_v59  ;;  %vm1995_vm10 = vcmp.gt.f32.partialorder %v1848_v58, 0.0  ;;  %vm1996_vm11 = vcmp.gt.f32.partialorder %v1871_v59, 0.0 }
 0x17c   :  { %2649 = vmatpush.msra.mxu0 %v2113_v34  ;;  %2672 = vmatpush.msra.mxu1 %v2114_v35 }
 0x17d   :  { %v2123_v22 = vsel %vm1995_vm10, %v1848_v58, %v2059_v9  ;;  %v2124_v23 = vsel %vm1996_vm11, %v1871_v59, %v2060_v10  ;;  %16834 = vmatmul.msk.f32.vlgmr.msra.gmra.mxu0 %vm96_vm1, %v18712_v8  ;;  %16837 = vmatmul.msk.f32.vlgmr.msra.gmra.mxu1 %vm96_vm1, %v18712_v8  ;;  %v1710_v43 = vpop.f32.mrf.mxu0  ;;  %v1733_v5 = vpop.f32.mrf.mxu1 }
 0x17e   :  { %v2053_v45 = vmul.f32 0.01, %v1710_v43  ;;  %v2054_v46 = vmul.f32 0.01, %v1733_v5  ;;  %vm1989_vm6 = vcmp.gt.f32.partialorder %v1710_v43, 0.0  ;;  %vm1990_vm7 = vcmp.gt.f32.partialorder %v1733_v5, 0.0 }
 0x180   :  { %v2117_v52 = vsel %vm1989_vm6, %v1710_v43, %v2053_v45  ;;  %v2118_v53 = vsel %vm1990_vm7, %v1733_v5, %v2054_v46 }
 0x181   :  { %16853 = vmatmul.msk.f32.gmra.mxu2 %vm96_vm1, %v18725_v17  ;;  %16856 = vmatmul.msk.f32.gmra.mxu3 %vm96_vm1, %v18725_v17 }
 0x182   :  { %v1851_v11 = vpop.f32.mrf.mxu2  ;;  %v1874_v12 = vpop.f32.mrf.mxu3 }
 0x183   :  { %vm2027_vm8 = vcmp.gt.f32.partialorder %v1851_v11, 0.0  ;;  %v2091_v14 = vmul.f32 0.01, %v1851_v11  ;;  %vm2028_vm9 = vcmp.gt.f32.partialorder %v1874_v12, 0.0  ;;  %v2092_v16 = vmul.f32 0.01, %v1874_v12 }
 0x185   :  { %v2155_v18 = vsel %vm2027_vm8, %v1851_v11, %v2091_v14  ;;  %v2156_v19 = vsel %vm2028_vm9, %v1874_v12, %v2092_v16  ;;  %16835 = vmatmul.msk.f32.gmra.mxu0 %vm96_vm1, %v18725_v17  ;;  %16838 = vmatmul.msk.f32.gmra.mxu1 %vm96_vm1, %v18725_v17  ;;  %v1713_v47 = vpop.f32.mrf.mxu0  ;;  %v1736_v48 = vpop.f32.mrf.mxu1 }
 0x186   :  { %16863 = vmatpush.msk.msra.mxu2 %vm103_vm0, %v2155_v18  ;;  %16866 = vmatpush.msk.msra.mxu3 %vm103_vm0, %v2156_v19  ;;  %vm2021_vm8 = vcmp.gt.f32.partialorder %v1713_v47, 0.0  ;;  %v2085_v15 = vmul.f32 0.01, %v1713_v47  ;;  %vm2022_vm9 = vcmp.gt.f32.partialorder %v1736_v48, 0.0  ;;  %v2086_v49 = vmul.f32 0.01, %v1736_v48 }
 0x188   :  { %2879 = vmatpush.msra.mxu2 %v2123_v22  ;;  %2902 = vmatpush.msra.mxu3 %v2124_v23  ;;  %v2149_v50 = vsel %vm2021_vm8, %v1713_v47, %v2085_v15  ;;  %v2150_v51 = vsel %vm2022_vm9, %v1736_v48, %v2086_v49 }
 0x189   :  { %16864 = vmatmul.msk.f32.vlgmr.msra.gmra.mxu2 %vm96_vm1, %v18712_v8  ;;  %16867 = vmatmul.msk.f32.vlgmr.msra.gmra.mxu3 %vm96_vm1, %v18712_v8 }
 0x18a   :  { %v1940_v24 = vpop.f32.mrf.mxu2  ;;  %v1963_v25 = vpop.f32.mrf.mxu3  ;;  %16845 = vmatpush.msk.msrb.mxu0 %vm103_vm0, %v2149_v50  ;;  %16848 = vmatpush.msk.msrb.mxu1 %vm103_vm0, %v2150_v51 }
 0x18b   :  { %v2063_v36 = vmul.f32 0.01, %v1940_v24  ;;  %v2064_v37 = vmul.f32 0.01, %v1963_v25  ;;  %vm1999_vm4 = vcmp.gt.f32.partialorder %v1940_v24, 0.0  ;;  %vm2000_vm5 = vcmp.gt.f32.partialorder %v1963_v25, 0.0 }
 0x18c   :  { %2741 = vmatpush.msrb.mxu0 %v2117_v52  ;;  %2764 = vmatpush.msrb.mxu1 %v2118_v53 }
 0x18d   :  { %v2127_v13 = vsel %vm1999_vm4, %v1940_v24, %v2063_v36  ;;  %v2128_v44 = vsel %vm2000_vm5, %v1963_v25, %v2064_v37  ;;  %16846 = vmatmul.msk.f32.vlgmr.msrb.gmra.mxu0 %vm96_vm1, %v18712_v8  ;;  %16849 = vmatmul.msk.f32.vlgmr.msrb.gmra.mxu1 %vm96_vm1, %v18712_v8  ;;  %v1802_v54 = vpop.f32.mrf.mxu0  ;;  %v1825_v55 = vpop.f32.mrf.mxu1  ;;  %v18895_v25 = vld [vmem:[%s21286_s1 + $0x38] sm:$0x1f] }
 0x18e   :  { %v2057_v58 = vmul.f32 0.01, %v1802_v54  ;;  %v2058_v59 = vmul.f32 0.01, %v1825_v55  ;;  %vm1993_vm10 = vcmp.gt.f32.partialorder %v1802_v54, 0.0  ;;  %vm1994_vm11 = vcmp.gt.f32.partialorder %v1825_v55, 0.0 }
 0x190   :  { %v2121_v2 = vsel %vm1993_vm10, %v1802_v54, %v2057_v58  ;;  %v2122_v3 = vsel %vm1994_vm11, %v1825_v55, %v2058_v59 }
 0x191   :  { %16865 = vmatmul.msk.f32.gmra.mxu2 %vm96_vm1, %v18725_v17  ;;  %16868 = vmatmul.msk.f32.gmra.mxu3 %vm96_vm1, %v18725_v17 }
 0x192   :  { %v1943_v4 = vpop.f32.mrf.mxu2  ;;  %v1966_v38 = vpop.f32.mrf.mxu3 }
 0x193   :  { %vm2031_vm2 = vcmp.gt.f32.partialorder %v1943_v4, 0.0  ;;  %v2095_v39 = vmul.f32 0.01, %v1943_v4  ;;  %vm2032_vm3 = vcmp.gt.f32.partialorder %v1966_v38, 0.0  ;;  %v2096_v40 = vmul.f32 0.01, %v1966_v38 }
 0x195   :  { %v2159_v41 = vsel %vm2031_vm2, %v1943_v4, %v2095_v39  ;;  %v2160_v42 = vsel %vm2032_vm3, %v1966_v38, %v2096_v40  ;;  %16847 = vmatmul.msk.f32.gmra.mxu0 %vm96_vm1, %v18725_v17  ;;  %16850 = vmatmul.msk.f32.gmra.mxu1 %vm96_vm1, %v18725_v17  ;;  %v1805_v60 = vpop.f32.mrf.mxu0  ;;  %v1828_v61 = vpop.f32.mrf.mxu1 }
 0x196   :  { %16875 = vmatpush.msk.msrb.mxu2 %vm103_vm0, %v2159_v41  ;;  %16878 = vmatpush.msk.msrb.mxu3 %vm103_vm0, %v2160_v42  ;;  %vm2025_vm12 = vcmp.gt.f32.partialorder %v1805_v60, 0.0  ;;  %v2089_v62 = vmul.f32 0.01, %v1805_v60  ;;  %vm2026_vm13 = vcmp.gt.f32.partialorder %v1828_v61, 0.0  ;;  %v2090_v63 = vmul.f32 0.01, %v1828_v61 }
 0x198   :  { %2971 = vmatpush.msrb.mxu2 %v2127_v13  ;;  %2994 = vmatpush.msrb.mxu3 %v2128_v44  ;;  %v2153_v0 = vsel %vm2025_vm12, %v1805_v60, %v2089_v62  ;;  %v2154_v1 = vsel %vm2026_vm13, %v1828_v61, %v2090_v63 }
 0x199   :  { %16876 = vmatmul.msk.f32.vlgmr.msrb.gmra.mxu2 %vm96_vm1, %v18712_v8  ;;  %16879 = vmatmul.msk.f32.vlgmr.msrb.gmra.mxu3 %vm96_vm1, %v18712_v8 }
 0x19a   :  { %16857 = vmatpush.msk.msra.mxu0 %vm103_vm0, %v2153_v0  ;;  %16860 = vmatpush.msk.msra.mxu1 %vm103_vm0, %v2154_v1 }
 0x19c   :  { %2833 = vmatpush.msra.mxu0 %v2121_v2  ;;  %2856 = vmatpush.msra.mxu1 %v2122_v3 }
 0x19d   :  { %16858 = vmatmul.msk.f32.vlgmr.msra.gmra.mxu0 %vm96_vm1, %v18712_v8  ;;  %16861 = vmatmul.msk.f32.vlgmr.msra.gmra.mxu1 %vm96_vm1, %v18712_v8  ;;  %v1894_v18 = vpop.f32.mrf.mxu0  ;;  %v1917_v19 = vpop.f32.mrf.mxu1 }
 0x19e   :  { %v2061_v26 = vmul.f32 0.01, %v1894_v18  ;;  %v2062_v27 = vmul.f32 0.01, %v1917_v19  ;;  %vm1997_vm4 = vcmp.gt.f32.partialorder %v1894_v18, 0.0  ;;  %vm1998_vm5 = vcmp.gt.f32.partialorder %v1917_v19, 0.0 }
 0x1a0   :  { %v2125_v34 = vsel %vm1997_vm4, %v1894_v18, %v2061_v26  ;;  %v2126_v35 = vsel %vm1998_vm5, %v1917_v19, %v2062_v27 }
 0x1a1   :  { %16877 = vmatmul.msk.f32.gmra.mxu2 %vm96_vm1, %v18725_v17  ;;  %16880 = vmatmul.msk.f32.gmra.mxu3 %vm96_vm1, %v18725_v17 }
 0x1a5   :  { %16859 = vmatmul.msk.f32.gmra.mxu0 %vm96_vm1, %v18725_v17  ;;  %16862 = vmatmul.msk.f32.gmra.mxu1 %vm96_vm1, %v18725_v17 }
 0x1a7   :  { %v1897_v28 = vpop.f32.mrf.mxu0  ;;  %v1920_v29 = vpop.f32.mrf.mxu1 }
 0x1a8   :  { %vm2029_vm6 = vcmp.gt.f32.partialorder %v1897_v28, 0.0  ;;  %v2093_v30 = vmul.f32 0.01, %v1897_v28  ;;  %vm2030_vm7 = vcmp.gt.f32.partialorder %v1920_v29, 0.0  ;;  %v2094_v31 = vmul.f32 0.01, %v1920_v29 }
 0x1aa   :  { %v2157_v32 = vsel %vm2029_vm6, %v1897_v28, %v2093_v30  ;;  %v2158_v33 = vsel %vm2030_vm7, %v1920_v29, %v2094_v31 }
 0x1ab   :  { %16869 = vmatpush.msk.msrb.mxu0 %vm103_vm0, %v2157_v32  ;;  %16872 = vmatpush.msk.msrb.mxu1 %vm103_vm0, %v2158_v33 }
 0x1ac   :  { %v2329_v56 = vpop.f32.mrf.mxu2  ;;  %v2352_v57 = vpop.f32.mrf.mxu3 }
 0x1ad   :  { %v3068_v6 = vmul.f32 0.01, %v2329_v56  ;;  %v3069_v7 = vmul.f32 0.01, %v2352_v57  ;;  %vm3004_vm2 = vcmp.gt.f32.partialorder %v2329_v56, 0.0  ;;  %vm3005_vm3 = vcmp.gt.f32.partialorder %v2352_v57, 0.0  ;;  %2925 = vmatpush.msrb.mxu0 %v2125_v34  ;;  %2948 = vmatpush.msrb.mxu1 %v2126_v35 }
 0x1ae   :  { %16870 = vmatmul.msk.f32.vlgmr.msrb.gmra.mxu0 %vm96_vm1, %v18712_v8  ;;  %16873 = vmatmul.msk.f32.vlgmr.msrb.gmra.mxu1 %vm96_vm1, %v18712_v8 }
 0x1af   :  { %v3132_v21 = vsel %vm3004_vm2, %v2329_v56, %v3068_v6  ;;  %v3133_v22 = vsel %vm3005_vm3, %v2352_v57, %v3069_v7 }
 0x1b2   :  { %v2283_v8 = vpop.f32.mrf.mxu0  ;;  %v2306_v45 = vpop.f32.mrf.mxu1 }
 0x1b3   :  { %v3066_v54 = vmul.f32 0.01, %v2283_v8  ;;  %v3067_v55 = vmul.f32 0.01, %v2306_v45  ;;  %vm3002_vm2 = vcmp.gt.f32.partialorder %v2283_v8, 0.0  ;;  %vm3003_vm3 = vcmp.gt.f32.partialorder %v2306_v45, 0.0 }
 0x1b4   :  { %v2332_v9 = vpop.f32.mrf.mxu2  ;;  %v2355_v10 = vpop.f32.mrf.mxu3 }
 0x1b5   :  { %vm3036_vm14 = vcmp.gt.f32.partialorder %v2332_v9, 0.0  ;;  %v3100_v11 = vmul.f32 0.01, %v2332_v9  ;;  %vm3037_vm15 = vcmp.gt.f32.partialorder %v2355_v10, 0.0  ;;  %v3101_v12 = vmul.f32 0.01, %v2355_v10 }
 0x1b6   :  { %16871 = vmatmul.msk.f32.gmra.mxu0 %vm96_vm1, %v18725_v17  ;;  %16874 = vmatmul.msk.f32.gmra.mxu1 %vm96_vm1, %v18725_v17  ;;  %v3130_v0 = vsel %vm3002_vm2, %v2283_v8, %v3066_v54  ;;  %v3131_v1 = vsel %vm3003_vm3, %v2306_v45, %v3067_v55 }
 0x1b7   :  { %v3164_v14 = vsel %vm3036_vm14, %v2332_v9, %v3100_v11  ;;  %v3165_v16 = vsel %vm3037_vm15, %v2355_v10, %v3101_v12 }
 0x1b8   :  { %16889 = vmatpush.msk.msra.mxu2 %vm103_vm0, %v3164_v14  ;;  %16892 = vmatpush.msk.msra.mxu3 %vm103_vm0, %v3165_v16 }
 0x1ba   :  { %3360 = vmatpush.msra.mxu2 %v3132_v21  ;;  %3383 = vmatpush.msra.mxu3 %v3133_v22  ;;  %v2286_v56 = vpop.f32.mrf.mxu0  ;;  %v2309_v57 = vpop.f32.mrf.mxu1 }
 0x1bb   :  { %16890 = vmatmul.msk.f32.vlgmr.msra.gmra.mxu2 %vm96_vm1, %v18886_v20  ;;  %16893 = vmatmul.msk.f32.vlgmr.msra.gmra.mxu3 %vm96_vm1, %v18886_v20  ;;  %vm3034_vm4 = vcmp.gt.f32.partialorder %v2286_v56, 0.0  ;;  %v3098_v58 = vmul.f32 0.01, %v2286_v56  ;;  %vm3035_vm5 = vcmp.gt.f32.partialorder %v2309_v57, 0.0  ;;  %v3099_v59 = vmul.f32 0.01, %v2309_v57 }
 0x1bc   :  { %v2421_v23 = vpop.f32.mrf.mxu2  ;;  %v2444_v24 = vpop.f32.mrf.mxu3 }
 0x1bd   :  { %v3072_v36 = vmul.f32 0.01, %v2421_v23  ;;  %v3073_v37 = vmul.f32 0.01, %v2444_v24  ;;  %vm3008_vm10 = vcmp.gt.f32.partialorder %v2421_v23, 0.0  ;;  %vm3009_vm11 = vcmp.gt.f32.partialorder %v2444_v24, 0.0 }
 0x1be   :  { %v3162_v62 = vsel %vm3034_vm4, %v2286_v56, %v3098_v58  ;;  %v3163_v63 = vsel %vm3035_vm5, %v2309_v57, %v3099_v59 }
 0x1bf   :  { %v3136_v43 = vsel %vm3008_vm10, %v2421_v23, %v3072_v36  ;;  %v3137_v5 = vsel %vm3009_vm11, %v2444_v24, %v3073_v37  ;;  %16883 = vmatpush.msk.msra.mxu0 %vm103_vm0, %v3162_v62  ;;  %16886 = vmatpush.msk.msra.mxu1 %vm103_vm0, %v3163_v63 }
 0x1c1   :  { %3314 = vmatpush.msra.mxu0 %v3130_v0  ;;  %3337 = vmatpush.msra.mxu1 %v3131_v1 }
 0x1c2   :  { %16884 = vmatmul.msk.f32.vlgmr.msra.gmra.mxu0 %vm96_vm1, %v18886_v20  ;;  %16887 = vmatmul.msk.f32.vlgmr.msra.gmra.mxu1 %vm96_vm1, %v18886_v20 }
 0x1c3   :  { %16891 = vmatmul.msk.f32.gmra.mxu2 %vm96_vm1, %v18895_v25  ;;  %16894 = vmatmul.msk.f32.gmra.mxu3 %vm96_vm1, %v18895_v25 }
 0x1c4   :  { %v2424_v4 = vpop.f32.mrf.mxu2  ;;  %v2447_v38 = vpop.f32.mrf.mxu3 }
 0x1c5   :  { %vm3040_vm8 = vcmp.gt.f32.partialorder %v2424_v4, 0.0  ;;  %v3104_v39 = vmul.f32 0.01, %v2424_v4  ;;  %vm3041_vm9 = vcmp.gt.f32.partialorder %v2447_v38, 0.0  ;;  %v3105_v40 = vmul.f32 0.01, %v2447_v38 }
 0x1c7   :  { %v3168_v41 = vsel %vm3040_vm8, %v2424_v4, %v3104_v39  ;;  %v3169_v42 = vsel %vm3041_vm9, %v2447_v38, %v3105_v40 }
 0x1c8   :  { %16901 = vmatpush.msk.msrb.mxu2 %vm103_vm0, %v3168_v41  ;;  %16904 = vmatpush.msk.msrb.mxu3 %vm103_vm0, %v3169_v42 }
 0x1ca   :  { %3452 = vmatpush.msrb.mxu2 %v3136_v43  ;;  %3475 = vmatpush.msrb.mxu3 %v3137_v5  ;;  %v2375_v2 = vpop.f32.mrf.mxu0  ;;  %v2398_v3 = vpop.f32.mrf.mxu1 }
 0x1cb   :  { %16902 = vmatmul.msk.f32.vlgmr.msrb.gmra.mxu2 %vm96_vm1, %v18886_v20  ;;  %16905 = vmatmul.msk.f32.vlgmr.msrb.gmra.mxu3 %vm96_vm1, %v18886_v20  ;;  %v3070_v21 = vmul.f32 0.01, %v2375_v2  ;;  %v3071_v22 = vmul.f32 0.01, %v2398_v3  ;;  %vm3006_vm10 = vcmp.gt.f32.partialorder %v2375_v2, 0.0  ;;  %vm3007_vm11 = vcmp.gt.f32.partialorder %v2398_v3, 0.0 }
 0x1cc   :  { %v2513_v13 = vpop.f32.mrf.mxu2  ;;  %v2536_v44 = vpop.f32.mrf.mxu3  ;;  %16885 = vmatmul.msk.f32.gmra.mxu0 %vm96_vm1, %v18895_v25  ;;  %16888 = vmatmul.msk.f32.gmra.mxu1 %vm96_vm1, %v18895_v25 }
 0x1cd   :  { %v3076_v46 = vmul.f32 0.01, %v2513_v13  ;;  %v3077_v47 = vmul.f32 0.01, %v2536_v44  ;;  %vm3012_vm14 = vcmp.gt.f32.partialorder %v2513_v13, 0.0  ;;  %vm3013_vm15 = vcmp.gt.f32.partialorder %v2536_v44, 0.0 }
 0x1ce   :  { %v3134_v32 = vsel %vm3006_vm10, %v2375_v2, %v3070_v21  ;;  %v3135_v33 = vsel %vm3007_vm11, %v2398_v3, %v3071_v22 }
 0x1cf   :  { %v3140_v52 = vsel %vm3012_vm14, %v2513_v13, %v3076_v46  ;;  %v3141_v53 = vsel %vm3013_vm15, %v2536_v44, %v3077_v47 }
 0x1d2   :  { %v2378_v23 = vpop.f32.mrf.mxu0  ;;  %v2401_v24 = vpop.f32.mrf.mxu1 }
 0x1d3   :  { %16903 = vmatmul.msk.f32.gmra.mxu2 %vm96_vm1, %v18895_v25  ;;  %16906 = vmatmul.msk.f32.gmra.mxu3 %vm96_vm1, %v18895_v25  ;;  %v3102_v26 = vmul.f32 0.01, %v2378_v23  ;;  %v3103_v27 = vmul.f32 0.01, %v2401_v24 }
 0x1d4   :  { %v2516_v48 = vpop.f32.mrf.mxu2  ;;  %v2539_v15 = vpop.f32.mrf.mxu3 }
 0x1d5   :  { %vm3044_vm12 = vcmp.gt.f32.partialorder %v2516_v48, 0.0  ;;  %v3108_v49 = vmul.f32 0.01, %v2516_v48  ;;  %vm3045_vm13 = vcmp.gt.f32.partialorder %v2539_v15, 0.0  ;;  %v3109_v50 = vmul.f32 0.01, %v2539_v15 }
 0x1d7   :  { %v3172_v51 = vsel %vm3044_vm12, %v2516_v48, %v3108_v49  ;;  %v3173_v17 = vsel %vm3045_vm13, %v2539_v15, %v3109_v50  ;;  %vm3038_vm12 = vcmp.gt.f32.partialorder %v2378_v23, 0.0  ;;  %vm3039_vm13 = vcmp.gt.f32.partialorder %v2401_v24, 0.0 }
 0x1d8   :  { %16913 = vmatpush.msk.msra.mxu2 %vm103_vm0, %v3172_v51  ;;  %16916 = vmatpush.msk.msra.mxu3 %vm103_vm0, %v3173_v17  ;;  %v3166_v30 = vsel %vm3038_vm12, %v2378_v23, %v3102_v26  ;;  %v3167_v31 = vsel %vm3039_vm13, %v2401_v24, %v3103_v27 }
 0x1d9   :  { %16895 = vmatpush.msk.msrb.mxu0 %vm103_vm0, %v3166_v30  ;;  %16898 = vmatpush.msk.msrb.mxu1 %vm103_vm0, %v3167_v31 }
 0x1da   :  { %3544 = vmatpush.msra.mxu2 %v3140_v52  ;;  %3567 = vmatpush.msra.mxu3 %v3141_v53  ;;  %v2467_v34 = vpop.f32.mrf.mxu0  ;;  %v2490_v35 = vpop.f32.mrf.mxu1 }
 0x1db   :  { %16914 = vmatmul.msk.f32.vlgmr.msra.gmra.mxu2 %vm96_vm1, %v18886_v20  ;;  %16917 = vmatmul.msk.f32.vlgmr.msra.gmra.mxu3 %vm96_vm1, %v18886_v20  ;;  %v3074_v13 = vmul.f32 0.01, %v2467_v34  ;;  %v3075_v44 = vmul.f32 0.01, %v2490_v35  ;;  %vm3010_vm4 = vcmp.gt.f32.partialorder %v2467_v34, 0.0  ;;  %vm3011_vm5 = vcmp.gt.f32.partialorder %v2490_v35, 0.0 }
 0x1dc   :  { %v2605_v60 = vpop.f32.mrf.mxu2  ;;  %v2628_v61 = vpop.f32.mrf.mxu3  ;;  %3406 = vmatpush.msrb.mxu0 %v3134_v32  ;;  %3429 = vmatpush.msrb.mxu1 %v3135_v33 }
 0x1dd   :  { %v3080_v6 = vmul.f32 0.01, %v2605_v60  ;;  %v3081_v7 = vmul.f32 0.01, %v2628_v61  ;;  %vm3016_vm8 = vcmp.gt.f32.partialorder %v2605_v60, 0.0  ;;  %vm3017_vm9 = vcmp.gt.f32.partialorder %v2628_v61, 0.0  ;;  %16896 = vmatmul.msk.f32.vlgmr.msrb.gmra.mxu0 %vm96_vm1, %v18886_v20  ;;  %16899 = vmatmul.msk.f32.vlgmr.msrb.gmra.mxu1 %vm96_vm1, %v18886_v20 }
 0x1de   :  { %v3138_v51 = vsel %vm3010_vm4, %v2467_v34, %v3074_v13  ;;  %v3139_v17 = vsel %vm3011_vm5, %v2490_v35, %v3075_v44 }
 0x1df   :  { %v3144_v18 = vsel %vm3016_vm8, %v2605_v60, %v3080_v6  ;;  %v3145_v19 = vsel %vm3017_vm9, %v2628_v61, %v3081_v7 }
 0x1e2   :  { %v2470_v8 = vpop.f32.mrf.mxu0  ;;  %v2493_v45 = vpop.f32.mrf.mxu1 }
 0x1e3   :  { %16915 = vmatmul.msk.f32.gmra.mxu2 %vm96_vm1, %v18895_v25  ;;  %16918 = vmatmul.msk.f32.gmra.mxu3 %vm96_vm1, %v18895_v25  ;;  %v3106_v46 = vmul.f32 0.01, %v2470_v8  ;;  %v3107_v47 = vmul.f32 0.01, %v2493_v45 }
 0x1e4   :  { %v2608_v9 = vpop.f32.mrf.mxu2  ;;  %v2631_v10 = vpop.f32.mrf.mxu3 }
 0x1e5   :  { %vm3048_vm6 = vcmp.gt.f32.partialorder %v2608_v9, 0.0  ;;  %v3112_v11 = vmul.f32 0.01, %v2608_v9  ;;  %vm3049_vm7 = vcmp.gt.f32.partialorder %v2631_v10, 0.0  ;;  %v3113_v12 = vmul.f32 0.01, %v2631_v10  ;;  %16897 = vmatmul.msk.f32.gmra.mxu0 %vm96_vm1, %v18895_v25  ;;  %16900 = vmatmul.msk.f32.gmra.mxu1 %vm96_vm1, %v18895_v25 }
 0x1e7   :  { %v3176_v14 = vsel %vm3048_vm6, %v2608_v9, %v3112_v11  ;;  %v3177_v16 = vsel %vm3049_vm7, %v2631_v10, %v3113_v12  ;;  %vm3042_vm6 = vcmp.gt.f32.partialorder %v2470_v8, 0.0  ;;  %vm3043_vm7 = vcmp.gt.f32.partialorder %v2493_v45, 0.0 }
 0x1e8   :  { %16925 = vmatpush.msk.msrb.mxu2 %vm103_vm0, %v3176_v14  ;;  %16928 = vmatpush.msk.msrb.mxu3 %vm103_vm0, %v3177_v16  ;;  %v3170_v49 = vsel %vm3042_vm6, %v2470_v8, %v3106_v46  ;;  %v3171_v50 = vsel %vm3043_vm7, %v2493_v45, %v3107_v47 }
 0x1e9   :  { %16907 = vmatpush.msk.msra.mxu0 %vm103_vm0, %v3170_v49  ;;  %16910 = vmatpush.msk.msra.mxu1 %vm103_vm0, %v3171_v50 }
 0x1ea   :  { %3636 = vmatpush.msrb.mxu2 %v3144_v18  ;;  %3659 = vmatpush.msrb.mxu3 %v3145_v19  ;;  %v2559_v52 = vpop.f32.mrf.mxu0  ;;  %v2582_v53 = vpop.f32.mrf.mxu1 }
 0x1eb   :  { %16926 = vmatmul.msk.f32.vlgmr.msrb.gmra.mxu2 %vm96_vm1, %v18886_v20  ;;  %16929 = vmatmul.msk.f32.vlgmr.msrb.gmra.mxu3 %vm96_vm1, %v18886_v20  ;;  %v3078_v0 = vmul.f32 0.01, %v2559_v52  ;;  %v3079_v1 = vmul.f32 0.01, %v2582_v53  ;;  %vm3014_vm12 = vcmp.gt.f32.partialorder %v2559_v52, 0.0  ;;  %vm3015_vm13 = vcmp.gt.f32.partialorder %v2582_v53, 0.0 }
 0x1ec   :  { %v2697_v28 = vpop.f32.mrf.mxu2  ;;  %v2720_v29 = vpop.f32.mrf.mxu3  ;;  %3498 = vmatpush.msra.mxu0 %v3138_v51  ;;  %3521 = vmatpush.msra.mxu1 %v3139_v17 }
 0x1ed   :  { %v3084_v36 = vmul.f32 0.01, %v2697_v28  ;;  %v3085_v37 = vmul.f32 0.01, %v2720_v29  ;;  %vm3020_vm2 = vcmp.gt.f32.partialorder %v2697_v28, 0.0  ;;  %vm3021_vm3 = vcmp.gt.f32.partialorder %v2720_v29, 0.0  ;;  %16908 = vmatmul.msk.f32.vlgmr.msra.gmra.mxu0 %vm96_vm1, %v18886_v20  ;;  %16911 = vmatmul.msk.f32.vlgmr.msra.gmra.mxu1 %vm96_vm1, %v18886_v20 }
 0x1ee   :  { %v3142_v14 = vsel %vm3014_vm12, %v2559_v52, %v3078_v0  ;;  %v3143_v16 = vsel %vm3015_vm13, %v2582_v53, %v3079_v1 }
 0x1ef   :  { %v3148_v43 = vsel %vm3020_vm2, %v2697_v28, %v3084_v36  ;;  %v3149_v5 = vsel %vm3021_vm3, %v2720_v29, %v3085_v37 }
 0x1f2   :  { %v2562_v2 = vpop.f32.mrf.mxu0  ;;  %v2585_v3 = vpop.f32.mrf.mxu1 }
 0x1f3   :  { %16927 = vmatmul.msk.f32.gmra.mxu2 %vm96_vm1, %v18895_v25  ;;  %16930 = vmatmul.msk.f32.gmra.mxu3 %vm96_vm1, %v18895_v25  ;;  %v3110_v6 = vmul.f32 0.01, %v2562_v2  ;;  %v3111_v7 = vmul.f32 0.01, %v2585_v3 }
 0x1f4   :  { %v2700_v4 = vpop.f32.mrf.mxu2  ;;  %v2723_v38 = vpop.f32.mrf.mxu3 }
 0x1f5   :  { %vm3052_vm14 = vcmp.gt.f32.partialorder %v2700_v4, 0.0  ;;  %v3116_v39 = vmul.f32 0.01, %v2700_v4  ;;  %vm3053_vm15 = vcmp.gt.f32.partialorder %v2723_v38, 0.0  ;;  %v3117_v40 = vmul.f32 0.01, %v2723_v38  ;;  %16909 = vmatmul.msk.f32.gmra.mxu0 %vm96_vm1, %v18895_v25  ;;  %16912 = vmatmul.msk.f32.gmra.mxu1 %vm96_vm1, %v18895_v25 }
 0x1f7   :  { %v3180_v41 = vsel %vm3052_vm14, %v2700_v4, %v3116_v39  ;;  %v3181_v42 = vsel %vm3053_vm15, %v2723_v38, %v3117_v40  ;;  %vm3046_vm14 = vcmp.gt.f32.partialorder %v2562_v2, 0.0  ;;  %vm3047_vm15 = vcmp.gt.f32.partialorder %v2585_v3, 0.0 }
 0x1f8   :  { %16937 = vmatpush.msk.msra.mxu2 %vm103_vm0, %v3180_v41  ;;  %16940 = vmatpush.msk.msra.mxu3 %vm103_vm0, %v3181_v42  ;;  %v3174_v11 = vsel %vm3046_vm14, %v2562_v2, %v3110_v6  ;;  %v3175_v12 = vsel %vm3047_vm15, %v2585_v3, %v3111_v7 }
 0x1f9   :  { %16919 = vmatpush.msk.msrb.mxu0 %vm103_vm0, %v3174_v11  ;;  %16922 = vmatpush.msk.msrb.mxu1 %vm103_vm0, %v3175_v12 }
 0x1fa   :  { %3728 = vmatpush.msra.mxu2 %v3148_v43  ;;  %3751 = vmatpush.msra.mxu3 %v3149_v5  ;;  %v2651_v18 = vpop.f32.mrf.mxu0  ;;  %v2674_v19 = vpop.f32.mrf.mxu1 }
 0x1fb   :  { %16938 = vmatmul.msk.f32.vlgmr.msra.gmra.mxu2 %vm96_vm1, %v18886_v20  ;;  %16941 = vmatmul.msk.f32.vlgmr.msra.gmra.mxu3 %vm96_vm1, %v18886_v20  ;;  %v3082_v32 = vmul.f32 0.01, %v2651_v18  ;;  %v3083_v33 = vmul.f32 0.01, %v2674_v19  ;;  %vm3018_vm6 = vcmp.gt.f32.partialorder %v2651_v18, 0.0  ;;  %vm3019_vm7 = vcmp.gt.f32.partialorder %v2674_v19, 0.0 }
 0x1fc   :  { %v2789_v48 = vpop.f32.mrf.mxu2  ;;  %v2812_v15 = vpop.f32.mrf.mxu3  ;;  %3590 = vmatpush.msrb.mxu0 %v3142_v14  ;;  %3613 = vmatpush.msrb.mxu1 %v3143_v16 }
 0x1fd   :  { %v3088_v54 = vmul.f32 0.01, %v2789_v48  ;;  %v3089_v55 = vmul.f32 0.01, %v2812_v15  ;;  %vm3024_vm10 = vcmp.gt.f32.partialorder %v2789_v48, 0.0  ;;  %vm3025_vm11 = vcmp.gt.f32.partialorder %v2812_v15, 0.0  ;;  %16920 = vmatmul.msk.f32.vlgmr.msrb.gmra.mxu0 %vm96_vm1, %v18886_v20  ;;  %16923 = vmatmul.msk.f32.vlgmr.msrb.gmra.mxu1 %vm96_vm1, %v18886_v20 }
 0x1fe   :  { %v3146_v41 = vsel %vm3018_vm6, %v2651_v18, %v3082_v32  ;;  %v3147_v42 = vsel %vm3019_vm7, %v2674_v19, %v3083_v33 }
 0x1ff   :  { %v3152_v62 = vsel %vm3024_vm10, %v2789_v48, %v3088_v54  ;;  %v3153_v63 = vsel %vm3025_vm11, %v2812_v15, %v3089_v55 }
 0x202   :  { %v2654_v34 = vpop.f32.mrf.mxu0  ;;  %v2677_v35 = vpop.f32.mrf.mxu1 }
 0x203   :  { %16939 = vmatmul.msk.f32.gmra.mxu2 %vm96_vm1, %v18895_v25  ;;  %16942 = vmatmul.msk.f32.gmra.mxu3 %vm96_vm1, %v18895_v25  ;;  %v3114_v36 = vmul.f32 0.01, %v2654_v34  ;;  %v3115_v37 = vmul.f32 0.01, %v2677_v35 }
 0x204   :  { %v2792_v56 = vpop.f32.mrf.mxu2  ;;  %v2815_v57 = vpop.f32.mrf.mxu3 }
 0x205   :  { %vm3056_vm8 = vcmp.gt.f32.partialorder %v2792_v56, 0.0  ;;  %v3120_v58 = vmul.f32 0.01, %v2792_v56  ;;  %vm3057_vm9 = vcmp.gt.f32.partialorder %v2815_v57, 0.0  ;;  %v3121_v59 = vmul.f32 0.01, %v2815_v57  ;;  %16921 = vmatmul.msk.f32.gmra.mxu0 %vm96_vm1, %v18895_v25  ;;  %16924 = vmatmul.msk.f32.gmra.mxu1 %vm96_vm1, %v18895_v25 }
 0x207   :  { %v3184_v60 = vsel %vm3056_vm8, %v2792_v56, %v3120_v58  ;;  %v3185_v61 = vsel %vm3057_vm9, %v2815_v57, %v3121_v59  ;;  %vm3050_vm8 = vcmp.gt.f32.partialorder %v2654_v34, 0.0  ;;  %vm3051_vm9 = vcmp.gt.f32.partialorder %v2677_v35, 0.0 }
 0x208   :  { %16949 = vmatpush.msk.msrb.mxu2 %vm103_vm0, %v3184_v60  ;;  %16952 = vmatpush.msk.msrb.mxu3 %vm103_vm0, %v3185_v61  ;;  %v3178_v39 = vsel %vm3050_vm8, %v2654_v34, %v3114_v36  ;;  %v3179_v40 = vsel %vm3051_vm9, %v2677_v35, %v3115_v37 }
 0x209   :  { %16931 = vmatpush.msk.msra.mxu0 %vm103_vm0, %v3178_v39  ;;  %16934 = vmatpush.msk.msra.mxu1 %vm103_vm0, %v3179_v40 }
 0x20a   :  { %3820 = vmatpush.msrb.mxu2 %v3152_v62  ;;  %3843 = vmatpush.msrb.mxu3 %v3153_v63  ;;  %v2743_v43 = vpop.f32.mrf.mxu0  ;;  %v2766_v5 = vpop.f32.mrf.mxu1 }
 0x20b   :  { %16950 = vmatmul.msk.f32.vlgmr.msrb.gmra.mxu2 %vm96_vm1, %v18886_v20  ;;  %16953 = vmatmul.msk.f32.vlgmr.msrb.gmra.mxu3 %vm96_vm1, %v18886_v20  ;;  %v3086_v51 = vmul.f32 0.01, %v2743_v43  ;;  %v3087_v17 = vmul.f32 0.01, %v2766_v5  ;;  %vm3022_vm14 = vcmp.gt.f32.partialorder %v2743_v43, 0.0  ;;  %vm3023_vm15 = vcmp.gt.f32.partialorder %v2766_v5, 0.0 }
 0x20c   :  { %v2881_v9 = vpop.f32.mrf.mxu2  ;;  %v2904_v10 = vpop.f32.mrf.mxu3  ;;  %3682 = vmatpush.msra.mxu0 %v3146_v41  ;;  %3705 = vmatpush.msra.mxu1 %v3147_v42  ;;  %v19071_v42 = vld [vmem:[%s21286_s1 + $0x48] sm:$0x1f] }
 0x20d   :  { %v3092_v21 = vmul.f32 0.01, %v2881_v9  ;;  %v3093_v22 = vmul.f32 0.01, %v2904_v10  ;;  %vm3028_vm4 = vcmp.gt.f32.partialorder %v2881_v9, 0.0  ;;  %vm3029_vm5 = vcmp.gt.f32.partialorder %v2904_v10, 0.0  ;;  %16932 = vmatmul.msk.f32.vlgmr.msra.gmra.mxu0 %vm96_vm1, %v18886_v20  ;;  %16935 = vmatmul.msk.f32.vlgmr.msra.gmra.mxu1 %vm96_vm1, %v18886_v20 }
 0x20e   :  { %v3150_v58 = vsel %vm3022_vm14, %v2743_v43, %v3086_v51  ;;  %v3151_v59 = vsel %vm3023_vm15, %v2766_v5, %v3087_v17 }
 0x20f   :  { %v3156_v30 = vsel %vm3028_vm4, %v2881_v9, %v3092_v21  ;;  %v3157_v31 = vsel %vm3029_vm5, %v2904_v10, %v3093_v22 }
 0x212   :  { %v2746_v52 = vpop.f32.mrf.mxu0  ;;  %v2769_v53 = vpop.f32.mrf.mxu1 }
 0x213   :  { %16951 = vmatmul.msk.f32.gmra.mxu2 %vm96_vm1, %v18895_v25  ;;  %16954 = vmatmul.msk.f32.gmra.mxu3 %vm96_vm1, %v18895_v25  ;;  %v3118_v54 = vmul.f32 0.01, %v2746_v52  ;;  %v3119_v55 = vmul.f32 0.01, %v2769_v53 }
 0x214   :  { %v2884_v23 = vpop.f32.mrf.mxu2  ;;  %v2907_v24 = vpop.f32.mrf.mxu3 }
 0x215   :  { %vm3060_vm2 = vcmp.gt.f32.partialorder %v2884_v23, 0.0  ;;  %v3124_v26 = vmul.f32 0.01, %v2884_v23  ;;  %vm3061_vm3 = vcmp.gt.f32.partialorder %v2907_v24, 0.0  ;;  %v3125_v27 = vmul.f32 0.01, %v2907_v24  ;;  %16933 = vmatmul.msk.f32.gmra.mxu0 %vm96_vm1, %v18895_v25  ;;  %16936 = vmatmul.msk.f32.gmra.mxu1 %vm96_vm1, %v18895_v25 }
 0x217   :  { %v3188_v28 = vsel %vm3060_vm2, %v2884_v23, %v3124_v26  ;;  %v3189_v29 = vsel %vm3061_vm3, %v2907_v24, %v3125_v27  ;;  %vm3054_vm2 = vcmp.gt.f32.partialorder %v2746_v52, 0.0  ;;  %vm3055_vm3 = vcmp.gt.f32.partialorder %v2769_v53, 0.0 }
 0x218   :  { %16961 = vmatpush.msk.msra.mxu2 %vm103_vm0, %v3188_v28  ;;  %16964 = vmatpush.msk.msra.mxu3 %vm103_vm0, %v3189_v29  ;;  %v3182_v56 = vsel %vm3054_vm2, %v2746_v52, %v3118_v54  ;;  %v3183_v57 = vsel %vm3055_vm3, %v2769_v53, %v3119_v55  ;;  %v19056_v28 = vld [vmem:[%s21286_s1 + $0x40] sm:$0xff] }
 0x219   :  { %16943 = vmatpush.msk.msrb.mxu0 %vm103_vm0, %v3182_v56  ;;  %16946 = vmatpush.msk.msrb.mxu1 %vm103_vm0, %v3183_v57 }
 0x21a   :  { %3912 = vmatpush.msra.mxu2 %v3156_v30  ;;  %3935 = vmatpush.msra.mxu3 %v3157_v31  ;;  %v2835_v60 = vpop.f32.mrf.mxu0  ;;  %v2858_v61 = vpop.f32.mrf.mxu1 }
 0x21b   :  { %16962 = vmatmul.msk.f32.vlgmr.msra.gmra.mxu2 %vm96_vm1, %v18886_v20  ;;  %16965 = vmatmul.msk.f32.vlgmr.msra.gmra.mxu3 %vm96_vm1, %v18886_v20  ;;  %v3090_v62 = vmul.f32 0.01, %v2835_v60  ;;  %v3091_v63 = vmul.f32 0.01, %v2858_v61  ;;  %vm3026_vm4 = vcmp.gt.f32.partialorder %v2835_v60, 0.0  ;;  %vm3027_vm5 = vcmp.gt.f32.partialorder %v2858_v61, 0.0 }
 0x21c   :  { %v2973_v4 = vpop.f32.mrf.mxu2  ;;  %v2996_v38 = vpop.f32.mrf.mxu3  ;;  %3774 = vmatpush.msrb.mxu0 %v3150_v58  ;;  %3797 = vmatpush.msrb.mxu1 %v3151_v59 }
 0x21d   :  { %v3096_v13 = vmul.f32 0.01, %v2973_v4  ;;  %v3097_v44 = vmul.f32 0.01, %v2996_v38  ;;  %vm3032_vm12 = vcmp.gt.f32.partialorder %v2973_v4, 0.0  ;;  %vm3033_vm13 = vcmp.gt.f32.partialorder %v2996_v38, 0.0  ;;  %16944 = vmatmul.msk.f32.vlgmr.msrb.gmra.mxu0 %vm96_vm1, %v18886_v20  ;;  %16947 = vmatmul.msk.f32.vlgmr.msrb.gmra.mxu1 %vm96_vm1, %v18886_v20 }
 0x21e   :  { %v3154_v11 = vsel %vm3026_vm4, %v2835_v60, %v3090_v62  ;;  %v3155_v12 = vsel %vm3027_vm5, %v2858_v61, %v3091_v63 }
 0x21f   :  { %v3160_v49 = vsel %vm3032_vm12, %v2973_v4, %v3096_v13  ;;  %v3161_v50 = vsel %vm3033_vm13, %v2996_v38, %v3097_v44 }
 0x222   :  { %v2838_v0 = vpop.f32.mrf.mxu0  ;;  %v2861_v1 = vpop.f32.mrf.mxu1 }
 0x223   :  { %16963 = vmatmul.msk.f32.gmra.mxu2 %vm96_vm1, %v18895_v25  ;;  %16966 = vmatmul.msk.f32.gmra.mxu3 %vm96_vm1, %v18895_v25  ;;  %vm3058_vm6 = vcmp.gt.f32.partialorder %v2838_v0, 0.0  ;;  %v3122_v2 = vmul.f32 0.01, %v2838_v0  ;;  %vm3059_vm7 = vcmp.gt.f32.partialorder %v2861_v1, 0.0  ;;  %v3123_v3 = vmul.f32 0.01, %v2861_v1 }
 0x224   :  { %v2976_v8 = vpop.f32.mrf.mxu2  ;;  %v2999_v45 = vpop.f32.mrf.mxu3 }
 0x225   :  { %vm3064_vm10 = vcmp.gt.f32.partialorder %v2976_v8, 0.0  ;;  %v3128_v46 = vmul.f32 0.01, %v2976_v8  ;;  %vm3065_vm11 = vcmp.gt.f32.partialorder %v2999_v45, 0.0  ;;  %v3129_v47 = vmul.f32 0.01, %v2999_v45  ;;  %16945 = vmatmul.msk.f32.gmra.mxu0 %vm96_vm1, %v18895_v25  ;;  %16948 = vmatmul.msk.f32.gmra.mxu1 %vm96_vm1, %v18895_v25 }
 0x226   :  { %v3186_v9 = vsel %vm3058_vm6, %v2838_v0, %v3122_v2  ;;  %v3187_v10 = vsel %vm3059_vm7, %v2861_v1, %v3123_v3 }
 0x227   :  { %v3192_v48 = vsel %vm3064_vm10, %v2976_v8, %v3128_v46  ;;  %v3193_v15 = vsel %vm3065_vm11, %v2999_v45, %v3129_v47  ;;  %16955 = vmatpush.msk.msra.mxu0 %vm103_vm0, %v3186_v9  ;;  %16958 = vmatpush.msk.msra.mxu1 %vm103_vm0, %v3187_v10 }
 0x228   :  { %16973 = vmatpush.msk.msrb.mxu2 %vm103_vm0, %v3192_v48  ;;  %16976 = vmatpush.msk.msrb.mxu3 %vm103_vm0, %v3193_v15 }
 0x229   :  { %3866 = vmatpush.msra.mxu0 %v3154_v11  ;;  %3889 = vmatpush.msra.mxu1 %v3155_v12 }
 0x22a   :  { %4004 = vmatpush.msrb.mxu2 %v3160_v49  ;;  %4027 = vmatpush.msrb.mxu3 %v3161_v50 }
 0x22b   :  { %16974 = vmatmul.msk.f32.vlgmr.msrb.gmra.mxu2 %vm96_vm1, %v18886_v20  ;;  %16977 = vmatmul.msk.f32.vlgmr.msrb.gmra.mxu3 %vm96_vm1, %v18886_v20  ;;  %v2927_v14 = vpop.f32.mrf.mxu0  ;;  %v2950_v16 = vpop.f32.mrf.mxu1 }
 0x22c   :  { %v3094_v31 = vmul.f32 0.01, %v2927_v14  ;;  %v3095_v32 = vmul.f32 0.01, %v2950_v16  ;;  %vm3030_vm12 = vcmp.gt.f32.partialorder %v2927_v14, 0.0  ;;  %vm3031_vm13 = vcmp.gt.f32.partialorder %v2950_v16, 0.0 }
 0x22d   :  { %16956 = vmatmul.msk.f32.vlgmr.msra.gmra.mxu0 %vm96_vm1, %v18886_v20  ;;  %16959 = vmatmul.msk.f32.vlgmr.msra.gmra.mxu1 %vm96_vm1, %v18886_v20 }
 0x22e   :  { %v3158_v40 = vsel %vm3030_vm12, %v2927_v14, %v3094_v31  ;;  %v3159_v41 = vsel %vm3031_vm13, %v2950_v16, %v3095_v32 }
 0x233   :  { %16975 = vmatmul.msk.f32.gmra.mxu2 %vm96_vm1, %v18895_v25  ;;  %16978 = vmatmul.msk.f32.gmra.mxu3 %vm96_vm1, %v18895_v25  ;;  %v2930_v33 = vpop.f32.mrf.mxu0  ;;  %v2953_v34 = vpop.f32.mrf.mxu1 }
 0x234   :  { %vm3062_vm14 = vcmp.gt.f32.partialorder %v2930_v33, 0.0  ;;  %v3126_v35 = vmul.f32 0.01, %v2930_v33  ;;  %vm3063_vm15 = vcmp.gt.f32.partialorder %v2953_v34, 0.0  ;;  %v3127_v36 = vmul.f32 0.01, %v2953_v34 }
 0x235   :  { %16957 = vmatmul.msk.f32.gmra.mxu0 %vm96_vm1, %v18895_v25  ;;  %16960 = vmatmul.msk.f32.gmra.mxu1 %vm96_vm1, %v18895_v25 }
 0x236   :  { %v3190_v38 = vsel %vm3062_vm14, %v2930_v33, %v3126_v35  ;;  %v3191_v39 = vsel %vm3063_vm15, %v2953_v34, %v3127_v36 }
 0x237   :  { %16967 = vmatpush.msk.msrb.mxu0 %vm103_vm0, %v3190_v38  ;;  %16970 = vmatpush.msk.msrb.mxu1 %vm103_vm0, %v3191_v39 }
 0x239   :  { %3958 = vmatpush.msrb.mxu0 %v3158_v40  ;;  %3981 = vmatpush.msrb.mxu1 %v3159_v41 }
 0x23d   :  { %16968 = vmatmul.msk.f32.vlgmr.msrb.gmra.mxu0 %vm96_vm1, %v18886_v20  ;;  %16971 = vmatmul.msk.f32.vlgmr.msrb.gmra.mxu1 %vm96_vm1, %v18886_v20 }
 0x23e   :  { %v3362_v6 = vpop.f32.mrf.mxu2  ;;  %v3385_v7 = vpop.f32.mrf.mxu3 }
 0x23f   :  { %v4101_v18 = vmul.f32 0.01, %v3362_v6  ;;  %v4102_v19 = vmul.f32 0.01, %v3385_v7  ;;  %vm4037_vm10 = vcmp.gt.f32.partialorder %v3362_v6, 0.0  ;;  %vm4038_vm11 = vcmp.gt.f32.partialorder %v3385_v7, 0.0  ;;  %v3316_v50 = vpop.f32.mrf.mxu0  ;;  %v3339_v51 = vpop.f32.mrf.mxu1 }
 0x240   :  { %v4099_v57 = vmul.f32 0.01, %v3316_v50 }
 0x241   :  { %v4165_v29 = vsel %vm4037_vm10, %v3362_v6, %v4101_v18  ;;  %v4166_v30 = vsel %vm4038_vm11, %v3385_v7, %v4102_v19  ;;  %vm4035_vm10 = vcmp.gt.f32.partialorder %v3316_v50, 0.0  ;;  %vm4036_vm11 = vcmp.gt.f32.partialorder %v3339_v51, 0.0 }
 0x242   :  { %v4163_v6 = vsel %vm4035_vm10, %v3316_v50, %v4099_v57 }
 0x245   :  { %16969 = vmatmul.msk.f32.gmra.mxu0 %vm96_vm1, %v18895_v25  ;;  %16972 = vmatmul.msk.f32.gmra.mxu1 %vm96_vm1, %v18895_v25  ;;  %v4100_v25 = vmul.f32 0.01, %v3339_v51 }
 0x246   :  { %v3365_v21 = vpop.f32.mrf.mxu2  ;;  %v3388_v22 = vpop.f32.mrf.mxu3 }
 0x247   :  { %vm4069_vm8 = vcmp.gt.f32.partialorder %v3365_v21, 0.0  ;;  %v4133_v23 = vmul.f32 0.01, %v3365_v21  ;;  %vm4070_vm9 = vcmp.gt.f32.partialorder %v3388_v22, 0.0  ;;  %v4134_v24 = vmul.f32 0.01, %v3388_v22 }
 0x248   :  { %v4164_v7 = vsel %vm4036_vm11, %v3339_v51, %v4100_v25 }
 0x249   :  { %v4197_v26 = vsel %vm4069_vm8, %v3365_v21, %v4133_v23  ;;  %v4198_v27 = vsel %vm4070_vm9, %v3388_v22, %v4134_v24  ;;  %v3319_v60 = vpop.f32.mrf.mxu0  ;;  %v3342_v61 = vpop.f32.mrf.mxu1 }
 0x24a   :  { %16987 = vmatpush.msk.msra.mxu2 %vm103_vm0, %v4197_v26  ;;  %16990 = vmatpush.msk.msra.mxu3 %vm103_vm0, %v4198_v27  ;;  %vm4067_vm12 = vcmp.gt.f32.partialorder %v3319_v60, 0.0  ;;  %v4131_v62 = vmul.f32 0.01, %v3319_v60  ;;  %vm4068_vm13 = vcmp.gt.f32.partialorder %v3342_v61, 0.0  ;;  %v4132_v63 = vmul.f32 0.01, %v3342_v61 }
 0x24c   :  { %4393 = vmatpush.msra.mxu2 %v4165_v29  ;;  %4416 = vmatpush.msra.mxu3 %v4166_v30  ;;  %v4195_v2 = vsel %vm4067_vm12, %v3319_v60, %v4131_v62  ;;  %v4196_v3 = vsel %vm4068_vm13, %v3342_v61, %v4132_v63 }
 0x24d   :  { %16988 = vmatmul.msk.f32.vlgmr.msra.gmra.mxu2 %vm96_vm1, %v19056_v28  ;;  %16991 = vmatmul.msk.f32.vlgmr.msra.gmra.mxu3 %vm96_vm1, %v19056_v28 }
 0x24e   :  { %v3454_v37 = vpop.f32.mrf.mxu2  ;;  %v3477_v4 = vpop.f32.mrf.mxu3  ;;  %16981 = vmatpush.msk.msra.mxu0 %vm103_vm0, %v4195_v2  ;;  %16984 = vmatpush.msk.msra.mxu1 %vm103_vm0, %v4196_v3 }
 0x24f   :  { %v4105_v43 = vmul.f32 0.01, %v3454_v37  ;;  %v4106_v5 = vmul.f32 0.01, %v3477_v4  ;;  %vm4041_vm4 = vcmp.gt.f32.partialorder %v3454_v37, 0.0  ;;  %vm4042_vm5 = vcmp.gt.f32.partialorder %v3477_v4, 0.0 }
 0x250   :  { %4347 = vmatpush.msra.mxu0 %v4163_v6  ;;  %4370 = vmatpush.msra.mxu1 %v4164_v7 }
 0x251   :  { %v4169_v48 = vsel %vm4041_vm4, %v3454_v37, %v4105_v43  ;;  %v4170_v15 = vsel %vm4042_vm5, %v3477_v4, %v4106_v5  ;;  %16982 = vmatmul.msk.f32.vlgmr.msra.gmra.mxu0 %vm96_vm1, %v19056_v28  ;;  %16985 = vmatmul.msk.f32.vlgmr.msra.gmra.mxu1 %vm96_vm1, %v19056_v28 }
 0x255   :  { %16989 = vmatmul.msk.f32.gmra.mxu2 %vm96_vm1, %v19071_v42  ;;  %16992 = vmatmul.msk.f32.gmra.mxu3 %vm96_vm1, %v19071_v42 }
 0x256   :  { %v3457_v13 = vpop.f32.mrf.mxu2  ;;  %v3480_v44 = vpop.f32.mrf.mxu3 }
 0x257   :  { %vm4073_vm2 = vcmp.gt.f32.partialorder %v3457_v13, 0.0  ;;  %v4137_v8 = vmul.f32 0.01, %v3457_v13  ;;  %vm4074_vm3 = vcmp.gt.f32.partialorder %v3480_v44, 0.0  ;;  %v4138_v45 = vmul.f32 0.01, %v3480_v44 }
 0x259   :  { %v4201_v46 = vsel %vm4073_vm2, %v3457_v13, %v4137_v8  ;;  %v4202_v47 = vsel %vm4074_vm3, %v3480_v44, %v4138_v45  ;;  %16983 = vmatmul.msk.f32.gmra.mxu0 %vm96_vm1, %v19071_v42  ;;  %16986 = vmatmul.msk.f32.gmra.mxu1 %vm96_vm1, %v19071_v42 }
 0x25a   :  { %16999 = vmatpush.msk.msrb.mxu2 %vm103_vm0, %v4201_v46  ;;  %17002 = vmatpush.msk.msrb.mxu3 %vm103_vm0, %v4202_v47  ;;  %v3408_v11 = vpop.f32.mrf.mxu0  ;;  %v3431_v12 = vpop.f32.mrf.mxu1 }
 0x25b   :  { %v4103_v23 = vmul.f32 0.01, %v3408_v11  ;;  %v4104_v24 = vmul.f32 0.01, %v3431_v12  ;;  %vm4039_vm4 = vcmp.gt.f32.partialorder %v3408_v11, 0.0  ;;  %vm4040_vm5 = vcmp.gt.f32.partialorder %v3431_v12, 0.0 }
 0x25c   :  { %4485 = vmatpush.msrb.mxu2 %v4169_v48  ;;  %4508 = vmatpush.msrb.mxu3 %v4170_v15 }
 0x25d   :  { %17000 = vmatmul.msk.f32.vlgmr.msrb.gmra.mxu2 %vm96_vm1, %v19056_v28  ;;  %17003 = vmatmul.msk.f32.vlgmr.msrb.gmra.mxu3 %vm96_vm1, %v19056_v28  ;;  %v4167_v37 = vsel %vm4039_vm4, %v3408_v11, %v4103_v23  ;;  %v4168_v4 = vsel %vm4040_vm5, %v3431_v12, %v4104_v24 }
 0x25e   :  { %v3546_v20 = vpop.f32.mrf.mxu2  ;;  %v3569_v49 = vpop.f32.mrf.mxu3 }
 0x25f   :  { %v4109_v17 = vmul.f32 0.01, %v3546_v20  ;;  %v4110_v52 = vmul.f32 0.01, %v3569_v49  ;;  %vm4045_vm8 = vcmp.gt.f32.partialorder %v3546_v20, 0.0  ;;  %vm4046_vm9 = vcmp.gt.f32.partialorder %v3569_v49, 0.0 }
 0x261   :  { %v4173_v0 = vsel %vm4045_vm8, %v3546_v20, %v4109_v17  ;;  %v4174_v1 = vsel %vm4046_vm9, %v3569_v49, %v4110_v52 }
 0x262   :  { %v3411_v29 = vpop.f32.mrf.mxu0  ;;  %v3434_v30 = vpop.f32.mrf.mxu1 }
 0x263   :  { %v4135_v31 = vmul.f32 0.01, %v3411_v29  ;;  %v4136_v32 = vmul.f32 0.01, %v3434_v30 }
 0x265   :  { %17001 = vmatmul.msk.f32.gmra.mxu2 %vm96_vm1, %v19071_v42  ;;  %17004 = vmatmul.msk.f32.gmra.mxu3 %vm96_vm1, %v19071_v42 }
 0x266   :  { %v3549_v53 = vpop.f32.mrf.mxu2  ;;  %v3572_v54 = vpop.f32.mrf.mxu3 }
 0x267   :  { %vm4077_vm6 = vcmp.gt.f32.partialorder %v3549_v53, 0.0  ;;  %v4141_v55 = vmul.f32 0.01, %v3549_v53  ;;  %vm4078_vm7 = vcmp.gt.f32.partialorder %v3572_v54, 0.0  ;;  %v4142_v56 = vmul.f32 0.01, %v3572_v54 }
 0x269   :  { %v4205_v58 = vsel %vm4077_vm6, %v3549_v53, %v4141_v55  ;;  %v4206_v59 = vsel %vm4078_vm7, %v3572_v54, %v4142_v56  ;;  %vm4071_vm6 = vcmp.gt.f32.partialorder %v3411_v29, 0.0  ;;  %vm4072_vm7 = vcmp.gt.f32.partialorder %v3434_v30, 0.0 }
 0x26a   :  { %17011 = vmatpush.msk.msra.mxu2 %vm103_vm0, %v4205_v58  ;;  %17014 = vmatpush.msk.msra.mxu3 %vm103_vm0, %v4206_v59  ;;  %v4199_v35 = vsel %vm4071_vm6, %v3411_v29, %v4135_v31  ;;  %v4200_v36 = vsel %vm4072_vm7, %v3434_v30, %v4136_v32  ;;  %v3500_v40 = vpop.f32.mrf.mxu0  ;;  %v3523_v41 = vpop.f32.mrf.mxu1 }
 0x26b   :  { %16993 = vmatpush.msk.msrb.mxu0 %vm103_vm0, %v4199_v35  ;;  %16996 = vmatpush.msk.msrb.mxu1 %vm103_vm0, %v4200_v36  ;;  %v4107_v46 = vmul.f32 0.01, %v3500_v40  ;;  %v4108_v47 = vmul.f32 0.01, %v3523_v41  ;;  %vm4043_vm12 = vcmp.gt.f32.partialorder %v3500_v40, 0.0  ;;  %vm4044_vm13 = vcmp.gt.f32.partialorder %v3523_v41, 0.0 }
 0x26c   :  { %4577 = vmatpush.msra.mxu2 %v4173_v0  ;;  %4600 = vmatpush.msra.mxu3 %v4174_v1 }
 0x26d   :  { %17012 = vmatmul.msk.f32.vlgmr.msra.gmra.mxu2 %vm96_vm1, %v19056_v28  ;;  %17015 = vmatmul.msk.f32.vlgmr.msra.gmra.mxu3 %vm96_vm1, %v19056_v28  ;;  %v4171_v55 = vsel %vm4043_vm12, %v3500_v40, %v4107_v46  ;;  %v4172_v56 = vsel %vm4044_vm13, %v3523_v41, %v4108_v47 }
 0x26e   :  { %v3638_v9 = vpop.f32.mrf.mxu2  ;;  %v3661_v10 = vpop.f32.mrf.mxu3  ;;  %4439 = vmatpush.msrb.mxu0 %v4167_v37  ;;  %4462 = vmatpush.msrb.mxu1 %v4168_v4 }
 0x26f   :  { %v4113_v14 = vmul.f32 0.01, %v3638_v9  ;;  %v4114_v16 = vmul.f32 0.01, %v3661_v10  ;;  %vm4049_vm2 = vcmp.gt.f32.partialorder %v3638_v9, 0.0  ;;  %vm4050_vm3 = vcmp.gt.f32.partialorder %v3661_v10, 0.0  ;;  %16994 = vmatmul.msk.f32.vlgmr.msrb.gmra.mxu0 %vm96_vm1, %v19056_v28  ;;  %16997 = vmatmul.msk.f32.vlgmr.msrb.gmra.mxu1 %vm96_vm1, %v19056_v28 }
 0x271   :  { %v4177_v33 = vsel %vm4049_vm2, %v3638_v9, %v4113_v14  ;;  %v4178_v34 = vsel %vm4050_vm3, %v3661_v10, %v4114_v16 }
 0x272   :  { %v3503_v20 = vpop.f32.mrf.mxu0  ;;  %v3526_v49 = vpop.f32.mrf.mxu1 }
 0x273   :  { %v4139_v50 = vmul.f32 0.01, %v3503_v20  ;;  %v4140_v51 = vmul.f32 0.01, %v3526_v49 }
 0x275   :  { %17013 = vmatmul.msk.f32.gmra.mxu2 %vm96_vm1, %v19071_v42  ;;  %17016 = vmatmul.msk.f32.gmra.mxu3 %vm96_vm1, %v19071_v42 }
 0x276   :  { %v3641_v18 = vpop.f32.mrf.mxu2  ;;  %v3664_v19 = vpop.f32.mrf.mxu3 }
 0x277   :  { %vm4081_vm14 = vcmp.gt.f32.partialorder %v3641_v18, 0.0  ;;  %v4145_v21 = vmul.f32 0.01, %v3641_v18  ;;  %vm4082_vm15 = vcmp.gt.f32.partialorder %v3664_v19, 0.0  ;;  %v4146_v22 = vmul.f32 0.01, %v3664_v19  ;;  %16995 = vmatmul.msk.f32.gmra.mxu0 %vm96_vm1, %v19071_v42  ;;  %16998 = vmatmul.msk.f32.gmra.mxu1 %vm96_vm1, %v19071_v42 }
 0x279   :  { %v4209_v26 = vsel %vm4081_vm14, %v3641_v18, %v4145_v21  ;;  %v4210_v27 = vsel %vm4082_vm15, %v3664_v19, %v4146_v22  ;;  %vm4075_vm14 = vcmp.gt.f32.partialorder %v3503_v20, 0.0  ;;  %vm4076_vm15 = vcmp.gt.f32.partialorder %v3526_v49, 0.0 }
 0x27a   :  { %17023 = vmatpush.msk.msrb.mxu2 %vm103_vm0, %v4209_v26  ;;  %17026 = vmatpush.msk.msrb.mxu3 %vm103_vm0, %v4210_v27  ;;  %v4203_v53 = vsel %vm4075_vm14, %v3503_v20, %v4139_v50  ;;  %v4204_v54 = vsel %vm4076_vm15, %v3526_v49, %v4140_v51  ;;  %v3592_v58 = vpop.f32.mrf.mxu0  ;;  %v3615_v59 = vpop.f32.mrf.mxu1 }
 0x27b   :  { %17005 = vmatpush.msk.msra.mxu0 %vm103_vm0, %v4203_v53  ;;  %17008 = vmatpush.msk.msra.mxu1 %vm103_vm0, %v4204_v54  ;;  %v4111_v2 = vmul.f32 0.01, %v3592_v58  ;;  %v4112_v3 = vmul.f32 0.01, %v3615_v59  ;;  %vm4047_vm6 = vcmp.gt.f32.partialorder %v3592_v58, 0.0  ;;  %vm4048_vm7 = vcmp.gt.f32.partialorder %v3615_v59, 0.0 }
 0x27c   :  { %4669 = vmatpush.msrb.mxu2 %v4177_v33  ;;  %4692 = vmatpush.msrb.mxu3 %v4178_v34 }
 0x27d   :  { %17024 = vmatmul.msk.f32.vlgmr.msrb.gmra.mxu2 %vm96_vm1, %v19056_v28  ;;  %17027 = vmatmul.msk.f32.vlgmr.msrb.gmra.mxu3 %vm96_vm1, %v19056_v28  ;;  %v4175_v21 = vsel %vm4047_vm6, %v3592_v58, %v4111_v2  ;;  %v4176_v22 = vsel %vm4048_vm7, %v3615_v59, %v4112_v3 }
 0x27e   :  { %v3730_v38 = vpop.f32.mrf.mxu2  ;;  %v3753_v39 = vpop.f32.mrf.mxu3  ;;  %4531 = vmatpush.msra.mxu0 %v4171_v55  ;;  %4554 = vmatpush.msra.mxu1 %v4172_v56 }
 0x27f   :  { %v4117_v43 = vmul.f32 0.01, %v3730_v38  ;;  %v4118_v5 = vmul.f32 0.01, %v3753_v39  ;;  %vm4053_vm10 = vcmp.gt.f32.partialorder %v3730_v38, 0.0  ;;  %vm4054_vm11 = vcmp.gt.f32.partialorder %v3753_v39, 0.0  ;;  %17006 = vmatmul.msk.f32.vlgmr.msra.gmra.mxu0 %vm96_vm1, %v19056_v28  ;;  %17009 = vmatmul.msk.f32.vlgmr.msra.gmra.mxu1 %vm96_vm1, %v19056_v28 }
 0x281   :  { %v4181_v17 = vsel %vm4053_vm10, %v3730_v38, %v4117_v43  ;;  %v4182_v52 = vsel %vm4054_vm11, %v3753_v39, %v4118_v5 }
 0x282   :  { %v3595_v9 = vpop.f32.mrf.mxu0  ;;  %v3618_v10 = vpop.f32.mrf.mxu1 }
 0x283   :  { %v4143_v11 = vmul.f32 0.01, %v3595_v9  ;;  %v4144_v12 = vmul.f32 0.01, %v3618_v10 }
 0x285   :  { %17025 = vmatmul.msk.f32.gmra.mxu2 %vm96_vm1, %v19071_v42  ;;  %17028 = vmatmul.msk.f32.gmra.mxu3 %vm96_vm1, %v19071_v42 }
 0x286   :  { %v3733_v13 = vpop.f32.mrf.mxu2  ;;  %v3756_v44 = vpop.f32.mrf.mxu3 }
 0x287   :  { %vm4085_vm8 = vcmp.gt.f32.partialorder %v3733_v13, 0.0  ;;  %v4149_v8 = vmul.f32 0.01, %v3733_v13  ;;  %vm4086_vm9 = vcmp.gt.f32.partialorder %v3756_v44, 0.0  ;;  %v4150_v45 = vmul.f32 0.01, %v3756_v44  ;;  %17007 = vmatmul.msk.f32.gmra.mxu0 %vm96_vm1, %v19071_v42  ;;  %17010 = vmatmul.msk.f32.gmra.mxu1 %vm96_vm1, %v19071_v42 }
 0x289   :  { %v4213_v48 = vsel %vm4085_vm8, %v3733_v13, %v4149_v8  ;;  %v4214_v15 = vsel %vm4086_vm9, %v3756_v44, %v4150_v45  ;;  %vm4079_vm8 = vcmp.gt.f32.partialorder %v3595_v9, 0.0  ;;  %vm4080_vm9 = vcmp.gt.f32.partialorder %v3618_v10, 0.0 }
 0x28a   :  { %17035 = vmatpush.msk.msra.mxu2 %vm103_vm0, %v4213_v48  ;;  %17038 = vmatpush.msk.msra.mxu3 %vm103_vm0, %v4214_v15  ;;  %v4207_v18 = vsel %vm4079_vm8, %v3595_v9, %v4143_v11  ;;  %v4208_v19 = vsel %vm4080_vm9, %v3618_v10, %v4144_v12  ;;  %v3684_v26 = vpop.f32.mrf.mxu0  ;;  %v3707_v27 = vpop.f32.mrf.mxu1 }
 0x28b   :  { %17017 = vmatpush.msk.msrb.mxu0 %vm103_vm0, %v4207_v18  ;;  %17020 = vmatpush.msk.msrb.mxu1 %vm103_vm0, %v4208_v19  ;;  %v4115_v35 = vmul.f32 0.01, %v3684_v26  ;;  %v4116_v36 = vmul.f32 0.01, %v3707_v27  ;;  %vm4051_vm14 = vcmp.gt.f32.partialorder %v3684_v26, 0.0  ;;  %vm4052_vm15 = vcmp.gt.f32.partialorder %v3707_v27, 0.0 }
 0x28c   :  { %4761 = vmatpush.msra.mxu2 %v4181_v17  ;;  %4784 = vmatpush.msra.mxu3 %v4182_v52 }
 0x28d   :  { %17036 = vmatmul.msk.f32.vlgmr.msra.gmra.mxu2 %vm96_vm1, %v19056_v28  ;;  %17039 = vmatmul.msk.f32.vlgmr.msra.gmra.mxu3 %vm96_vm1, %v19056_v28  ;;  %v4179_v8 = vsel %vm4051_vm14, %v3684_v26, %v4115_v35  ;;  %v4180_v45 = vsel %vm4052_vm15, %v3707_v27, %v4116_v36 }
 0x28e   :  { %v3822_v57 = vpop.f32.mrf.mxu2  ;;  %v3845_v25 = vpop.f32.mrf.mxu3  ;;  %4623 = vmatpush.msrb.mxu0 %v4175_v21  ;;  %4646 = vmatpush.msrb.mxu1 %v4176_v22 }
 0x28f   :  { %v4121_v60 = vmul.f32 0.01, %v3822_v57  ;;  %v4122_v61 = vmul.f32 0.01, %v3845_v25  ;;  %vm4057_vm4 = vcmp.gt.f32.partialorder %v3822_v57, 0.0  ;;  %vm4058_vm5 = vcmp.gt.f32.partialorder %v3845_v25, 0.0  ;;  %17018 = vmatmul.msk.f32.vlgmr.msrb.gmra.mxu0 %vm96_vm1, %v19056_v28  ;;  %17021 = vmatmul.msk.f32.vlgmr.msrb.gmra.mxu1 %vm96_vm1, %v19056_v28 }
 0x291   :  { %v4185_v14 = vsel %vm4057_vm4, %v3822_v57, %v4121_v60  ;;  %v4186_v16 = vsel %vm4058_vm5, %v3845_v25, %v4122_v61 }
 0x292   :  { %v3687_v38 = vpop.f32.mrf.mxu0  ;;  %v3710_v39 = vpop.f32.mrf.mxu1 }
 0x293   :  { %v4147_v40 = vmul.f32 0.01, %v3687_v38  ;;  %v4148_v41 = vmul.f32 0.01, %v3710_v39 }
 0x295   :  { %17037 = vmatmul.msk.f32.gmra.mxu2 %vm96_vm1, %v19071_v42  ;;  %17040 = vmatmul.msk.f32.gmra.mxu3 %vm96_vm1, %v19071_v42 }
 0x296   :  { %v3825_v62 = vpop.f32.mrf.mxu2  ;;  %v3848_v63 = vpop.f32.mrf.mxu3 }
 0x297   :  { %vm4089_vm2 = vcmp.gt.f32.partialorder %v3825_v62, 0.0  ;;  %v4153_v0 = vmul.f32 0.01, %v3825_v62  ;;  %vm4090_vm3 = vcmp.gt.f32.partialorder %v3848_v63, 0.0  ;;  %v4154_v1 = vmul.f32 0.01, %v3848_v63  ;;  %17019 = vmatmul.msk.f32.gmra.mxu0 %vm96_vm1, %v19071_v42  ;;  %17022 = vmatmul.msk.f32.gmra.mxu1 %vm96_vm1, %v19071_v42 }
 0x299   :  { %v4217_v6 = vsel %vm4089_vm2, %v3825_v62, %v4153_v0  ;;  %v4218_v7 = vsel %vm4090_vm3, %v3848_v63, %v4154_v1  ;;  %vm4083_vm2 = vcmp.gt.f32.partialorder %v3687_v38, 0.0  ;;  %vm4084_vm3 = vcmp.gt.f32.partialorder %v3710_v39, 0.0 }
 0x29a   :  { %17047 = vmatpush.msk.msrb.mxu2 %vm103_vm0, %v4217_v6  ;;  %17050 = vmatpush.msk.msrb.mxu3 %vm103_vm0, %v4218_v7  ;;  %v4211_v13 = vsel %vm4083_vm2, %v3687_v38, %v4147_v40  ;;  %v4212_v44 = vsel %vm4084_vm3, %v3710_v39, %v4148_v41  ;;  %v3776_v48 = vpop.f32.mrf.mxu0  ;;  %v3799_v15 = vpop.f32.mrf.mxu1 }
 0x29b   :  { %17029 = vmatpush.msk.msra.mxu0 %vm103_vm0, %v4211_v13  ;;  %17032 = vmatpush.msk.msra.mxu1 %vm103_vm0, %v4212_v44  ;;  %v4119_v53 = vmul.f32 0.01, %v3776_v48  ;;  %v4120_v54 = vmul.f32 0.01, %v3799_v15  ;;  %vm4055_vm8 = vcmp.gt.f32.partialorder %v3776_v48, 0.0  ;;  %vm4056_vm9 = vcmp.gt.f32.partialorder %v3799_v15, 0.0 }
 0x29c   :  { %4853 = vmatpush.msrb.mxu2 %v4185_v14  ;;  %4876 = vmatpush.msrb.mxu3 %v4186_v16 }
 0x29d   :  { %17048 = vmatmul.msk.f32.vlgmr.msrb.gmra.mxu2 %vm96_vm1, %v19056_v28  ;;  %17051 = vmatmul.msk.f32.vlgmr.msrb.gmra.mxu3 %vm96_vm1, %v19056_v28  ;;  %v4183_v0 = vsel %vm4055_vm8, %v3776_v48, %v4119_v53  ;;  %v4184_v1 = vsel %vm4056_vm9, %v3799_v15, %v4120_v54 }
 0x29e   :  { %v3914_v23 = vpop.f32.mrf.mxu2  ;;  %v3937_v24 = vpop.f32.mrf.mxu3  ;;  %4715 = vmatpush.msra.mxu0 %v4179_v8  ;;  %4738 = vmatpush.msra.mxu1 %v4180_v45 }
 0x29f   :  { %v4125_v29 = vmul.f32 0.01, %v3914_v23  ;;  %v4126_v30 = vmul.f32 0.01, %v3937_v24  ;;  %vm4061_vm12 = vcmp.gt.f32.partialorder %v3914_v23, 0.0  ;;  %vm4062_vm13 = vcmp.gt.f32.partialorder %v3937_v24, 0.0  ;;  %17030 = vmatmul.msk.f32.vlgmr.msra.gmra.mxu0 %vm96_vm1, %v19056_v28  ;;  %17033 = vmatmul.msk.f32.vlgmr.msra.gmra.mxu1 %vm96_vm1, %v19056_v28 }
 0x2a1   :  { %v4189_v43 = vsel %vm4061_vm12, %v3914_v23, %v4125_v29  ;;  %v4190_v5 = vsel %vm4062_vm13, %v3937_v24, %v4126_v30 }
 0x2a2   :  { %v3779_v57 = vpop.f32.mrf.mxu0  ;;  %v3802_v25 = vpop.f32.mrf.mxu1 }
 0x2a3   :  { %v4151_v58 = vmul.f32 0.01, %v3779_v57  ;;  %v4152_v59 = vmul.f32 0.01, %v3802_v25 }
 0x2a5   :  { %17049 = vmatmul.msk.f32.gmra.mxu2 %vm96_vm1, %v19071_v42  ;;  %17052 = vmatmul.msk.f32.gmra.mxu3 %vm96_vm1, %v19071_v42 }
 0x2a6   :  { %v3917_v31 = vpop.f32.mrf.mxu2  ;;  %v3940_v32 = vpop.f32.mrf.mxu3 }
 0x2a7   :  { %vm4093_vm10 = vcmp.gt.f32.partialorder %v3917_v31, 0.0  ;;  %v4157_v33 = vmul.f32 0.01, %v3917_v31  ;;  %vm4094_vm11 = vcmp.gt.f32.partialorder %v3940_v32, 0.0  ;;  %v4158_v34 = vmul.f32 0.01, %v3940_v32  ;;  %17031 = vmatmul.msk.f32.gmra.mxu0 %vm96_vm1, %v19071_v42  ;;  %17034 = vmatmul.msk.f32.gmra.mxu1 %vm96_vm1, %v19071_v42 }
 0x2a9   :  { %v4221_v37 = vsel %vm4093_vm10, %v3917_v31, %v4157_v33  ;;  %v4222_v4 = vsel %vm4094_vm11, %v3940_v32, %v4158_v34  ;;  %vm4087_vm10 = vcmp.gt.f32.partialorder %v3779_v57, 0.0  ;;  %vm4088_vm11 = vcmp.gt.f32.partialorder %v3802_v25, 0.0 }
 0x2aa   :  { %17059 = vmatpush.msk.msra.mxu2 %vm103_vm0, %v4221_v37  ;;  %17062 = vmatpush.msk.msra.mxu3 %vm103_vm0, %v4222_v4  ;;  %v4215_v62 = vsel %vm4087_vm10, %v3779_v57, %v4151_v58  ;;  %v4216_v63 = vsel %vm4088_vm11, %v3802_v25, %v4152_v59  ;;  %v3868_v2 = vpop.f32.mrf.mxu0  ;;  %v3891_v3 = vpop.f32.mrf.mxu1  ;;  %v19252_v37 = vld [vmem:[%s21286_s1 + $0x50] sm:$0xff] }
 0x2ab   :  { %17041 = vmatpush.msk.msrb.mxu0 %vm103_vm0, %v4215_v62  ;;  %17044 = vmatpush.msk.msrb.mxu1 %vm103_vm0, %v4216_v63  ;;  %v4123_v6 = vmul.f32 0.01, %v3868_v2  ;;  %v4124_v7 = vmul.f32 0.01, %v3891_v3  ;;  %vm4059_vm12 = vcmp.gt.f32.partialorder %v3868_v2, 0.0  ;;  %vm4060_vm13 = vcmp.gt.f32.partialorder %v3891_v3, 0.0 }
 0x2ac   :  { %4945 = vmatpush.msra.mxu2 %v4189_v43  ;;  %4968 = vmatpush.msra.mxu3 %v4190_v5 }
 0x2ad   :  { %17060 = vmatmul.msk.f32.vlgmr.msra.gmra.mxu2 %vm96_vm1, %v19056_v28  ;;  %17063 = vmatmul.msk.f32.vlgmr.msra.gmra.mxu3 %vm96_vm1, %v19056_v28  ;;  %v4187_v18 = vsel %vm4059_vm12, %v3868_v2, %v4123_v6  ;;  %v4188_v19 = vsel %vm4060_vm13, %v3891_v3, %v4124_v7 }
 0x2ae   :  { %v4006_v46 = vpop.f32.mrf.mxu2  ;;  %v4029_v47 = vpop.f32.mrf.mxu3  ;;  %4807 = vmatpush.msrb.mxu0 %v4183_v0  ;;  %4830 = vmatpush.msrb.mxu1 %v4184_v1 }
 0x2af   :  { %v4129_v20 = vmul.f32 0.01, %v4006_v46  ;;  %v4130_v49 = vmul.f32 0.01, %v4029_v47  ;;  %vm4065_vm6 = vcmp.gt.f32.partialorder %v4006_v46, 0.0  ;;  %vm4066_vm7 = vcmp.gt.f32.partialorder %v4029_v47, 0.0  ;;  %17042 = vmatmul.msk.f32.vlgmr.msrb.gmra.mxu0 %vm96_vm1, %v19056_v28  ;;  %17045 = vmatmul.msk.f32.vlgmr.msrb.gmra.mxu1 %vm96_vm1, %v19056_v28 }
 0x2b1   :  { %v4193_v60 = vsel %vm4065_vm6, %v4006_v46, %v4129_v20  ;;  %v4194_v61 = vsel %vm4066_vm7, %v4029_v47, %v4130_v49  ;;  %v19273_v47 = vld [vmem:[%s21286_s1 + $0x58] sm:$0x1f] }
 0x2b2   :  { %v3871_v9 = vpop.f32.mrf.mxu0  ;;  %v3894_v10 = vpop.f32.mrf.mxu1 }
 0x2b3   :  { %vm4091_vm14 = vcmp.gt.f32.partialorder %v3871_v9, 0.0  ;;  %v4155_v11 = vmul.f32 0.01, %v3871_v9  ;;  %vm4092_vm15 = vcmp.gt.f32.partialorder %v3894_v10, 0.0  ;;  %v4156_v12 = vmul.f32 0.01, %v3894_v10 }
 0x2b5   :  { %17061 = vmatmul.msk.f32.gmra.mxu2 %vm96_vm1, %v19071_v42  ;;  %17064 = vmatmul.msk.f32.gmra.mxu3 %vm96_vm1, %v19071_v42  ;;  %v4219_v14 = vsel %vm4091_vm14, %v3871_v9, %v4155_v11  ;;  %v4220_v16 = vsel %vm4092_vm15, %v3894_v10, %v4156_v12 }
 0x2b6   :  { %v4009_v50 = vpop.f32.mrf.mxu2  ;;  %v4032_v51 = vpop.f32.mrf.mxu3  ;;  %17053 = vmatpush.msk.msra.mxu0 %vm103_vm0, %v4219_v14  ;;  %17056 = vmatpush.msk.msra.mxu1 %vm103_vm0, %v4220_v16 }
 0x2b7   :  { %vm4097_vm4 = vcmp.gt.f32.partialorder %v4009_v50, 0.0  ;;  %v4161_v17 = vmul.f32 0.01, %v4009_v50  ;;  %vm4098_vm5 = vcmp.gt.f32.partialorder %v4032_v51, 0.0  ;;  %v4162_v52 = vmul.f32 0.01, %v4032_v51  ;;  %17043 = vmatmul.msk.f32.gmra.mxu0 %vm96_vm1, %v19071_v42  ;;  %17046 = vmatmul.msk.f32.gmra.mxu1 %vm96_vm1, %v19071_v42 }
 0x2b8   :  { %4899 = vmatpush.msra.mxu0 %v4187_v18  ;;  %4922 = vmatpush.msra.mxu1 %v4188_v19 }
 0x2b9   :  { %v4225_v55 = vsel %vm4097_vm4, %v4009_v50, %v4161_v17  ;;  %v4226_v56 = vsel %vm4098_vm5, %v4032_v51, %v4162_v52 }
 0x2ba   :  { %17071 = vmatpush.msk.msrb.mxu2 %vm103_vm0, %v4225_v55  ;;  %17074 = vmatpush.msk.msrb.mxu3 %vm103_vm0, %v4226_v56  ;;  %v3960_v23 = vpop.f32.mrf.mxu0  ;;  %v3983_v24 = vpop.f32.mrf.mxu1 }
 0x2bb   :  { %v4127_v33 = vmul.f32 0.01, %v3960_v23  ;;  %v4128_v34 = vmul.f32 0.01, %v3983_v24  ;;  %vm4063_vm6 = vcmp.gt.f32.partialorder %v3960_v23, 0.0  ;;  %vm4064_vm7 = vcmp.gt.f32.partialorder %v3983_v24, 0.0 }
 0x2bc   :  { %5037 = vmatpush.msrb.mxu2 %v4193_v60  ;;  %5060 = vmatpush.msrb.mxu3 %v4194_v61 }
 0x2bd   :  { %17072 = vmatmul.msk.f32.vlgmr.msrb.gmra.mxu2 %vm96_vm1, %v19056_v28  ;;  %17075 = vmatmul.msk.f32.vlgmr.msrb.gmra.mxu3 %vm96_vm1, %v19056_v28  ;;  %v4191_v44 = vsel %vm4063_vm6, %v3960_v23, %v4127_v33  ;;  %v4192_v8 = vsel %vm4064_vm7, %v3983_v24, %v4128_v34 }
 0x2bf   :  { %17054 = vmatmul.msk.f32.vlgmr.msra.gmra.mxu0 %vm96_vm1, %v19056_v28  ;;  %17057 = vmatmul.msk.f32.vlgmr.msra.gmra.mxu1 %vm96_vm1, %v19056_v28 }
 0x2c2   :  { %v3963_v4 = vpop.f32.mrf.mxu0  ;;  %v3986_v38 = vpop.f32.mrf.mxu1 }
 0x2c3   :  { %vm4095_vm8 = vcmp.gt.f32.partialorder %v3963_v4, 0.0  ;;  %v4159_v39 = vmul.f32 0.01, %v3963_v4  ;;  %vm4096_vm9 = vcmp.gt.f32.partialorder %v3986_v38, 0.0  ;;  %v4160_v40 = vmul.f32 0.01, %v3986_v38 }
 0x2c5   :  { %17073 = vmatmul.msk.f32.gmra.mxu2 %vm96_vm1, %v19071_v42  ;;  %17076 = vmatmul.msk.f32.gmra.mxu3 %vm96_vm1, %v19071_v42  ;;  %v4223_v5 = vsel %vm4095_vm8, %v3963_v4, %v4159_v39  ;;  %v4224_v13 = vsel %vm4096_vm9, %v3986_v38, %v4160_v40 }
 0x2c6   :  { %17065 = vmatpush.msk.msrb.mxu0 %vm103_vm0, %v4223_v5  ;;  %17068 = vmatpush.msk.msrb.mxu1 %vm103_vm0, %v4224_v13 }
 0x2c7   :  { %17055 = vmatmul.msk.f32.gmra.mxu0 %vm96_vm1, %v19071_v42  ;;  %17058 = vmatmul.msk.f32.gmra.mxu1 %vm96_vm1, %v19071_v42 }
 0x2c8   :  { %4991 = vmatpush.msrb.mxu0 %v4191_v44  ;;  %5014 = vmatpush.msrb.mxu1 %v4192_v8 }
 0x2ce   :  { %v4349_v54 = vpop.f32.mrf.mxu0  ;;  %v4372_v55 = vpop.f32.mrf.mxu1 }
 0x2cf   :  { %17066 = vmatmul.msk.f32.vlgmr.msrb.gmra.mxu0 %vm96_vm1, %v19056_v28  ;;  %17069 = vmatmul.msk.f32.vlgmr.msrb.gmra.mxu1 %vm96_vm1, %v19056_v28  ;;  %v5132_v25 = vmul.f32 0.01, %v4349_v54  ;;  %vm5068_vm14 = vcmp.gt.f32.partialorder %v4349_v54, 0.0  ;;  %vm5069_vm15 = vcmp.gt.f32.partialorder %v4372_v55, 0.0 }
 0x2d0   :  { %v4395_v21 = vpop.f32.mrf.mxu2  ;;  %v4418_v22 = vpop.f32.mrf.mxu3 }
 0x2d1   :  { %v5134_v26 = vmul.f32 0.01, %v4395_v21  ;;  %v5135_v27 = vmul.f32 0.01, %v4418_v22  ;;  %vm5070_vm4 = vcmp.gt.f32.partialorder %v4395_v21, 0.0  ;;  %vm5071_vm5 = vcmp.gt.f32.partialorder %v4418_v22, 0.0 }
 0x2d2   :  { %v5196_v9 = vsel %vm5068_vm14, %v4349_v54, %v5132_v25 }
 0x2d3   :  { %v5198_v41 = vsel %vm5070_vm4, %v4395_v21, %v5134_v26  ;;  %v5199_v43 = vsel %vm5071_vm5, %v4418_v22, %v5135_v27 }
 0x2d6   :  { %v4352_v58 = vpop.f32.mrf.mxu0  ;;  %v4375_v59 = vpop.f32.mrf.mxu1 }
 0x2d7   :  { %17067 = vmatmul.msk.f32.gmra.mxu0 %vm96_vm1, %v19071_v42  ;;  %17070 = vmatmul.msk.f32.gmra.mxu1 %vm96_vm1, %v19071_v42  ;;  %v5133_v42 = vmul.f32 0.01, %v4372_v55  ;;  %v5164_v60 = vmul.f32 0.01, %v4352_v58  ;;  %v5165_v61 = vmul.f32 0.01, %v4375_v59 }
 0x2d8   :  { %v4398_v29 = vpop.f32.mrf.mxu2  ;;  %v4421_v30 = vpop.f32.mrf.mxu3 }
 0x2d9   :  { %vm5102_vm2 = vcmp.gt.f32.partialorder %v4398_v29, 0.0  ;;  %v5166_v31 = vmul.f32 0.01, %v4398_v29  ;;  %vm5103_vm3 = vcmp.gt.f32.partialorder %v4421_v30, 0.0  ;;  %v5167_v32 = vmul.f32 0.01, %v4421_v30 }
 0x2da   :  { %v5197_v10 = vsel %vm5069_vm15, %v4372_v55, %v5133_v42 }
 0x2db   :  { %v5230_v35 = vsel %vm5102_vm2, %v4398_v29, %v5166_v31  ;;  %v5231_v36 = vsel %vm5103_vm3, %v4421_v30, %v5167_v32  ;;  %vm5100_vm2 = vcmp.gt.f32.partialorder %v4352_v58, 0.0  ;;  %vm5101_vm3 = vcmp.gt.f32.partialorder %v4375_v59, 0.0 }
 0x2dc   :  { %17085 = vmatpush.msk.msra.mxu2 %vm103_vm0, %v5230_v35  ;;  %17088 = vmatpush.msk.msra.mxu3 %vm103_vm0, %v5231_v36  ;;  %v5228_v6 = vsel %vm5100_vm2, %v4352_v58, %v5164_v60  ;;  %v5229_v7 = vsel %vm5101_vm3, %v4375_v59, %v5165_v61 }
 0x2dd   :  { %17079 = vmatpush.msk.msra.mxu0 %vm103_vm0, %v5228_v6  ;;  %17082 = vmatpush.msk.msra.mxu1 %vm103_vm0, %v5229_v7 }
 0x2de   :  { %5426 = vmatpush.msra.mxu2 %v5198_v41  ;;  %5449 = vmatpush.msra.mxu3 %v5199_v43 }
 0x2df   :  { %17086 = vmatmul.msk.f32.vlgmr.msra.gmra.mxu2 %vm96_vm1, %v19252_v37  ;;  %17089 = vmatmul.msk.f32.vlgmr.msra.gmra.mxu3 %vm96_vm1, %v19252_v37 }
 0x2e0   :  { %v4487_v45 = vpop.f32.mrf.mxu2  ;;  %v4510_v46 = vpop.f32.mrf.mxu3  ;;  %5380 = vmatpush.msra.mxu0 %v5196_v9  ;;  %5403 = vmatpush.msra.mxu1 %v5197_v10 }
 0x2e1   :  { %v5138_v48 = vmul.f32 0.01, %v4487_v45  ;;  %v5139_v15 = vmul.f32 0.01, %v4510_v46  ;;  %vm5074_vm12 = vcmp.gt.f32.partialorder %v4487_v45, 0.0  ;;  %vm5075_vm13 = vcmp.gt.f32.partialorder %v4510_v46, 0.0  ;;  %17080 = vmatmul.msk.f32.vlgmr.msra.gmra.mxu0 %vm96_vm1, %v19252_v37  ;;  %17083 = vmatmul.msk.f32.vlgmr.msra.gmra.mxu1 %vm96_vm1, %v19252_v37 }
 0x2e3   :  { %v5202_v52 = vsel %vm5074_vm12, %v4487_v45, %v5138_v48  ;;  %v5203_v53 = vsel %vm5075_vm13, %v4510_v46, %v5139_v15 }
 0x2e7   :  { %17087 = vmatmul.msk.f32.gmra.mxu2 %vm96_vm1, %v19273_v47  ;;  %17090 = vmatmul.msk.f32.gmra.mxu3 %vm96_vm1, %v19273_v47 }
 0x2e8   :  { %v4490_v20 = vpop.f32.mrf.mxu2  ;;  %v4513_v49 = vpop.f32.mrf.mxu3 }
 0x2e9   :  { %vm5106_vm10 = vcmp.gt.f32.partialorder %v4490_v20, 0.0  ;;  %v5170_v50 = vmul.f32 0.01, %v4490_v20  ;;  %vm5107_vm11 = vcmp.gt.f32.partialorder %v4513_v49, 0.0  ;;  %v5171_v51 = vmul.f32 0.01, %v4513_v49  ;;  %17081 = vmatmul.msk.f32.gmra.mxu0 %vm96_vm1, %v19273_v47  ;;  %17084 = vmatmul.msk.f32.gmra.mxu1 %vm96_vm1, %v19273_v47 }
 0x2eb   :  { %v5234_v28 = vsel %vm5106_vm10, %v4490_v20, %v5170_v50  ;;  %v5235_v17 = vsel %vm5107_vm11, %v4513_v49, %v5171_v51 }
 0x2ec   :  { %17097 = vmatpush.msk.msrb.mxu2 %vm103_vm0, %v5234_v28  ;;  %17100 = vmatpush.msk.msrb.mxu3 %vm103_vm0, %v5235_v17  ;;  %v4441_v18 = vpop.f32.mrf.mxu0  ;;  %v4464_v19 = vpop.f32.mrf.mxu1 }
 0x2ed   :  { %v5136_v23 = vmul.f32 0.01, %v4441_v18  ;;  %v5137_v24 = vmul.f32 0.01, %v4464_v19  ;;  %vm5072_vm8 = vcmp.gt.f32.partialorder %v4441_v18, 0.0  ;;  %vm5073_vm9 = vcmp.gt.f32.partialorder %v4464_v19, 0.0 }
 0x2ee   :  { %5518 = vmatpush.msrb.mxu2 %v5202_v52  ;;  %5541 = vmatpush.msrb.mxu3 %v5203_v53 }
 0x2ef   :  { %17098 = vmatmul.msk.f32.vlgmr.msrb.gmra.mxu2 %vm96_vm1, %v19252_v37  ;;  %17101 = vmatmul.msk.f32.vlgmr.msrb.gmra.mxu3 %vm96_vm1, %v19252_v37  ;;  %v5200_v39 = vsel %vm5072_vm8, %v4441_v18, %v5136_v23  ;;  %v5201_v40 = vsel %vm5073_vm9, %v4464_v19, %v5137_v24 }
 0x2f0   :  { %v4579_v56 = vpop.f32.mrf.mxu2  ;;  %v4602_v57 = vpop.f32.mrf.mxu3 }
 0x2f1   :  { %v5142_v62 = vmul.f32 0.01, %v4579_v56  ;;  %v5143_v63 = vmul.f32 0.01, %v4602_v57  ;;  %vm5078_vm4 = vcmp.gt.f32.partialorder %v4579_v56, 0.0  ;;  %vm5079_vm5 = vcmp.gt.f32.partialorder %v4602_v57, 0.0 }
 0x2f3   :  { %v5206_v14 = vsel %vm5078_vm4, %v4579_v56, %v5142_v62  ;;  %v5207_v16 = vsel %vm5079_vm5, %v4602_v57, %v5143_v63 }
 0x2f4   :  { %v4444_v26 = vpop.f32.mrf.mxu0  ;;  %v4467_v27 = vpop.f32.mrf.mxu1 }
 0x2f5   :  { %vm5104_vm10 = vcmp.gt.f32.partialorder %v4444_v26, 0.0  ;;  %v5168_v29 = vmul.f32 0.01, %v4444_v26  ;;  %vm5105_vm11 = vcmp.gt.f32.partialorder %v4467_v27, 0.0  ;;  %v5169_v30 = vmul.f32 0.01, %v4467_v27 }
 0x2f7   :  { %17099 = vmatmul.msk.f32.gmra.mxu2 %vm96_vm1, %v19273_v47  ;;  %17102 = vmatmul.msk.f32.gmra.mxu3 %vm96_vm1, %v19273_v47  ;;  %v5232_v4 = vsel %vm5104_vm10, %v4444_v26, %v5168_v29  ;;  %v5233_v38 = vsel %vm5105_vm11, %v4467_v27, %v5169_v30 }
 0x2f8   :  { %v4582_v0 = vpop.f32.mrf.mxu2  ;;  %v4605_v1 = vpop.f32.mrf.mxu3  ;;  %17091 = vmatpush.msk.msrb.mxu0 %vm103_vm0, %v5232_v4  ;;  %17094 = vmatpush.msk.msrb.mxu1 %vm103_vm0, %v5233_v38 }
 0x2f9   :  { %vm5110_vm6 = vcmp.gt.f32.partialorder %v4582_v0, 0.0  ;;  %v5174_v2 = vmul.f32 0.01, %v4582_v0  ;;  %vm5111_vm7 = vcmp.gt.f32.partialorder %v4605_v1, 0.0  ;;  %v5175_v3 = vmul.f32 0.01, %v4605_v1 }
 0x2fa   :  { %5472 = vmatpush.msrb.mxu0 %v5200_v39  ;;  %5495 = vmatpush.msrb.mxu1 %v5201_v40 }
 0x2fb   :  { %v5238_v11 = vsel %vm5110_vm6, %v4582_v0, %v5174_v2  ;;  %v5239_v12 = vsel %vm5111_vm7, %v4605_v1, %v5175_v3  ;;  %17092 = vmatmul.msk.f32.vlgmr.msrb.gmra.mxu0 %vm96_vm1, %v19252_v37  ;;  %17095 = vmatmul.msk.f32.vlgmr.msrb.gmra.mxu1 %vm96_vm1, %v19252_v37 }
 0x2fc   :  { %17109 = vmatpush.msk.msra.mxu2 %vm103_vm0, %v5238_v11  ;;  %17112 = vmatpush.msk.msra.mxu3 %vm103_vm0, %v5239_v12  ;;  %v4533_v44 = vpop.f32.mrf.mxu0  ;;  %v4556_v8 = vpop.f32.mrf.mxu1 }
 0x2fd   :  { %v5140_v48 = vmul.f32 0.01, %v4533_v44  ;;  %v5141_v15 = vmul.f32 0.01, %v4556_v8  ;;  %vm5076_vm2 = vcmp.gt.f32.partialorder %v4533_v44, 0.0  ;;  %vm5077_vm3 = vcmp.gt.f32.partialorder %v4556_v8, 0.0 }
 0x2fe   :  { %5610 = vmatpush.msra.mxu2 %v5206_v14  ;;  %5633 = vmatpush.msra.mxu3 %v5207_v16 }
 0x2ff   :  { %17110 = vmatmul.msk.f32.vlgmr.msra.gmra.mxu2 %vm96_vm1, %v19252_v37  ;;  %17113 = vmatmul.msk.f32.vlgmr.msra.gmra.mxu3 %vm96_vm1, %v19252_v37  ;;  %v5204_v25 = vsel %vm5076_vm2, %v4533_v44, %v5140_v48  ;;  %v5205_v42 = vsel %vm5077_vm3, %v4556_v8, %v5141_v15 }
 0x300   :  { %v4671_v21 = vpop.f32.mrf.mxu2  ;;  %v4694_v22 = vpop.f32.mrf.mxu3 }
 0x301   :  { %v5146_v31 = vmul.f32 0.01, %v4671_v21  ;;  %v5147_v32 = vmul.f32 0.01, %v4694_v22  ;;  %vm5082_vm12 = vcmp.gt.f32.partialorder %v4671_v21, 0.0  ;;  %vm5083_vm13 = vcmp.gt.f32.partialorder %v4694_v22, 0.0 }
 0x303   :  { %v5210_v5 = vsel %vm5082_vm12, %v4671_v21, %v5146_v31  ;;  %v5211_v13 = vsel %vm5083_vm13, %v4694_v22, %v5147_v32  ;;  %17093 = vmatmul.msk.f32.gmra.mxu0 %vm96_vm1, %v19273_v47  ;;  %17096 = vmatmul.msk.f32.gmra.mxu1 %vm96_vm1, %v19273_v47 }
 0x304   :  { %v4536_v20 = vpop.f32.mrf.mxu0  ;;  %v4559_v49 = vpop.f32.mrf.mxu1 }
 0x305   :  { %vm5108_vm4 = vcmp.gt.f32.partialorder %v4536_v20, 0.0  ;;  %v5172_v50 = vmul.f32 0.01, %v4536_v20  ;;  %vm5109_vm5 = vcmp.gt.f32.partialorder %v4559_v49, 0.0  ;;  %v5173_v51 = vmul.f32 0.01, %v4559_v49 }
 0x307   :  { %17111 = vmatmul.msk.f32.gmra.mxu2 %vm96_vm1, %v19273_v47  ;;  %17114 = vmatmul.msk.f32.gmra.mxu3 %vm96_vm1, %v19273_v47  ;;  %v5236_v56 = vsel %vm5108_vm4, %v4536_v20, %v5172_v50  ;;  %v5237_v57 = vsel %vm5109_vm5, %v4559_v49, %v5173_v51 }
 0x308   :  { %v4674_v33 = vpop.f32.mrf.mxu2  ;;  %v4697_v34 = vpop.f32.mrf.mxu3  ;;  %17103 = vmatpush.msk.msra.mxu0 %vm103_vm0, %v5236_v56  ;;  %17106 = vmatpush.msk.msra.mxu1 %vm103_vm0, %v5237_v57 }
 0x309   :  { %vm5114_vm14 = vcmp.gt.f32.partialorder %v4674_v33, 0.0  ;;  %v5178_v35 = vmul.f32 0.01, %v4674_v33  ;;  %vm5115_vm15 = vcmp.gt.f32.partialorder %v4697_v34, 0.0  ;;  %v5179_v36 = vmul.f32 0.01, %v4697_v34 }
 0x30a   :  { %5564 = vmatpush.msra.mxu0 %v5204_v25  ;;  %5587 = vmatpush.msra.mxu1 %v5205_v42 }
 0x30b   :  { %v5242_v41 = vsel %vm5114_vm14, %v4674_v33, %v5178_v35  ;;  %v5243_v43 = vsel %vm5115_vm15, %v4697_v34, %v5179_v36  ;;  %17104 = vmatmul.msk.f32.vlgmr.msra.gmra.mxu0 %vm96_vm1, %v19252_v37  ;;  %17107 = vmatmul.msk.f32.vlgmr.msra.gmra.mxu1 %vm96_vm1, %v19252_v37 }
 0x30c   :  { %17121 = vmatpush.msk.msrb.mxu2 %vm103_vm0, %v5242_v41  ;;  %17124 = vmatpush.msk.msrb.mxu3 %vm103_vm0, %v5243_v43  ;;  %v4625_v62 = vpop.f32.mrf.mxu0  ;;  %v4648_v63 = vpop.f32.mrf.mxu1 }
 0x30d   :  { %v5144_v2 = vmul.f32 0.01, %v4625_v62  ;;  %v5145_v3 = vmul.f32 0.01, %v4648_v63  ;;  %vm5080_vm10 = vcmp.gt.f32.partialorder %v4625_v62, 0.0  ;;  %vm5081_vm11 = vcmp.gt.f32.partialorder %v4648_v63, 0.0 }
 0x30e   :  { %5702 = vmatpush.msrb.mxu2 %v5210_v5  ;;  %5725 = vmatpush.msrb.mxu3 %v5211_v13 }
 0x30f   :  { %17122 = vmatmul.msk.f32.vlgmr.msrb.gmra.mxu2 %vm96_vm1, %v19252_v37  ;;  %17125 = vmatmul.msk.f32.vlgmr.msrb.gmra.mxu3 %vm96_vm1, %v19252_v37  ;;  %v5208_v23 = vsel %vm5080_vm10, %v4625_v62, %v5144_v2  ;;  %v5209_v24 = vsel %vm5081_vm11, %v4648_v63, %v5145_v3 }
 0x310   :  { %v4763_v45 = vpop.f32.mrf.mxu2  ;;  %v4786_v46 = vpop.f32.mrf.mxu3 }
 0x311   :  { %v5150_v28 = vmul.f32 0.01, %v4763_v45  ;;  %v5151_v17 = vmul.f32 0.01, %v4786_v46  ;;  %vm5086_vm6 = vcmp.gt.f32.partialorder %v4763_v45, 0.0  ;;  %vm5087_vm7 = vcmp.gt.f32.partialorder %v4786_v46, 0.0 }
 0x313   :  { %v5214_v60 = vsel %vm5086_vm6, %v4763_v45, %v5150_v28  ;;  %v5215_v61 = vsel %vm5087_vm7, %v4786_v46, %v5151_v17  ;;  %17105 = vmatmul.msk.f32.gmra.mxu0 %vm96_vm1, %v19273_v47  ;;  %17108 = vmatmul.msk.f32.gmra.mxu1 %vm96_vm1, %v19273_v47 }
 0x314   :  { %v4628_v6 = vpop.f32.mrf.mxu0  ;;  %v4651_v7 = vpop.f32.mrf.mxu1 }
 0x315   :  { %vm5112_vm12 = vcmp.gt.f32.partialorder %v4628_v6, 0.0  ;;  %v5176_v9 = vmul.f32 0.01, %v4628_v6  ;;  %vm5113_vm13 = vcmp.gt.f32.partialorder %v4651_v7, 0.0  ;;  %v5177_v10 = vmul.f32 0.01, %v4651_v7 }
 0x317   :  { %17123 = vmatmul.msk.f32.gmra.mxu2 %vm96_vm1, %v19273_v47  ;;  %17126 = vmatmul.msk.f32.gmra.mxu3 %vm96_vm1, %v19273_v47  ;;  %v5240_v21 = vsel %vm5112_vm12, %v4628_v6, %v5176_v9  ;;  %v5241_v22 = vsel %vm5113_vm13, %v4651_v7, %v5177_v10 }
 0x318   :  { %v4766_v52 = vpop.f32.mrf.mxu2  ;;  %v4789_v53 = vpop.f32.mrf.mxu3  ;;  %17115 = vmatpush.msk.msrb.mxu0 %vm103_vm0, %v5240_v21  ;;  %17118 = vmatpush.msk.msrb.mxu1 %vm103_vm0, %v5241_v22 }
 0x319   :  { %vm5118_vm8 = vcmp.gt.f32.partialorder %v4766_v52, 0.0  ;;  %v5182_v54 = vmul.f32 0.01, %v4766_v52  ;;  %vm5119_vm9 = vcmp.gt.f32.partialorder %v4789_v53, 0.0  ;;  %v5183_v55 = vmul.f32 0.01, %v4789_v53 }
 0x31a   :  { %5656 = vmatpush.msrb.mxu0 %v5208_v23  ;;  %5679 = vmatpush.msrb.mxu1 %v5209_v24 }
 0x31b   :  { %v5246_v58 = vsel %vm5118_vm8, %v4766_v52, %v5182_v54  ;;  %v5247_v59 = vsel %vm5119_vm9, %v4789_v53, %v5183_v55  ;;  %17116 = vmatmul.msk.f32.vlgmr.msrb.gmra.mxu0 %vm96_vm1, %v19252_v37  ;;  %17119 = vmatmul.msk.f32.vlgmr.msrb.gmra.mxu1 %vm96_vm1, %v19252_v37 }
 0x31c   :  { %17133 = vmatpush.msk.msra.mxu2 %vm103_vm0, %v5246_v58  ;;  %17136 = vmatpush.msk.msra.mxu3 %vm103_vm0, %v5247_v59  ;;  %v4717_v31 = vpop.f32.mrf.mxu0  ;;  %v4740_v32 = vpop.f32.mrf.mxu1 }
 0x31d   :  { %v5148_v35 = vmul.f32 0.01, %v4717_v31  ;;  %v5149_v36 = vmul.f32 0.01, %v4740_v32  ;;  %vm5084_vm4 = vcmp.gt.f32.partialorder %v4717_v31, 0.0  ;;  %vm5085_vm5 = vcmp.gt.f32.partialorder %v4740_v32, 0.0 }
 0x31e   :  { %5794 = vmatpush.msra.mxu2 %v5214_v60  ;;  %5817 = vmatpush.msra.mxu3 %v5215_v61 }
 0x31f   :  { %17134 = vmatmul.msk.f32.vlgmr.msra.gmra.mxu2 %vm96_vm1, %v19252_v37  ;;  %17137 = vmatmul.msk.f32.vlgmr.msra.gmra.mxu3 %vm96_vm1, %v19252_v37  ;;  %v5212_v48 = vsel %vm5084_vm4, %v4717_v31, %v5148_v35  ;;  %v5213_v15 = vsel %vm5085_vm5, %v4740_v32, %v5149_v36 }
 0x320   :  { %v4855_v0 = vpop.f32.mrf.mxu2  ;;  %v4878_v1 = vpop.f32.mrf.mxu3 }
 0x321   :  { %v5154_v11 = vmul.f32 0.01, %v4855_v0  ;;  %v5155_v12 = vmul.f32 0.01, %v4878_v1  ;;  %vm5090_vm14 = vcmp.gt.f32.partialorder %v4855_v0, 0.0  ;;  %vm5091_vm15 = vcmp.gt.f32.partialorder %v4878_v1, 0.0 }
 0x323   :  { %v5218_v29 = vsel %vm5090_vm14, %v4855_v0, %v5154_v11  ;;  %v5219_v30 = vsel %vm5091_vm15, %v4878_v1, %v5155_v12  ;;  %17117 = vmatmul.msk.f32.gmra.mxu0 %vm96_vm1, %v19273_v47  ;;  %17120 = vmatmul.msk.f32.gmra.mxu1 %vm96_vm1, %v19273_v47 }
 0x324   :  { %v4720_v4 = vpop.f32.mrf.mxu0  ;;  %v4743_v38 = vpop.f32.mrf.mxu1 }
 0x325   :  { %vm5116_vm6 = vcmp.gt.f32.partialorder %v4720_v4, 0.0  ;;  %v5180_v39 = vmul.f32 0.01, %v4720_v4  ;;  %vm5117_vm7 = vcmp.gt.f32.partialorder %v4743_v38, 0.0  ;;  %v5181_v40 = vmul.f32 0.01, %v4743_v38 }
 0x327   :  { %17135 = vmatmul.msk.f32.gmra.mxu2 %vm96_vm1, %v19273_v47  ;;  %17138 = vmatmul.msk.f32.gmra.mxu3 %vm96_vm1, %v19273_v47  ;;  %v5244_v45 = vsel %vm5116_vm6, %v4720_v4, %v5180_v39  ;;  %v5245_v46 = vsel %vm5117_vm7, %v4743_v38, %v5181_v40 }
 0x328   :  { %v4858_v14 = vpop.f32.mrf.mxu2  ;;  %v4881_v16 = vpop.f32.mrf.mxu3  ;;  %17127 = vmatpush.msk.msra.mxu0 %vm103_vm0, %v5244_v45  ;;  %17130 = vmatpush.msk.msra.mxu1 %vm103_vm0, %v5245_v46 }
 0x329   :  { %vm5122_vm2 = vcmp.gt.f32.partialorder %v4858_v14, 0.0  ;;  %v5186_v18 = vmul.f32 0.01, %v4858_v14  ;;  %vm5123_vm3 = vcmp.gt.f32.partialorder %v4881_v16, 0.0  ;;  %v5187_v19 = vmul.f32 0.01, %v4881_v16 }
 0x32a   :  { %5748 = vmatpush.msra.mxu0 %v5212_v48  ;;  %5771 = vmatpush.msra.mxu1 %v5213_v15 }
 0x32b   :  { %v5250_v26 = vsel %vm5122_vm2, %v4858_v14, %v5186_v18  ;;  %v5251_v27 = vsel %vm5123_vm3, %v4881_v16, %v5187_v19  ;;  %17128 = vmatmul.msk.f32.vlgmr.msra.gmra.mxu0 %vm96_vm1, %v19252_v37  ;;  %17131 = vmatmul.msk.f32.vlgmr.msra.gmra.mxu1 %vm96_vm1, %v19252_v37 }
 0x32c   :  { %17145 = vmatpush.msk.msrb.mxu2 %vm103_vm0, %v5250_v26  ;;  %17148 = vmatpush.msk.msrb.mxu3 %vm103_vm0, %v5251_v27  ;;  %v4809_v28 = vpop.f32.mrf.mxu0  ;;  %v4832_v17 = vpop.f32.mrf.mxu1 }
 0x32d   :  { %v5152_v54 = vmul.f32 0.01, %v4809_v28  ;;  %v5153_v55 = vmul.f32 0.01, %v4832_v17  ;;  %vm5088_vm12 = vcmp.gt.f32.partialorder %v4809_v28, 0.0  ;;  %vm5089_vm13 = vcmp.gt.f32.partialorder %v4832_v17, 0.0 }
 0x32e   :  { %5886 = vmatpush.msrb.mxu2 %v5218_v29  ;;  %5909 = vmatpush.msrb.mxu3 %v5219_v30 }
 0x32f   :  { %17146 = vmatmul.msk.f32.vlgmr.msrb.gmra.mxu2 %vm96_vm1, %v19252_v37  ;;  %17149 = vmatmul.msk.f32.vlgmr.msrb.gmra.mxu3 %vm96_vm1, %v19252_v37  ;;  %v5216_v2 = vsel %vm5088_vm12, %v4809_v28, %v5152_v54  ;;  %v5217_v3 = vsel %vm5089_vm13, %v4832_v17, %v5153_v55  ;;  %v19476_v17 = vld [vmem:[%s21286_s1 + $0x68] sm:$0x1f] }
 0x330   :  { %v4947_v33 = vpop.f32.mrf.mxu2  ;;  %v4970_v34 = vpop.f32.mrf.mxu3 }
 0x331   :  { %v5158_v41 = vmul.f32 0.01, %v4947_v33  ;;  %v5159_v43 = vmul.f32 0.01, %v4970_v34  ;;  %vm5094_vm8 = vcmp.gt.f32.partialorder %v4947_v33, 0.0  ;;  %vm5095_vm9 = vcmp.gt.f32.partialorder %v4970_v34, 0.0 }
 0x333   :  { %v5222_v50 = vsel %vm5094_vm8, %v4947_v33, %v5158_v41  ;;  %v5223_v51 = vsel %vm5095_vm9, %v4970_v34, %v5159_v43  ;;  %17129 = vmatmul.msk.f32.gmra.mxu0 %vm96_vm1, %v19273_v47  ;;  %17132 = vmatmul.msk.f32.gmra.mxu1 %vm96_vm1, %v19273_v47 }
 0x334   :  { %v4812_v56 = vpop.f32.mrf.mxu0  ;;  %v4835_v57 = vpop.f32.mrf.mxu1 }
 0x335   :  { %vm5120_vm14 = vcmp.gt.f32.partialorder %v4812_v56, 0.0  ;;  %v5184_v25 = vmul.f32 0.01, %v4812_v56  ;;  %vm5121_vm15 = vcmp.gt.f32.partialorder %v4835_v57, 0.0  ;;  %v5185_v42 = vmul.f32 0.01, %v4835_v57 }
 0x337   :  { %17147 = vmatmul.msk.f32.gmra.mxu2 %vm96_vm1, %v19273_v47  ;;  %17150 = vmatmul.msk.f32.gmra.mxu3 %vm96_vm1, %v19273_v47  ;;  %v5248_v0 = vsel %vm5120_vm14, %v4812_v56, %v5184_v25  ;;  %v5249_v1 = vsel %vm5121_vm15, %v4835_v57, %v5185_v42 }
 0x338   :  { %v4950_v5 = vpop.f32.mrf.mxu2  ;;  %v4973_v13 = vpop.f32.mrf.mxu3  ;;  %17139 = vmatpush.msk.msrb.mxu0 %vm103_vm0, %v5248_v0  ;;  %17142 = vmatpush.msk.msrb.mxu1 %vm103_vm0, %v5249_v1 }
 0x339   :  { %vm5126_vm10 = vcmp.gt.f32.partialorder %v4950_v5, 0.0  ;;  %v5190_v44 = vmul.f32 0.01, %v4950_v5  ;;  %vm5127_vm11 = vcmp.gt.f32.partialorder %v4973_v13, 0.0  ;;  %v5191_v8 = vmul.f32 0.01, %v4973_v13 }
 0x33a   :  { %5840 = vmatpush.msrb.mxu0 %v5216_v2  ;;  %5863 = vmatpush.msrb.mxu1 %v5217_v3 }
 0x33b   :  { %v5254_v20 = vsel %vm5126_vm10, %v4950_v5, %v5190_v44  ;;  %v5255_v49 = vsel %vm5127_vm11, %v4973_v13, %v5191_v8  ;;  %17140 = vmatmul.msk.f32.vlgmr.msrb.gmra.mxu0 %vm96_vm1, %v19252_v37  ;;  %17143 = vmatmul.msk.f32.vlgmr.msrb.gmra.mxu1 %vm96_vm1, %v19252_v37 }
 0x33c   :  { %17157 = vmatpush.msk.msra.mxu2 %vm103_vm0, %v5254_v20  ;;  %17160 = vmatpush.msk.msra.mxu3 %vm103_vm0, %v5255_v49  ;;  %v4901_v11 = vpop.f32.mrf.mxu0  ;;  %v4924_v12 = vpop.f32.mrf.mxu1  ;;  %v19461_v20 = vld [vmem:[%s21286_s1 + $0x60] sm:$0xff] }
 0x33d   :  { %v5156_v14 = vmul.f32 0.01, %v4901_v11  ;;  %v5157_v16 = vmul.f32 0.01, %v4924_v12  ;;  %vm5092_vm6 = vcmp.gt.f32.partialorder %v4901_v11, 0.0  ;;  %vm5093_vm7 = vcmp.gt.f32.partialorder %v4924_v12, 0.0 }
 0x33e   :  { %5978 = vmatpush.msra.mxu2 %v5222_v50  ;;  %6001 = vmatpush.msra.mxu3 %v5223_v51 }
 0x33f   :  { %17158 = vmatmul.msk.f32.vlgmr.msra.gmra.mxu2 %vm96_vm1, %v19252_v37  ;;  %17161 = vmatmul.msk.f32.vlgmr.msra.gmra.mxu3 %vm96_vm1, %v19252_v37  ;;  %v5220_v26 = vsel %vm5092_vm6, %v4901_v11, %v5156_v14  ;;  %v5221_v27 = vsel %vm5093_vm7, %v4924_v12, %v5157_v16 }
 0x340   :  { %v5039_v52 = vpop.f32.mrf.mxu2  ;;  %v5062_v53 = vpop.f32.mrf.mxu3 }
 0x341   :  { %v5162_v58 = vmul.f32 0.01, %v5039_v52  ;;  %v5163_v59 = vmul.f32 0.01, %v5062_v53  ;;  %vm5098_vm2 = vcmp.gt.f32.partialorder %v5039_v52, 0.0  ;;  %vm5099_vm3 = vcmp.gt.f32.partialorder %v5062_v53, 0.0 }
 0x343   :  { %v5226_v9 = vsel %vm5098_vm2, %v5039_v52, %v5162_v58  ;;  %v5227_v10 = vsel %vm5099_vm3, %v5062_v53, %v5163_v59  ;;  %17141 = vmatmul.msk.f32.gmra.mxu0 %vm96_vm1, %v19273_v47  ;;  %17144 = vmatmul.msk.f32.gmra.mxu1 %vm96_vm1, %v19273_v47 }
 0x344   :  { %v4904_v18 = vpop.f32.mrf.mxu0  ;;  %v4927_v19 = vpop.f32.mrf.mxu1 }
 0x345   :  { %vm5124_vm8 = vcmp.gt.f32.partialorder %v4904_v18, 0.0  ;;  %v5188_v21 = vmul.f32 0.01, %v4904_v18  ;;  %vm5125_vm9 = vcmp.gt.f32.partialorder %v4927_v19, 0.0  ;;  %v5189_v22 = vmul.f32 0.01, %v4927_v19 }
 0x347   :  { %17159 = vmatmul.msk.f32.gmra.mxu2 %vm96_vm1, %v19273_v47  ;;  %17162 = vmatmul.msk.f32.gmra.mxu3 %vm96_vm1, %v19273_v47  ;;  %v5252_v23 = vsel %vm5124_vm8, %v4904_v18, %v5188_v21  ;;  %v5253_v24 = vsel %vm5125_vm9, %v4927_v19, %v5189_v22 }
 0x348   :  { %v5042_v60 = vpop.f32.mrf.mxu2  ;;  %v5065_v61 = vpop.f32.mrf.mxu3  ;;  %17151 = vmatpush.msk.msra.mxu0 %vm103_vm0, %v5252_v23  ;;  %17154 = vmatpush.msk.msra.mxu1 %vm103_vm0, %v5253_v24 }
 0x349   :  { %vm5130_vm4 = vcmp.gt.f32.partialorder %v5042_v60, 0.0  ;;  %v5194_v62 = vmul.f32 0.01, %v5042_v60  ;;  %vm5131_vm5 = vcmp.gt.f32.partialorder %v5065_v61, 0.0  ;;  %v5195_v63 = vmul.f32 0.01, %v5065_v61 }
 0x34a   :  { %5932 = vmatpush.msra.mxu0 %v5220_v26  ;;  %5955 = vmatpush.msra.mxu1 %v5221_v27 }
 0x34b   :  { %v5258_v6 = vsel %vm5130_vm4, %v5042_v60, %v5194_v62  ;;  %v5259_v7 = vsel %vm5131_vm5, %v5065_v61, %v5195_v63  ;;  %17152 = vmatmul.msk.f32.vlgmr.msra.gmra.mxu0 %vm96_vm1, %v19252_v37  ;;  %17155 = vmatmul.msk.f32.vlgmr.msra.gmra.mxu1 %vm96_vm1, %v19252_v37 }
 0x34c   :  { %17169 = vmatpush.msk.msrb.mxu2 %vm103_vm0, %v5258_v6  ;;  %17172 = vmatpush.msk.msrb.mxu3 %vm103_vm0, %v5259_v7  ;;  %v4993_v29 = vpop.f32.mrf.mxu0  ;;  %v5016_v30 = vpop.f32.mrf.mxu1 }
 0x34d   :  { %v5160_v33 = vmul.f32 0.01, %v4993_v29  ;;  %v5161_v34 = vmul.f32 0.01, %v5016_v30  ;;  %vm5096_vm10 = vcmp.gt.f32.partialorder %v4993_v29, 0.0  ;;  %vm5097_vm11 = vcmp.gt.f32.partialorder %v5016_v30, 0.0 }
 0x34e   :  { %6070 = vmatpush.msrb.mxu2 %v5226_v9  ;;  %6093 = vmatpush.msrb.mxu3 %v5227_v10 }
 0x34f   :  { %17170 = vmatmul.msk.f32.vlgmr.msrb.gmra.mxu2 %vm96_vm1, %v19252_v37  ;;  %17173 = vmatmul.msk.f32.vlgmr.msrb.gmra.mxu3 %vm96_vm1, %v19252_v37  ;;  %v5224_v45 = vsel %vm5096_vm10, %v4993_v29, %v5160_v33  ;;  %v5225_v46 = vsel %vm5097_vm11, %v5016_v30, %v5161_v34 }
 0x353   :  { %17153 = vmatmul.msk.f32.gmra.mxu0 %vm96_vm1, %v19273_v47  ;;  %17156 = vmatmul.msk.f32.gmra.mxu1 %vm96_vm1, %v19273_v47 }
 0x354   :  { %v4996_v35 = vpop.f32.mrf.mxu0  ;;  %v5019_v36 = vpop.f32.mrf.mxu1 }
 0x355   :  { %vm5128_vm12 = vcmp.gt.f32.partialorder %v4996_v35, 0.0  ;;  %v5192_v4 = vmul.f32 0.01, %v4996_v35  ;;  %vm5129_vm13 = vcmp.gt.f32.partialorder %v5019_v36, 0.0  ;;  %v5193_v38 = vmul.f32 0.01, %v5019_v36 }
 0x357   :  { %17171 = vmatmul.msk.f32.gmra.mxu2 %vm96_vm1, %v19273_v47  ;;  %17174 = vmatmul.msk.f32.gmra.mxu3 %vm96_vm1, %v19273_v47  ;;  %v5256_v44 = vsel %vm5128_vm12, %v4996_v35, %v5192_v4  ;;  %v5257_v8 = vsel %vm5129_vm13, %v5019_v36, %v5193_v38 }
 0x358   :  { %17163 = vmatpush.msk.msrb.mxu0 %vm103_vm0, %v5256_v44  ;;  %17166 = vmatpush.msk.msrb.mxu1 %vm103_vm0, %v5257_v8 }
 0x35a   :  { %6024 = vmatpush.msrb.mxu0 %v5224_v45  ;;  %6047 = vmatpush.msrb.mxu1 %v5225_v46 }
 0x35b   :  { %17164 = vmatmul.msk.f32.vlgmr.msrb.gmra.mxu0 %vm96_vm1, %v19252_v37  ;;  %17167 = vmatmul.msk.f32.vlgmr.msrb.gmra.mxu1 %vm96_vm1, %v19252_v37 }
 0x35e   :  { %v5382_v42 = vpop.f32.mrf.mxu0  ;;  %v5405_v58 = vpop.f32.mrf.mxu1 }
 0x35f   :  { %v6165_v62 = vmul.f32 0.01, %v5382_v42  ;;  %v6166_v63 = vmul.f32 0.01, %v5405_v58  ;;  %vm6101_vm8 = vcmp.gt.f32.partialorder %v5382_v42, 0.0  ;;  %vm6102_vm9 = vcmp.gt.f32.partialorder %v5405_v58, 0.0 }
 0x361   :  { %v6229_v9 = vsel %vm6101_vm8, %v5382_v42, %v6165_v62  ;;  %v6230_v10 = vsel %vm6102_vm9, %v5405_v58, %v6166_v63 }
 0x362   :  { %v5428_v31 = vpop.f32.mrf.mxu2  ;;  %v5451_v32 = vpop.f32.mrf.mxu3 }
 0x363   :  { %v6167_v39 = vmul.f32 0.01, %v5428_v31  ;;  %v6168_v40 = vmul.f32 0.01, %v5451_v32  ;;  %vm6103_vm14 = vcmp.gt.f32.partialorder %v5428_v31, 0.0  ;;  %vm6104_vm15 = vcmp.gt.f32.partialorder %v5451_v32, 0.0  ;;  %17165 = vmatmul.msk.f32.gmra.mxu0 %vm96_vm1, %v19273_v47  ;;  %17168 = vmatmul.msk.f32.gmra.mxu1 %vm96_vm1, %v19273_v47 }
 0x365   :  { %v6231_v49 = vsel %vm6103_vm14, %v5428_v31, %v6167_v39  ;;  %v6232_v50 = vsel %vm6104_vm15, %v5451_v32, %v6168_v40 }
 0x366   :  { %v5385_v0 = vpop.f32.mrf.mxu0  ;;  %v5408_v1 = vpop.f32.mrf.mxu1 }
 0x367   :  { %vm6133_vm10 = vcmp.gt.f32.partialorder %v5385_v0, 0.0  ;;  %v6197_v2 = vmul.f32 0.01, %v5385_v0  ;;  %vm6134_vm11 = vcmp.gt.f32.partialorder %v5408_v1, 0.0  ;;  %v6198_v3 = vmul.f32 0.01, %v5408_v1 }
 0x369   :  { %v6261_v6 = vsel %vm6133_vm10, %v5385_v0, %v6197_v2  ;;  %v6262_v7 = vsel %vm6134_vm11, %v5408_v1, %v6198_v3 }
 0x36a   :  { %v5431_v41 = vpop.f32.mrf.mxu2  ;;  %v5454_v43 = vpop.f32.mrf.mxu3  ;;  %17177 = vmatpush.msk.msra.mxu0 %vm103_vm0, %v6261_v6  ;;  %17180 = vmatpush.msk.msra.mxu1 %vm103_vm0, %v6262_v7 }
 0x36b   :  { %vm6135_vm2 = vcmp.gt.f32.partialorder %v5431_v41, 0.0  ;;  %v6199_v5 = vmul.f32 0.01, %v5431_v41  ;;  %vm6136_vm3 = vcmp.gt.f32.partialorder %v5454_v43, 0.0  ;;  %v6200_v13 = vmul.f32 0.01, %v5454_v43 }
 0x36c   :  { %6413 = vmatpush.msra.mxu0 %v6229_v9  ;;  %6436 = vmatpush.msra.mxu1 %v6230_v10 }
 0x36d   :  { %v6263_v48 = vsel %vm6135_vm2, %v5431_v41, %v6199_v5  ;;  %v6264_v15 = vsel %vm6136_vm3, %v5454_v43, %v6200_v13  ;;  %17178 = vmatmul.msk.f32.vlgmr.msra.gmra.mxu0 %vm96_vm1, %v19461_v20  ;;  %17181 = vmatmul.msk.f32.vlgmr.msra.gmra.mxu1 %vm96_vm1, %v19461_v20 }
 0x36e   :  { %17183 = vmatpush.msk.msra.mxu2 %vm103_vm0, %v6263_v48  ;;  %17186 = vmatpush.msk.msra.mxu3 %vm103_vm0, %v6264_v15 }
 0x370   :  { %6459 = vmatpush.msra.mxu2 %v6231_v49  ;;  %6482 = vmatpush.msra.mxu3 %v6232_v50 }
 0x371   :  { %17184 = vmatmul.msk.f32.vlgmr.msra.gmra.mxu2 %vm96_vm1, %v19461_v20  ;;  %17187 = vmatmul.msk.f32.vlgmr.msra.gmra.mxu3 %vm96_vm1, %v19461_v20 }
 0x372   :  { %v5520_v51 = vpop.f32.mrf.mxu2  ;;  %v5543_v28 = vpop.f32.mrf.mxu3 }
 0x373   :  { %v6171_v52 = vmul.f32 0.01, %v5520_v51  ;;  %v6172_v53 = vmul.f32 0.01, %v5543_v28  ;;  %vm6107_vm6 = vcmp.gt.f32.partialorder %v5520_v51, 0.0  ;;  %vm6108_vm7 = vcmp.gt.f32.partialorder %v5543_v28, 0.0 }
 0x375   :  { %v6235_v59 = vsel %vm6107_vm6, %v5520_v51, %v6171_v52  ;;  %v6236_v60 = vsel %vm6108_vm7, %v5543_v28, %v6172_v53  ;;  %17179 = vmatmul.msk.f32.gmra.mxu0 %vm96_vm1, %v19476_v17  ;;  %17182 = vmatmul.msk.f32.gmra.mxu1 %vm96_vm1, %v19476_v17 }
 0x378   :  { %v5474_v23 = vpop.f32.mrf.mxu0  ;;  %v5497_v24 = vpop.f32.mrf.mxu1 }
 0x379   :  { %17185 = vmatmul.msk.f32.gmra.mxu2 %vm96_vm1, %v19476_v17  ;;  %17188 = vmatmul.msk.f32.gmra.mxu3 %vm96_vm1, %v19476_v17  ;;  %v6169_v31 = vmul.f32 0.01, %v5474_v23  ;;  %v6170_v32 = vmul.f32 0.01, %v5497_v24  ;;  %vm6105_vm2 = vcmp.gt.f32.partialorder %v5474_v23, 0.0  ;;  %vm6106_vm3 = vcmp.gt.f32.partialorder %v5497_v24, 0.0 }
 0x37a   :  { %v5523_v54 = vpop.f32.mrf.mxu2  ;;  %v5546_v55 = vpop.f32.mrf.mxu3 }
 0x37b   :  { %vm6139_vm4 = vcmp.gt.f32.partialorder %v5523_v54, 0.0  ;;  %v6203_v37 = vmul.f32 0.01, %v5523_v54  ;;  %vm6140_vm5 = vcmp.gt.f32.partialorder %v5546_v55, 0.0  ;;  %v6204_v56 = vmul.f32 0.01, %v5546_v55 }
 0x37c   :  { %v6233_v39 = vsel %vm6105_vm2, %v5474_v23, %v6169_v31  ;;  %v6234_v40 = vsel %vm6106_vm3, %v5497_v24, %v6170_v32 }
 0x37d   :  { %v6267_v57 = vsel %vm6139_vm4, %v5523_v54, %v6203_v37  ;;  %v6268_v25 = vsel %vm6140_vm5, %v5546_v55, %v6204_v56 }
 0x37e   :  { %17195 = vmatpush.msk.msrb.mxu2 %vm103_vm0, %v6267_v57  ;;  %17198 = vmatpush.msk.msrb.mxu3 %vm103_vm0, %v6268_v25 }
 0x380   :  { %6551 = vmatpush.msrb.mxu2 %v6235_v59  ;;  %6574 = vmatpush.msrb.mxu3 %v6236_v60  ;;  %v5477_v33 = vpop.f32.mrf.mxu0  ;;  %v5500_v34 = vpop.f32.mrf.mxu1 }
 0x381   :  { %17196 = vmatmul.msk.f32.vlgmr.msrb.gmra.mxu2 %vm96_vm1, %v19461_v20  ;;  %17199 = vmatmul.msk.f32.vlgmr.msrb.gmra.mxu3 %vm96_vm1, %v19461_v20  ;;  %vm6137_vm4 = vcmp.gt.f32.partialorder %v5477_v33, 0.0  ;;  %v6201_v35 = vmul.f32 0.01, %v5477_v33  ;;  %vm6138_vm5 = vcmp.gt.f32.partialorder %v5500_v34, 0.0  ;;  %v6202_v36 = vmul.f32 0.01, %v5500_v34 }
 0x382   :  { %v5612_v47 = vpop.f32.mrf.mxu2  ;;  %v5635_v61 = vpop.f32.mrf.mxu3 }
 0x383   :  { %v6175_v11 = vmul.f32 0.01, %v5612_v47  ;;  %v6176_v12 = vmul.f32 0.01, %v5635_v61  ;;  %vm6111_vm14 = vcmp.gt.f32.partialorder %v5612_v47, 0.0  ;;  %vm6112_vm15 = vcmp.gt.f32.partialorder %v5635_v61, 0.0 }
 0x384   :  { %v6265_v4 = vsel %vm6137_vm4, %v5477_v33, %v6201_v35  ;;  %v6266_v38 = vsel %vm6138_vm5, %v5500_v34, %v6202_v36 }
 0x385   :  { %v6239_v26 = vsel %vm6111_vm14, %v5612_v47, %v6175_v11  ;;  %v6240_v27 = vsel %vm6112_vm15, %v5635_v61, %v6176_v12  ;;  %17189 = vmatpush.msk.msrb.mxu0 %vm103_vm0, %v6265_v4  ;;  %17192 = vmatpush.msk.msrb.mxu1 %vm103_vm0, %v6266_v38 }
 0x387   :  { %6505 = vmatpush.msrb.mxu0 %v6233_v39  ;;  %6528 = vmatpush.msrb.mxu1 %v6234_v40 }
 0x388   :  { %17190 = vmatmul.msk.f32.vlgmr.msrb.gmra.mxu0 %vm96_vm1, %v19461_v20  ;;  %17193 = vmatmul.msk.f32.vlgmr.msrb.gmra.mxu1 %vm96_vm1, %v19461_v20  ;;  %v5566_v48 = vpop.f32.mrf.mxu0  ;;  %v5589_v15 = vpop.f32.mrf.mxu1 }
 0x389   :  { %17197 = vmatmul.msk.f32.gmra.mxu2 %vm96_vm1, %v19476_v17  ;;  %17200 = vmatmul.msk.f32.gmra.mxu3 %vm96_vm1, %v19476_v17  ;;  %v6173_v52 = vmul.f32 0.01, %v5566_v48  ;;  %v6174_v53 = vmul.f32 0.01, %v5589_v15  ;;  %vm6109_vm10 = vcmp.gt.f32.partialorder %v5566_v48, 0.0  ;;  %vm6110_vm11 = vcmp.gt.f32.partialorder %v5589_v15, 0.0 }
 0x38a   :  { %v5615_v14 = vpop.f32.mrf.mxu2  ;;  %v5638_v16 = vpop.f32.mrf.mxu3 }
 0x38b   :  { %vm6143_vm12 = vcmp.gt.f32.partialorder %v5615_v14, 0.0  ;;  %v6207_v18 = vmul.f32 0.01, %v5615_v14  ;;  %vm6144_vm13 = vcmp.gt.f32.partialorder %v5638_v16, 0.0  ;;  %v6208_v19 = vmul.f32 0.01, %v5638_v16 }
 0x38c   :  { %v6237_v42 = vsel %vm6109_vm10, %v5566_v48, %v6173_v52  ;;  %v6238_v58 = vsel %vm6110_vm11, %v5589_v15, %v6174_v53 }
 0x38d   :  { %v6271_v21 = vsel %vm6143_vm12, %v5615_v14, %v6207_v18  ;;  %v6272_v22 = vsel %vm6144_vm13, %v5638_v16, %v6208_v19 }
 0x38e   :  { %17207 = vmatpush.msk.msra.mxu2 %vm103_vm0, %v6271_v21  ;;  %17210 = vmatpush.msk.msra.mxu3 %vm103_vm0, %v6272_v22 }
 0x390   :  { %6643 = vmatpush.msra.mxu2 %v6239_v26  ;;  %6666 = vmatpush.msra.mxu3 %v6240_v27  ;;  %v5569_v54 = vpop.f32.mrf.mxu0  ;;  %v5592_v55 = vpop.f32.mrf.mxu1 }
 0x391   :  { %17208 = vmatmul.msk.f32.vlgmr.msra.gmra.mxu2 %vm96_vm1, %v19461_v20  ;;  %17211 = vmatmul.msk.f32.vlgmr.msra.gmra.mxu3 %vm96_vm1, %v19461_v20  ;;  %vm6141_vm12 = vcmp.gt.f32.partialorder %v5569_v54, 0.0  ;;  %v6205_v37 = vmul.f32 0.01, %v5569_v54  ;;  %vm6142_vm13 = vcmp.gt.f32.partialorder %v5592_v55, 0.0  ;;  %v6206_v56 = vmul.f32 0.01, %v5592_v55 }
 0x392   :  { %v5704_v29 = vpop.f32.mrf.mxu2  ;;  %v5727_v30 = vpop.f32.mrf.mxu3  ;;  %17191 = vmatmul.msk.f32.gmra.mxu0 %vm96_vm1, %v19476_v17  ;;  %17194 = vmatmul.msk.f32.gmra.mxu1 %vm96_vm1, %v19476_v17 }
 0x393   :  { %v6179_v41 = vmul.f32 0.01, %v5704_v29  ;;  %v6180_v43 = vmul.f32 0.01, %v5727_v30  ;;  %vm6115_vm8 = vcmp.gt.f32.partialorder %v5704_v29, 0.0  ;;  %vm6116_vm9 = vcmp.gt.f32.partialorder %v5727_v30, 0.0 }
 0x394   :  { %v6269_v57 = vsel %vm6141_vm12, %v5569_v54, %v6205_v37  ;;  %v6270_v25 = vsel %vm6142_vm13, %v5592_v55, %v6206_v56 }
 0x395   :  { %v6243_v49 = vsel %vm6115_vm8, %v5704_v29, %v6179_v41  ;;  %v6244_v50 = vsel %vm6116_vm9, %v5727_v30, %v6180_v43  ;;  %17201 = vmatpush.msk.msra.mxu0 %vm103_vm0, %v6269_v57  ;;  %17204 = vmatpush.msk.msra.mxu1 %vm103_vm0, %v6270_v25 }
 0x397   :  { %6597 = vmatpush.msra.mxu0 %v6237_v42  ;;  %6620 = vmatpush.msra.mxu1 %v6238_v58 }
 0x398   :  { %v5658_v2 = vpop.f32.mrf.mxu0  ;;  %v5681_v3 = vpop.f32.mrf.mxu1 }
 0x399   :  { %17209 = vmatmul.msk.f32.gmra.mxu2 %vm96_vm1, %v19476_v17  ;;  %17212 = vmatmul.msk.f32.gmra.mxu3 %vm96_vm1, %v19476_v17  ;;  %v6177_v11 = vmul.f32 0.01, %v5658_v2  ;;  %v6178_v12 = vmul.f32 0.01, %v5681_v3  ;;  %vm6113_vm4 = vcmp.gt.f32.partialorder %v5658_v2, 0.0  ;;  %vm6114_vm5 = vcmp.gt.f32.partialorder %v5681_v3, 0.0 }
 0x39a   :  { %v5707_v5 = vpop.f32.mrf.mxu2  ;;  %v5730_v13 = vpop.f32.mrf.mxu3  ;;  %17202 = vmatmul.msk.f32.vlgmr.msra.gmra.mxu0 %vm96_vm1, %v19461_v20  ;;  %17205 = vmatmul.msk.f32.vlgmr.msra.gmra.mxu1 %vm96_vm1, %v19461_v20 }
 0x39b   :  { %vm6147_vm6 = vcmp.gt.f32.partialorder %v5707_v5, 0.0  ;;  %v6211_v44 = vmul.f32 0.01, %v5707_v5  ;;  %vm6148_vm7 = vcmp.gt.f32.partialorder %v5730_v13, 0.0  ;;  %v6212_v8 = vmul.f32 0.01, %v5730_v13 }
 0x39c   :  { %v6241_v23 = vsel %vm6113_vm4, %v5658_v2, %v6177_v11  ;;  %v6242_v24 = vsel %vm6114_vm5, %v5681_v3, %v6178_v12 }
 0x39d   :  { %v6275_v45 = vsel %vm6147_vm6, %v5707_v5, %v6211_v44  ;;  %v6276_v46 = vsel %vm6148_vm7, %v5730_v13, %v6212_v8 }
 0x39e   :  { %17219 = vmatpush.msk.msrb.mxu2 %vm103_vm0, %v6275_v45  ;;  %17222 = vmatpush.msk.msrb.mxu3 %vm103_vm0, %v6276_v46 }
 0x3a0   :  { %6735 = vmatpush.msrb.mxu2 %v6243_v49  ;;  %6758 = vmatpush.msrb.mxu3 %v6244_v50  ;;  %v5661_v14 = vpop.f32.mrf.mxu0  ;;  %v5684_v16 = vpop.f32.mrf.mxu1 }
 0x3a1   :  { %17220 = vmatmul.msk.f32.vlgmr.msrb.gmra.mxu2 %vm96_vm1, %v19461_v20  ;;  %17223 = vmatmul.msk.f32.vlgmr.msrb.gmra.mxu3 %vm96_vm1, %v19461_v20  ;;  %vm6145_vm6 = vcmp.gt.f32.partialorder %v5661_v14, 0.0  ;;  %v6209_v18 = vmul.f32 0.01, %v5661_v14  ;;  %vm6146_vm7 = vcmp.gt.f32.partialorder %v5684_v16, 0.0  ;;  %v6210_v19 = vmul.f32 0.01, %v5684_v16 }
 0x3a2   :  { %v5796_v51 = vpop.f32.mrf.mxu2  ;;  %v5819_v28 = vpop.f32.mrf.mxu3  ;;  %17203 = vmatmul.msk.f32.gmra.mxu0 %vm96_vm1, %v19476_v17  ;;  %17206 = vmatmul.msk.f32.gmra.mxu1 %vm96_vm1, %v19476_v17 }
 0x3a3   :  { %v6183_v59 = vmul.f32 0.01, %v5796_v51  ;;  %v6184_v60 = vmul.f32 0.01, %v5819_v28  ;;  %vm6119_vm2 = vcmp.gt.f32.partialorder %v5796_v51, 0.0  ;;  %vm6120_vm3 = vcmp.gt.f32.partialorder %v5819_v28, 0.0 }
 0x3a4   :  { %v6273_v21 = vsel %vm6145_vm6, %v5661_v14, %v6209_v18  ;;  %v6274_v22 = vsel %vm6146_vm7, %v5684_v16, %v6210_v19 }
 0x3a5   :  { %v6247_v6 = vsel %vm6119_vm2, %v5796_v51, %v6183_v59  ;;  %v6248_v7 = vsel %vm6120_vm3, %v5819_v28, %v6184_v60  ;;  %17213 = vmatpush.msk.msrb.mxu0 %vm103_vm0, %v6273_v21  ;;  %17216 = vmatpush.msk.msrb.mxu1 %vm103_vm0, %v6274_v22 }
 0x3a7   :  { %6689 = vmatpush.msrb.mxu0 %v6241_v23  ;;  %6712 = vmatpush.msrb.mxu1 %v6242_v24 }
 0x3a8   :  { %v5750_v35 = vpop.f32.mrf.mxu0  ;;  %v5773_v36 = vpop.f32.mrf.mxu1 }
 0x3a9   :  { %17221 = vmatmul.msk.f32.gmra.mxu2 %vm96_vm1, %v19476_v17  ;;  %17224 = vmatmul.msk.f32.gmra.mxu3 %vm96_vm1, %v19476_v17  ;;  %v6181_v41 = vmul.f32 0.01, %v5750_v35  ;;  %v6182_v43 = vmul.f32 0.01, %v5773_v36  ;;  %vm6117_vm12 = vcmp.gt.f32.partialorder %v5750_v35, 0.0  ;;  %vm6118_vm13 = vcmp.gt.f32.partialorder %v5773_v36, 0.0 }
 0x3aa   :  { %v5799_v47 = vpop.f32.mrf.mxu2  ;;  %v5822_v61 = vpop.f32.mrf.mxu3  ;;  %17214 = vmatmul.msk.f32.vlgmr.msrb.gmra.mxu0 %vm96_vm1, %v19461_v20  ;;  %17217 = vmatmul.msk.f32.vlgmr.msrb.gmra.mxu1 %vm96_vm1, %v19461_v20 }
 0x3ab   :  { %vm6151_vm14 = vcmp.gt.f32.partialorder %v5799_v47, 0.0  ;;  %v6215_v62 = vmul.f32 0.01, %v5799_v47  ;;  %vm6152_vm15 = vcmp.gt.f32.partialorder %v5822_v61, 0.0  ;;  %v6216_v63 = vmul.f32 0.01, %v5822_v61 }
 0x3ac   :  { %v6245_v48 = vsel %vm6117_vm12, %v5750_v35, %v6181_v41  ;;  %v6246_v15 = vsel %vm6118_vm13, %v5773_v36, %v6182_v43 }
 0x3ad   :  { %v6279_v0 = vsel %vm6151_vm14, %v5799_v47, %v6215_v62  ;;  %v6280_v1 = vsel %vm6152_vm15, %v5822_v61, %v6216_v63 }
 0x3ae   :  { %17231 = vmatpush.msk.msra.mxu2 %vm103_vm0, %v6279_v0  ;;  %17234 = vmatpush.msk.msra.mxu3 %vm103_vm0, %v6280_v1 }
 0x3b0   :  { %6827 = vmatpush.msra.mxu2 %v6247_v6  ;;  %6850 = vmatpush.msra.mxu3 %v6248_v7  ;;  %v5753_v5 = vpop.f32.mrf.mxu0  ;;  %v5776_v13 = vpop.f32.mrf.mxu1 }
 0x3b1   :  { %17232 = vmatmul.msk.f32.vlgmr.msra.gmra.mxu2 %vm96_vm1, %v19461_v20  ;;  %17235 = vmatmul.msk.f32.vlgmr.msra.gmra.mxu3 %vm96_vm1, %v19461_v20  ;;  %vm6149_vm14 = vcmp.gt.f32.partialorder %v5753_v5, 0.0  ;;  %v6213_v44 = vmul.f32 0.01, %v5753_v5  ;;  %vm6150_vm15 = vcmp.gt.f32.partialorder %v5776_v13, 0.0  ;;  %v6214_v8 = vmul.f32 0.01, %v5776_v13 }
 0x3b2   :  { %v5888_v9 = vpop.f32.mrf.mxu2  ;;  %v5911_v10 = vpop.f32.mrf.mxu3  ;;  %17215 = vmatmul.msk.f32.gmra.mxu0 %vm96_vm1, %v19476_v17  ;;  %17218 = vmatmul.msk.f32.gmra.mxu1 %vm96_vm1, %v19476_v17 }
 0x3b3   :  { %v6187_v26 = vmul.f32 0.01, %v5888_v9  ;;  %v6188_v27 = vmul.f32 0.01, %v5911_v10  ;;  %vm6123_vm10 = vcmp.gt.f32.partialorder %v5888_v9, 0.0  ;;  %vm6124_vm11 = vcmp.gt.f32.partialorder %v5911_v10, 0.0 }
 0x3b4   :  { %v6277_v45 = vsel %vm6149_vm14, %v5753_v5, %v6213_v44  ;;  %v6278_v46 = vsel %vm6150_vm15, %v5776_v13, %v6214_v8 }
 0x3b5   :  { %v6251_v4 = vsel %vm6123_vm10, %v5888_v9, %v6187_v26  ;;  %v6252_v38 = vsel %vm6124_vm11, %v5911_v10, %v6188_v27  ;;  %17225 = vmatpush.msk.msra.mxu0 %vm103_vm0, %v6277_v45  ;;  %17228 = vmatpush.msk.msra.mxu1 %vm103_vm0, %v6278_v46 }
 0x3b7   :  { %6781 = vmatpush.msra.mxu0 %v6245_v48  ;;  %6804 = vmatpush.msra.mxu1 %v6246_v15 }
 0x3b8   :  { %v5842_v37 = vpop.f32.mrf.mxu0  ;;  %v5865_v56 = vpop.f32.mrf.mxu1 }
 0x3b9   :  { %17233 = vmatmul.msk.f32.gmra.mxu2 %vm96_vm1, %v19476_v17  ;;  %17236 = vmatmul.msk.f32.gmra.mxu3 %vm96_vm1, %v19476_v17  ;;  %v6185_v59 = vmul.f32 0.01, %v5842_v37  ;;  %v6186_v60 = vmul.f32 0.01, %v5865_v56  ;;  %vm6121_vm6 = vcmp.gt.f32.partialorder %v5842_v37, 0.0  ;;  %vm6122_vm7 = vcmp.gt.f32.partialorder %v5865_v56, 0.0 }
 0x3ba   :  { %v5891_v29 = vpop.f32.mrf.mxu2  ;;  %v5914_v30 = vpop.f32.mrf.mxu3  ;;  %17226 = vmatmul.msk.f32.vlgmr.msra.gmra.mxu0 %vm96_vm1, %v19461_v20  ;;  %17229 = vmatmul.msk.f32.vlgmr.msra.gmra.mxu1 %vm96_vm1, %v19461_v20 }
 0x3bb   :  { %vm6155_vm8 = vcmp.gt.f32.partialorder %v5891_v29, 0.0  ;;  %v6219_v31 = vmul.f32 0.01, %v5891_v29  ;;  %vm6156_vm9 = vcmp.gt.f32.partialorder %v5914_v30, 0.0  ;;  %v6220_v32 = vmul.f32 0.01, %v5914_v30 }
 0x3bc   :  { %v6249_v2 = vsel %vm6121_vm6, %v5842_v37, %v6185_v59  ;;  %v6250_v3 = vsel %vm6122_vm7, %v5865_v56, %v6186_v60 }
 0x3bd   :  { %v6283_v33 = vsel %vm6155_vm8, %v5891_v29, %v6219_v31  ;;  %v6284_v34 = vsel %vm6156_vm9, %v5914_v30, %v6220_v32 }
 0x3be   :  { %17243 = vmatpush.msk.msrb.mxu2 %vm103_vm0, %v6283_v33  ;;  %17246 = vmatpush.msk.msrb.mxu3 %vm103_vm0, %v6284_v34 }
 0x3c0   :  { %6919 = vmatpush.msrb.mxu2 %v6251_v4  ;;  %6942 = vmatpush.msrb.mxu3 %v6252_v38  ;;  %v5845_v47 = vpop.f32.mrf.mxu0  ;;  %v5868_v61 = vpop.f32.mrf.mxu1 }
 0x3c1   :  { %17244 = vmatmul.msk.f32.vlgmr.msrb.gmra.mxu2 %vm96_vm1, %v19461_v20  ;;  %17247 = vmatmul.msk.f32.vlgmr.msrb.gmra.mxu3 %vm96_vm1, %v19461_v20  ;;  %vm6153_vm8 = vcmp.gt.f32.partialorder %v5845_v47, 0.0  ;;  %v6217_v62 = vmul.f32 0.01, %v5845_v47  ;;  %vm6154_vm9 = vcmp.gt.f32.partialorder %v5868_v61, 0.0  ;;  %v6218_v63 = vmul.f32 0.01, %v5868_v61 }
 0x3c2   :  { %v5980_v39 = vpop.f32.mrf.mxu2  ;;  %v6003_v40 = vpop.f32.mrf.mxu3  ;;  %17227 = vmatmul.msk.f32.gmra.mxu0 %vm96_vm1, %v19476_v17  ;;  %17230 = vmatmul.msk.f32.gmra.mxu1 %vm96_vm1, %v19476_v17 }
 0x3c3   :  { %v6191_v49 = vmul.f32 0.01, %v5980_v39  ;;  %v6192_v50 = vmul.f32 0.01, %v6003_v40  ;;  %vm6127_vm4 = vcmp.gt.f32.partialorder %v5980_v39, 0.0  ;;  %vm6128_vm5 = vcmp.gt.f32.partialorder %v6003_v40, 0.0 }
 0x3c4   :  { %v6281_v0 = vsel %vm6153_vm8, %v5845_v47, %v6217_v62  ;;  %v6282_v1 = vsel %vm6154_vm9, %v5868_v61, %v6218_v63 }
 0x3c5   :  { %v6255_v57 = vsel %vm6127_vm4, %v5980_v39, %v6191_v49  ;;  %v6256_v25 = vsel %vm6128_vm5, %v6003_v40, %v6192_v50  ;;  %17237 = vmatpush.msk.msrb.mxu0 %vm103_vm0, %v6281_v0  ;;  %17240 = vmatpush.msk.msrb.mxu1 %vm103_vm0, %v6282_v1 }
 0x3c7   :  { %6873 = vmatpush.msrb.mxu0 %v6249_v2  ;;  %6896 = vmatpush.msrb.mxu1 %v6250_v3 }
 0x3c8   :  { %v5934_v18 = vpop.f32.mrf.mxu0  ;;  %v5957_v19 = vpop.f32.mrf.mxu1 }
 0x3c9   :  { %17245 = vmatmul.msk.f32.gmra.mxu2 %vm96_vm1, %v19476_v17  ;;  %17248 = vmatmul.msk.f32.gmra.mxu3 %vm96_vm1, %v19476_v17  ;;  %v6189_v23 = vmul.f32 0.01, %v5934_v18  ;;  %v6190_v24 = vmul.f32 0.01, %v5957_v19  ;;  %vm6125_vm14 = vcmp.gt.f32.partialorder %v5934_v18, 0.0  ;;  %vm6126_vm15 = vcmp.gt.f32.partialorder %v5957_v19, 0.0 }
 0x3ca   :  { %v5983_v51 = vpop.f32.mrf.mxu2  ;;  %v6006_v28 = vpop.f32.mrf.mxu3  ;;  %17238 = vmatmul.msk.f32.vlgmr.msrb.gmra.mxu0 %vm96_vm1, %v19461_v20  ;;  %17241 = vmatmul.msk.f32.vlgmr.msrb.gmra.mxu1 %vm96_vm1, %v19461_v20 }
 0x3cb   :  { %vm6159_vm2 = vcmp.gt.f32.partialorder %v5983_v51, 0.0  ;;  %v6223_v52 = vmul.f32 0.01, %v5983_v51  ;;  %vm6160_vm3 = vcmp.gt.f32.partialorder %v6006_v28, 0.0  ;;  %v6224_v53 = vmul.f32 0.01, %v6006_v28 }
 0x3cc   :  { %v6253_v33 = vsel %vm6125_vm14, %v5934_v18, %v6189_v23  ;;  %v6254_v34 = vsel %vm6126_vm15, %v5957_v19, %v6190_v24 }
 0x3cd   :  { %v6287_v54 = vsel %vm6159_vm2, %v5983_v51, %v6223_v52  ;;  %v6288_v55 = vsel %vm6160_vm3, %v6006_v28, %v6224_v53 }
 0x3ce   :  { %17255 = vmatpush.msk.msra.mxu2 %vm103_vm0, %v6287_v54  ;;  %17258 = vmatpush.msk.msra.mxu3 %vm103_vm0, %v6288_v55  ;;  %v19637_v54 = vld [vmem:[%s21286_s1 + $0x70] sm:$0xff] }
 0x3d0   :  { %7011 = vmatpush.msra.mxu2 %v6255_v57  ;;  %7034 = vmatpush.msra.mxu3 %v6256_v25  ;;  %v5937_v26 = vpop.f32.mrf.mxu0  ;;  %v5960_v27 = vpop.f32.mrf.mxu1  ;;  %v19650_v57 = vld [vmem:[%s21286_s1 + $0x78] sm:$0x1f] }
 0x3d1   :  { %17256 = vmatmul.msk.f32.vlgmr.msra.gmra.mxu2 %vm96_vm1, %v19461_v20  ;;  %17259 = vmatmul.msk.f32.vlgmr.msra.gmra.mxu3 %vm96_vm1, %v19461_v20  ;;  %vm6157_vm2 = vcmp.gt.f32.partialorder %v5937_v26, 0.0  ;;  %v6221_v29 = vmul.f32 0.01, %v5937_v26  ;;  %vm6158_vm3 = vcmp.gt.f32.partialorder %v5960_v27, 0.0  ;;  %v6222_v30 = vmul.f32 0.01, %v5960_v27 }
 0x3d2   :  { %v6072_v42 = vpop.f32.mrf.mxu2  ;;  %v6095_v58 = vpop.f32.mrf.mxu3  ;;  %17239 = vmatmul.msk.f32.gmra.mxu0 %vm96_vm1, %v19476_v17  ;;  %17242 = vmatmul.msk.f32.gmra.mxu1 %vm96_vm1, %v19476_v17 }
 0x3d3   :  { %v6195_v6 = vmul.f32 0.01, %v6072_v42  ;;  %v6196_v7 = vmul.f32 0.01, %v6095_v58  ;;  %vm6131_vm12 = vcmp.gt.f32.partialorder %v6072_v42, 0.0  ;;  %vm6132_vm13 = vcmp.gt.f32.partialorder %v6095_v58, 0.0 }
 0x3d4   :  { %v6285_v31 = vsel %vm6157_vm2, %v5937_v26, %v6221_v29  ;;  %v6286_v32 = vsel %vm6158_vm3, %v5960_v27, %v6222_v30 }
 0x3d5   :  { %v6259_v21 = vsel %vm6131_vm12, %v6072_v42, %v6195_v6  ;;  %v6260_v22 = vsel %vm6132_vm13, %v6095_v58, %v6196_v7  ;;  %17249 = vmatpush.msk.msra.mxu0 %vm103_vm0, %v6285_v31  ;;  %17252 = vmatpush.msk.msra.mxu1 %vm103_vm0, %v6286_v32 }
 0x3d7   :  { %6965 = vmatpush.msra.mxu0 %v6253_v33  ;;  %6988 = vmatpush.msra.mxu1 %v6254_v34 }
 0x3d8   :  { %v6026_v35 = vpop.f32.mrf.mxu0  ;;  %v6049_v36 = vpop.f32.mrf.mxu1 }
 0x3d9   :  { %17257 = vmatmul.msk.f32.gmra.mxu2 %vm96_vm1, %v19476_v17  ;;  %17260 = vmatmul.msk.f32.gmra.mxu3 %vm96_vm1, %v19476_v17  ;;  %v6193_v39 = vmul.f32 0.01, %v6026_v35  ;;  %v6194_v40 = vmul.f32 0.01, %v6049_v36  ;;  %vm6129_vm4 = vcmp.gt.f32.partialorder %v6026_v35, 0.0  ;;  %vm6130_vm5 = vcmp.gt.f32.partialorder %v6049_v36, 0.0 }
 0x3da   :  { %v6075_v9 = vpop.f32.mrf.mxu2  ;;  %v6098_v10 = vpop.f32.mrf.mxu3  ;;  %17250 = vmatmul.msk.f32.vlgmr.msra.gmra.mxu0 %vm96_vm1, %v19461_v20  ;;  %17253 = vmatmul.msk.f32.vlgmr.msra.gmra.mxu1 %vm96_vm1, %v19461_v20 }
 0x3db   :  { %vm6163_vm10 = vcmp.gt.f32.partialorder %v6075_v9, 0.0  ;;  %v6227_v11 = vmul.f32 0.01, %v6075_v9  ;;  %vm6164_vm11 = vcmp.gt.f32.partialorder %v6098_v10, 0.0  ;;  %v6228_v12 = vmul.f32 0.01, %v6098_v10 }
 0x3dc   :  { %v6257_v45 = vsel %vm6129_vm4, %v6026_v35, %v6193_v39  ;;  %v6258_v46 = vsel %vm6130_vm5, %v6049_v36, %v6194_v40 }
 0x3dd   :  { %v6291_v14 = vsel %vm6163_vm10, %v6075_v9, %v6227_v11  ;;  %v6292_v16 = vsel %vm6164_vm11, %v6098_v10, %v6228_v12 }
 0x3de   :  { %17267 = vmatpush.msk.msrb.mxu2 %vm103_vm0, %v6291_v14  ;;  %17270 = vmatpush.msk.msrb.mxu3 %vm103_vm0, %v6292_v16 }
 0x3e0   :  { %7103 = vmatpush.msrb.mxu2 %v6259_v21  ;;  %7126 = vmatpush.msrb.mxu3 %v6260_v22  ;;  %v6029_v41 = vpop.f32.mrf.mxu0  ;;  %v6052_v43 = vpop.f32.mrf.mxu1 }
 0x3e1   :  { %17268 = vmatmul.msk.f32.vlgmr.msrb.gmra.mxu2 %vm96_vm1, %v19461_v20  ;;  %17271 = vmatmul.msk.f32.vlgmr.msrb.gmra.mxu3 %vm96_vm1, %v19461_v20  ;;  %vm6161_vm6 = vcmp.gt.f32.partialorder %v6029_v41, 0.0  ;;  %v6225_v5 = vmul.f32 0.01, %v6029_v41  ;;  %vm6162_vm7 = vcmp.gt.f32.partialorder %v6052_v43, 0.0  ;;  %v6226_v13 = vmul.f32 0.01, %v6052_v43 }
 0x3e2   :  { %17251 = vmatmul.msk.f32.gmra.mxu0 %vm96_vm1, %v19476_v17  ;;  %17254 = vmatmul.msk.f32.gmra.mxu1 %vm96_vm1, %v19476_v17 }
 0x3e3   :  { %v6289_v44 = vsel %vm6161_vm6, %v6029_v41, %v6225_v5  ;;  %v6290_v8 = vsel %vm6162_vm7, %v6052_v43, %v6226_v13 }
 0x3e4   :  { %17261 = vmatpush.msk.msrb.mxu0 %vm103_vm0, %v6289_v44  ;;  %17264 = vmatpush.msk.msrb.mxu1 %vm103_vm0, %v6290_v8 }
 0x3e6   :  { %7057 = vmatpush.msrb.mxu0 %v6257_v45  ;;  %7080 = vmatpush.msrb.mxu1 %v6258_v46 }
 0x3e9   :  { %17269 = vmatmul.msk.f32.gmra.mxu2 %vm96_vm1, %v19476_v17  ;;  %17272 = vmatmul.msk.f32.gmra.mxu3 %vm96_vm1, %v19476_v17 }
 0x3ea   :  { %17262 = vmatmul.msk.f32.vlgmr.msrb.gmra.mxu0 %vm96_vm1, %v19461_v20  ;;  %17265 = vmatmul.msk.f32.vlgmr.msrb.gmra.mxu1 %vm96_vm1, %v19461_v20  ;;  %v6415_v25 = vpop.f32.mrf.mxu0  ;;  %v6438_v42 = vpop.f32.mrf.mxu1 }
 0x3eb   :  { %v7198_v2 = vmul.f32 0.01, %v6415_v25  ;;  %v7199_v3 = vmul.f32 0.01, %v6438_v42  ;;  %vm7134_vm2 = vcmp.gt.f32.partialorder %v6415_v25, 0.0  ;;  %vm7135_vm3 = vcmp.gt.f32.partialorder %v6438_v42, 0.0 }
 0x3ed   :  { %v7262_v18 = vsel %vm7134_vm2, %v6415_v25, %v7198_v2  ;;  %v7263_v19 = vsel %vm7135_vm3, %v6438_v42, %v7199_v3 }
 0x3f2   :  { %17263 = vmatmul.msk.f32.gmra.mxu0 %vm96_vm1, %v19476_v17  ;;  %17266 = vmatmul.msk.f32.gmra.mxu1 %vm96_vm1, %v19476_v17  ;;  %v6418_v6 = vpop.f32.mrf.mxu0  ;;  %v6441_v7 = vpop.f32.mrf.mxu1 }
 0x3f3   :  { %vm7166_vm4 = vcmp.gt.f32.partialorder %v6418_v6, 0.0  ;;  %v7230_v9 = vmul.f32 0.01, %v6418_v6  ;;  %vm7167_vm5 = vcmp.gt.f32.partialorder %v6441_v7, 0.0  ;;  %v7231_v10 = vmul.f32 0.01, %v6441_v7 }
 0x3f4   :  { %v6461_v4 = vpop.f32.mrf.mxu2  ;;  %v6484_v38 = vpop.f32.mrf.mxu3 }
 0x3f5   :  { %v7200_v48 = vmul.f32 0.01, %v6461_v4  ;;  %v7201_v15 = vmul.f32 0.01, %v6484_v38  ;;  %vm7136_vm10 = vcmp.gt.f32.partialorder %v6461_v4, 0.0  ;;  %vm7137_vm11 = vcmp.gt.f32.partialorder %v6484_v38, 0.0 }
 0x3f6   :  { %v7294_v14 = vsel %vm7166_vm4, %v6418_v6, %v7230_v9  ;;  %v7295_v16 = vsel %vm7167_vm5, %v6441_v7, %v7231_v10 }
 0x3f7   :  { %v7264_v55 = vsel %vm7136_vm10, %v6461_v4, %v7200_v48  ;;  %v7265_v37 = vsel %vm7137_vm11, %v6484_v38, %v7201_v15  ;;  %17275 = vmatpush.msk.msra.mxu0 %vm103_vm0, %v7294_v14  ;;  %17278 = vmatpush.msk.msra.mxu1 %vm103_vm0, %v7295_v16 }
 0x3f9   :  { %7446 = vmatpush.msra.mxu0 %v7262_v18  ;;  %7469 = vmatpush.msra.mxu1 %v7263_v19 }
 0x3fa   :  { %17276 = vmatmul.msk.f32.vlgmr.msra.gmra.mxu0 %vm96_vm1, %v19637_v54  ;;  %17279 = vmatmul.msk.f32.vlgmr.msra.gmra.mxu1 %vm96_vm1, %v19637_v54 }
 0x3fc   :  { %v6464_v49 = vpop.f32.mrf.mxu2  ;;  %v6487_v50 = vpop.f32.mrf.mxu3 }
 0x3fd   :  { %vm7168_vm8 = vcmp.gt.f32.partialorder %v6464_v49, 0.0  ;;  %v7232_v51 = vmul.f32 0.01, %v6464_v49  ;;  %vm7169_vm9 = vcmp.gt.f32.partialorder %v6487_v50, 0.0  ;;  %v7233_v28 = vmul.f32 0.01, %v6487_v50 }
 0x3ff   :  { %v7296_v52 = vsel %vm7168_vm8, %v6464_v49, %v7232_v51  ;;  %v7297_v53 = vsel %vm7169_vm9, %v6487_v50, %v7233_v28 }
 0x400   :  { %17281 = vmatpush.msk.msra.mxu2 %vm103_vm0, %v7296_v52  ;;  %17284 = vmatpush.msk.msra.mxu3 %vm103_vm0, %v7297_v53 }
 0x402   :  { %7492 = vmatpush.msra.mxu2 %v7264_v55  ;;  %7515 = vmatpush.msra.mxu3 %v7265_v37 }
 0x403   :  { %17282 = vmatmul.msk.f32.vlgmr.msra.gmra.mxu2 %vm96_vm1, %v19637_v54  ;;  %17285 = vmatmul.msk.f32.vlgmr.msra.gmra.mxu3 %vm96_vm1, %v19637_v54 }
 0x404   :  { %v6553_v20 = vpop.f32.mrf.mxu2  ;;  %v6576_v56 = vpop.f32.mrf.mxu3  ;;  %17277 = vmatmul.msk.f32.gmra.mxu0 %vm96_vm1, %v19650_v57  ;;  %17280 = vmatmul.msk.f32.gmra.mxu1 %vm96_vm1, %v19650_v57 }
 0x405   :  { %v7204_v58 = vmul.f32 0.01, %v6553_v20  ;;  %v7205_v59 = vmul.f32 0.01, %v6576_v56  ;;  %vm7140_vm14 = vcmp.gt.f32.partialorder %v6553_v20, 0.0  ;;  %vm7141_vm15 = vcmp.gt.f32.partialorder %v6576_v56, 0.0  ;;  %v6507_v21 = vpop.f32.mrf.mxu0  ;;  %v6530_v22 = vpop.f32.mrf.mxu1 }
 0x406   :  { %v7202_v35 = vmul.f32 0.01, %v6507_v21  ;;  %v7203_v36 = vmul.f32 0.01, %v6530_v22  ;;  %vm7138_vm10 = vcmp.gt.f32.partialorder %v6507_v21, 0.0  ;;  %vm7139_vm11 = vcmp.gt.f32.partialorder %v6530_v22, 0.0 }
 0x407   :  { %v7268_v0 = vsel %vm7140_vm14, %v6553_v20, %v7204_v58  ;;  %v7269_v1 = vsel %vm7141_vm15, %v6576_v56, %v7205_v59 }
 0x408   :  { %v7266_v44 = vsel %vm7138_vm10, %v6507_v21, %v7202_v35  ;;  %v7267_v8 = vsel %vm7139_vm11, %v6530_v22, %v7203_v36 }
 0x40b   :  { %17283 = vmatmul.msk.f32.gmra.mxu2 %vm96_vm1, %v19650_v57  ;;  %17286 = vmatmul.msk.f32.gmra.mxu3 %vm96_vm1, %v19650_v57 }
 0x40c   :  { %v6556_v60 = vpop.f32.mrf.mxu2  ;;  %v6579_v47 = vpop.f32.mrf.mxu3 }
 0x40d   :  { %vm7172_vm12 = vcmp.gt.f32.partialorder %v6556_v60, 0.0  ;;  %v7236_v61 = vmul.f32 0.01, %v6556_v60  ;;  %vm7173_vm13 = vcmp.gt.f32.partialorder %v6579_v47, 0.0  ;;  %v7237_v17 = vmul.f32 0.01, %v6579_v47 }
 0x40f   :  { %v7300_v62 = vsel %vm7172_vm12, %v6556_v60, %v7236_v61  ;;  %v7301_v63 = vsel %vm7173_vm13, %v6579_v47, %v7237_v17  ;;  %v6510_v4 = vpop.f32.mrf.mxu0  ;;  %v6533_v38 = vpop.f32.mrf.mxu1 }
 0x410   :  { %17293 = vmatpush.msk.msrb.mxu2 %vm103_vm0, %v7300_v62  ;;  %17296 = vmatpush.msk.msrb.mxu3 %vm103_vm0, %v7301_v63  ;;  %vm7170_vm12 = vcmp.gt.f32.partialorder %v6510_v4, 0.0  ;;  %v7234_v39 = vmul.f32 0.01, %v6510_v4  ;;  %vm7171_vm13 = vcmp.gt.f32.partialorder %v6533_v38, 0.0  ;;  %v7235_v40 = vmul.f32 0.01, %v6533_v38 }
 0x412   :  { %7584 = vmatpush.msrb.mxu2 %v7268_v0  ;;  %7607 = vmatpush.msrb.mxu3 %v7269_v1  ;;  %v7298_v5 = vsel %vm7170_vm12, %v6510_v4, %v7234_v39  ;;  %v7299_v13 = vsel %vm7171_vm13, %v6533_v38, %v7235_v40 }
 0x413   :  { %17294 = vmatmul.msk.f32.vlgmr.msrb.gmra.mxu2 %vm96_vm1, %v19637_v54  ;;  %17297 = vmatmul.msk.f32.vlgmr.msrb.gmra.mxu3 %vm96_vm1, %v19637_v54 }
 0x414   :  { %v6645_v11 = vpop.f32.mrf.mxu2  ;;  %v6668_v12 = vpop.f32.mrf.mxu3  ;;  %17287 = vmatpush.msk.msrb.mxu0 %vm103_vm0, %v7298_v5  ;;  %17290 = vmatpush.msk.msrb.mxu1 %vm103_vm0, %v7299_v13 }
 0x415   :  { %v7208_v23 = vmul.f32 0.01, %v6645_v11  ;;  %v7209_v24 = vmul.f32 0.01, %v6668_v12  ;;  %vm7144_vm8 = vcmp.gt.f32.partialorder %v6645_v11, 0.0  ;;  %vm7145_vm9 = vcmp.gt.f32.partialorder %v6668_v12, 0.0 }
 0x416   :  { %7538 = vmatpush.msrb.mxu0 %v7266_v44  ;;  %7561 = vmatpush.msrb.mxu1 %v7267_v8 }
 0x417   :  { %v7272_v33 = vsel %vm7144_vm8, %v6645_v11, %v7208_v23  ;;  %v7273_v34 = vsel %vm7145_vm9, %v6668_v12, %v7209_v24  ;;  %v6599_v45 = vpop.f32.mrf.mxu0  ;;  %v6622_v46 = vpop.f32.mrf.mxu1  ;;  %17288 = vmatmul.msk.f32.vlgmr.msrb.gmra.mxu0 %vm96_vm1, %v19637_v54  ;;  %17291 = vmatmul.msk.f32.vlgmr.msrb.gmra.mxu1 %vm96_vm1, %v19637_v54 }
 0x418   :  { %v7206_v20 = vmul.f32 0.01, %v6599_v45  ;;  %v7207_v56 = vmul.f32 0.01, %v6622_v46  ;;  %vm7142_vm4 = vcmp.gt.f32.partialorder %v6599_v45, 0.0  ;;  %vm7143_vm5 = vcmp.gt.f32.partialorder %v6622_v46, 0.0 }
 0x41a   :  { %v7270_v62 = vsel %vm7142_vm4, %v6599_v45, %v7206_v20  ;;  %v7271_v63 = vsel %vm7143_vm5, %v6622_v46, %v7207_v56 }
 0x41b   :  { %17295 = vmatmul.msk.f32.gmra.mxu2 %vm96_vm1, %v19650_v57  ;;  %17298 = vmatmul.msk.f32.gmra.mxu3 %vm96_vm1, %v19650_v57 }
 0x41c   :  { %v6648_v26 = vpop.f32.mrf.mxu2  ;;  %v6671_v27 = vpop.f32.mrf.mxu3 }
 0x41d   :  { %vm7176_vm6 = vcmp.gt.f32.partialorder %v6648_v26, 0.0  ;;  %v7240_v29 = vmul.f32 0.01, %v6648_v26  ;;  %vm7177_vm7 = vcmp.gt.f32.partialorder %v6671_v27, 0.0  ;;  %v7241_v30 = vmul.f32 0.01, %v6671_v27 }
 0x41f   :  { %v7304_v31 = vsel %vm7176_vm6, %v6648_v26, %v7240_v29  ;;  %v7305_v32 = vsel %vm7177_vm7, %v6671_v27, %v7241_v30  ;;  %v6602_v25 = vpop.f32.mrf.mxu0  ;;  %v6625_v42 = vpop.f32.mrf.mxu1  ;;  %17289 = vmatmul.msk.f32.gmra.mxu0 %vm96_vm1, %v19650_v57  ;;  %17292 = vmatmul.msk.f32.gmra.mxu1 %vm96_vm1, %v19650_v57 }
 0x420   :  { %17305 = vmatpush.msk.msra.mxu2 %vm103_vm0, %v7304_v31  ;;  %17308 = vmatpush.msk.msra.mxu3 %vm103_vm0, %v7305_v32  ;;  %vm7174_vm6 = vcmp.gt.f32.partialorder %v6602_v25, 0.0  ;;  %v7238_v58 = vmul.f32 0.01, %v6602_v25  ;;  %vm7175_vm7 = vcmp.gt.f32.partialorder %v6625_v42, 0.0  ;;  %v7239_v59 = vmul.f32 0.01, %v6625_v42 }
 0x422   :  { %7676 = vmatpush.msra.mxu2 %v7272_v33  ;;  %7699 = vmatpush.msra.mxu3 %v7273_v34  ;;  %v7302_v61 = vsel %vm7174_vm6, %v6602_v25, %v7238_v58  ;;  %v7303_v17 = vsel %vm7175_vm7, %v6625_v42, %v7239_v59 }
 0x423   :  { %17306 = vmatmul.msk.f32.vlgmr.msra.gmra.mxu2 %vm96_vm1, %v19637_v54  ;;  %17309 = vmatmul.msk.f32.vlgmr.msra.gmra.mxu3 %vm96_vm1, %v19637_v54 }
 0x424   :  { %v6737_v41 = vpop.f32.mrf.mxu2  ;;  %v6760_v43 = vpop.f32.mrf.mxu3  ;;  %17299 = vmatpush.msk.msra.mxu0 %vm103_vm0, %v7302_v61  ;;  %17302 = vmatpush.msk.msra.mxu1 %vm103_vm0, %v7303_v17 }
 0x425   :  { %v7212_v48 = vmul.f32 0.01, %v6737_v41  ;;  %v7213_v15 = vmul.f32 0.01, %v6760_v43  ;;  %vm7148_vm2 = vcmp.gt.f32.partialorder %v6737_v41, 0.0  ;;  %vm7149_vm3 = vcmp.gt.f32.partialorder %v6760_v43, 0.0 }
 0x426   :  { %7630 = vmatpush.msra.mxu0 %v7270_v62  ;;  %7653 = vmatpush.msra.mxu1 %v7271_v63 }
 0x427   :  { %v7276_v55 = vsel %vm7148_vm2, %v6737_v41, %v7212_v48  ;;  %v7277_v37 = vsel %vm7149_vm3, %v6760_v43, %v7213_v15  ;;  %v6691_v0 = vpop.f32.mrf.mxu0  ;;  %v6714_v1 = vpop.f32.mrf.mxu1  ;;  %17300 = vmatmul.msk.f32.vlgmr.msra.gmra.mxu0 %vm96_vm1, %v19637_v54  ;;  %17303 = vmatmul.msk.f32.vlgmr.msra.gmra.mxu1 %vm96_vm1, %v19637_v54 }
 0x428   :  { %v7210_v18 = vmul.f32 0.01, %v6691_v0  ;;  %v7211_v19 = vmul.f32 0.01, %v6714_v1  ;;  %vm7146_vm12 = vcmp.gt.f32.partialorder %v6691_v0, 0.0  ;;  %vm7147_vm13 = vcmp.gt.f32.partialorder %v6714_v1, 0.0 }
 0x42a   :  { %v7274_v31 = vsel %vm7146_vm12, %v6691_v0, %v7210_v18  ;;  %v7275_v32 = vsel %vm7147_vm13, %v6714_v1, %v7211_v19 }
 0x42b   :  { %17307 = vmatmul.msk.f32.gmra.mxu2 %vm96_vm1, %v19650_v57  ;;  %17310 = vmatmul.msk.f32.gmra.mxu3 %vm96_vm1, %v19650_v57 }
 0x42c   :  { %v6740_v49 = vpop.f32.mrf.mxu2  ;;  %v6763_v50 = vpop.f32.mrf.mxu3 }
 0x42d   :  { %vm7180_vm14 = vcmp.gt.f32.partialorder %v6740_v49, 0.0  ;;  %v7244_v51 = vmul.f32 0.01, %v6740_v49  ;;  %vm7181_vm15 = vcmp.gt.f32.partialorder %v6763_v50, 0.0  ;;  %v7245_v28 = vmul.f32 0.01, %v6763_v50 }
 0x42f   :  { %v7308_v52 = vsel %vm7180_vm14, %v6740_v49, %v7244_v51  ;;  %v7309_v53 = vsel %vm7181_vm15, %v6763_v50, %v7245_v28  ;;  %v6694_v21 = vpop.f32.mrf.mxu0  ;;  %v6717_v22 = vpop.f32.mrf.mxu1  ;;  %17301 = vmatmul.msk.f32.gmra.mxu0 %vm96_vm1, %v19650_v57  ;;  %17304 = vmatmul.msk.f32.gmra.mxu1 %vm96_vm1, %v19650_v57 }
 0x430   :  { %17317 = vmatpush.msk.msrb.mxu2 %vm103_vm0, %v7308_v52  ;;  %17320 = vmatpush.msk.msrb.mxu3 %vm103_vm0, %v7309_v53  ;;  %vm7178_vm14 = vcmp.gt.f32.partialorder %v6694_v21, 0.0  ;;  %v7242_v23 = vmul.f32 0.01, %v6694_v21  ;;  %vm7179_vm15 = vcmp.gt.f32.partialorder %v6717_v22, 0.0  ;;  %v7243_v24 = vmul.f32 0.01, %v6717_v22 }
 0x432   :  { %7768 = vmatpush.msrb.mxu2 %v7276_v55  ;;  %7791 = vmatpush.msrb.mxu3 %v7277_v37  ;;  %v7306_v29 = vsel %vm7178_vm14, %v6694_v21, %v7242_v23  ;;  %v7307_v30 = vsel %vm7179_vm15, %v6717_v22, %v7243_v24 }
 0x433   :  { %17318 = vmatmul.msk.f32.vlgmr.msrb.gmra.mxu2 %vm96_vm1, %v19637_v54  ;;  %17321 = vmatmul.msk.f32.vlgmr.msrb.gmra.mxu3 %vm96_vm1, %v19637_v54 }
 0x434   :  { %v6829_v60 = vpop.f32.mrf.mxu2  ;;  %v6852_v47 = vpop.f32.mrf.mxu3  ;;  %17311 = vmatpush.msk.msrb.mxu0 %vm103_vm0, %v7306_v29  ;;  %17314 = vmatpush.msk.msrb.mxu1 %vm103_vm0, %v7307_v30 }
 0x435   :  { %v7216_v2 = vmul.f32 0.01, %v6829_v60  ;;  %v7217_v3 = vmul.f32 0.01, %v6852_v47  ;;  %vm7152_vm10 = vcmp.gt.f32.partialorder %v6829_v60, 0.0  ;;  %vm7153_vm11 = vcmp.gt.f32.partialorder %v6852_v47, 0.0 }
 0x436   :  { %7722 = vmatpush.msrb.mxu0 %v7274_v31  ;;  %7745 = vmatpush.msrb.mxu1 %v7275_v32 }
 0x437   :  { %v7280_v14 = vsel %vm7152_vm10, %v6829_v60, %v7216_v2  ;;  %v7281_v16 = vsel %vm7153_vm11, %v6852_v47, %v7217_v3  ;;  %v6783_v33 = vpop.f32.mrf.mxu0  ;;  %v6806_v34 = vpop.f32.mrf.mxu1  ;;  %17312 = vmatmul.msk.f32.vlgmr.msrb.gmra.mxu0 %vm96_vm1, %v19637_v54  ;;  %17315 = vmatmul.msk.f32.vlgmr.msrb.gmra.mxu1 %vm96_vm1, %v19637_v54 }
 0x438   :  { %v7214_v44 = vmul.f32 0.01, %v6783_v33  ;;  %v7215_v8 = vmul.f32 0.01, %v6806_v34  ;;  %vm7150_vm6 = vcmp.gt.f32.partialorder %v6783_v33, 0.0  ;;  %vm7151_vm7 = vcmp.gt.f32.partialorder %v6806_v34, 0.0 }
 0x43a   :  { %v7278_v52 = vsel %vm7150_vm6, %v6783_v33, %v7214_v44  ;;  %v7279_v53 = vsel %vm7151_vm7, %v6806_v34, %v7215_v8 }
 0x43b   :  { %17319 = vmatmul.msk.f32.gmra.mxu2 %vm96_vm1, %v19650_v57  ;;  %17322 = vmatmul.msk.f32.gmra.mxu3 %vm96_vm1, %v19650_v57 }
 0x43c   :  { %v6832_v6 = vpop.f32.mrf.mxu2  ;;  %v6855_v7 = vpop.f32.mrf.mxu3 }
 0x43d   :  { %vm7184_vm8 = vcmp.gt.f32.partialorder %v6832_v6, 0.0  ;;  %v7248_v9 = vmul.f32 0.01, %v6832_v6  ;;  %vm7185_vm9 = vcmp.gt.f32.partialorder %v6855_v7, 0.0  ;;  %v7249_v10 = vmul.f32 0.01, %v6855_v7 }
 0x43f   :  { %v7312_v11 = vsel %vm7184_vm8, %v6832_v6, %v7248_v9  ;;  %v7313_v12 = vsel %vm7185_vm9, %v6855_v7, %v7249_v10  ;;  %v6786_v45 = vpop.f32.mrf.mxu0  ;;  %v6809_v46 = vpop.f32.mrf.mxu1  ;;  %17313 = vmatmul.msk.f32.gmra.mxu0 %vm96_vm1, %v19650_v57  ;;  %17316 = vmatmul.msk.f32.gmra.mxu1 %vm96_vm1, %v19650_v57 }
 0x440   :  { %17329 = vmatpush.msk.msra.mxu2 %vm103_vm0, %v7312_v11  ;;  %17332 = vmatpush.msk.msra.mxu3 %vm103_vm0, %v7313_v12  ;;  %vm7182_vm8 = vcmp.gt.f32.partialorder %v6786_v45, 0.0  ;;  %v7246_v48 = vmul.f32 0.01, %v6786_v45  ;;  %vm7183_vm9 = vcmp.gt.f32.partialorder %v6809_v46, 0.0  ;;  %v7247_v15 = vmul.f32 0.01, %v6809_v46 }
 0x442   :  { %7860 = vmatpush.msra.mxu2 %v7280_v14  ;;  %7883 = vmatpush.msra.mxu3 %v7281_v16  ;;  %v7310_v51 = vsel %vm7182_vm8, %v6786_v45, %v7246_v48  ;;  %v7311_v28 = vsel %vm7183_vm9, %v6809_v46, %v7247_v15 }
 0x443   :  { %17330 = vmatmul.msk.f32.vlgmr.msra.gmra.mxu2 %vm96_vm1, %v19637_v54  ;;  %17333 = vmatmul.msk.f32.vlgmr.msra.gmra.mxu3 %vm96_vm1, %v19637_v54 }
 0x444   :  { %v6921_v26 = vpop.f32.mrf.mxu2  ;;  %v6944_v27 = vpop.f32.mrf.mxu3  ;;  %17323 = vmatpush.msk.msra.mxu0 %vm103_vm0, %v7310_v51  ;;  %17326 = vmatpush.msk.msra.mxu1 %vm103_vm0, %v7311_v28 }
 0x445   :  { %v7220_v35 = vmul.f32 0.01, %v6921_v26  ;;  %v7221_v36 = vmul.f32 0.01, %v6944_v27  ;;  %vm7156_vm4 = vcmp.gt.f32.partialorder %v6921_v26, 0.0  ;;  %vm7157_vm5 = vcmp.gt.f32.partialorder %v6944_v27, 0.0 }
 0x446   :  { %7814 = vmatpush.msra.mxu0 %v7278_v52  ;;  %7837 = vmatpush.msra.mxu1 %v7279_v53 }
 0x447   :  { %v7284_v5 = vsel %vm7156_vm4, %v6921_v26, %v7220_v35  ;;  %v7285_v13 = vsel %vm7157_vm5, %v6944_v27, %v7221_v36  ;;  %v6875_v55 = vpop.f32.mrf.mxu0  ;;  %v6898_v37 = vpop.f32.mrf.mxu1  ;;  %17324 = vmatmul.msk.f32.vlgmr.msra.gmra.mxu0 %vm96_vm1, %v19637_v54  ;;  %17327 = vmatmul.msk.f32.vlgmr.msra.gmra.mxu1 %vm96_vm1, %v19637_v54 }
 0x448   :  { %v7218_v62 = vmul.f32 0.01, %v6875_v55  ;;  %v7219_v63 = vmul.f32 0.01, %v6898_v37  ;;  %vm7154_vm14 = vcmp.gt.f32.partialorder %v6875_v55, 0.0  ;;  %vm7155_vm15 = vcmp.gt.f32.partialorder %v6898_v37, 0.0 }
 0x44a   :  { %v7282_v11 = vsel %vm7154_vm14, %v6875_v55, %v7218_v62  ;;  %v7283_v12 = vsel %vm7155_vm15, %v6898_v37, %v7219_v63  ;;  %v19820_v62 = vld [vmem:[%s21286_s1 + $0x88] sm:$0x1f] }
 0x44b   :  { %17331 = vmatmul.msk.f32.gmra.mxu2 %vm96_vm1, %v19650_v57  ;;  %17334 = vmatmul.msk.f32.gmra.mxu3 %vm96_vm1, %v19650_v57 }
 0x44c   :  { %v6924_v4 = vpop.f32.mrf.mxu2  ;;  %v6947_v38 = vpop.f32.mrf.mxu3 }
 0x44d   :  { %vm7188_vm2 = vcmp.gt.f32.partialorder %v6924_v4, 0.0  ;;  %v7252_v39 = vmul.f32 0.01, %v6924_v4  ;;  %vm7189_vm3 = vcmp.gt.f32.partialorder %v6947_v38, 0.0  ;;  %v7253_v40 = vmul.f32 0.01, %v6947_v38 }
 0x44f   :  { %v7316_v41 = vsel %vm7188_vm2, %v6924_v4, %v7252_v39  ;;  %v7317_v43 = vsel %vm7189_vm3, %v6947_v38, %v7253_v40  ;;  %v6878_v0 = vpop.f32.mrf.mxu0  ;;  %v6901_v1 = vpop.f32.mrf.mxu1  ;;  %17325 = vmatmul.msk.f32.gmra.mxu0 %vm96_vm1, %v19650_v57  ;;  %17328 = vmatmul.msk.f32.gmra.mxu1 %vm96_vm1, %v19650_v57 }
 0x450   :  { %17341 = vmatpush.msk.msrb.mxu2 %vm103_vm0, %v7316_v41  ;;  %17344 = vmatpush.msk.msrb.mxu3 %vm103_vm0, %v7317_v43  ;;  %vm7186_vm2 = vcmp.gt.f32.partialorder %v6878_v0, 0.0  ;;  %v7250_v2 = vmul.f32 0.01, %v6878_v0  ;;  %vm7187_vm3 = vcmp.gt.f32.partialorder %v6901_v1, 0.0  ;;  %v7251_v3 = vmul.f32 0.01, %v6901_v1 }
 0x452   :  { %7952 = vmatpush.msrb.mxu2 %v7284_v5  ;;  %7975 = vmatpush.msrb.mxu3 %v7285_v13  ;;  %v7314_v9 = vsel %vm7186_vm2, %v6878_v0, %v7250_v2  ;;  %v7315_v10 = vsel %vm7187_vm3, %v6901_v1, %v7251_v3 }
 0x453   :  { %17342 = vmatmul.msk.f32.vlgmr.msrb.gmra.mxu2 %vm96_vm1, %v19637_v54  ;;  %17345 = vmatmul.msk.f32.vlgmr.msrb.gmra.mxu3 %vm96_vm1, %v19637_v54 }
 0x454   :  { %v7013_v49 = vpop.f32.mrf.mxu2  ;;  %v7036_v50 = vpop.f32.mrf.mxu3  ;;  %17335 = vmatpush.msk.msrb.mxu0 %vm103_vm0, %v7314_v9  ;;  %17338 = vmatpush.msk.msrb.mxu1 %vm103_vm0, %v7315_v10 }
 0x455   :  { %v7224_v20 = vmul.f32 0.01, %v7013_v49  ;;  %v7225_v56 = vmul.f32 0.01, %v7036_v50  ;;  %vm7160_vm12 = vcmp.gt.f32.partialorder %v7013_v49, 0.0  ;;  %vm7161_vm13 = vcmp.gt.f32.partialorder %v7036_v50, 0.0 }
 0x456   :  { %7906 = vmatpush.msrb.mxu0 %v7282_v11  ;;  %7929 = vmatpush.msrb.mxu1 %v7283_v12 }
 0x457   :  { %v7288_v61 = vsel %vm7160_vm12, %v7013_v49, %v7224_v20  ;;  %v7289_v17 = vsel %vm7161_vm13, %v7036_v50, %v7225_v56  ;;  %v6967_v14 = vpop.f32.mrf.mxu0  ;;  %v6990_v16 = vpop.f32.mrf.mxu1  ;;  %17336 = vmatmul.msk.f32.vlgmr.msrb.gmra.mxu0 %vm96_vm1, %v19637_v54  ;;  %17339 = vmatmul.msk.f32.vlgmr.msrb.gmra.mxu1 %vm96_vm1, %v19637_v54 }
 0x458   :  { %v7222_v31 = vmul.f32 0.01, %v6967_v14  ;;  %v7223_v32 = vmul.f32 0.01, %v6990_v16  ;;  %vm7158_vm8 = vcmp.gt.f32.partialorder %v6967_v14, 0.0  ;;  %vm7159_vm9 = vcmp.gt.f32.partialorder %v6990_v16, 0.0 }
 0x45a   :  { %v7286_v39 = vsel %vm7158_vm8, %v6967_v14, %v7222_v31  ;;  %v7287_v40 = vsel %vm7159_vm9, %v6990_v16, %v7223_v32 }
 0x45b   :  { %17343 = vmatmul.msk.f32.gmra.mxu2 %vm96_vm1, %v19650_v57  ;;  %17346 = vmatmul.msk.f32.gmra.mxu3 %vm96_vm1, %v19650_v57 }
 0x45c   :  { %v7016_v25 = vpop.f32.mrf.mxu2  ;;  %v7039_v42 = vpop.f32.mrf.mxu3 }
 0x45d   :  { %vm7192_vm10 = vcmp.gt.f32.partialorder %v7016_v25, 0.0  ;;  %v7256_v58 = vmul.f32 0.01, %v7016_v25  ;;  %vm7193_vm11 = vcmp.gt.f32.partialorder %v7039_v42, 0.0  ;;  %v7257_v59 = vmul.f32 0.01, %v7039_v42 }
 0x45f   :  { %v7320_v60 = vsel %vm7192_vm10, %v7016_v25, %v7256_v58  ;;  %v7321_v47 = vsel %vm7193_vm11, %v7039_v42, %v7257_v59  ;;  %v6970_v33 = vpop.f32.mrf.mxu0  ;;  %v6993_v34 = vpop.f32.mrf.mxu1  ;;  %17337 = vmatmul.msk.f32.gmra.mxu0 %vm96_vm1, %v19650_v57  ;;  %17340 = vmatmul.msk.f32.gmra.mxu1 %vm96_vm1, %v19650_v57 }
 0x460   :  { %17353 = vmatpush.msk.msra.mxu2 %vm103_vm0, %v7320_v60  ;;  %17356 = vmatpush.msk.msra.mxu3 %vm103_vm0, %v7321_v47  ;;  %vm7190_vm10 = vcmp.gt.f32.partialorder %v6970_v33, 0.0  ;;  %v7254_v35 = vmul.f32 0.01, %v6970_v33  ;;  %vm7191_vm11 = vcmp.gt.f32.partialorder %v6993_v34, 0.0  ;;  %v7255_v36 = vmul.f32 0.01, %v6993_v34 }
 0x462   :  { %8044 = vmatpush.msra.mxu2 %v7288_v61  ;;  %8067 = vmatpush.msra.mxu3 %v7289_v17  ;;  %v7318_v4 = vsel %vm7190_vm10, %v6970_v33, %v7254_v35  ;;  %v7319_v38 = vsel %vm7191_vm11, %v6993_v34, %v7255_v36 }
 0x463   :  { %17354 = vmatmul.msk.f32.vlgmr.msra.gmra.mxu2 %vm96_vm1, %v19637_v54  ;;  %17357 = vmatmul.msk.f32.vlgmr.msra.gmra.mxu3 %vm96_vm1, %v19637_v54 }
 0x464   :  { %v7105_v6 = vpop.f32.mrf.mxu2  ;;  %v7128_v7 = vpop.f32.mrf.mxu3  ;;  %17347 = vmatpush.msk.msra.mxu0 %vm103_vm0, %v7318_v4  ;;  %17350 = vmatpush.msk.msra.mxu1 %vm103_vm0, %v7319_v38 }
 0x465   :  { %v7228_v18 = vmul.f32 0.01, %v7105_v6  ;;  %v7229_v19 = vmul.f32 0.01, %v7128_v7  ;;  %vm7164_vm6 = vcmp.gt.f32.partialorder %v7105_v6, 0.0  ;;  %vm7165_vm7 = vcmp.gt.f32.partialorder %v7128_v7, 0.0 }
 0x466   :  { %7998 = vmatpush.msra.mxu0 %v7286_v39  ;;  %8021 = vmatpush.msra.mxu1 %v7287_v40 }
 0x467   :  { %v7292_v29 = vsel %vm7164_vm6, %v7105_v6, %v7228_v18  ;;  %v7293_v30 = vsel %vm7165_vm7, %v7128_v7, %v7229_v19  ;;  %v7059_v41 = vpop.f32.mrf.mxu0  ;;  %v7082_v43 = vpop.f32.mrf.mxu1  ;;  %17348 = vmatmul.msk.f32.vlgmr.msra.gmra.mxu0 %vm96_vm1, %v19637_v54  ;;  %17351 = vmatmul.msk.f32.vlgmr.msra.gmra.mxu1 %vm96_vm1, %v19637_v54 }
 0x468   :  { %v7226_v5 = vmul.f32 0.01, %v7059_v41  ;;  %v7227_v13 = vmul.f32 0.01, %v7082_v43  ;;  %vm7162_vm12 = vcmp.gt.f32.partialorder %v7059_v41, 0.0  ;;  %vm7163_vm13 = vcmp.gt.f32.partialorder %v7082_v43, 0.0 }
 0x46a   :  { %v7290_v51 = vsel %vm7162_vm12, %v7059_v41, %v7226_v5  ;;  %v7291_v28 = vsel %vm7163_vm13, %v7082_v43, %v7227_v13 }
 0x46b   :  { %17355 = vmatmul.msk.f32.gmra.mxu2 %vm96_vm1, %v19650_v57  ;;  %17358 = vmatmul.msk.f32.gmra.mxu3 %vm96_vm1, %v19650_v57 }
 0x46c   :  { %v7108_v21 = vpop.f32.mrf.mxu2  ;;  %v7131_v22 = vpop.f32.mrf.mxu3 }
 0x46d   :  { %vm7196_vm4 = vcmp.gt.f32.partialorder %v7108_v21, 0.0  ;;  %v7260_v23 = vmul.f32 0.01, %v7108_v21  ;;  %vm7197_vm5 = vcmp.gt.f32.partialorder %v7131_v22, 0.0  ;;  %v7261_v24 = vmul.f32 0.01, %v7131_v22 }
 0x46f   :  { %v7324_v26 = vsel %vm7196_vm4, %v7108_v21, %v7260_v23  ;;  %v7325_v27 = vsel %vm7197_vm5, %v7131_v22, %v7261_v24  ;;  %v7062_v44 = vpop.f32.mrf.mxu0  ;;  %v7085_v8 = vpop.f32.mrf.mxu1  ;;  %17349 = vmatmul.msk.f32.gmra.mxu0 %vm96_vm1, %v19650_v57  ;;  %17352 = vmatmul.msk.f32.gmra.mxu1 %vm96_vm1, %v19650_v57 }
 0x470   :  { %17365 = vmatpush.msk.msrb.mxu2 %vm103_vm0, %v7324_v26  ;;  %17368 = vmatpush.msk.msrb.mxu3 %vm103_vm0, %v7325_v27  ;;  %vm7194_vm14 = vcmp.gt.f32.partialorder %v7062_v44, 0.0  ;;  %v7258_v45 = vmul.f32 0.01, %v7062_v44  ;;  %vm7195_vm15 = vcmp.gt.f32.partialorder %v7085_v8, 0.0  ;;  %v7259_v46 = vmul.f32 0.01, %v7085_v8 }
 0x472   :  { %8136 = vmatpush.msrb.mxu2 %v7292_v29  ;;  %8159 = vmatpush.msrb.mxu3 %v7293_v30  ;;  %v7322_v49 = vsel %vm7194_vm14, %v7062_v44, %v7258_v45  ;;  %v7323_v50 = vsel %vm7195_vm15, %v7085_v8, %v7259_v46 }
 0x473   :  { %17366 = vmatmul.msk.f32.vlgmr.msrb.gmra.mxu2 %vm96_vm1, %v19637_v54  ;;  %17369 = vmatmul.msk.f32.vlgmr.msrb.gmra.mxu3 %vm96_vm1, %v19637_v54 }
 0x474   :  { %17359 = vmatpush.msk.msrb.mxu0 %vm103_vm0, %v7322_v49  ;;  %17362 = vmatpush.msk.msrb.mxu1 %vm103_vm0, %v7323_v50 }
 0x476   :  { %8090 = vmatpush.msrb.mxu0 %v7290_v51  ;;  %8113 = vmatpush.msrb.mxu1 %v7291_v28 }
 0x477   :  { %17360 = vmatmul.msk.f32.vlgmr.msrb.gmra.mxu0 %vm96_vm1, %v19637_v54  ;;  %17363 = vmatmul.msk.f32.vlgmr.msrb.gmra.mxu1 %vm96_vm1, %v19637_v54  ;;  %v19807_v54 = vld [vmem:[%s21286_s1 + $0x80] sm:$0xff]  ;;  %v7448_v61 = vpop.f32.mrf.mxu0  ;;  %v7471_v17 = vpop.f32.mrf.mxu1 }
 0x478   :  { %v8231_v6 = vmul.f32 0.01, %v7448_v61  ;;  %v8232_v7 = vmul.f32 0.01, %v7471_v17  ;;  %vm8167_vm10 = vcmp.gt.f32.partialorder %v7448_v61, 0.0  ;;  %vm8168_vm11 = vcmp.gt.f32.partialorder %v7471_v17, 0.0 }
 0x47a   :  { %v8295_v23 = vsel %vm8167_vm10, %v7448_v61, %v8231_v6  ;;  %v8296_v24 = vsel %vm8168_vm11, %v7471_v17, %v8232_v7 }
 0x47b   :  { %17367 = vmatmul.msk.f32.gmra.mxu2 %vm96_vm1, %v19650_v57  ;;  %17370 = vmatmul.msk.f32.gmra.mxu3 %vm96_vm1, %v19650_v57 }
 0x47f   :  { %17361 = vmatmul.msk.f32.gmra.mxu0 %vm96_vm1, %v19650_v57  ;;  %17364 = vmatmul.msk.f32.gmra.mxu1 %vm96_vm1, %v19650_v57 }
 0x481   :  { %v7451_v11 = vpop.f32.mrf.mxu0  ;;  %v7474_v12 = vpop.f32.mrf.mxu1 }
 0x482   :  { %vm8199_vm12 = vcmp.gt.f32.partialorder %v7451_v11, 0.0  ;;  %v8263_v14 = vmul.f32 0.01, %v7451_v11  ;;  %vm8200_vm13 = vcmp.gt.f32.partialorder %v7474_v12, 0.0  ;;  %v8264_v16 = vmul.f32 0.01, %v7474_v12 }
 0x484   :  { %v8327_v21 = vsel %vm8199_vm12, %v7451_v11, %v8263_v14  ;;  %v8328_v22 = vsel %vm8200_vm13, %v7474_v12, %v8264_v16 }
 0x485   :  { %17373 = vmatpush.msk.msra.mxu0 %vm103_vm0, %v8327_v21  ;;  %17376 = vmatpush.msk.msra.mxu1 %vm103_vm0, %v8328_v22 }
 0x486   :  { %v7494_v48 = vpop.f32.mrf.mxu2  ;;  %v7517_v15 = vpop.f32.mrf.mxu3 }
 0x487   :  { %v8233_v52 = vmul.f32 0.01, %v7494_v48  ;;  %v8234_v53 = vmul.f32 0.01, %v7517_v15  ;;  %vm8169_vm4 = vcmp.gt.f32.partialorder %v7494_v48, 0.0  ;;  %vm8170_vm5 = vcmp.gt.f32.partialorder %v7517_v15, 0.0  ;;  %8479 = vmatpush.msra.mxu0 %v8295_v23  ;;  %8502 = vmatpush.msra.mxu1 %v8296_v24 }
 0x488   :  { %17374 = vmatmul.msk.f32.vlgmr.msra.gmra.mxu0 %vm96_vm1, %v19807_v54  ;;  %17377 = vmatmul.msk.f32.vlgmr.msra.gmra.mxu1 %vm96_vm1, %v19807_v54 }
 0x489   :  { %v8297_v58 = vsel %vm8169_vm4, %v7494_v48, %v8233_v52  ;;  %v8298_v59 = vsel %vm8170_vm5, %v7517_v15, %v8234_v53 }
 0x48e   :  { %v7497_v55 = vpop.f32.mrf.mxu2  ;;  %v7520_v37 = vpop.f32.mrf.mxu3 }
 0x48f   :  { %vm8201_vm2 = vcmp.gt.f32.partialorder %v7497_v55, 0.0  ;;  %v8265_v20 = vmul.f32 0.01, %v7497_v55  ;;  %vm8202_vm3 = vcmp.gt.f32.partialorder %v7520_v37, 0.0  ;;  %v8266_v56 = vmul.f32 0.01, %v7520_v37 }
 0x490   :  { %17375 = vmatmul.msk.f32.gmra.mxu0 %vm96_vm1, %v19820_v62  ;;  %17378 = vmatmul.msk.f32.gmra.mxu1 %vm96_vm1, %v19820_v62 }
 0x491   :  { %v8329_v25 = vsel %vm8201_vm2, %v7497_v55, %v8265_v20  ;;  %v8330_v42 = vsel %vm8202_vm3, %v7520_v37, %v8266_v56 }
 0x492   :  { %17379 = vmatpush.msk.msra.mxu2 %vm103_vm0, %v8329_v25  ;;  %17382 = vmatpush.msk.msra.mxu3 %vm103_vm0, %v8330_v42 }
 0x494   :  { %8525 = vmatpush.msra.mxu2 %v8297_v58  ;;  %8548 = vmatpush.msra.mxu3 %v8298_v59  ;;  %v7540_v29 = vpop.f32.mrf.mxu0  ;;  %v7563_v30 = vpop.f32.mrf.mxu1 }
 0x495   :  { %17380 = vmatmul.msk.f32.vlgmr.msra.gmra.mxu2 %vm96_vm1, %v19807_v54  ;;  %17383 = vmatmul.msk.f32.vlgmr.msra.gmra.mxu3 %vm96_vm1, %v19807_v54  ;;  %v8235_v4 = vmul.f32 0.01, %v7540_v29  ;;  %v8236_v38 = vmul.f32 0.01, %v7563_v30  ;;  %vm8171_vm4 = vcmp.gt.f32.partialorder %v7540_v29, 0.0  ;;  %vm8172_vm5 = vcmp.gt.f32.partialorder %v7563_v30, 0.0 }
 0x496   :  { %v7586_v60 = vpop.f32.mrf.mxu2  ;;  %v7609_v47 = vpop.f32.mrf.mxu3 }
 0x497   :  { %v8237_v63 = vmul.f32 0.01, %v7586_v60  ;;  %v8238_v0 = vmul.f32 0.01, %v7609_v47  ;;  %vm8173_vm8 = vcmp.gt.f32.partialorder %v7586_v60, 0.0  ;;  %vm8174_vm9 = vcmp.gt.f32.partialorder %v7609_v47, 0.0 }
 0x498   :  { %v8299_v48 = vsel %vm8171_vm4, %v7540_v29, %v8235_v4  ;;  %v8300_v15 = vsel %vm8172_vm5, %v7563_v30, %v8236_v38 }
 0x499   :  { %v8301_v18 = vsel %vm8173_vm8, %v7586_v60, %v8237_v63  ;;  %v8302_v19 = vsel %vm8174_vm9, %v7609_v47, %v8238_v0 }
 0x49c   :  { %v7543_v41 = vpop.f32.mrf.mxu0  ;;  %v7566_v43 = vpop.f32.mrf.mxu1 }
 0x49d   :  { %17381 = vmatmul.msk.f32.gmra.mxu2 %vm96_vm1, %v19820_v62  ;;  %17384 = vmatmul.msk.f32.gmra.mxu3 %vm96_vm1, %v19820_v62  ;;  %v8267_v5 = vmul.f32 0.01, %v7543_v41  ;;  %v8268_v13 = vmul.f32 0.01, %v7566_v43 }
 0x49e   :  { %v7589_v1 = vpop.f32.mrf.mxu2  ;;  %v7612_v2 = vpop.f32.mrf.mxu3 }
 0x49f   :  { %vm8205_vm6 = vcmp.gt.f32.partialorder %v7589_v1, 0.0  ;;  %v8269_v3 = vmul.f32 0.01, %v7589_v1  ;;  %vm8206_vm7 = vcmp.gt.f32.partialorder %v7612_v2, 0.0  ;;  %v8270_v57 = vmul.f32 0.01, %v7612_v2 }
 0x4a1   :  { %v8333_v9 = vsel %vm8205_vm6, %v7589_v1, %v8269_v3  ;;  %v8334_v10 = vsel %vm8206_vm7, %v7612_v2, %v8270_v57  ;;  %vm8203_vm6 = vcmp.gt.f32.partialorder %v7543_v41, 0.0  ;;  %vm8204_vm7 = vcmp.gt.f32.partialorder %v7566_v43, 0.0 }
 0x4a2   :  { %17391 = vmatpush.msk.msrb.mxu2 %vm103_vm0, %v8333_v9  ;;  %17394 = vmatpush.msk.msrb.mxu3 %vm103_vm0, %v8334_v10  ;;  %v8331_v45 = vsel %vm8203_vm6, %v7543_v41, %v8267_v5  ;;  %v8332_v46 = vsel %vm8204_vm7, %v7566_v43, %v8268_v13 }
 0x4a3   :  { %17385 = vmatpush.msk.msrb.mxu0 %vm103_vm0, %v8331_v45  ;;  %17388 = vmatpush.msk.msrb.mxu1 %vm103_vm0, %v8332_v46 }
 0x4a4   :  { %8617 = vmatpush.msrb.mxu2 %v8301_v18  ;;  %8640 = vmatpush.msrb.mxu3 %v8302_v19  ;;  %v7632_v51 = vpop.f32.mrf.mxu0  ;;  %v7655_v28 = vpop.f32.mrf.mxu1 }
 0x4a5   :  { %17392 = vmatmul.msk.f32.vlgmr.msrb.gmra.mxu2 %vm96_vm1, %v19807_v54  ;;  %17395 = vmatmul.msk.f32.vlgmr.msrb.gmra.mxu3 %vm96_vm1, %v19807_v54  ;;  %v8239_v25 = vmul.f32 0.01, %v7632_v51  ;;  %v8240_v42 = vmul.f32 0.01, %v7655_v28  ;;  %vm8175_vm12 = vcmp.gt.f32.partialorder %v7632_v51, 0.0  ;;  %vm8176_vm13 = vcmp.gt.f32.partialorder %v7655_v28, 0.0 }
 0x4a6   :  { %v7678_v26 = vpop.f32.mrf.mxu2  ;;  %v7701_v27 = vpop.f32.mrf.mxu3  ;;  %8571 = vmatpush.msrb.mxu0 %v8299_v48  ;;  %8594 = vmatpush.msrb.mxu1 %v8300_v15 }
 0x4a7   :  { %v8241_v31 = vmul.f32 0.01, %v7678_v26  ;;  %v8242_v32 = vmul.f32 0.01, %v7701_v27  ;;  %vm8177_vm2 = vcmp.gt.f32.partialorder %v7678_v26, 0.0  ;;  %vm8178_vm3 = vcmp.gt.f32.partialorder %v7701_v27, 0.0  ;;  %17386 = vmatmul.msk.f32.vlgmr.msrb.gmra.mxu0 %vm96_vm1, %v19807_v54  ;;  %17389 = vmatmul.msk.f32.vlgmr.msrb.gmra.mxu1 %vm96_vm1, %v19807_v54 }
 0x4a8   :  { %v8303_v3 = vsel %vm8175_vm12, %v7632_v51, %v8239_v25  ;;  %v8304_v57 = vsel %vm8176_vm13, %v7655_v28, %v8240_v42 }
 0x4a9   :  { %v8305_v44 = vsel %vm8177_vm2, %v7678_v26, %v8241_v31  ;;  %v8306_v8 = vsel %vm8178_vm3, %v7701_v27, %v8242_v32 }
 0x4ac   :  { %v7635_v60 = vpop.f32.mrf.mxu0  ;;  %v7658_v47 = vpop.f32.mrf.mxu1 }
 0x4ad   :  { %17393 = vmatmul.msk.f32.gmra.mxu2 %vm96_vm1, %v19820_v62  ;;  %17396 = vmatmul.msk.f32.gmra.mxu3 %vm96_vm1, %v19820_v62  ;;  %v8271_v61 = vmul.f32 0.01, %v7635_v60  ;;  %v8272_v17 = vmul.f32 0.01, %v7658_v47 }
 0x4ae   :  { %v7681_v33 = vpop.f32.mrf.mxu2  ;;  %v7704_v34 = vpop.f32.mrf.mxu3 }
 0x4af   :  { %vm8209_vm14 = vcmp.gt.f32.partialorder %v7681_v33, 0.0  ;;  %v8273_v35 = vmul.f32 0.01, %v7681_v33  ;;  %vm8210_vm15 = vcmp.gt.f32.partialorder %v7704_v34, 0.0  ;;  %v8274_v36 = vmul.f32 0.01, %v7704_v34  ;;  %17387 = vmatmul.msk.f32.gmra.mxu0 %vm96_vm1, %v19820_v62  ;;  %17390 = vmatmul.msk.f32.gmra.mxu1 %vm96_vm1, %v19820_v62 }
 0x4b1   :  { %v8337_v39 = vsel %vm8209_vm14, %v7681_v33, %v8273_v35  ;;  %v8338_v40 = vsel %vm8210_vm15, %v7704_v34, %v8274_v36  ;;  %vm8207_vm14 = vcmp.gt.f32.partialorder %v7635_v60, 0.0  ;;  %vm8208_vm15 = vcmp.gt.f32.partialorder %v7658_v47, 0.0 }
 0x4b2   :  { %17403 = vmatpush.msk.msra.mxu2 %vm103_vm0, %v8337_v39  ;;  %17406 = vmatpush.msk.msra.mxu3 %vm103_vm0, %v8338_v40  ;;  %v8335_v1 = vsel %vm8207_vm14, %v7635_v60, %v8271_v61  ;;  %v8336_v2 = vsel %vm8208_vm15, %v7658_v47, %v8272_v17 }
 0x4b3   :  { %17397 = vmatpush.msk.msra.mxu0 %vm103_vm0, %v8335_v1  ;;  %17400 = vmatpush.msk.msra.mxu1 %vm103_vm0, %v8336_v2 }
 0x4b4   :  { %8709 = vmatpush.msra.mxu2 %v8305_v44  ;;  %8732 = vmatpush.msra.mxu3 %v8306_v8  ;;  %v7724_v9 = vpop.f32.mrf.mxu0  ;;  %v7747_v10 = vpop.f32.mrf.mxu1 }
 0x4b5   :  { %17404 = vmatmul.msk.f32.vlgmr.msra.gmra.mxu2 %vm96_vm1, %v19807_v54  ;;  %17407 = vmatmul.msk.f32.vlgmr.msra.gmra.mxu3 %vm96_vm1, %v19807_v54  ;;  %v8243_v21 = vmul.f32 0.01, %v7724_v9  ;;  %v8244_v22 = vmul.f32 0.01, %v7747_v10  ;;  %vm8179_vm6 = vcmp.gt.f32.partialorder %v7724_v9, 0.0  ;;  %vm8180_vm7 = vcmp.gt.f32.partialorder %v7747_v10, 0.0 }
 0x4b6   :  { %v7770_v49 = vpop.f32.mrf.mxu2  ;;  %v7793_v50 = vpop.f32.mrf.mxu3  ;;  %8663 = vmatpush.msra.mxu0 %v8303_v3  ;;  %8686 = vmatpush.msra.mxu1 %v8304_v57 }
 0x4b7   :  { %v8245_v52 = vmul.f32 0.01, %v7770_v49  ;;  %v8246_v53 = vmul.f32 0.01, %v7793_v50  ;;  %vm8181_vm10 = vcmp.gt.f32.partialorder %v7770_v49, 0.0  ;;  %vm8182_vm11 = vcmp.gt.f32.partialorder %v7793_v50, 0.0  ;;  %17398 = vmatmul.msk.f32.vlgmr.msra.gmra.mxu0 %vm96_vm1, %v19807_v54  ;;  %17401 = vmatmul.msk.f32.vlgmr.msra.gmra.mxu1 %vm96_vm1, %v19807_v54 }
 0x4b8   :  { %v8307_v35 = vsel %vm8179_vm6, %v7724_v9, %v8243_v21  ;;  %v8308_v36 = vsel %vm8180_vm7, %v7747_v10, %v8244_v22 }
 0x4b9   :  { %v8309_v63 = vsel %vm8181_vm10, %v7770_v49, %v8245_v52  ;;  %v8310_v0 = vsel %vm8182_vm11, %v7793_v50, %v8246_v53 }
 0x4bc   :  { %v7727_v26 = vpop.f32.mrf.mxu0  ;;  %v7750_v27 = vpop.f32.mrf.mxu1 }
 0x4bd   :  { %17405 = vmatmul.msk.f32.gmra.mxu2 %vm96_vm1, %v19820_v62  ;;  %17408 = vmatmul.msk.f32.gmra.mxu3 %vm96_vm1, %v19820_v62  ;;  %v8275_v29 = vmul.f32 0.01, %v7727_v26  ;;  %v8276_v30 = vmul.f32 0.01, %v7750_v27 }
 0x4be   :  { %v7773_v55 = vpop.f32.mrf.mxu2  ;;  %v7796_v37 = vpop.f32.mrf.mxu3 }
 0x4bf   :  { %vm8213_vm8 = vcmp.gt.f32.partialorder %v7773_v55, 0.0  ;;  %v8277_v20 = vmul.f32 0.01, %v7773_v55  ;;  %vm8214_vm9 = vcmp.gt.f32.partialorder %v7796_v37, 0.0  ;;  %v8278_v56 = vmul.f32 0.01, %v7796_v37  ;;  %17399 = vmatmul.msk.f32.gmra.mxu0 %vm96_vm1, %v19820_v62  ;;  %17402 = vmatmul.msk.f32.gmra.mxu1 %vm96_vm1, %v19820_v62 }
 0x4c1   :  { %v8341_v58 = vsel %vm8213_vm8, %v7773_v55, %v8277_v20  ;;  %v8342_v59 = vsel %vm8214_vm9, %v7796_v37, %v8278_v56  ;;  %vm8211_vm8 = vcmp.gt.f32.partialorder %v7727_v26, 0.0  ;;  %vm8212_vm9 = vcmp.gt.f32.partialorder %v7750_v27, 0.0 }
 0x4c2   :  { %17415 = vmatpush.msk.msrb.mxu2 %vm103_vm0, %v8341_v58  ;;  %17418 = vmatpush.msk.msrb.mxu3 %vm103_vm0, %v8342_v59  ;;  %v8339_v33 = vsel %vm8211_vm8, %v7727_v26, %v8275_v29  ;;  %v8340_v34 = vsel %vm8212_vm9, %v7750_v27, %v8276_v30 }
 0x4c3   :  { %17409 = vmatpush.msk.msrb.mxu0 %vm103_vm0, %v8339_v33  ;;  %17412 = vmatpush.msk.msrb.mxu1 %vm103_vm0, %v8340_v34 }
 0x4c4   :  { %8801 = vmatpush.msrb.mxu2 %v8309_v63  ;;  %8824 = vmatpush.msrb.mxu3 %v8310_v0  ;;  %v7816_v39 = vpop.f32.mrf.mxu0  ;;  %v7839_v40 = vpop.f32.mrf.mxu1 }
 0x4c5   :  { %17416 = vmatmul.msk.f32.vlgmr.msrb.gmra.mxu2 %vm96_vm1, %v19807_v54  ;;  %17419 = vmatmul.msk.f32.vlgmr.msrb.gmra.mxu3 %vm96_vm1, %v19807_v54  ;;  %v8247_v45 = vmul.f32 0.01, %v7816_v39  ;;  %v8248_v46 = vmul.f32 0.01, %v7839_v40  ;;  %vm8183_vm14 = vcmp.gt.f32.partialorder %v7816_v39, 0.0  ;;  %vm8184_vm15 = vcmp.gt.f32.partialorder %v7839_v40, 0.0 }
 0x4c6   :  { %v7862_v6 = vpop.f32.mrf.mxu2  ;;  %v7885_v7 = vpop.f32.mrf.mxu3  ;;  %8755 = vmatpush.msrb.mxu0 %v8307_v35  ;;  %8778 = vmatpush.msrb.mxu1 %v8308_v36 }
 0x4c7   :  { %v8249_v11 = vmul.f32 0.01, %v7862_v6  ;;  %v8250_v12 = vmul.f32 0.01, %v7885_v7  ;;  %vm8185_vm4 = vcmp.gt.f32.partialorder %v7862_v6, 0.0  ;;  %vm8186_vm5 = vcmp.gt.f32.partialorder %v7885_v7, 0.0  ;;  %17410 = vmatmul.msk.f32.vlgmr.msrb.gmra.mxu0 %vm96_vm1, %v19807_v54  ;;  %17413 = vmatmul.msk.f32.vlgmr.msrb.gmra.mxu1 %vm96_vm1, %v19807_v54 }
 0x4c8   :  { %v8311_v20 = vsel %vm8183_vm14, %v7816_v39, %v8247_v45  ;;  %v8312_v56 = vsel %vm8184_vm15, %v7839_v40, %v8248_v46 }
 0x4c9   :  { %v8313_v31 = vsel %vm8185_vm4, %v7862_v6, %v8249_v11  ;;  %v8314_v32 = vsel %vm8186_vm5, %v7885_v7, %v8250_v12 }
 0x4cc   :  { %v7819_v49 = vpop.f32.mrf.mxu0  ;;  %v7842_v50 = vpop.f32.mrf.mxu1 }
 0x4cd   :  { %17417 = vmatmul.msk.f32.gmra.mxu2 %vm96_vm1, %v19820_v62  ;;  %17420 = vmatmul.msk.f32.gmra.mxu3 %vm96_vm1, %v19820_v62  ;;  %v8279_v51 = vmul.f32 0.01, %v7819_v49  ;;  %v8280_v28 = vmul.f32 0.01, %v7842_v50 }
 0x4ce   :  { %v7865_v14 = vpop.f32.mrf.mxu2  ;;  %v7888_v16 = vpop.f32.mrf.mxu3 }
 0x4cf   :  { %vm8217_vm2 = vcmp.gt.f32.partialorder %v7865_v14, 0.0  ;;  %v8281_v18 = vmul.f32 0.01, %v7865_v14  ;;  %vm8218_vm3 = vcmp.gt.f32.partialorder %v7888_v16, 0.0  ;;  %v8282_v19 = vmul.f32 0.01, %v7888_v16  ;;  %17411 = vmatmul.msk.f32.gmra.mxu0 %vm96_vm1, %v19820_v62  ;;  %17414 = vmatmul.msk.f32.gmra.mxu1 %vm96_vm1, %v19820_v62 }
 0x4d1   :  { %v8345_v23 = vsel %vm8217_vm2, %v7865_v14, %v8281_v18  ;;  %v8346_v24 = vsel %vm8218_vm3, %v7888_v16, %v8282_v19  ;;  %vm8215_vm2 = vcmp.gt.f32.partialorder %v7819_v49, 0.0  ;;  %vm8216_vm3 = vcmp.gt.f32.partialorder %v7842_v50, 0.0 }
 0x4d2   :  { %17427 = vmatpush.msk.msra.mxu2 %vm103_vm0, %v8345_v23  ;;  %17430 = vmatpush.msk.msra.mxu3 %vm103_vm0, %v8346_v24  ;;  %v8343_v55 = vsel %vm8215_vm2, %v7819_v49, %v8279_v51  ;;  %v8344_v37 = vsel %vm8216_vm3, %v7842_v50, %v8280_v28 }
 0x4d3   :  { %17421 = vmatpush.msk.msra.mxu0 %vm103_vm0, %v8343_v55  ;;  %17424 = vmatpush.msk.msra.mxu1 %vm103_vm0, %v8344_v37 }
 0x4d4   :  { %8893 = vmatpush.msra.mxu2 %v8313_v31  ;;  %8916 = vmatpush.msra.mxu3 %v8314_v32  ;;  %v7908_v58 = vpop.f32.mrf.mxu0  ;;  %v7931_v59 = vpop.f32.mrf.mxu1 }
 0x4d5   :  { %17428 = vmatmul.msk.f32.vlgmr.msra.gmra.mxu2 %vm96_vm1, %v19807_v54  ;;  %17431 = vmatmul.msk.f32.vlgmr.msra.gmra.mxu3 %vm96_vm1, %v19807_v54  ;;  %v8251_v1 = vmul.f32 0.01, %v7908_v58  ;;  %v8252_v2 = vmul.f32 0.01, %v7931_v59  ;;  %vm8187_vm8 = vcmp.gt.f32.partialorder %v7908_v58, 0.0  ;;  %vm8188_vm9 = vcmp.gt.f32.partialorder %v7931_v59, 0.0 }
 0x4d6   :  { %v7954_v4 = vpop.f32.mrf.mxu2  ;;  %v7977_v38 = vpop.f32.mrf.mxu3  ;;  %8847 = vmatpush.msra.mxu0 %v8311_v20  ;;  %8870 = vmatpush.msra.mxu1 %v8312_v56 }
 0x4d7   :  { %v8253_v41 = vmul.f32 0.01, %v7954_v4  ;;  %v8254_v43 = vmul.f32 0.01, %v7977_v38  ;;  %vm8189_vm12 = vcmp.gt.f32.partialorder %v7954_v4, 0.0  ;;  %vm8190_vm13 = vcmp.gt.f32.partialorder %v7977_v38, 0.0  ;;  %17422 = vmatmul.msk.f32.vlgmr.msra.gmra.mxu0 %vm96_vm1, %v19807_v54  ;;  %17425 = vmatmul.msk.f32.vlgmr.msra.gmra.mxu1 %vm96_vm1, %v19807_v54 }
 0x4d8   :  { %v8315_v18 = vsel %vm8187_vm8, %v7908_v58, %v8251_v1  ;;  %v8316_v19 = vsel %vm8188_vm9, %v7931_v59, %v8252_v2 }
 0x4d9   :  { %v8317_v52 = vsel %vm8189_vm12, %v7954_v4, %v8253_v41  ;;  %v8318_v53 = vsel %vm8190_vm13, %v7977_v38, %v8254_v43 }
 0x4dc   :  { %v7911_v6 = vpop.f32.mrf.mxu0  ;;  %v7934_v7 = vpop.f32.mrf.mxu1 }
 0x4dd   :  { %17429 = vmatmul.msk.f32.gmra.mxu2 %vm96_vm1, %v19820_v62  ;;  %17432 = vmatmul.msk.f32.gmra.mxu3 %vm96_vm1, %v19820_v62  ;;  %v8283_v9 = vmul.f32 0.01, %v7911_v6  ;;  %v8284_v10 = vmul.f32 0.01, %v7934_v7 }
 0x4de   :  { %v7957_v5 = vpop.f32.mrf.mxu2  ;;  %v7980_v13 = vpop.f32.mrf.mxu3 }
 0x4df   :  { %vm8221_vm10 = vcmp.gt.f32.partialorder %v7957_v5, 0.0  ;;  %v8285_v44 = vmul.f32 0.01, %v7957_v5  ;;  %vm8222_vm11 = vcmp.gt.f32.partialorder %v7980_v13, 0.0  ;;  %v8286_v8 = vmul.f32 0.01, %v7980_v13  ;;  %17423 = vmatmul.msk.f32.gmra.mxu0 %vm96_vm1, %v19820_v62  ;;  %17426 = vmatmul.msk.f32.gmra.mxu1 %vm96_vm1, %v19820_v62 }
 0x4e1   :  { %v8349_v48 = vsel %vm8221_vm10, %v7957_v5, %v8285_v44  ;;  %v8350_v15 = vsel %vm8222_vm11, %v7980_v13, %v8286_v8  ;;  %vm8219_vm10 = vcmp.gt.f32.partialorder %v7911_v6, 0.0  ;;  %vm8220_vm11 = vcmp.gt.f32.partialorder %v7934_v7, 0.0 }
 0x4e2   :  { %17439 = vmatpush.msk.msrb.mxu2 %vm103_vm0, %v8349_v48  ;;  %17442 = vmatpush.msk.msrb.mxu3 %vm103_vm0, %v8350_v15  ;;  %v8347_v14 = vsel %vm8219_vm10, %v7911_v6, %v8283_v9  ;;  %v8348_v16 = vsel %vm8220_vm11, %v7934_v7, %v8284_v10 }
 0x4e3   :  { %17433 = vmatpush.msk.msrb.mxu0 %vm103_vm0, %v8347_v14  ;;  %17436 = vmatpush.msk.msrb.mxu1 %vm103_vm0, %v8348_v16 }
 0x4e4   :  { %8985 = vmatpush.msrb.mxu2 %v8317_v52  ;;  %9008 = vmatpush.msrb.mxu3 %v8318_v53  ;;  %v8000_v23 = vpop.f32.mrf.mxu0  ;;  %v8023_v24 = vpop.f32.mrf.mxu1 }
 0x4e5   :  { %17440 = vmatmul.msk.f32.vlgmr.msrb.gmra.mxu2 %vm96_vm1, %v19807_v54  ;;  %17443 = vmatmul.msk.f32.vlgmr.msrb.gmra.mxu3 %vm96_vm1, %v19807_v54  ;;  %v8255_v33 = vmul.f32 0.01, %v8000_v23  ;;  %v8256_v34 = vmul.f32 0.01, %v8023_v24  ;;  %vm8191_vm2 = vcmp.gt.f32.partialorder %v8000_v23, 0.0  ;;  %vm8192_vm3 = vcmp.gt.f32.partialorder %v8023_v24, 0.0 }
 0x4e6   :  { %v8046_v25 = vpop.f32.mrf.mxu2  ;;  %v8069_v42 = vpop.f32.mrf.mxu3  ;;  %8939 = vmatpush.msrb.mxu0 %v8315_v18  ;;  %8962 = vmatpush.msrb.mxu1 %v8316_v19 }
 0x4e7   :  { %v8257_v60 = vmul.f32 0.01, %v8046_v25  ;;  %v8258_v47 = vmul.f32 0.01, %v8069_v42  ;;  %vm8193_vm6 = vcmp.gt.f32.partialorder %v8046_v25, 0.0  ;;  %vm8194_vm7 = vcmp.gt.f32.partialorder %v8069_v42, 0.0  ;;  %17434 = vmatmul.msk.f32.vlgmr.msrb.gmra.mxu0 %vm96_vm1, %v19807_v54  ;;  %17437 = vmatmul.msk.f32.vlgmr.msrb.gmra.mxu1 %vm96_vm1, %v19807_v54 }
 0x4e8   :  { %v8319_v44 = vsel %vm8191_vm2, %v8000_v23, %v8255_v33  ;;  %v8320_v8 = vsel %vm8192_vm3, %v8023_v24, %v8256_v34 }
 0x4e9   :  { %v8321_v11 = vsel %vm8193_vm6, %v8046_v25, %v8257_v60  ;;  %v8322_v12 = vsel %vm8194_vm7, %v8069_v42, %v8258_v47 }
 0x4ec   :  { %v8003_v4 = vpop.f32.mrf.mxu0  ;;  %v8026_v38 = vpop.f32.mrf.mxu1 }
 0x4ed   :  { %17441 = vmatmul.msk.f32.gmra.mxu2 %vm96_vm1, %v19820_v62  ;;  %17444 = vmatmul.msk.f32.gmra.mxu3 %vm96_vm1, %v19820_v62  ;;  %v8287_v39 = vmul.f32 0.01, %v8003_v4  ;;  %v8288_v40 = vmul.f32 0.01, %v8026_v38 }
 0x4ee   :  { %v8049_v61 = vpop.f32.mrf.mxu2  ;;  %v8072_v17 = vpop.f32.mrf.mxu3 }
 0x4ef   :  { %vm8225_vm4 = vcmp.gt.f32.partialorder %v8049_v61, 0.0  ;;  %v8289_v63 = vmul.f32 0.01, %v8049_v61  ;;  %vm8226_vm5 = vcmp.gt.f32.partialorder %v8072_v17, 0.0  ;;  %v8290_v0 = vmul.f32 0.01, %v8072_v17  ;;  %17435 = vmatmul.msk.f32.gmra.mxu0 %vm96_vm1, %v19820_v62  ;;  %17438 = vmatmul.msk.f32.gmra.mxu1 %vm96_vm1, %v19820_v62 }
 0x4f1   :  { %v8353_v3 = vsel %vm8225_vm4, %v8049_v61, %v8289_v63  ;;  %v8354_v57 = vsel %vm8226_vm5, %v8072_v17, %v8290_v0  ;;  %vm8223_vm4 = vcmp.gt.f32.partialorder %v8003_v4, 0.0  ;;  %vm8224_vm5 = vcmp.gt.f32.partialorder %v8026_v38, 0.0 }
 0x4f2   :  { %17451 = vmatpush.msk.msra.mxu2 %vm103_vm0, %v8353_v3  ;;  %17454 = vmatpush.msk.msra.mxu3 %vm103_vm0, %v8354_v57  ;;  %v8351_v5 = vsel %vm8223_vm4, %v8003_v4, %v8287_v39  ;;  %v8352_v13 = vsel %vm8224_vm5, %v8026_v38, %v8288_v40  ;;  %v20018_v57 = vld [vmem:[%s21286_s1 + $0x98] sm:$0x1f] }
 0x4f3   :  { %17445 = vmatpush.msk.msra.mxu0 %vm103_vm0, %v8351_v5  ;;  %17448 = vmatpush.msk.msra.mxu1 %vm103_vm0, %v8352_v13 }
 0x4f4   :  { %9077 = vmatpush.msra.mxu2 %v8321_v11  ;;  %9100 = vmatpush.msra.mxu3 %v8322_v12  ;;  %v8092_v45 = vpop.f32.mrf.mxu0  ;;  %v8115_v46 = vpop.f32.mrf.mxu1 }
 0x4f5   :  { %17452 = vmatmul.msk.f32.vlgmr.msra.gmra.mxu2 %vm96_vm1, %v19807_v54  ;;  %17455 = vmatmul.msk.f32.vlgmr.msra.gmra.mxu3 %vm96_vm1, %v19807_v54  ;;  %v8259_v48 = vmul.f32 0.01, %v8092_v45  ;;  %v8260_v15 = vmul.f32 0.01, %v8115_v46  ;;  %vm8195_vm6 = vcmp.gt.f32.partialorder %v8092_v45, 0.0  ;;  %vm8196_vm7 = vcmp.gt.f32.partialorder %v8115_v46, 0.0 }
 0x4f6   :  { %v8138_v21 = vpop.f32.mrf.mxu2  ;;  %v8161_v22 = vpop.f32.mrf.mxu3  ;;  %9031 = vmatpush.msra.mxu0 %v8319_v44  ;;  %9054 = vmatpush.msra.mxu1 %v8320_v8 }
 0x4f7   :  { %v8261_v26 = vmul.f32 0.01, %v8138_v21  ;;  %v8262_v27 = vmul.f32 0.01, %v8161_v22  ;;  %vm8197_vm14 = vcmp.gt.f32.partialorder %v8138_v21, 0.0  ;;  %vm8198_vm15 = vcmp.gt.f32.partialorder %v8161_v22, 0.0  ;;  %17446 = vmatmul.msk.f32.vlgmr.msra.gmra.mxu0 %vm96_vm1, %v19807_v54  ;;  %17449 = vmatmul.msk.f32.vlgmr.msra.gmra.mxu1 %vm96_vm1, %v19807_v54 }
 0x4f8   :  { %v8323_v55 = vsel %vm8195_vm6, %v8092_v45, %v8259_v48  ;;  %v8324_v37 = vsel %vm8196_vm7, %v8115_v46, %v8260_v15 }
 0x4f9   :  { %v8325_v41 = vsel %vm8197_vm14, %v8138_v21, %v8261_v26  ;;  %v8326_v43 = vsel %vm8198_vm15, %v8161_v22, %v8262_v27 }
 0x4fc   :  { %v8095_v49 = vpop.f32.mrf.mxu0  ;;  %v8118_v50 = vpop.f32.mrf.mxu1 }
 0x4fd   :  { %17453 = vmatmul.msk.f32.gmra.mxu2 %vm96_vm1, %v19820_v62  ;;  %17456 = vmatmul.msk.f32.gmra.mxu3 %vm96_vm1, %v19820_v62  ;;  %vm8227_vm8 = vcmp.gt.f32.partialorder %v8095_v49, 0.0  ;;  %v8291_v51 = vmul.f32 0.01, %v8095_v49  ;;  %vm8228_vm9 = vcmp.gt.f32.partialorder %v8118_v50, 0.0  ;;  %v8292_v28 = vmul.f32 0.01, %v8118_v50 }
 0x4fe   :  { %v8141_v29 = vpop.f32.mrf.mxu2  ;;  %v8164_v30 = vpop.f32.mrf.mxu3 }
 0x4ff   :  { %vm8229_vm12 = vcmp.gt.f32.partialorder %v8141_v29, 0.0  ;;  %v8293_v31 = vmul.f32 0.01, %v8141_v29  ;;  %vm8230_vm13 = vcmp.gt.f32.partialorder %v8164_v30, 0.0  ;;  %v8294_v32 = vmul.f32 0.01, %v8164_v30  ;;  %17447 = vmatmul.msk.f32.gmra.mxu0 %vm96_vm1, %v19820_v62  ;;  %17450 = vmatmul.msk.f32.gmra.mxu1 %vm96_vm1, %v19820_v62 }
 0x500   :  { %v8355_v52 = vsel %vm8227_vm8, %v8095_v49, %v8291_v51  ;;  %v8356_v53 = vsel %vm8228_vm9, %v8118_v50, %v8292_v28 }
 0x501   :  { %v8357_v35 = vsel %vm8229_vm12, %v8141_v29, %v8293_v31  ;;  %v8358_v36 = vsel %vm8230_vm13, %v8164_v30, %v8294_v32  ;;  %17457 = vmatpush.msk.msrb.mxu0 %vm103_vm0, %v8355_v52  ;;  %17460 = vmatpush.msk.msrb.mxu1 %vm103_vm0, %v8356_v53 }
 0x502   :  { %17463 = vmatpush.msk.msrb.mxu2 %vm103_vm0, %v8357_v35  ;;  %17466 = vmatpush.msk.msrb.mxu3 %vm103_vm0, %v8358_v36 }
 0x503   :  { %9123 = vmatpush.msrb.mxu0 %v8323_v55  ;;  %9146 = vmatpush.msrb.mxu1 %v8324_v37 }
 0x504   :  { %9169 = vmatpush.msrb.mxu2 %v8325_v41  ;;  %9192 = vmatpush.msrb.mxu3 %v8326_v43 }
 0x505   :  { %17464 = vmatmul.msk.f32.vlgmr.msrb.gmra.mxu2 %vm96_vm1, %v19807_v54  ;;  %17467 = vmatmul.msk.f32.vlgmr.msrb.gmra.mxu3 %vm96_vm1, %v19807_v54  ;;  %v8481_v1 = vpop.f32.mrf.mxu0  ;;  %v8504_v2 = vpop.f32.mrf.mxu1 }
 0x506   :  { %v9264_v6 = vmul.f32 0.01, %v8481_v1  ;;  %v9265_v7 = vmul.f32 0.01, %v8504_v2  ;;  %vm9200_vm14 = vcmp.gt.f32.partialorder %v8481_v1, 0.0  ;;  %vm9201_vm15 = vcmp.gt.f32.partialorder %v8504_v2, 0.0 }
 0x507   :  { %17458 = vmatmul.msk.f32.vlgmr.msrb.gmra.mxu0 %vm96_vm1, %v19807_v54  ;;  %17461 = vmatmul.msk.f32.vlgmr.msrb.gmra.mxu1 %vm96_vm1, %v19807_v54  ;;  %v20009_v54 = vld [vmem:[%s21286_s1 + $0x90] sm:$0xff] }
 0x508   :  { %v9328_v26 = vsel %vm9200_vm14, %v8481_v1, %v9264_v6  ;;  %v9329_v27 = vsel %vm9201_vm15, %v8504_v2, %v9265_v7 }
 0x50d   :  { %17465 = vmatmul.msk.f32.gmra.mxu2 %vm96_vm1, %v19820_v62  ;;  %17468 = vmatmul.msk.f32.gmra.mxu3 %vm96_vm1, %v19820_v62  ;;  %v8484_v9 = vpop.f32.mrf.mxu0  ;;  %v8507_v10 = vpop.f32.mrf.mxu1 }
 0x50e   :  { %vm9232_vm2 = vcmp.gt.f32.partialorder %v8484_v9, 0.0  ;;  %v9296_v11 = vmul.f32 0.01, %v8484_v9  ;;  %vm9233_vm3 = vcmp.gt.f32.partialorder %v8507_v10, 0.0  ;;  %v9297_v12 = vmul.f32 0.01, %v8507_v10 }
 0x50f   :  { %17459 = vmatmul.msk.f32.gmra.mxu0 %vm96_vm1, %v19820_v62  ;;  %17462 = vmatmul.msk.f32.gmra.mxu1 %vm96_vm1, %v19820_v62 }
 0x510   :  { %v9360_v23 = vsel %vm9232_vm2, %v8484_v9, %v9296_v11  ;;  %v9361_v24 = vsel %vm9233_vm3, %v8507_v10, %v9297_v12 }
 0x511   :  { %17471 = vmatpush.msk.msra.mxu0 %vm103_vm0, %v9360_v23  ;;  %17474 = vmatpush.msk.msra.mxu1 %vm103_vm0, %v9361_v24 }
 0x513   :  { %9512 = vmatpush.msra.mxu0 %v9328_v26  ;;  %9535 = vmatpush.msra.mxu1 %v9329_v27 }
 0x517   :  { %17472 = vmatmul.msk.f32.vlgmr.msra.gmra.mxu0 %vm96_vm1, %v20009_v54  ;;  %17475 = vmatmul.msk.f32.vlgmr.msra.gmra.mxu1 %vm96_vm1, %v20009_v54 }
 0x518   :  { %v8527_v20 = vpop.f32.mrf.mxu2  ;;  %v8550_v56 = vpop.f32.mrf.mxu3 }
 0x519   :  { %v9266_v25 = vmul.f32 0.01, %v8527_v20  ;;  %v9267_v42 = vmul.f32 0.01, %v8550_v56  ;;  %vm9202_vm12 = vcmp.gt.f32.partialorder %v8527_v20, 0.0  ;;  %vm9203_vm13 = vcmp.gt.f32.partialorder %v8550_v56, 0.0 }
 0x51b   :  { %v9330_v63 = vsel %vm9202_vm12, %v8527_v20, %v9266_v25  ;;  %v9331_v0 = vsel %vm9203_vm13, %v8550_v56, %v9267_v42 }
 0x51f   :  { %17473 = vmatmul.msk.f32.gmra.mxu0 %vm96_vm1, %v20018_v57  ;;  %17476 = vmatmul.msk.f32.gmra.mxu1 %vm96_vm1, %v20018_v57 }
 0x520   :  { %v8530_v58 = vpop.f32.mrf.mxu2  ;;  %v8553_v59 = vpop.f32.mrf.mxu3 }
 0x521   :  { %vm9234_vm10 = vcmp.gt.f32.partialorder %v8530_v58, 0.0  ;;  %v9298_v60 = vmul.f32 0.01, %v8530_v58  ;;  %vm9235_vm11 = vcmp.gt.f32.partialorder %v8553_v59, 0.0  ;;  %v9299_v47 = vmul.f32 0.01, %v8553_v59 }
 0x523   :  { %v9362_v61 = vsel %vm9234_vm10, %v8530_v58, %v9298_v60  ;;  %v9363_v17 = vsel %vm9235_vm11, %v8553_v59, %v9299_v47 }
 0x524   :  { %17477 = vmatpush.msk.msra.mxu2 %vm103_vm0, %v9362_v61  ;;  %17480 = vmatpush.msk.msra.mxu3 %vm103_vm0, %v9363_v17  ;;  %v8573_v33 = vpop.f32.mrf.mxu0  ;;  %v8596_v34 = vpop.f32.mrf.mxu1 }
 0x525   :  { %v9268_v4 = vmul.f32 0.01, %v8573_v33  ;;  %v9269_v38 = vmul.f32 0.01, %v8596_v34  ;;  %vm9204_vm8 = vcmp.gt.f32.partialorder %v8573_v33, 0.0  ;;  %vm9205_vm9 = vcmp.gt.f32.partialorder %v8596_v34, 0.0 }
 0x526   :  { %9558 = vmatpush.msra.mxu2 %v9330_v63  ;;  %9581 = vmatpush.msra.mxu3 %v9331_v0 }
 0x527   :  { %17478 = vmatmul.msk.f32.vlgmr.msra.gmra.mxu2 %vm96_vm1, %v20009_v54  ;;  %17481 = vmatmul.msk.f32.vlgmr.msra.gmra.mxu3 %vm96_vm1, %v20009_v54  ;;  %v9332_v49 = vsel %vm9204_vm8, %v8573_v33, %v9268_v4  ;;  %v9333_v50 = vsel %vm9205_vm9, %v8596_v34, %v9269_v38 }
 0x528   :  { %v8619_v62 = vpop.f32.mrf.mxu2  ;;  %v8642_v3 = vpop.f32.mrf.mxu3 }
 0x529   :  { %v9270_v14 = vmul.f32 0.01, %v8619_v62  ;;  %v9271_v16 = vmul.f32 0.01, %v8642_v3  ;;  %vm9206_vm4 = vcmp.gt.f32.partialorder %v8619_v62, 0.0  ;;  %vm9207_vm5 = vcmp.gt.f32.partialorder %v8642_v3, 0.0 }
 0x52b   :  { %v9334_v31 = vsel %vm9206_vm4, %v8619_v62, %v9270_v14  ;;  %v9335_v32 = vsel %vm9207_vm5, %v8642_v3, %v9271_v16 }
 0x52c   :  { %v8576_v39 = vpop.f32.mrf.mxu0  ;;  %v8599_v40 = vpop.f32.mrf.mxu1 }
 0x52d   :  { %vm9236_vm10 = vcmp.gt.f32.partialorder %v8576_v39, 0.0  ;;  %v9300_v41 = vmul.f32 0.01, %v8576_v39  ;;  %vm9237_vm11 = vcmp.gt.f32.partialorder %v8599_v40, 0.0  ;;  %v9301_v43 = vmul.f32 0.01, %v8599_v40 }
 0x52f   :  { %17479 = vmatmul.msk.f32.gmra.mxu2 %vm96_vm1, %v20018_v57  ;;  %17482 = vmatmul.msk.f32.gmra.mxu3 %vm96_vm1, %v20018_v57  ;;  %v9364_v48 = vsel %vm9236_vm10, %v8576_v39, %v9300_v41  ;;  %v9365_v15 = vsel %vm9237_vm11, %v8599_v40, %v9301_v43 }
 0x530   :  { %v8622_v18 = vpop.f32.mrf.mxu2  ;;  %v8645_v19 = vpop.f32.mrf.mxu3  ;;  %17483 = vmatpush.msk.msrb.mxu0 %vm103_vm0, %v9364_v48  ;;  %17486 = vmatpush.msk.msrb.mxu1 %vm103_vm0, %v9365_v15 }
 0x531   :  { %vm9238_vm6 = vcmp.gt.f32.partialorder %v8622_v18, 0.0  ;;  %v9302_v21 = vmul.f32 0.01, %v8622_v18  ;;  %vm9239_vm7 = vcmp.gt.f32.partialorder %v8645_v19, 0.0  ;;  %v9303_v22 = vmul.f32 0.01, %v8645_v19 }
 0x532   :  { %9604 = vmatpush.msrb.mxu0 %v9332_v49  ;;  %9627 = vmatpush.msrb.mxu1 %v9333_v50 }
 0x533   :  { %v9366_v29 = vsel %vm9238_vm6, %v8622_v18, %v9302_v21  ;;  %v9367_v30 = vsel %vm9239_vm7, %v8645_v19, %v9303_v22  ;;  %17484 = vmatmul.msk.f32.vlgmr.msrb.gmra.mxu0 %vm96_vm1, %v20009_v54  ;;  %17487 = vmatmul.msk.f32.vlgmr.msrb.gmra.mxu1 %vm96_vm1, %v20009_v54 }
 0x534   :  { %17489 = vmatpush.msk.msrb.mxu2 %vm103_vm0, %v9366_v29  ;;  %17492 = vmatpush.msk.msrb.mxu3 %vm103_vm0, %v9367_v30  ;;  %v8665_v55 = vpop.f32.mrf.mxu0  ;;  %v8688_v37 = vpop.f32.mrf.mxu1 }
 0x535   :  { %v9272_v25 = vmul.f32 0.01, %v8665_v55  ;;  %v9273_v42 = vmul.f32 0.01, %v8688_v37  ;;  %vm9208_vm2 = vcmp.gt.f32.partialorder %v8665_v55, 0.0  ;;  %vm9209_vm3 = vcmp.gt.f32.partialorder %v8688_v37, 0.0 }
 0x536   :  { %9650 = vmatpush.msrb.mxu2 %v9334_v31  ;;  %9673 = vmatpush.msrb.mxu3 %v9335_v32 }
 0x537   :  { %17490 = vmatmul.msk.f32.vlgmr.msrb.gmra.mxu2 %vm96_vm1, %v20009_v54  ;;  %17493 = vmatmul.msk.f32.vlgmr.msrb.gmra.mxu3 %vm96_vm1, %v20009_v54  ;;  %v9336_v6 = vsel %vm9208_vm2, %v8665_v55, %v9272_v25  ;;  %v9337_v7 = vsel %vm9209_vm3, %v8688_v37, %v9273_v42 }
 0x538   :  { %v8711_v35 = vpop.f32.mrf.mxu2  ;;  %v8734_v36 = vpop.f32.mrf.mxu3 }
 0x539   :  { %v9274_v5 = vmul.f32 0.01, %v8711_v35  ;;  %v9275_v13 = vmul.f32 0.01, %v8734_v36  ;;  %vm9210_vm12 = vcmp.gt.f32.partialorder %v8711_v35, 0.0  ;;  %vm9211_vm13 = vcmp.gt.f32.partialorder %v8734_v36, 0.0 }
 0x53b   :  { %v9338_v52 = vsel %vm9210_vm12, %v8711_v35, %v9274_v5  ;;  %v9339_v53 = vsel %vm9211_vm13, %v8734_v36, %v9275_v13  ;;  %17485 = vmatmul.msk.f32.gmra.mxu0 %vm96_vm1, %v20018_v57  ;;  %17488 = vmatmul.msk.f32.gmra.mxu1 %vm96_vm1, %v20018_v57 }
 0x53c   :  { %v8668_v58 = vpop.f32.mrf.mxu0  ;;  %v8691_v59 = vpop.f32.mrf.mxu1 }
 0x53d   :  { %vm9240_vm4 = vcmp.gt.f32.partialorder %v8668_v58, 0.0  ;;  %v9304_v60 = vmul.f32 0.01, %v8668_v58  ;;  %vm9241_vm5 = vcmp.gt.f32.partialorder %v8691_v59, 0.0  ;;  %v9305_v47 = vmul.f32 0.01, %v8691_v59 }
 0x53f   :  { %17491 = vmatmul.msk.f32.gmra.mxu2 %vm96_vm1, %v20018_v57  ;;  %17494 = vmatmul.msk.f32.gmra.mxu3 %vm96_vm1, %v20018_v57  ;;  %v9368_v62 = vsel %vm9240_vm4, %v8668_v58, %v9304_v60  ;;  %v9369_v3 = vsel %vm9241_vm5, %v8691_v59, %v9305_v47 }
 0x540   :  { %v8714_v44 = vpop.f32.mrf.mxu2  ;;  %v8737_v8 = vpop.f32.mrf.mxu3  ;;  %17495 = vmatpush.msk.msra.mxu0 %vm103_vm0, %v9368_v62  ;;  %17498 = vmatpush.msk.msra.mxu1 %vm103_vm0, %v9369_v3 }
 0x541   :  { %vm9242_vm14 = vcmp.gt.f32.partialorder %v8714_v44, 0.0  ;;  %v9306_v45 = vmul.f32 0.01, %v8714_v44  ;;  %vm9243_vm15 = vcmp.gt.f32.partialorder %v8737_v8, 0.0  ;;  %v9307_v46 = vmul.f32 0.01, %v8737_v8 }
 0x542   :  { %9696 = vmatpush.msra.mxu0 %v9336_v6  ;;  %9719 = vmatpush.msra.mxu1 %v9337_v7 }
 0x543   :  { %v9370_v51 = vsel %vm9242_vm14, %v8714_v44, %v9306_v45  ;;  %v9371_v28 = vsel %vm9243_vm15, %v8737_v8, %v9307_v46  ;;  %17496 = vmatmul.msk.f32.vlgmr.msra.gmra.mxu0 %vm96_vm1, %v20009_v54  ;;  %17499 = vmatmul.msk.f32.vlgmr.msra.gmra.mxu1 %vm96_vm1, %v20009_v54 }
 0x544   :  { %17501 = vmatpush.msk.msra.mxu2 %vm103_vm0, %v9370_v51  ;;  %17504 = vmatpush.msk.msra.mxu3 %vm103_vm0, %v9371_v28  ;;  %v8757_v14 = vpop.f32.mrf.mxu0  ;;  %v8780_v16 = vpop.f32.mrf.mxu1 }
 0x545   :  { %v9276_v21 = vmul.f32 0.01, %v8757_v14  ;;  %v9277_v22 = vmul.f32 0.01, %v8780_v16  ;;  %vm9212_vm10 = vcmp.gt.f32.partialorder %v8757_v14, 0.0  ;;  %vm9213_vm11 = vcmp.gt.f32.partialorder %v8780_v16, 0.0 }
 0x546   :  { %9742 = vmatpush.msra.mxu2 %v9338_v52  ;;  %9765 = vmatpush.msra.mxu3 %v9339_v53 }
 0x547   :  { %17502 = vmatmul.msk.f32.vlgmr.msra.gmra.mxu2 %vm96_vm1, %v20009_v54  ;;  %17505 = vmatmul.msk.f32.vlgmr.msra.gmra.mxu3 %vm96_vm1, %v20009_v54  ;;  %v9340_v4 = vsel %vm9212_vm10, %v8757_v14, %v9276_v21  ;;  %v9341_v38 = vsel %vm9213_vm11, %v8780_v16, %v9277_v22 }
 0x548   :  { %v8803_v20 = vpop.f32.mrf.mxu2  ;;  %v8826_v56 = vpop.f32.mrf.mxu3 }
 0x549   :  { %v9278_v61 = vmul.f32 0.01, %v8803_v20  ;;  %v9279_v17 = vmul.f32 0.01, %v8826_v56  ;;  %vm9214_vm6 = vcmp.gt.f32.partialorder %v8803_v20, 0.0  ;;  %vm9215_vm7 = vcmp.gt.f32.partialorder %v8826_v56, 0.0 }
 0x54b   :  { %v9342_v11 = vsel %vm9214_vm6, %v8803_v20, %v9278_v61  ;;  %v9343_v12 = vsel %vm9215_vm7, %v8826_v56, %v9279_v17  ;;  %17497 = vmatmul.msk.f32.gmra.mxu0 %vm96_vm1, %v20018_v57  ;;  %17500 = vmatmul.msk.f32.gmra.mxu1 %vm96_vm1, %v20018_v57 }
 0x54c   :  { %v8760_v23 = vpop.f32.mrf.mxu0  ;;  %v8783_v24 = vpop.f32.mrf.mxu1 }
 0x54d   :  { %vm9244_vm12 = vcmp.gt.f32.partialorder %v8760_v23, 0.0  ;;  %v9308_v26 = vmul.f32 0.01, %v8760_v23  ;;  %vm9245_vm13 = vcmp.gt.f32.partialorder %v8783_v24, 0.0  ;;  %v9309_v27 = vmul.f32 0.01, %v8783_v24 }
 0x54f   :  { %17503 = vmatmul.msk.f32.gmra.mxu2 %vm96_vm1, %v20018_v57  ;;  %17506 = vmatmul.msk.f32.gmra.mxu3 %vm96_vm1, %v20018_v57  ;;  %v9372_v35 = vsel %vm9244_vm12, %v8760_v23, %v9308_v26  ;;  %v9373_v36 = vsel %vm9245_vm13, %v8783_v24, %v9309_v27 }
 0x550   :  { %v8806_v63 = vpop.f32.mrf.mxu2  ;;  %v8829_v0 = vpop.f32.mrf.mxu3  ;;  %17507 = vmatpush.msk.msrb.mxu0 %vm103_vm0, %v9372_v35  ;;  %17510 = vmatpush.msk.msrb.mxu1 %vm103_vm0, %v9373_v36 }
 0x551   :  { %vm9246_vm8 = vcmp.gt.f32.partialorder %v8806_v63, 0.0  ;;  %v9310_v1 = vmul.f32 0.01, %v8806_v63  ;;  %vm9247_vm9 = vcmp.gt.f32.partialorder %v8829_v0, 0.0  ;;  %v9311_v2 = vmul.f32 0.01, %v8829_v0 }
 0x552   :  { %9788 = vmatpush.msrb.mxu0 %v9340_v4  ;;  %9811 = vmatpush.msrb.mxu1 %v9341_v38 }
 0x553   :  { %v9374_v9 = vsel %vm9246_vm8, %v8806_v63, %v9310_v1  ;;  %v9375_v10 = vsel %vm9247_vm9, %v8829_v0, %v9311_v2  ;;  %17508 = vmatmul.msk.f32.vlgmr.msrb.gmra.mxu0 %vm96_vm1, %v20009_v54  ;;  %17511 = vmatmul.msk.f32.vlgmr.msrb.gmra.mxu1 %vm96_vm1, %v20009_v54 }
 0x554   :  { %17513 = vmatpush.msk.msrb.mxu2 %vm103_vm0, %v9374_v9  ;;  %17516 = vmatpush.msk.msrb.mxu3 %vm103_vm0, %v9375_v10  ;;  %v8849_v5 = vpop.f32.mrf.mxu0  ;;  %v8872_v13 = vpop.f32.mrf.mxu1 }
 0x555   :  { %v9280_v45 = vmul.f32 0.01, %v8849_v5  ;;  %v9281_v46 = vmul.f32 0.01, %v8872_v13  ;;  %vm9216_vm4 = vcmp.gt.f32.partialorder %v8849_v5, 0.0  ;;  %vm9217_vm5 = vcmp.gt.f32.partialorder %v8872_v13, 0.0 }
 0x556   :  { %9834 = vmatpush.msrb.mxu2 %v9342_v11  ;;  %9857 = vmatpush.msrb.mxu3 %v9343_v12 }
 0x557   :  { %17514 = vmatmul.msk.f32.vlgmr.msrb.gmra.mxu2 %vm96_vm1, %v20009_v54  ;;  %17517 = vmatmul.msk.f32.vlgmr.msrb.gmra.mxu3 %vm96_vm1, %v20009_v54  ;;  %v9344_v25 = vsel %vm9216_vm4, %v8849_v5, %v9280_v45  ;;  %v9345_v42 = vsel %vm9217_vm5, %v8872_v13, %v9281_v46 }
 0x558   :  { %v8895_v18 = vpop.f32.mrf.mxu2  ;;  %v8918_v19 = vpop.f32.mrf.mxu3 }
 0x559   :  { %v9282_v29 = vmul.f32 0.01, %v8895_v18  ;;  %v9283_v30 = vmul.f32 0.01, %v8918_v19  ;;  %vm9218_vm14 = vcmp.gt.f32.partialorder %v8895_v18, 0.0  ;;  %vm9219_vm15 = vcmp.gt.f32.partialorder %v8918_v19, 0.0 }
 0x55b   :  { %v9346_v41 = vsel %vm9218_vm14, %v8895_v18, %v9282_v29  ;;  %v9347_v43 = vsel %vm9219_vm15, %v8918_v19, %v9283_v30  ;;  %17509 = vmatmul.msk.f32.gmra.mxu0 %vm96_vm1, %v20018_v57  ;;  %17512 = vmatmul.msk.f32.gmra.mxu1 %vm96_vm1, %v20018_v57 }
 0x55c   :  { %v8852_v48 = vpop.f32.mrf.mxu0  ;;  %v8875_v15 = vpop.f32.mrf.mxu1 }
 0x55d   :  { %vm9248_vm6 = vcmp.gt.f32.partialorder %v8852_v48, 0.0  ;;  %v9312_v49 = vmul.f32 0.01, %v8852_v48  ;;  %vm9249_vm7 = vcmp.gt.f32.partialorder %v8875_v15, 0.0  ;;  %v9313_v50 = vmul.f32 0.01, %v8875_v15 }
 0x55f   :  { %17515 = vmatmul.msk.f32.gmra.mxu2 %vm96_vm1, %v20018_v57  ;;  %17518 = vmatmul.msk.f32.gmra.mxu3 %vm96_vm1, %v20018_v57  ;;  %v9376_v20 = vsel %vm9248_vm6, %v8852_v48, %v9312_v49  ;;  %v9377_v56 = vsel %vm9249_vm7, %v8875_v15, %v9313_v50 }
 0x560   :  { %v8898_v31 = vpop.f32.mrf.mxu2  ;;  %v8921_v32 = vpop.f32.mrf.mxu3  ;;  %17519 = vmatpush.msk.msra.mxu0 %vm103_vm0, %v9376_v20  ;;  %17522 = vmatpush.msk.msra.mxu1 %vm103_vm0, %v9377_v56 }
 0x561   :  { %vm9250_vm2 = vcmp.gt.f32.partialorder %v8898_v31, 0.0  ;;  %v9314_v33 = vmul.f32 0.01, %v8898_v31  ;;  %vm9251_vm3 = vcmp.gt.f32.partialorder %v8921_v32, 0.0  ;;  %v9315_v34 = vmul.f32 0.01, %v8921_v32 }
 0x562   :  { %9880 = vmatpush.msra.mxu0 %v9344_v25  ;;  %9903 = vmatpush.msra.mxu1 %v9345_v42 }
 0x563   :  { %v9378_v39 = vsel %vm9250_vm2, %v8898_v31, %v9314_v33  ;;  %v9379_v40 = vsel %vm9251_vm3, %v8921_v32, %v9315_v34  ;;  %17520 = vmatmul.msk.f32.vlgmr.msra.gmra.mxu0 %vm96_vm1, %v20009_v54  ;;  %17523 = vmatmul.msk.f32.vlgmr.msra.gmra.mxu1 %vm96_vm1, %v20009_v54 }
 0x564   :  { %17525 = vmatpush.msk.msra.mxu2 %vm103_vm0, %v9378_v39  ;;  %17528 = vmatpush.msk.msra.mxu3 %vm103_vm0, %v9379_v40  ;;  %v8941_v61 = vpop.f32.mrf.mxu0  ;;  %v8964_v17 = vpop.f32.mrf.mxu1 }
 0x565   :  { %v9284_v1 = vmul.f32 0.01, %v8941_v61  ;;  %v9285_v2 = vmul.f32 0.01, %v8964_v17  ;;  %vm9220_vm12 = vcmp.gt.f32.partialorder %v8941_v61, 0.0  ;;  %vm9221_vm13 = vcmp.gt.f32.partialorder %v8964_v17, 0.0 }
 0x566   :  { %9926 = vmatpush.msra.mxu2 %v9346_v41  ;;  %9949 = vmatpush.msra.mxu3 %v9347_v43 }
 0x567   :  { %17526 = vmatmul.msk.f32.vlgmr.msra.gmra.mxu2 %vm96_vm1, %v20009_v54  ;;  %17529 = vmatmul.msk.f32.vlgmr.msra.gmra.mxu3 %vm96_vm1, %v20009_v54  ;;  %v9348_v21 = vsel %vm9220_vm12, %v8941_v61, %v9284_v1  ;;  %v9349_v22 = vsel %vm9221_vm13, %v8964_v17, %v9285_v2 }
 0x568   :  { %v8987_v44 = vpop.f32.mrf.mxu2  ;;  %v9010_v8 = vpop.f32.mrf.mxu3 }
 0x569   :  { %v9286_v51 = vmul.f32 0.01, %v8987_v44  ;;  %v9287_v28 = vmul.f32 0.01, %v9010_v8  ;;  %vm9222_vm8 = vcmp.gt.f32.partialorder %v8987_v44, 0.0  ;;  %vm9223_vm9 = vcmp.gt.f32.partialorder %v9010_v8, 0.0 }
 0x56b   :  { %v9350_v60 = vsel %vm9222_vm8, %v8987_v44, %v9286_v51  ;;  %v9351_v47 = vsel %vm9223_vm9, %v9010_v8, %v9287_v28  ;;  %17521 = vmatmul.msk.f32.gmra.mxu0 %vm96_vm1, %v20018_v57  ;;  %17524 = vmatmul.msk.f32.gmra.mxu1 %vm96_vm1, %v20018_v57 }
 0x56c   :  { %v8944_v62 = vpop.f32.mrf.mxu0  ;;  %v8967_v3 = vpop.f32.mrf.mxu1 }
 0x56d   :  { %vm9252_vm14 = vcmp.gt.f32.partialorder %v8944_v62, 0.0  ;;  %v9316_v6 = vmul.f32 0.01, %v8944_v62  ;;  %vm9253_vm15 = vcmp.gt.f32.partialorder %v8967_v3, 0.0  ;;  %v9317_v7 = vmul.f32 0.01, %v8967_v3 }
 0x56f   :  { %17527 = vmatmul.msk.f32.gmra.mxu2 %vm96_vm1, %v20018_v57  ;;  %17530 = vmatmul.msk.f32.gmra.mxu3 %vm96_vm1, %v20018_v57  ;;  %v9380_v18 = vsel %vm9252_vm14, %v8944_v62, %v9316_v6  ;;  %v9381_v19 = vsel %vm9253_vm15, %v8967_v3, %v9317_v7 }
 0x570   :  { %v8990_v52 = vpop.f32.mrf.mxu2  ;;  %v9013_v53 = vpop.f32.mrf.mxu3  ;;  %17531 = vmatpush.msk.msrb.mxu0 %vm103_vm0, %v9380_v18  ;;  %17534 = vmatpush.msk.msrb.mxu1 %vm103_vm0, %v9381_v19 }
 0x571   :  { %vm9254_vm10 = vcmp.gt.f32.partialorder %v8990_v52, 0.0  ;;  %v9318_v55 = vmul.f32 0.01, %v8990_v52  ;;  %vm9255_vm11 = vcmp.gt.f32.partialorder %v9013_v53, 0.0  ;;  %v9319_v37 = vmul.f32 0.01, %v9013_v53 }
 0x572   :  { %9972 = vmatpush.msrb.mxu0 %v9348_v21  ;;  %9995 = vmatpush.msrb.mxu1 %v9349_v22 }
 0x573   :  { %v9382_v58 = vsel %vm9254_vm10, %v8990_v52, %v9318_v55  ;;  %v9383_v59 = vsel %vm9255_vm11, %v9013_v53, %v9319_v37  ;;  %17532 = vmatmul.msk.f32.vlgmr.msrb.gmra.mxu0 %vm96_vm1, %v20009_v54  ;;  %17535 = vmatmul.msk.f32.vlgmr.msrb.gmra.mxu1 %vm96_vm1, %v20009_v54 }
 0x574   :  { %17537 = vmatpush.msk.msrb.mxu2 %vm103_vm0, %v9382_v58  ;;  %17540 = vmatpush.msk.msrb.mxu3 %vm103_vm0, %v9383_v59  ;;  %v9033_v29 = vpop.f32.mrf.mxu0  ;;  %v9056_v30 = vpop.f32.mrf.mxu1 }
 0x575   :  { %v9288_v33 = vmul.f32 0.01, %v9033_v29  ;;  %v9289_v34 = vmul.f32 0.01, %v9056_v30  ;;  %vm9224_vm6 = vcmp.gt.f32.partialorder %v9033_v29, 0.0  ;;  %vm9225_vm7 = vcmp.gt.f32.partialorder %v9056_v30, 0.0 }
 0x576   :  { %10018 = vmatpush.msrb.mxu2 %v9350_v60  ;;  %10041 = vmatpush.msrb.mxu3 %v9351_v47 }
 0x577   :  { %17538 = vmatmul.msk.f32.vlgmr.msrb.gmra.mxu2 %vm96_vm1, %v20009_v54  ;;  %17541 = vmatmul.msk.f32.vlgmr.msrb.gmra.mxu3 %vm96_vm1, %v20009_v54  ;;  %v9352_v45 = vsel %vm9224_vm6, %v9033_v29, %v9288_v33  ;;  %v9353_v46 = vsel %vm9225_vm7, %v9056_v30, %v9289_v34 }
 0x578   :  { %v9079_v63 = vpop.f32.mrf.mxu2  ;;  %v9102_v0 = vpop.f32.mrf.mxu3 }
 0x579   :  { %v9290_v9 = vmul.f32 0.01, %v9079_v63  ;;  %v9291_v10 = vmul.f32 0.01, %v9102_v0  ;;  %vm9226_vm2 = vcmp.gt.f32.partialorder %v9079_v63, 0.0  ;;  %vm9227_vm3 = vcmp.gt.f32.partialorder %v9102_v0, 0.0 }
 0x57b   :  { %v9354_v26 = vsel %vm9226_vm2, %v9079_v63, %v9290_v9  ;;  %v9355_v27 = vsel %vm9227_vm3, %v9102_v0, %v9291_v10  ;;  %17533 = vmatmul.msk.f32.gmra.mxu0 %vm96_vm1, %v20018_v57  ;;  %17536 = vmatmul.msk.f32.gmra.mxu1 %vm96_vm1, %v20018_v57 }
 0x57c   :  { %v9036_v35 = vpop.f32.mrf.mxu0  ;;  %v9059_v36 = vpop.f32.mrf.mxu1 }
 0x57d   :  { %vm9256_vm8 = vcmp.gt.f32.partialorder %v9036_v35, 0.0  ;;  %v9320_v4 = vmul.f32 0.01, %v9036_v35  ;;  %vm9257_vm9 = vcmp.gt.f32.partialorder %v9059_v36, 0.0  ;;  %v9321_v38 = vmul.f32 0.01, %v9059_v36 }
 0x57f   :  { %17539 = vmatmul.msk.f32.gmra.mxu2 %vm96_vm1, %v20018_v57  ;;  %17542 = vmatmul.msk.f32.gmra.mxu3 %vm96_vm1, %v20018_v57  ;;  %v9384_v44 = vsel %vm9256_vm8, %v9036_v35, %v9320_v4  ;;  %v9385_v8 = vsel %vm9257_vm9, %v9059_v36, %v9321_v38 }
 0x580   :  { %v9082_v11 = vpop.f32.mrf.mxu2  ;;  %v9105_v12 = vpop.f32.mrf.mxu3  ;;  %17543 = vmatpush.msk.msra.mxu0 %vm103_vm0, %v9384_v44  ;;  %17546 = vmatpush.msk.msra.mxu1 %vm103_vm0, %v9385_v8 }
 0x581   :  { %vm9258_vm4 = vcmp.gt.f32.partialorder %v9082_v11, 0.0  ;;  %v9322_v14 = vmul.f32 0.01, %v9082_v11  ;;  %vm9259_vm5 = vcmp.gt.f32.partialorder %v9105_v12, 0.0  ;;  %v9323_v16 = vmul.f32 0.01, %v9105_v12 }
 0x582   :  { %10064 = vmatpush.msra.mxu0 %v9352_v45  ;;  %10087 = vmatpush.msra.mxu1 %v9353_v46 }
 0x583   :  { %v9386_v23 = vsel %vm9258_vm4, %v9082_v11, %v9322_v14  ;;  %v9387_v24 = vsel %vm9259_vm5, %v9105_v12, %v9323_v16  ;;  %17544 = vmatmul.msk.f32.vlgmr.msra.gmra.mxu0 %vm96_vm1, %v20009_v54  ;;  %17547 = vmatmul.msk.f32.vlgmr.msra.gmra.mxu1 %vm96_vm1, %v20009_v54  ;;  %v20222_v12 = vld [vmem:[%s21286_s1 + $0xa8] sm:$0x1f] }
 0x584   :  { %17549 = vmatpush.msk.msra.mxu2 %vm103_vm0, %v9386_v23  ;;  %17552 = vmatpush.msk.msra.mxu3 %vm103_vm0, %v9387_v24  ;;  %v9125_v51 = vpop.f32.mrf.mxu0  ;;  %v9148_v28 = vpop.f32.mrf.mxu1 }
 0x585   :  { %v9292_v52 = vmul.f32 0.01, %v9125_v51  ;;  %v9293_v53 = vmul.f32 0.01, %v9148_v28  ;;  %vm9228_vm14 = vcmp.gt.f32.partialorder %v9125_v51, 0.0  ;;  %vm9229_vm15 = vcmp.gt.f32.partialorder %v9148_v28, 0.0 }
 0x586   :  { %10110 = vmatpush.msra.mxu2 %v9354_v26  ;;  %10133 = vmatpush.msra.mxu3 %v9355_v27 }
 0x587   :  { %17550 = vmatmul.msk.f32.vlgmr.msra.gmra.mxu2 %vm96_vm1, %v20009_v54  ;;  %17553 = vmatmul.msk.f32.vlgmr.msra.gmra.mxu3 %vm96_vm1, %v20009_v54  ;;  %v9356_v58 = vsel %vm9228_vm14, %v9125_v51, %v9292_v52  ;;  %v9357_v59 = vsel %vm9229_vm15, %v9148_v28, %v9293_v53 }
 0x588   :  { %v9171_v31 = vpop.f32.mrf.mxu2  ;;  %v9194_v32 = vpop.f32.mrf.mxu3 }
 0x589   :  { %v9294_v39 = vmul.f32 0.01, %v9171_v31  ;;  %v9295_v40 = vmul.f32 0.01, %v9194_v32  ;;  %vm9230_vm10 = vcmp.gt.f32.partialorder %v9171_v31, 0.0  ;;  %vm9231_vm11 = vcmp.gt.f32.partialorder %v9194_v32, 0.0 }
 0x58b   :  { %v9358_v49 = vsel %vm9230_vm10, %v9171_v31, %v9294_v39  ;;  %v9359_v50 = vsel %vm9231_vm11, %v9194_v32, %v9295_v40  ;;  %17545 = vmatmul.msk.f32.gmra.mxu0 %vm96_vm1, %v20018_v57  ;;  %17548 = vmatmul.msk.f32.gmra.mxu1 %vm96_vm1, %v20018_v57 }
 0x58c   :  { %v9128_v55 = vpop.f32.mrf.mxu0  ;;  %v9151_v37 = vpop.f32.mrf.mxu1 }
 0x58d   :  { %vm9260_vm2 = vcmp.gt.f32.partialorder %v9128_v55, 0.0  ;;  %v9324_v20 = vmul.f32 0.01, %v9128_v55  ;;  %vm9261_vm3 = vcmp.gt.f32.partialorder %v9151_v37, 0.0  ;;  %v9325_v56 = vmul.f32 0.01, %v9151_v37 }
 0x58f   :  { %17551 = vmatmul.msk.f32.gmra.mxu2 %vm96_vm1, %v20018_v57  ;;  %17554 = vmatmul.msk.f32.gmra.mxu3 %vm96_vm1, %v20018_v57  ;;  %v9388_v25 = vsel %vm9260_vm2, %v9128_v55, %v9324_v20  ;;  %v9389_v42 = vsel %vm9261_vm3, %v9151_v37, %v9325_v56 }
 0x590   :  { %v9174_v41 = vpop.f32.mrf.mxu2  ;;  %v9197_v43 = vpop.f32.mrf.mxu3  ;;  %17555 = vmatpush.msk.msrb.mxu0 %vm103_vm0, %v9388_v25  ;;  %17558 = vmatpush.msk.msrb.mxu1 %vm103_vm0, %v9389_v42 }
 0x591   :  { %vm9262_vm12 = vcmp.gt.f32.partialorder %v9174_v41, 0.0  ;;  %v9326_v5 = vmul.f32 0.01, %v9174_v41  ;;  %vm9263_vm13 = vcmp.gt.f32.partialorder %v9197_v43, 0.0  ;;  %v9327_v13 = vmul.f32 0.01, %v9197_v43 }
 0x592   :  { %10156 = vmatpush.msrb.mxu0 %v9356_v58  ;;  %10179 = vmatpush.msrb.mxu1 %v9357_v59 }
 0x593   :  { %v9390_v48 = vsel %vm9262_vm12, %v9174_v41, %v9326_v5  ;;  %v9391_v15 = vsel %vm9263_vm13, %v9197_v43, %v9327_v13  ;;  %17556 = vmatmul.msk.f32.vlgmr.msrb.gmra.mxu0 %vm96_vm1, %v20009_v54  ;;  %17559 = vmatmul.msk.f32.vlgmr.msrb.gmra.mxu1 %vm96_vm1, %v20009_v54 }
 0x594   :  { %17561 = vmatpush.msk.msrb.mxu2 %vm103_vm0, %v9390_v48  ;;  %17564 = vmatpush.msk.msrb.mxu3 %vm103_vm0, %v9391_v15  ;;  %v9514_v3 = vpop.f32.mrf.mxu0  ;;  %v9537_v6 = vpop.f32.mrf.mxu1 }
 0x595   :  { %v10297_v14 = vmul.f32 0.01, %v9514_v3  ;;  %v10298_v16 = vmul.f32 0.01, %v9537_v6  ;;  %vm10233_vm8 = vcmp.gt.f32.partialorder %v9514_v3, 0.0  ;;  %vm10234_vm9 = vcmp.gt.f32.partialorder %v9537_v6, 0.0 }
 0x596   :  { %10202 = vmatpush.msrb.mxu2 %v9358_v49  ;;  %10225 = vmatpush.msrb.mxu3 %v9359_v50 }
 0x597   :  { %17562 = vmatmul.msk.f32.vlgmr.msrb.gmra.mxu2 %vm96_vm1, %v20009_v54  ;;  %17565 = vmatmul.msk.f32.vlgmr.msrb.gmra.mxu3 %vm96_vm1, %v20009_v54  ;;  %v10361_v26 = vsel %vm10233_vm8, %v9514_v3, %v10297_v14  ;;  %v10362_v27 = vsel %vm10234_vm9, %v9537_v6, %v10298_v16 }
 0x59b   :  { %17557 = vmatmul.msk.f32.gmra.mxu0 %vm96_vm1, %v20018_v57  ;;  %17560 = vmatmul.msk.f32.gmra.mxu1 %vm96_vm1, %v20018_v57 }
 0x59c   :  { %v9517_v18 = vpop.f32.mrf.mxu0  ;;  %v9540_v19 = vpop.f32.mrf.mxu1 }
 0x59d   :  { %vm10265_vm10 = vcmp.gt.f32.partialorder %v9517_v18, 0.0  ;;  %v10329_v21 = vmul.f32 0.01, %v9517_v18  ;;  %vm10266_vm11 = vcmp.gt.f32.partialorder %v9540_v19, 0.0  ;;  %v10330_v22 = vmul.f32 0.01, %v9540_v19 }
 0x59f   :  { %17563 = vmatmul.msk.f32.gmra.mxu2 %vm96_vm1, %v20018_v57  ;;  %17566 = vmatmul.msk.f32.gmra.mxu3 %vm96_vm1, %v20018_v57  ;;  %v20213_v57 = vld [vmem:[%s21286_s1 + $0xa0] sm:$0xff]  ;;  %v10393_v23 = vsel %vm10265_vm10, %v9517_v18, %v10329_v21  ;;  %v10394_v24 = vsel %vm10266_vm11, %v9540_v19, %v10330_v22 }
 0x5a0   :  { %17569 = vmatpush.msk.msra.mxu0 %vm103_vm0, %v10393_v23  ;;  %17572 = vmatpush.msk.msra.mxu1 %vm103_vm0, %v10394_v24 }
 0x5a2   :  { %10545 = vmatpush.msra.mxu0 %v10361_v26  ;;  %10568 = vmatpush.msra.mxu1 %v10362_v27 }
 0x5a3   :  { %17570 = vmatmul.msk.f32.vlgmr.msra.gmra.mxu0 %vm96_vm1, %v20213_v57  ;;  %17573 = vmatmul.msk.f32.vlgmr.msra.gmra.mxu1 %vm96_vm1, %v20213_v57 }
 0x5aa   :  { %v9560_v60 = vpop.f32.mrf.mxu2  ;;  %v9583_v47 = vpop.f32.mrf.mxu3 }
 0x5ab   :  { %v10299_v61 = vmul.f32 0.01, %v9560_v60  ;;  %v10300_v17 = vmul.f32 0.01, %v9583_v47  ;;  %vm10235_vm6 = vcmp.gt.f32.partialorder %v9560_v60, 0.0  ;;  %vm10236_vm7 = vcmp.gt.f32.partialorder %v9583_v47, 0.0  ;;  %17571 = vmatmul.msk.f32.gmra.mxu0 %vm96_vm1, %v20222_v12  ;;  %17574 = vmatmul.msk.f32.gmra.mxu1 %vm96_vm1, %v20222_v12 }
 0x5ad   :  { %v10363_v7 = vsel %vm10235_vm6, %v9560_v60, %v10299_v61  ;;  %v10364_v9 = vsel %vm10236_vm7, %v9583_v47, %v10300_v17 }
 0x5b0   :  { %v9606_v4 = vpop.f32.mrf.mxu0  ;;  %v9629_v38 = vpop.f32.mrf.mxu1 }
 0x5b1   :  { %v10301_v5 = vmul.f32 0.01, %v9606_v4  ;;  %v10302_v13 = vmul.f32 0.01, %v9629_v38  ;;  %vm10237_vm2 = vcmp.gt.f32.partialorder %v9606_v4, 0.0  ;;  %vm10238_vm3 = vcmp.gt.f32.partialorder %v9629_v38, 0.0 }
 0x5b2   :  { %v9563_v63 = vpop.f32.mrf.mxu2  ;;  %v9586_v0 = vpop.f32.mrf.mxu3 }
 0x5b3   :  { %vm10267_vm4 = vcmp.gt.f32.partialorder %v9563_v63, 0.0  ;;  %v10331_v1 = vmul.f32 0.01, %v9563_v63  ;;  %vm10268_vm5 = vcmp.gt.f32.partialorder %v9586_v0, 0.0  ;;  %v10332_v2 = vmul.f32 0.01, %v9586_v0 }
 0x5b4   :  { %v10365_v49 = vsel %vm10237_vm2, %v9606_v4, %v10301_v5  ;;  %v10366_v50 = vsel %vm10238_vm3, %v9629_v38, %v10302_v13 }
 0x5b5   :  { %v10395_v62 = vsel %vm10267_vm4, %v9563_v63, %v10331_v1  ;;  %v10396_v54 = vsel %vm10268_vm5, %v9586_v0, %v10332_v2 }
 0x5b6   :  { %17575 = vmatpush.msk.msra.mxu2 %vm103_vm0, %v10395_v62  ;;  %17578 = vmatpush.msk.msra.mxu3 %vm103_vm0, %v10396_v54 }
 0x5b8   :  { %10591 = vmatpush.msra.mxu2 %v10363_v7  ;;  %10614 = vmatpush.msra.mxu3 %v10364_v9  ;;  %v9609_v44 = vpop.f32.mrf.mxu0  ;;  %v9632_v8 = vpop.f32.mrf.mxu1 }
 0x5b9   :  { %17576 = vmatmul.msk.f32.vlgmr.msra.gmra.mxu2 %vm96_vm1, %v20213_v57  ;;  %17579 = vmatmul.msk.f32.vlgmr.msra.gmra.mxu3 %vm96_vm1, %v20213_v57  ;;  %vm10269_vm4 = vcmp.gt.f32.partialorder %v9609_v44, 0.0  ;;  %v10333_v45 = vmul.f32 0.01, %v9609_v44  ;;  %vm10270_vm5 = vcmp.gt.f32.partialorder %v9632_v8, 0.0  ;;  %v10334_v46 = vmul.f32 0.01, %v9632_v8 }
 0x5ba   :  { %v9652_v10 = vpop.f32.mrf.mxu2  ;;  %v9675_v11 = vpop.f32.mrf.mxu3 }
 0x5bb   :  { %v10303_v29 = vmul.f32 0.01, %v9652_v10  ;;  %v10304_v30 = vmul.f32 0.01, %v9675_v11  ;;  %vm10239_vm14 = vcmp.gt.f32.partialorder %v9652_v10, 0.0  ;;  %vm10240_vm15 = vcmp.gt.f32.partialorder %v9675_v11, 0.0 }
 0x5bc   :  { %v10397_v48 = vsel %vm10269_vm4, %v9609_v44, %v10333_v45  ;;  %v10398_v15 = vsel %vm10270_vm5, %v9632_v8, %v10334_v46 }
 0x5bd   :  { %v10367_v39 = vsel %vm10239_vm14, %v9652_v10, %v10303_v29  ;;  %v10368_v40 = vsel %vm10240_vm15, %v9675_v11, %v10304_v30  ;;  %17581 = vmatpush.msk.msrb.mxu0 %vm103_vm0, %v10397_v48  ;;  %17584 = vmatpush.msk.msrb.mxu1 %vm103_vm0, %v10398_v15 }
 0x5bf   :  { %10637 = vmatpush.msrb.mxu0 %v10365_v49  ;;  %10660 = vmatpush.msrb.mxu1 %v10366_v50 }
 0x5c0   :  { %17582 = vmatmul.msk.f32.vlgmr.msrb.gmra.mxu0 %vm96_vm1, %v20213_v57  ;;  %17585 = vmatmul.msk.f32.vlgmr.msrb.gmra.mxu1 %vm96_vm1, %v20213_v57  ;;  %v9698_v25 = vpop.f32.mrf.mxu0  ;;  %v9721_v42 = vpop.f32.mrf.mxu1 }
 0x5c1   :  { %17577 = vmatmul.msk.f32.gmra.mxu2 %vm96_vm1, %v20222_v12  ;;  %17580 = vmatmul.msk.f32.gmra.mxu3 %vm96_vm1, %v20222_v12  ;;  %v10305_v61 = vmul.f32 0.01, %v9698_v25  ;;  %v10306_v17 = vmul.f32 0.01, %v9721_v42  ;;  %vm10241_vm10 = vcmp.gt.f32.partialorder %v9698_v25, 0.0  ;;  %vm10242_vm11 = vcmp.gt.f32.partialorder %v9721_v42, 0.0 }
 0x5c2   :  { %v9655_v31 = vpop.f32.mrf.mxu2  ;;  %v9678_v32 = vpop.f32.mrf.mxu3 }
 0x5c3   :  { %vm10271_vm12 = vcmp.gt.f32.partialorder %v9655_v31, 0.0  ;;  %v10335_v33 = vmul.f32 0.01, %v9655_v31  ;;  %vm10272_vm13 = vcmp.gt.f32.partialorder %v9678_v32, 0.0  ;;  %v10336_v34 = vmul.f32 0.01, %v9678_v32 }
 0x5c4   :  { %v10369_v3 = vsel %vm10241_vm10, %v9698_v25, %v10305_v61  ;;  %v10370_v6 = vsel %vm10242_vm11, %v9721_v42, %v10306_v17 }
 0x5c5   :  { %v10399_v35 = vsel %vm10271_vm12, %v9655_v31, %v10335_v33  ;;  %v10400_v36 = vsel %vm10272_vm13, %v9678_v32, %v10336_v34 }
 0x5c6   :  { %17587 = vmatpush.msk.msrb.mxu2 %vm103_vm0, %v10399_v35  ;;  %17590 = vmatpush.msk.msrb.mxu3 %vm103_vm0, %v10400_v36 }
 0x5c8   :  { %10683 = vmatpush.msrb.mxu2 %v10367_v39  ;;  %10706 = vmatpush.msrb.mxu3 %v10368_v40  ;;  %v9701_v63 = vpop.f32.mrf.mxu0  ;;  %v9724_v0 = vpop.f32.mrf.mxu1 }
 0x5c9   :  { %17588 = vmatmul.msk.f32.vlgmr.msrb.gmra.mxu2 %vm96_vm1, %v20213_v57  ;;  %17591 = vmatmul.msk.f32.vlgmr.msrb.gmra.mxu3 %vm96_vm1, %v20213_v57  ;;  %vm10273_vm12 = vcmp.gt.f32.partialorder %v9701_v63, 0.0  ;;  %v10337_v1 = vmul.f32 0.01, %v9701_v63  ;;  %vm10274_vm13 = vcmp.gt.f32.partialorder %v9724_v0, 0.0  ;;  %v10338_v2 = vmul.f32 0.01, %v9724_v0 }
 0x5ca   :  { %v9744_v41 = vpop.f32.mrf.mxu2  ;;  %v9767_v43 = vpop.f32.mrf.mxu3  ;;  %17583 = vmatmul.msk.f32.gmra.mxu0 %vm96_vm1, %v20222_v12  ;;  %17586 = vmatmul.msk.f32.gmra.mxu1 %vm96_vm1, %v20222_v12 }
 0x5cb   :  { %v10307_v51 = vmul.f32 0.01, %v9744_v41  ;;  %v10308_v28 = vmul.f32 0.01, %v9767_v43  ;;  %vm10243_vm8 = vcmp.gt.f32.partialorder %v9744_v41, 0.0  ;;  %vm10244_vm9 = vcmp.gt.f32.partialorder %v9767_v43, 0.0 }
 0x5cc   :  { %v10401_v62 = vsel %vm10273_vm12, %v9701_v63, %v10337_v1  ;;  %v10402_v54 = vsel %vm10274_vm13, %v9724_v0, %v10338_v2 }
 0x5cd   :  { %v10371_v58 = vsel %vm10243_vm8, %v9744_v41, %v10307_v51  ;;  %v10372_v59 = vsel %vm10244_vm9, %v9767_v43, %v10308_v28  ;;  %17593 = vmatpush.msk.msra.mxu0 %vm103_vm0, %v10401_v62  ;;  %17596 = vmatpush.msk.msra.mxu1 %vm103_vm0, %v10402_v54 }
 0x5cf   :  { %10729 = vmatpush.msra.mxu0 %v10369_v3  ;;  %10752 = vmatpush.msra.mxu1 %v10370_v6 }
 0x5d0   :  { %v9790_v21 = vpop.f32.mrf.mxu0  ;;  %v9813_v22 = vpop.f32.mrf.mxu1 }
 0x5d1   :  { %17589 = vmatmul.msk.f32.gmra.mxu2 %vm96_vm1, %v20222_v12  ;;  %17592 = vmatmul.msk.f32.gmra.mxu3 %vm96_vm1, %v20222_v12  ;;  %v10309_v29 = vmul.f32 0.01, %v9790_v21  ;;  %v10310_v30 = vmul.f32 0.01, %v9813_v22  ;;  %vm10245_vm4 = vcmp.gt.f32.partialorder %v9790_v21, 0.0  ;;  %vm10246_vm5 = vcmp.gt.f32.partialorder %v9813_v22, 0.0 }
 0x5d2   :  { %v9747_v52 = vpop.f32.mrf.mxu2  ;;  %v9770_v53 = vpop.f32.mrf.mxu3  ;;  %17594 = vmatmul.msk.f32.vlgmr.msra.gmra.mxu0 %vm96_vm1, %v20213_v57  ;;  %17597 = vmatmul.msk.f32.vlgmr.msra.gmra.mxu1 %vm96_vm1, %v20213_v57 }
 0x5d3   :  { %vm10275_vm6 = vcmp.gt.f32.partialorder %v9747_v52, 0.0  ;;  %v10339_v55 = vmul.f32 0.01, %v9747_v52  ;;  %vm10276_vm7 = vcmp.gt.f32.partialorder %v9770_v53, 0.0  ;;  %v10340_v37 = vmul.f32 0.01, %v9770_v53 }
 0x5d4   :  { %v10373_v4 = vsel %vm10245_vm4, %v9790_v21, %v10309_v29  ;;  %v10374_v38 = vsel %vm10246_vm5, %v9813_v22, %v10310_v30 }
 0x5d5   :  { %v10403_v20 = vsel %vm10275_vm6, %v9747_v52, %v10339_v55  ;;  %v10404_v56 = vsel %vm10276_vm7, %v9770_v53, %v10340_v37 }
 0x5d6   :  { %17599 = vmatpush.msk.msra.mxu2 %vm103_vm0, %v10403_v20  ;;  %17602 = vmatpush.msk.msra.mxu3 %vm103_vm0, %v10404_v56 }
 0x5d8   :  { %10775 = vmatpush.msra.mxu2 %v10371_v58  ;;  %10798 = vmatpush.msra.mxu3 %v10372_v59  ;;  %v9793_v31 = vpop.f32.mrf.mxu0  ;;  %v9816_v32 = vpop.f32.mrf.mxu1 }
 0x5d9   :  { %17600 = vmatmul.msk.f32.vlgmr.msra.gmra.mxu2 %vm96_vm1, %v20213_v57  ;;  %17603 = vmatmul.msk.f32.vlgmr.msra.gmra.mxu3 %vm96_vm1, %v20213_v57  ;;  %vm10277_vm6 = vcmp.gt.f32.partialorder %v9793_v31, 0.0  ;;  %v10341_v33 = vmul.f32 0.01, %v9793_v31  ;;  %vm10278_vm7 = vcmp.gt.f32.partialorder %v9816_v32, 0.0  ;;  %v10342_v34 = vmul.f32 0.01, %v9816_v32 }
 0x5da   :  { %v9836_v60 = vpop.f32.mrf.mxu2  ;;  %v9859_v47 = vpop.f32.mrf.mxu3  ;;  %17595 = vmatmul.msk.f32.gmra.mxu0 %vm96_vm1, %v20222_v12  ;;  %17598 = vmatmul.msk.f32.gmra.mxu1 %vm96_vm1, %v20222_v12 }
 0x5db   :  { %v10311_v7 = vmul.f32 0.01, %v9836_v60  ;;  %v10312_v9 = vmul.f32 0.01, %v9859_v47  ;;  %vm10247_vm2 = vcmp.gt.f32.partialorder %v9836_v60, 0.0  ;;  %vm10248_vm3 = vcmp.gt.f32.partialorder %v9859_v47, 0.0 }
 0x5dc   :  { %v10405_v35 = vsel %vm10277_vm6, %v9793_v31, %v10341_v33  ;;  %v10406_v36 = vsel %vm10278_vm7, %v9816_v32, %v10342_v34 }
 0x5dd   :  { %v10375_v23 = vsel %vm10247_vm2, %v9836_v60, %v10311_v7  ;;  %v10376_v24 = vsel %vm10248_vm3, %v9859_v47, %v10312_v9  ;;  %17605 = vmatpush.msk.msrb.mxu0 %vm103_vm0, %v10405_v35  ;;  %17608 = vmatpush.msk.msrb.mxu1 %vm103_vm0, %v10406_v36 }
 0x5df   :  { %10821 = vmatpush.msrb.mxu0 %v10373_v4  ;;  %10844 = vmatpush.msrb.mxu1 %v10374_v38 }
 0x5e0   :  { %v9882_v45 = vpop.f32.mrf.mxu0  ;;  %v9905_v46 = vpop.f32.mrf.mxu1 }
 0x5e1   :  { %17601 = vmatmul.msk.f32.gmra.mxu2 %vm96_vm1, %v20222_v12  ;;  %17604 = vmatmul.msk.f32.gmra.mxu3 %vm96_vm1, %v20222_v12  ;;  %v10313_v51 = vmul.f32 0.01, %v9882_v45  ;;  %v10314_v28 = vmul.f32 0.01, %v9905_v46  ;;  %vm10249_vm12 = vcmp.gt.f32.partialorder %v9882_v45, 0.0  ;;  %vm10250_vm13 = vcmp.gt.f32.partialorder %v9905_v46, 0.0 }
 0x5e2   :  { %v9839_v10 = vpop.f32.mrf.mxu2  ;;  %v9862_v11 = vpop.f32.mrf.mxu3  ;;  %17606 = vmatmul.msk.f32.vlgmr.msrb.gmra.mxu0 %vm96_vm1, %v20213_v57  ;;  %17609 = vmatmul.msk.f32.vlgmr.msrb.gmra.mxu1 %vm96_vm1, %v20213_v57 }
 0x5e3   :  { %vm10279_vm14 = vcmp.gt.f32.partialorder %v9839_v10, 0.0  ;;  %v10343_v14 = vmul.f32 0.01, %v9839_v10  ;;  %vm10280_vm15 = vcmp.gt.f32.partialorder %v9862_v11, 0.0  ;;  %v10344_v16 = vmul.f32 0.01, %v9862_v11 }
 0x5e4   :  { %v10377_v25 = vsel %vm10249_vm12, %v9882_v45, %v10313_v51  ;;  %v10378_v42 = vsel %vm10250_vm13, %v9905_v46, %v10314_v28 }
 0x5e5   :  { %v10407_v18 = vsel %vm10279_vm14, %v9839_v10, %v10343_v14  ;;  %v10408_v19 = vsel %vm10280_vm15, %v9862_v11, %v10344_v16 }
 0x5e6   :  { %17611 = vmatpush.msk.msrb.mxu2 %vm103_vm0, %v10407_v18  ;;  %17614 = vmatpush.msk.msrb.mxu3 %vm103_vm0, %v10408_v19 }
 0x5e8   :  { %10867 = vmatpush.msrb.mxu2 %v10375_v23  ;;  %10890 = vmatpush.msrb.mxu3 %v10376_v24  ;;  %v9885_v52 = vpop.f32.mrf.mxu0  ;;  %v9908_v53 = vpop.f32.mrf.mxu1 }
 0x5e9   :  { %17612 = vmatmul.msk.f32.vlgmr.msrb.gmra.mxu2 %vm96_vm1, %v20213_v57  ;;  %17615 = vmatmul.msk.f32.vlgmr.msrb.gmra.mxu3 %vm96_vm1, %v20213_v57  ;;  %vm10281_vm14 = vcmp.gt.f32.partialorder %v9885_v52, 0.0  ;;  %v10345_v55 = vmul.f32 0.01, %v9885_v52  ;;  %vm10282_vm15 = vcmp.gt.f32.partialorder %v9908_v53, 0.0  ;;  %v10346_v37 = vmul.f32 0.01, %v9908_v53 }
 0x5ea   :  { %v9928_v26 = vpop.f32.mrf.mxu2  ;;  %v9951_v27 = vpop.f32.mrf.mxu3  ;;  %17607 = vmatmul.msk.f32.gmra.mxu0 %vm96_vm1, %v20222_v12  ;;  %17610 = vmatmul.msk.f32.gmra.mxu1 %vm96_vm1, %v20222_v12 }
 0x5eb   :  { %v10315_v39 = vmul.f32 0.01, %v9928_v26  ;;  %v10316_v40 = vmul.f32 0.01, %v9951_v27  ;;  %vm10251_vm10 = vcmp.gt.f32.partialorder %v9928_v26, 0.0  ;;  %vm10252_vm11 = vcmp.gt.f32.partialorder %v9951_v27, 0.0 }
 0x5ec   :  { %v10409_v20 = vsel %vm10281_vm14, %v9885_v52, %v10345_v55  ;;  %v10410_v56 = vsel %vm10282_vm15, %v9908_v53, %v10346_v37 }
 0x5ed   :  { %v10379_v48 = vsel %vm10251_vm10, %v9928_v26, %v10315_v39  ;;  %v10380_v15 = vsel %vm10252_vm11, %v9951_v27, %v10316_v40  ;;  %17617 = vmatpush.msk.msra.mxu0 %vm103_vm0, %v10409_v20  ;;  %17620 = vmatpush.msk.msra.mxu1 %vm103_vm0, %v10410_v56 }
 0x5ef   :  { %10913 = vmatpush.msra.mxu0 %v10377_v25  ;;  %10936 = vmatpush.msra.mxu1 %v10378_v42 }
 0x5f0   :  { %v9974_v1 = vpop.f32.mrf.mxu0  ;;  %v9997_v2 = vpop.f32.mrf.mxu1 }
 0x5f1   :  { %17613 = vmatmul.msk.f32.gmra.mxu2 %vm96_vm1, %v20222_v12  ;;  %17616 = vmatmul.msk.f32.gmra.mxu3 %vm96_vm1, %v20222_v12  ;;  %v10317_v7 = vmul.f32 0.01, %v9974_v1  ;;  %v10318_v9 = vmul.f32 0.01, %v9997_v2  ;;  %vm10253_vm6 = vcmp.gt.f32.partialorder %v9974_v1, 0.0  ;;  %vm10254_vm7 = vcmp.gt.f32.partialorder %v9997_v2, 0.0 }
 0x5f2   :  { %v9931_v41 = vpop.f32.mrf.mxu2  ;;  %v9954_v43 = vpop.f32.mrf.mxu3  ;;  %17618 = vmatmul.msk.f32.vlgmr.msra.gmra.mxu0 %vm96_vm1, %v20213_v57  ;;  %17621 = vmatmul.msk.f32.vlgmr.msra.gmra.mxu1 %vm96_vm1, %v20213_v57 }
 0x5f3   :  { %vm10283_vm8 = vcmp.gt.f32.partialorder %v9931_v41, 0.0  ;;  %v10347_v5 = vmul.f32 0.01, %v9931_v41  ;;  %vm10284_vm9 = vcmp.gt.f32.partialorder %v9954_v43, 0.0  ;;  %v10348_v13 = vmul.f32 0.01, %v9954_v43 }
 0x5f4   :  { %v10381_v21 = vsel %vm10253_vm6, %v9974_v1, %v10317_v7  ;;  %v10382_v22 = vsel %vm10254_vm7, %v9997_v2, %v10318_v9 }
 0x5f5   :  { %v10411_v44 = vsel %vm10283_vm8, %v9931_v41, %v10347_v5  ;;  %v10412_v8 = vsel %vm10284_vm9, %v9954_v43, %v10348_v13 }
 0x5f6   :  { %17623 = vmatpush.msk.msra.mxu2 %vm103_vm0, %v10411_v44  ;;  %17626 = vmatpush.msk.msra.mxu3 %vm103_vm0, %v10412_v8 }
 0x5f8   :  { %10959 = vmatpush.msra.mxu2 %v10379_v48  ;;  %10982 = vmatpush.msra.mxu3 %v10380_v15  ;;  %v9977_v10 = vpop.f32.mrf.mxu0  ;;  %v10000_v11 = vpop.f32.mrf.mxu1 }
 0x5f9   :  { %17624 = vmatmul.msk.f32.vlgmr.msra.gmra.mxu2 %vm96_vm1, %v20213_v57  ;;  %17627 = vmatmul.msk.f32.vlgmr.msra.gmra.mxu3 %vm96_vm1, %v20213_v57  ;;  %vm10285_vm8 = vcmp.gt.f32.partialorder %v9977_v10, 0.0  ;;  %v10349_v14 = vmul.f32 0.01, %v9977_v10  ;;  %vm10286_vm9 = vcmp.gt.f32.partialorder %v10000_v11, 0.0  ;;  %v10350_v16 = vmul.f32 0.01, %v10000_v11 }
 0x5fa   :  { %v10020_v49 = vpop.f32.mrf.mxu2  ;;  %v10043_v50 = vpop.f32.mrf.mxu3  ;;  %17619 = vmatmul.msk.f32.gmra.mxu0 %vm96_vm1, %v20222_v12  ;;  %17622 = vmatmul.msk.f32.gmra.mxu1 %vm96_vm1, %v20222_v12 }
 0x5fb   :  { %v10319_v58 = vmul.f32 0.01, %v10020_v49  ;;  %v10320_v59 = vmul.f32 0.01, %v10043_v50  ;;  %vm10255_vm4 = vcmp.gt.f32.partialorder %v10020_v49, 0.0  ;;  %vm10256_vm5 = vcmp.gt.f32.partialorder %v10043_v50, 0.0 }
 0x5fc   :  { %v10413_v18 = vsel %vm10285_vm8, %v9977_v10, %v10349_v14  ;;  %v10414_v19 = vsel %vm10286_vm9, %v10000_v11, %v10350_v16 }
 0x5fd   :  { %v10383_v62 = vsel %vm10255_vm4, %v10020_v49, %v10319_v58  ;;  %v10384_v54 = vsel %vm10256_vm5, %v10043_v50, %v10320_v59  ;;  %17629 = vmatpush.msk.msrb.mxu0 %vm103_vm0, %v10413_v18  ;;  %17632 = vmatpush.msk.msrb.mxu1 %vm103_vm0, %v10414_v19 }
 0x5ff   :  { %11005 = vmatpush.msrb.mxu0 %v10381_v21  ;;  %11028 = vmatpush.msrb.mxu1 %v10382_v22 }
 0x600   :  { %v10066_v33 = vpop.f32.mrf.mxu0  ;;  %v10089_v34 = vpop.f32.mrf.mxu1 }
 0x601   :  { %17625 = vmatmul.msk.f32.gmra.mxu2 %vm96_vm1, %v20222_v12  ;;  %17628 = vmatmul.msk.f32.gmra.mxu3 %vm96_vm1, %v20222_v12  ;;  %v10321_v39 = vmul.f32 0.01, %v10066_v33  ;;  %v10322_v40 = vmul.f32 0.01, %v10089_v34  ;;  %vm10257_vm14 = vcmp.gt.f32.partialorder %v10066_v33, 0.0  ;;  %vm10258_vm15 = vcmp.gt.f32.partialorder %v10089_v34, 0.0 }
 0x602   :  { %v10023_v60 = vpop.f32.mrf.mxu2  ;;  %v10046_v47 = vpop.f32.mrf.mxu3  ;;  %17630 = vmatmul.msk.f32.vlgmr.msrb.gmra.mxu0 %vm96_vm1, %v20213_v57  ;;  %17633 = vmatmul.msk.f32.vlgmr.msrb.gmra.mxu1 %vm96_vm1, %v20213_v57 }
 0x603   :  { %vm10287_vm2 = vcmp.gt.f32.partialorder %v10023_v60, 0.0  ;;  %v10351_v61 = vmul.f32 0.01, %v10023_v60  ;;  %vm10288_vm3 = vcmp.gt.f32.partialorder %v10046_v47, 0.0  ;;  %v10352_v17 = vmul.f32 0.01, %v10046_v47 }
 0x604   :  { %v10385_v45 = vsel %vm10257_vm14, %v10066_v33, %v10321_v39  ;;  %v10386_v46 = vsel %vm10258_vm15, %v10089_v34, %v10322_v40  ;;  %v20394_v34 = vld [vmem:[%s21286_s1 + $0xb8] sm:$0x1f] }
 0x605   :  { %v10415_v63 = vsel %vm10287_vm2, %v10023_v60, %v10351_v61  ;;  %v10416_v0 = vsel %vm10288_vm3, %v10046_v47, %v10352_v17 }
 0x606   :  { %17635 = vmatpush.msk.msrb.mxu2 %vm103_vm0, %v10415_v63  ;;  %17638 = vmatpush.msk.msrb.mxu3 %vm103_vm0, %v10416_v0 }
 0x608   :  { %11051 = vmatpush.msrb.mxu2 %v10383_v62  ;;  %11074 = vmatpush.msrb.mxu3 %v10384_v54  ;;  %v10069_v41 = vpop.f32.mrf.mxu0  ;;  %v10092_v43 = vpop.f32.mrf.mxu1 }
 0x609   :  { %17636 = vmatmul.msk.f32.vlgmr.msrb.gmra.mxu2 %vm96_vm1, %v20213_v57  ;;  %17639 = vmatmul.msk.f32.vlgmr.msrb.gmra.mxu3 %vm96_vm1, %v20213_v57  ;;  %vm10289_vm2 = vcmp.gt.f32.partialorder %v10069_v41, 0.0  ;;  %v10353_v5 = vmul.f32 0.01, %v10069_v41  ;;  %vm10290_vm3 = vcmp.gt.f32.partialorder %v10092_v43, 0.0  ;;  %v10354_v13 = vmul.f32 0.01, %v10092_v43 }
 0x60a   :  { %v10112_v3 = vpop.f32.mrf.mxu2  ;;  %v10135_v6 = vpop.f32.mrf.mxu3  ;;  %17631 = vmatmul.msk.f32.gmra.mxu0 %vm96_vm1, %v20222_v12  ;;  %17634 = vmatmul.msk.f32.gmra.mxu1 %vm96_vm1, %v20222_v12 }
 0x60b   :  { %v10323_v23 = vmul.f32 0.01, %v10112_v3  ;;  %v10324_v24 = vmul.f32 0.01, %v10135_v6  ;;  %vm10259_vm12 = vcmp.gt.f32.partialorder %v10112_v3, 0.0  ;;  %vm10260_vm13 = vcmp.gt.f32.partialorder %v10135_v6, 0.0 }
 0x60c   :  { %v10417_v44 = vsel %vm10289_vm2, %v10069_v41, %v10353_v5  ;;  %v10418_v8 = vsel %vm10290_vm3, %v10092_v43, %v10354_v13 }
 0x60d   :  { %v10387_v35 = vsel %vm10259_vm12, %v10112_v3, %v10323_v23  ;;  %v10388_v36 = vsel %vm10260_vm13, %v10135_v6, %v10324_v24  ;;  %17641 = vmatpush.msk.msra.mxu0 %vm103_vm0, %v10417_v44  ;;  %17644 = vmatpush.msk.msra.mxu1 %vm103_vm0, %v10418_v8 }
 0x60f   :  { %11097 = vmatpush.msra.mxu0 %v10385_v45  ;;  %11120 = vmatpush.msra.mxu1 %v10386_v46 }
 0x610   :  { %v10158_v55 = vpop.f32.mrf.mxu0  ;;  %v10181_v37 = vpop.f32.mrf.mxu1 }
 0x611   :  { %17637 = vmatmul.msk.f32.gmra.mxu2 %vm96_vm1, %v20222_v12  ;;  %17640 = vmatmul.msk.f32.gmra.mxu3 %vm96_vm1, %v20222_v12  ;;  %v10325_v25 = vmul.f32 0.01, %v10158_v55  ;;  %v10326_v42 = vmul.f32 0.01, %v10181_v37  ;;  %vm10261_vm8 = vcmp.gt.f32.partialorder %v10158_v55, 0.0  ;;  %vm10262_vm9 = vcmp.gt.f32.partialorder %v10181_v37, 0.0 }
 0x612   :  { %v10115_v26 = vpop.f32.mrf.mxu2  ;;  %v10138_v27 = vpop.f32.mrf.mxu3  ;;  %17642 = vmatmul.msk.f32.vlgmr.msra.gmra.mxu0 %vm96_vm1, %v20213_v57  ;;  %17645 = vmatmul.msk.f32.vlgmr.msra.gmra.mxu1 %vm96_vm1, %v20213_v57 }
 0x613   :  { %vm10291_vm10 = vcmp.gt.f32.partialorder %v10115_v26, 0.0  ;;  %v10355_v29 = vmul.f32 0.01, %v10115_v26  ;;  %vm10292_vm11 = vcmp.gt.f32.partialorder %v10138_v27, 0.0  ;;  %v10356_v30 = vmul.f32 0.01, %v10138_v27 }
 0x614   :  { %v10389_v63 = vsel %vm10261_vm8, %v10158_v55, %v10325_v25  ;;  %v10390_v0 = vsel %vm10262_vm9, %v10181_v37, %v10326_v42 }
 0x615   :  { %v10419_v31 = vsel %vm10291_vm10, %v10115_v26, %v10355_v29  ;;  %v10420_v32 = vsel %vm10292_vm11, %v10138_v27, %v10356_v30 }
 0x616   :  { %17647 = vmatpush.msk.msra.mxu2 %vm103_vm0, %v10419_v31  ;;  %17650 = vmatpush.msk.msra.mxu3 %vm103_vm0, %v10420_v32 }
 0x618   :  { %11143 = vmatpush.msra.mxu2 %v10387_v35  ;;  %11166 = vmatpush.msra.mxu3 %v10388_v36  ;;  %v10161_v58 = vpop.f32.mrf.mxu0  ;;  %v10184_v59 = vpop.f32.mrf.mxu1 }
 0x619   :  { %17648 = vmatmul.msk.f32.vlgmr.msra.gmra.mxu2 %vm96_vm1, %v20213_v57  ;;  %17651 = vmatmul.msk.f32.vlgmr.msra.gmra.mxu3 %vm96_vm1, %v20213_v57  ;;  %vm10293_vm10 = vcmp.gt.f32.partialorder %v10161_v58, 0.0  ;;  %v10357_v60 = vmul.f32 0.01, %v10161_v58  ;;  %vm10294_vm11 = vcmp.gt.f32.partialorder %v10184_v59, 0.0  ;;  %v10358_v47 = vmul.f32 0.01, %v10184_v59 }
 0x61a   :  { %v10204_v4 = vpop.f32.mrf.mxu2  ;;  %v10227_v38 = vpop.f32.mrf.mxu3  ;;  %17643 = vmatmul.msk.f32.gmra.mxu0 %vm96_vm1, %v20222_v12  ;;  %17646 = vmatmul.msk.f32.gmra.mxu1 %vm96_vm1, %v20222_v12 }
 0x61b   :  { %v10327_v48 = vmul.f32 0.01, %v10204_v4  ;;  %v10328_v15 = vmul.f32 0.01, %v10227_v38  ;;  %vm10263_vm6 = vcmp.gt.f32.partialorder %v10204_v4, 0.0  ;;  %vm10264_vm7 = vcmp.gt.f32.partialorder %v10227_v38, 0.0 }
 0x61c   :  { %v10421_v61 = vsel %vm10293_vm10, %v10161_v58, %v10357_v60  ;;  %v10422_v17 = vsel %vm10294_vm11, %v10184_v59, %v10358_v47 }
 0x61d   :  { %v10391_v20 = vsel %vm10263_vm6, %v10204_v4, %v10327_v48  ;;  %v10392_v56 = vsel %vm10264_vm7, %v10227_v38, %v10328_v15  ;;  %17653 = vmatpush.msk.msrb.mxu0 %vm103_vm0, %v10421_v61  ;;  %17656 = vmatpush.msk.msrb.mxu1 %vm103_vm0, %v10422_v17 }
 0x61f   :  { %11189 = vmatpush.msrb.mxu0 %v10389_v63  ;;  %11212 = vmatpush.msrb.mxu1 %v10390_v0 }
 0x620   :  { %v10547_v62 = vpop.f32.mrf.mxu0  ;;  %v10570_v54 = vpop.f32.mrf.mxu1 }
 0x621   :  { %17649 = vmatmul.msk.f32.gmra.mxu2 %vm96_vm1, %v20222_v12  ;;  %17652 = vmatmul.msk.f32.gmra.mxu3 %vm96_vm1, %v20222_v12  ;;  %v11330_v19 = vmul.f32 0.01, %v10547_v62  ;;  %v11331_v21 = vmul.f32 0.01, %v10570_v54  ;;  %vm11266_vm2 = vcmp.gt.f32.partialorder %v10547_v62, 0.0  ;;  %vm11267_vm3 = vcmp.gt.f32.partialorder %v10570_v54, 0.0 }
 0x622   :  { %v10207_v49 = vpop.f32.mrf.mxu2  ;;  %v10230_v50 = vpop.f32.mrf.mxu3  ;;  %17654 = vmatmul.msk.f32.vlgmr.msrb.gmra.mxu0 %vm96_vm1, %v20213_v57  ;;  %17657 = vmatmul.msk.f32.vlgmr.msrb.gmra.mxu1 %vm96_vm1, %v20213_v57 }
 0x623   :  { %vm10295_vm4 = vcmp.gt.f32.partialorder %v10207_v49, 0.0  ;;  %v10359_v51 = vmul.f32 0.01, %v10207_v49  ;;  %vm10296_vm5 = vcmp.gt.f32.partialorder %v10230_v50, 0.0  ;;  %v10360_v28 = vmul.f32 0.01, %v10230_v50 }
 0x624   :  { %v11394_v32 = vsel %vm11266_vm2, %v10547_v62, %v11330_v19  ;;  %v11395_v33 = vsel %vm11267_vm3, %v10570_v54, %v11331_v21 }
 0x625   :  { %v10423_v52 = vsel %vm10295_vm4, %v10207_v49, %v10359_v51  ;;  %v10424_v53 = vsel %vm10296_vm5, %v10230_v50, %v10360_v28 }
 0x626   :  { %17659 = vmatpush.msk.msrb.mxu2 %vm103_vm0, %v10423_v52  ;;  %17662 = vmatpush.msk.msrb.mxu3 %vm103_vm0, %v10424_v53 }
 0x628   :  { %11235 = vmatpush.msrb.mxu2 %v10391_v20  ;;  %11258 = vmatpush.msrb.mxu3 %v10392_v56  ;;  %v10550_v22 = vpop.f32.mrf.mxu0  ;;  %v10573_v23 = vpop.f32.mrf.mxu1 }
 0x629   :  { %17660 = vmatmul.msk.f32.vlgmr.msrb.gmra.mxu2 %vm96_vm1, %v20213_v57  ;;  %17663 = vmatmul.msk.f32.vlgmr.msrb.gmra.mxu3 %vm96_vm1, %v20213_v57  ;;  %vm11298_vm4 = vcmp.gt.f32.partialorder %v10550_v22, 0.0  ;;  %v11362_v24 = vmul.f32 0.01, %v10550_v22  ;;  %vm11299_vm5 = vcmp.gt.f32.partialorder %v10573_v23, 0.0  ;;  %v11363_v26 = vmul.f32 0.01, %v10573_v23 }
 0x62a   :  { %17655 = vmatmul.msk.f32.gmra.mxu0 %vm96_vm1, %v20222_v12  ;;  %17658 = vmatmul.msk.f32.gmra.mxu1 %vm96_vm1, %v20222_v12 }
 0x62b   :  { %v11426_v30 = vsel %vm11298_vm4, %v10550_v22, %v11362_v24  ;;  %v11427_v31 = vsel %vm11299_vm5, %v10573_v23, %v11363_v26 }
 0x62c   :  { %17667 = vmatpush.msk.msra.mxu0 %vm103_vm0, %v11426_v30  ;;  %17670 = vmatpush.msk.msra.mxu1 %vm103_vm0, %v11427_v31 }
 0x62e   :  { %11578 = vmatpush.msra.mxu0 %v11394_v32  ;;  %11601 = vmatpush.msra.mxu1 %v11395_v33 }
 0x631   :  { %17661 = vmatmul.msk.f32.gmra.mxu2 %vm96_vm1, %v20222_v12  ;;  %17664 = vmatmul.msk.f32.gmra.mxu3 %vm96_vm1, %v20222_v12  ;;  %v20383_v12 = vld [vmem:[%s21286_s1 + $0xb0] sm:$0xff] }
 0x632   :  { %17668 = vmatmul.msk.f32.vlgmr.msra.gmra.mxu0 %vm96_vm1, %v20383_v12  ;;  %17671 = vmatmul.msk.f32.vlgmr.msra.gmra.mxu1 %vm96_vm1, %v20383_v12 }
 0x63a   :  { %17669 = vmatmul.msk.f32.gmra.mxu0 %vm96_vm1, %v20394_v34  ;;  %17672 = vmatmul.msk.f32.gmra.mxu1 %vm96_vm1, %v20394_v34 }
 0x63c   :  { %v10593_v1 = vpop.f32.mrf.mxu2  ;;  %v10616_v2 = vpop.f32.mrf.mxu3 }
 0x63d   :  { %v11332_v3 = vmul.f32 0.01, %v10593_v1  ;;  %v11333_v6 = vmul.f32 0.01, %v10616_v2  ;;  %vm11268_vm14 = vcmp.gt.f32.partialorder %v10593_v1, 0.0  ;;  %vm11269_vm15 = vcmp.gt.f32.partialorder %v10616_v2, 0.0  ;;  %v10639_v35 = vpop.f32.mrf.mxu0  ;;  %v10662_v36 = vpop.f32.mrf.mxu1 }
 0x63e   :  { %v11334_v45 = vmul.f32 0.01, %v10639_v35  ;;  %v11335_v46 = vmul.f32 0.01, %v10662_v36  ;;  %vm11270_vm10 = vcmp.gt.f32.partialorder %v10639_v35, 0.0  ;;  %vm11271_vm11 = vcmp.gt.f32.partialorder %v10662_v36, 0.0 }
 0x63f   :  { %v11396_v16 = vsel %vm11268_vm14, %v10593_v1, %v11332_v3  ;;  %v11397_v18 = vsel %vm11269_vm15, %v10616_v2, %v11333_v6 }
 0x640   :  { %v11398_v55 = vsel %vm11270_vm10, %v10639_v35, %v11334_v45  ;;  %v11399_v37 = vsel %vm11271_vm11, %v10662_v36, %v11335_v46 }
 0x644   :  { %v10596_v7 = vpop.f32.mrf.mxu2  ;;  %v10619_v9 = vpop.f32.mrf.mxu3 }
 0x645   :  { %vm11300_vm12 = vcmp.gt.f32.partialorder %v10596_v7, 0.0  ;;  %v11364_v10 = vmul.f32 0.01, %v10596_v7  ;;  %vm11301_vm13 = vcmp.gt.f32.partialorder %v10619_v9, 0.0  ;;  %v11365_v11 = vmul.f32 0.01, %v10619_v9 }
 0x647   :  { %v11428_v57 = vsel %vm11300_vm12, %v10596_v7, %v11364_v10  ;;  %v11429_v14 = vsel %vm11301_vm13, %v10619_v9, %v11365_v11  ;;  %v10642_v48 = vpop.f32.mrf.mxu0  ;;  %v10665_v15 = vpop.f32.mrf.mxu1 }
 0x648   :  { %17673 = vmatpush.msk.msra.mxu2 %vm103_vm0, %v11428_v57  ;;  %17676 = vmatpush.msk.msra.mxu3 %vm103_vm0, %v11429_v14  ;;  %vm11302_vm12 = vcmp.gt.f32.partialorder %v10642_v48, 0.0  ;;  %v11366_v49 = vmul.f32 0.01, %v10642_v48  ;;  %vm11303_vm13 = vcmp.gt.f32.partialorder %v10665_v15, 0.0  ;;  %v11367_v50 = vmul.f32 0.01, %v10665_v15 }
 0x64a   :  { %11624 = vmatpush.msra.mxu2 %v11396_v16  ;;  %11647 = vmatpush.msra.mxu3 %v11397_v18  ;;  %v11430_v52 = vsel %vm11302_vm12, %v10642_v48, %v11366_v49  ;;  %v11431_v53 = vsel %vm11303_vm13, %v10665_v15, %v11367_v50 }
 0x64b   :  { %17674 = vmatmul.msk.f32.vlgmr.msra.gmra.mxu2 %vm96_vm1, %v20383_v12  ;;  %17677 = vmatmul.msk.f32.vlgmr.msra.gmra.mxu3 %vm96_vm1, %v20383_v12 }
 0x64c   :  { %v10685_v27 = vpop.f32.mrf.mxu2  ;;  %v10708_v29 = vpop.f32.mrf.mxu3  ;;  %17679 = vmatpush.msk.msrb.mxu0 %vm103_vm0, %v11430_v52  ;;  %17682 = vmatpush.msk.msrb.mxu1 %vm103_vm0, %v11431_v53 }
 0x64d   :  { %v11336_v4 = vmul.f32 0.01, %v10685_v27  ;;  %v11337_v38 = vmul.f32 0.01, %v10708_v29  ;;  %vm11272_vm8 = vcmp.gt.f32.partialorder %v10685_v27, 0.0  ;;  %vm11273_vm9 = vcmp.gt.f32.partialorder %v10708_v29, 0.0 }
 0x64e   :  { %11670 = vmatpush.msrb.mxu0 %v11398_v55  ;;  %11693 = vmatpush.msrb.mxu1 %v11399_v37 }
 0x64f   :  { %v11400_v44 = vsel %vm11272_vm8, %v10685_v27, %v11336_v4  ;;  %v11401_v8 = vsel %vm11273_vm9, %v10708_v29, %v11337_v38  ;;  %17680 = vmatmul.msk.f32.vlgmr.msrb.gmra.mxu0 %vm96_vm1, %v20383_v12  ;;  %17683 = vmatmul.msk.f32.vlgmr.msrb.gmra.mxu1 %vm96_vm1, %v20383_v12  ;;  %v10731_v20 = vpop.f32.mrf.mxu0  ;;  %v10754_v56 = vpop.f32.mrf.mxu1 }
 0x650   :  { %v11338_v1 = vmul.f32 0.01, %v10731_v20  ;;  %v11339_v2 = vmul.f32 0.01, %v10754_v56  ;;  %vm11274_vm4 = vcmp.gt.f32.partialorder %v10731_v20, 0.0  ;;  %vm11275_vm5 = vcmp.gt.f32.partialorder %v10754_v56, 0.0 }
 0x652   :  { %v11402_v57 = vsel %vm11274_vm4, %v10731_v20, %v11338_v1  ;;  %v11403_v14 = vsel %vm11275_vm5, %v10754_v56, %v11339_v2 }
 0x653   :  { %17675 = vmatmul.msk.f32.gmra.mxu2 %vm96_vm1, %v20394_v34  ;;  %17678 = vmatmul.msk.f32.gmra.mxu3 %vm96_vm1, %v20394_v34 }
 0x654   :  { %v10688_v39 = vpop.f32.mrf.mxu2  ;;  %v10711_v40 = vpop.f32.mrf.mxu3 }
 0x655   :  { %vm11304_vm6 = vcmp.gt.f32.partialorder %v10688_v39, 0.0  ;;  %v11368_v41 = vmul.f32 0.01, %v10688_v39  ;;  %vm11305_vm7 = vcmp.gt.f32.partialorder %v10711_v40, 0.0  ;;  %v11369_v43 = vmul.f32 0.01, %v10711_v40 }
 0x657   :  { %v11432_v5 = vsel %vm11304_vm6, %v10688_v39, %v11368_v41  ;;  %v11433_v13 = vsel %vm11305_vm7, %v10711_v40, %v11369_v43  ;;  %17681 = vmatmul.msk.f32.gmra.mxu0 %vm96_vm1, %v20394_v34  ;;  %17684 = vmatmul.msk.f32.gmra.mxu1 %vm96_vm1, %v20394_v34  ;;  %v10734_v62 = vpop.f32.mrf.mxu0  ;;  %v10757_v54 = vpop.f32.mrf.mxu1 }
 0x658   :  { %17685 = vmatpush.msk.msrb.mxu2 %vm103_vm0, %v11432_v5  ;;  %17688 = vmatpush.msk.msrb.mxu3 %vm103_vm0, %v11433_v13  ;;  %vm11306_vm6 = vcmp.gt.f32.partialorder %v10734_v62, 0.0  ;;  %v11370_v3 = vmul.f32 0.01, %v10734_v62  ;;  %vm11307_vm7 = vcmp.gt.f32.partialorder %v10757_v54, 0.0  ;;  %v11371_v6 = vmul.f32 0.01, %v10757_v54 }
 0x65a   :  { %11716 = vmatpush.msrb.mxu2 %v11400_v44  ;;  %11739 = vmatpush.msrb.mxu3 %v11401_v8  ;;  %v11434_v10 = vsel %vm11306_vm6, %v10734_v62, %v11370_v3  ;;  %v11435_v11 = vsel %vm11307_vm7, %v10757_v54, %v11371_v6 }
 0x65b   :  { %17686 = vmatmul.msk.f32.vlgmr.msrb.gmra.mxu2 %vm96_vm1, %v20383_v12  ;;  %17689 = vmatmul.msk.f32.vlgmr.msrb.gmra.mxu3 %vm96_vm1, %v20383_v12 }
 0x65c   :  { %v10777_v51 = vpop.f32.mrf.mxu2  ;;  %v10800_v28 = vpop.f32.mrf.mxu3  ;;  %17691 = vmatpush.msk.msra.mxu0 %vm103_vm0, %v11434_v10  ;;  %17694 = vmatpush.msk.msra.mxu1 %vm103_vm0, %v11435_v11 }
 0x65d   :  { %v11340_v25 = vmul.f32 0.01, %v10777_v51  ;;  %v11341_v42 = vmul.f32 0.01, %v10800_v28  ;;  %vm11276_vm2 = vcmp.gt.f32.partialorder %v10777_v51, 0.0  ;;  %vm11277_vm3 = vcmp.gt.f32.partialorder %v10800_v28, 0.0 }
 0x65e   :  { %11762 = vmatpush.msra.mxu0 %v11402_v57  ;;  %11785 = vmatpush.msra.mxu1 %v11403_v14 }
 0x65f   :  { %v11404_v63 = vsel %vm11276_vm2, %v10777_v51, %v11340_v25  ;;  %v11405_v0 = vsel %vm11277_vm3, %v10800_v28, %v11341_v42  ;;  %17692 = vmatmul.msk.f32.vlgmr.msra.gmra.mxu0 %vm96_vm1, %v20383_v12  ;;  %17695 = vmatmul.msk.f32.vlgmr.msra.gmra.mxu1 %vm96_vm1, %v20383_v12  ;;  %v10823_v16 = vpop.f32.mrf.mxu0  ;;  %v10846_v18 = vpop.f32.mrf.mxu1 }
 0x660   :  { %v11342_v32 = vmul.f32 0.01, %v10823_v16  ;;  %v11343_v33 = vmul.f32 0.01, %v10846_v18  ;;  %vm11278_vm12 = vcmp.gt.f32.partialorder %v10823_v16, 0.0  ;;  %vm11279_vm13 = vcmp.gt.f32.partialorder %v10846_v18, 0.0 }
 0x662   :  { %v11406_v5 = vsel %vm11278_vm12, %v10823_v16, %v11342_v32  ;;  %v11407_v13 = vsel %vm11279_vm13, %v10846_v18, %v11343_v33 }
 0x663   :  { %17687 = vmatmul.msk.f32.gmra.mxu2 %vm96_vm1, %v20394_v34  ;;  %17690 = vmatmul.msk.f32.gmra.mxu3 %vm96_vm1, %v20394_v34 }
 0x664   :  { %v10780_v58 = vpop.f32.mrf.mxu2  ;;  %v10803_v59 = vpop.f32.mrf.mxu3 }
 0x665   :  { %vm11308_vm14 = vcmp.gt.f32.partialorder %v10780_v58, 0.0  ;;  %v11372_v60 = vmul.f32 0.01, %v10780_v58  ;;  %vm11309_vm15 = vcmp.gt.f32.partialorder %v10803_v59, 0.0  ;;  %v11373_v47 = vmul.f32 0.01, %v10803_v59 }
 0x667   :  { %v11436_v61 = vsel %vm11308_vm14, %v10780_v58, %v11372_v60  ;;  %v11437_v17 = vsel %vm11309_vm15, %v10803_v59, %v11373_v47  ;;  %17693 = vmatmul.msk.f32.gmra.mxu0 %vm96_vm1, %v20394_v34  ;;  %17696 = vmatmul.msk.f32.gmra.mxu1 %vm96_vm1, %v20394_v34  ;;  %v10826_v35 = vpop.f32.mrf.mxu0  ;;  %v10849_v36 = vpop.f32.mrf.mxu1 }
 0x668   :  { %17697 = vmatpush.msk.msra.mxu2 %vm103_vm0, %v11436_v61  ;;  %17700 = vmatpush.msk.msra.mxu3 %vm103_vm0, %v11437_v17  ;;  %vm11310_vm14 = vcmp.gt.f32.partialorder %v10826_v35, 0.0  ;;  %v11374_v4 = vmul.f32 0.01, %v10826_v35  ;;  %vm11311_vm15 = vcmp.gt.f32.partialorder %v10849_v36, 0.0  ;;  %v11375_v38 = vmul.f32 0.01, %v10849_v36 }
 0x66a   :  { %11808 = vmatpush.msra.mxu2 %v11404_v63  ;;  %11831 = vmatpush.msra.mxu3 %v11405_v0  ;;  %v11438_v41 = vsel %vm11310_vm14, %v10826_v35, %v11374_v4  ;;  %v11439_v43 = vsel %vm11311_vm15, %v10849_v36, %v11375_v38 }
 0x66b   :  { %17698 = vmatmul.msk.f32.vlgmr.msra.gmra.mxu2 %vm96_vm1, %v20383_v12  ;;  %17701 = vmatmul.msk.f32.vlgmr.msra.gmra.mxu3 %vm96_vm1, %v20383_v12 }
 0x66c   :  { %v10869_v7 = vpop.f32.mrf.mxu2  ;;  %v10892_v9 = vpop.f32.mrf.mxu3  ;;  %17703 = vmatpush.msk.msrb.mxu0 %vm103_vm0, %v11438_v41  ;;  %17706 = vmatpush.msk.msrb.mxu1 %vm103_vm0, %v11439_v43 }
 0x66d   :  { %v11344_v19 = vmul.f32 0.01, %v10869_v7  ;;  %v11345_v21 = vmul.f32 0.01, %v10892_v9  ;;  %vm11280_vm10 = vcmp.gt.f32.partialorder %v10869_v7, 0.0  ;;  %vm11281_vm11 = vcmp.gt.f32.partialorder %v10892_v9, 0.0 }
 0x66e   :  { %11854 = vmatpush.msrb.mxu0 %v11406_v5  ;;  %11877 = vmatpush.msrb.mxu1 %v11407_v13 }
 0x66f   :  { %v11408_v30 = vsel %vm11280_vm10, %v10869_v7, %v11344_v19  ;;  %v11409_v31 = vsel %vm11281_vm11, %v10892_v9, %v11345_v21  ;;  %17704 = vmatmul.msk.f32.vlgmr.msrb.gmra.mxu0 %vm96_vm1, %v20383_v12  ;;  %17707 = vmatmul.msk.f32.vlgmr.msrb.gmra.mxu1 %vm96_vm1, %v20383_v12  ;;  %v10915_v44 = vpop.f32.mrf.mxu0  ;;  %v10938_v8 = vpop.f32.mrf.mxu1 }
 0x670   :  { %v11346_v55 = vmul.f32 0.01, %v10915_v44  ;;  %v11347_v37 = vmul.f32 0.01, %v10938_v8  ;;  %vm11282_vm6 = vcmp.gt.f32.partialorder %v10915_v44, 0.0  ;;  %vm11283_vm7 = vcmp.gt.f32.partialorder %v10938_v8, 0.0 }
 0x672   :  { %v11410_v61 = vsel %vm11282_vm6, %v10915_v44, %v11346_v55  ;;  %v11411_v17 = vsel %vm11283_vm7, %v10938_v8, %v11347_v37 }
 0x673   :  { %17699 = vmatmul.msk.f32.gmra.mxu2 %vm96_vm1, %v20394_v34  ;;  %17702 = vmatmul.msk.f32.gmra.mxu3 %vm96_vm1, %v20394_v34 }
 0x674   :  { %v10872_v22 = vpop.f32.mrf.mxu2  ;;  %v10895_v23 = vpop.f32.mrf.mxu3 }
 0x675   :  { %vm11312_vm8 = vcmp.gt.f32.partialorder %v10872_v22, 0.0  ;;  %v11376_v24 = vmul.f32 0.01, %v10872_v22  ;;  %vm11313_vm9 = vcmp.gt.f32.partialorder %v10895_v23, 0.0  ;;  %v11377_v26 = vmul.f32 0.01, %v10895_v23 }
 0x677   :  { %v11440_v27 = vsel %vm11312_vm8, %v10872_v22, %v11376_v24  ;;  %v11441_v29 = vsel %vm11313_vm9, %v10895_v23, %v11377_v26  ;;  %17705 = vmatmul.msk.f32.gmra.mxu0 %vm96_vm1, %v20394_v34  ;;  %17708 = vmatmul.msk.f32.gmra.mxu1 %vm96_vm1, %v20394_v34  ;;  %v10918_v20 = vpop.f32.mrf.mxu0  ;;  %v10941_v56 = vpop.f32.mrf.mxu1 }
 0x678   :  { %17709 = vmatpush.msk.msrb.mxu2 %vm103_vm0, %v11440_v27  ;;  %17712 = vmatpush.msk.msrb.mxu3 %vm103_vm0, %v11441_v29  ;;  %vm11314_vm8 = vcmp.gt.f32.partialorder %v10918_v20, 0.0  ;;  %v11378_v25 = vmul.f32 0.01, %v10918_v20  ;;  %vm11315_vm9 = vcmp.gt.f32.partialorder %v10941_v56, 0.0  ;;  %v11379_v42 = vmul.f32 0.01, %v10941_v56 }
 0x67a   :  { %11900 = vmatpush.msrb.mxu2 %v11408_v30  ;;  %11923 = vmatpush.msrb.mxu3 %v11409_v31  ;;  %v11442_v60 = vsel %vm11314_vm8, %v10918_v20, %v11378_v25  ;;  %v11443_v47 = vsel %vm11315_vm9, %v10941_v56, %v11379_v42 }
 0x67b   :  { %17710 = vmatmul.msk.f32.vlgmr.msrb.gmra.mxu2 %vm96_vm1, %v20383_v12  ;;  %17713 = vmatmul.msk.f32.vlgmr.msrb.gmra.mxu3 %vm96_vm1, %v20383_v12 }
 0x67c   :  { %v10961_v39 = vpop.f32.mrf.mxu2  ;;  %v10984_v40 = vpop.f32.mrf.mxu3  ;;  %17715 = vmatpush.msk.msra.mxu0 %vm103_vm0, %v11442_v60  ;;  %17718 = vmatpush.msk.msra.mxu1 %vm103_vm0, %v11443_v47 }
 0x67d   :  { %v11348_v45 = vmul.f32 0.01, %v10961_v39  ;;  %v11349_v46 = vmul.f32 0.01, %v10984_v40  ;;  %vm11284_vm4 = vcmp.gt.f32.partialorder %v10961_v39, 0.0  ;;  %vm11285_vm5 = vcmp.gt.f32.partialorder %v10984_v40, 0.0 }
 0x67e   :  { %11946 = vmatpush.msra.mxu0 %v11410_v61  ;;  %11969 = vmatpush.msra.mxu1 %v11411_v17 }
 0x67f   :  { %v11412_v52 = vsel %vm11284_vm4, %v10961_v39, %v11348_v45  ;;  %v11413_v53 = vsel %vm11285_vm5, %v10984_v40, %v11349_v46  ;;  %17716 = vmatmul.msk.f32.vlgmr.msra.gmra.mxu0 %vm96_vm1, %v20383_v12  ;;  %17719 = vmatmul.msk.f32.vlgmr.msra.gmra.mxu1 %vm96_vm1, %v20383_v12  ;;  %v11007_v63 = vpop.f32.mrf.mxu0  ;;  %v11030_v0 = vpop.f32.mrf.mxu1 }
 0x680   :  { %v11350_v57 = vmul.f32 0.01, %v11007_v63  ;;  %v11351_v14 = vmul.f32 0.01, %v11030_v0  ;;  %vm11286_vm14 = vcmp.gt.f32.partialorder %v11007_v63, 0.0  ;;  %vm11287_vm15 = vcmp.gt.f32.partialorder %v11030_v0, 0.0 }
 0x682   :  { %v11414_v27 = vsel %vm11286_vm14, %v11007_v63, %v11350_v57  ;;  %v11415_v29 = vsel %vm11287_vm15, %v11030_v0, %v11351_v14 }
 0x683   :  { %17711 = vmatmul.msk.f32.gmra.mxu2 %vm96_vm1, %v20394_v34  ;;  %17714 = vmatmul.msk.f32.gmra.mxu3 %vm96_vm1, %v20394_v34 }
 0x684   :  { %v10964_v48 = vpop.f32.mrf.mxu2  ;;  %v10987_v15 = vpop.f32.mrf.mxu3 }
 0x685   :  { %vm11316_vm2 = vcmp.gt.f32.partialorder %v10964_v48, 0.0  ;;  %v11380_v49 = vmul.f32 0.01, %v10964_v48  ;;  %vm11317_vm3 = vcmp.gt.f32.partialorder %v10987_v15, 0.0  ;;  %v11381_v50 = vmul.f32 0.01, %v10987_v15 }
 0x687   :  { %v11444_v51 = vsel %vm11316_vm2, %v10964_v48, %v11380_v49  ;;  %v11445_v28 = vsel %vm11317_vm3, %v10987_v15, %v11381_v50  ;;  %17717 = vmatmul.msk.f32.gmra.mxu0 %vm96_vm1, %v20394_v34  ;;  %17720 = vmatmul.msk.f32.gmra.mxu1 %vm96_vm1, %v20394_v34  ;;  %v11010_v16 = vpop.f32.mrf.mxu0  ;;  %v11033_v18 = vpop.f32.mrf.mxu1 }
 0x688   :  { %17721 = vmatpush.msk.msra.mxu2 %vm103_vm0, %v11444_v51  ;;  %17724 = vmatpush.msk.msra.mxu3 %vm103_vm0, %v11445_v28  ;;  %vm11318_vm2 = vcmp.gt.f32.partialorder %v11010_v16, 0.0  ;;  %v11382_v19 = vmul.f32 0.01, %v11010_v16  ;;  %vm11319_vm3 = vcmp.gt.f32.partialorder %v11033_v18, 0.0  ;;  %v11383_v21 = vmul.f32 0.01, %v11033_v18 }
 0x68a   :  { %11992 = vmatpush.msra.mxu2 %v11412_v52  ;;  %12015 = vmatpush.msra.mxu3 %v11413_v53  ;;  %v11446_v24 = vsel %vm11318_vm2, %v11010_v16, %v11382_v19  ;;  %v11447_v26 = vsel %vm11319_vm3, %v11033_v18, %v11383_v21 }
 0x68b   :  { %17722 = vmatmul.msk.f32.vlgmr.msra.gmra.mxu2 %vm96_vm1, %v20383_v12  ;;  %17725 = vmatmul.msk.f32.vlgmr.msra.gmra.mxu3 %vm96_vm1, %v20383_v12 }
 0x68c   :  { %v11053_v58 = vpop.f32.mrf.mxu2  ;;  %v11076_v59 = vpop.f32.mrf.mxu3  ;;  %17727 = vmatpush.msk.msrb.mxu0 %vm103_vm0, %v11446_v24  ;;  %17730 = vmatpush.msk.msrb.mxu1 %vm103_vm0, %v11447_v26 }
 0x68d   :  { %v11352_v1 = vmul.f32 0.01, %v11053_v58  ;;  %v11353_v2 = vmul.f32 0.01, %v11076_v59  ;;  %vm11288_vm12 = vcmp.gt.f32.partialorder %v11053_v58, 0.0  ;;  %vm11289_vm13 = vcmp.gt.f32.partialorder %v11076_v59, 0.0 }
 0x68e   :  { %12038 = vmatpush.msrb.mxu0 %v11414_v27  ;;  %12061 = vmatpush.msrb.mxu1 %v11415_v29 }
 0x68f   :  { %v11416_v10 = vsel %vm11288_vm12, %v11053_v58, %v11352_v1  ;;  %v11417_v11 = vsel %vm11289_vm13, %v11076_v59, %v11353_v2  ;;  %17728 = vmatmul.msk.f32.vlgmr.msrb.gmra.mxu0 %vm96_vm1, %v20383_v12  ;;  %17731 = vmatmul.msk.f32.vlgmr.msrb.gmra.mxu1 %vm96_vm1, %v20383_v12  ;;  %v11099_v30 = vpop.f32.mrf.mxu0  ;;  %v11122_v31 = vpop.f32.mrf.mxu1 }
 0x690   :  { %v11354_v5 = vmul.f32 0.01, %v11099_v30  ;;  %v11355_v13 = vmul.f32 0.01, %v11122_v31  ;;  %vm11290_vm8 = vcmp.gt.f32.partialorder %v11099_v30, 0.0  ;;  %vm11291_vm9 = vcmp.gt.f32.partialorder %v11122_v31, 0.0 }
 0x692   :  { %v11418_v51 = vsel %vm11290_vm8, %v11099_v30, %v11354_v5  ;;  %v11419_v28 = vsel %vm11291_vm9, %v11122_v31, %v11355_v13  ;;  %v20554_v31 = vld [vmem:[%s21286_s1 + $0xc0] sm:$0xff] }
 0x693   :  { %17723 = vmatmul.msk.f32.gmra.mxu2 %vm96_vm1, %v20394_v34  ;;  %17726 = vmatmul.msk.f32.gmra.mxu3 %vm96_vm1, %v20394_v34 }
 0x694   :  { %v11056_v62 = vpop.f32.mrf.mxu2  ;;  %v11079_v54 = vpop.f32.mrf.mxu3 }
 0x695   :  { %vm11320_vm10 = vcmp.gt.f32.partialorder %v11056_v62, 0.0  ;;  %v11384_v3 = vmul.f32 0.01, %v11056_v62  ;;  %vm11321_vm11 = vcmp.gt.f32.partialorder %v11079_v54, 0.0  ;;  %v11385_v6 = vmul.f32 0.01, %v11079_v54 }
 0x697   :  { %v11448_v7 = vsel %vm11320_vm10, %v11056_v62, %v11384_v3  ;;  %v11449_v9 = vsel %vm11321_vm11, %v11079_v54, %v11385_v6  ;;  %17729 = vmatmul.msk.f32.gmra.mxu0 %vm96_vm1, %v20394_v34  ;;  %17732 = vmatmul.msk.f32.gmra.mxu1 %vm96_vm1, %v20394_v34  ;;  %v11102_v44 = vpop.f32.mrf.mxu0  ;;  %v11125_v8 = vpop.f32.mrf.mxu1 }
 0x698   :  { %17733 = vmatpush.msk.msrb.mxu2 %vm103_vm0, %v11448_v7  ;;  %17736 = vmatpush.msk.msrb.mxu3 %vm103_vm0, %v11449_v9  ;;  %vm11322_vm10 = vcmp.gt.f32.partialorder %v11102_v44, 0.0  ;;  %v11386_v45 = vmul.f32 0.01, %v11102_v44  ;;  %vm11323_vm11 = vcmp.gt.f32.partialorder %v11125_v8, 0.0  ;;  %v11387_v46 = vmul.f32 0.01, %v11125_v8 }
 0x69a   :  { %12084 = vmatpush.msrb.mxu2 %v11416_v10  ;;  %12107 = vmatpush.msrb.mxu3 %v11417_v11  ;;  %v11450_v49 = vsel %vm11322_vm10, %v11102_v44, %v11386_v45  ;;  %v11451_v50 = vsel %vm11323_vm11, %v11125_v8, %v11387_v46 }
 0x69b   :  { %17734 = vmatmul.msk.f32.vlgmr.msrb.gmra.mxu2 %vm96_vm1, %v20383_v12  ;;  %17737 = vmatmul.msk.f32.vlgmr.msrb.gmra.mxu3 %vm96_vm1, %v20383_v12 }
 0x69c   :  { %v11145_v22 = vpop.f32.mrf.mxu2  ;;  %v11168_v23 = vpop.f32.mrf.mxu3  ;;  %17739 = vmatpush.msk.msra.mxu0 %vm103_vm0, %v11450_v49  ;;  %17742 = vmatpush.msk.msra.mxu1 %vm103_vm0, %v11451_v50 }
 0x69d   :  { %v11356_v32 = vmul.f32 0.01, %v11145_v22  ;;  %v11357_v33 = vmul.f32 0.01, %v11168_v23  ;;  %vm11292_vm6 = vcmp.gt.f32.partialorder %v11145_v22, 0.0  ;;  %vm11293_vm7 = vcmp.gt.f32.partialorder %v11168_v23, 0.0 }
 0x69e   :  { %12130 = vmatpush.msra.mxu0 %v11418_v51  ;;  %12153 = vmatpush.msra.mxu1 %v11419_v28 }
 0x69f   :  { %v11420_v41 = vsel %vm11292_vm6, %v11145_v22, %v11356_v32  ;;  %v11421_v43 = vsel %vm11293_vm7, %v11168_v23, %v11357_v33  ;;  %17740 = vmatmul.msk.f32.vlgmr.msra.gmra.mxu0 %vm96_vm1, %v20383_v12  ;;  %17743 = vmatmul.msk.f32.vlgmr.msra.gmra.mxu1 %vm96_vm1, %v20383_v12  ;;  %v11191_v52 = vpop.f32.mrf.mxu0  ;;  %v11214_v53 = vpop.f32.mrf.mxu1 }
 0x6a0   :  { %v11358_v61 = vmul.f32 0.01, %v11191_v52  ;;  %v11359_v17 = vmul.f32 0.01, %v11214_v53  ;;  %vm11294_vm2 = vcmp.gt.f32.partialorder %v11191_v52, 0.0  ;;  %vm11295_vm3 = vcmp.gt.f32.partialorder %v11214_v53, 0.0 }
 0x6a2   :  { %v11422_v3 = vsel %vm11294_vm2, %v11191_v52, %v11358_v61  ;;  %v11423_v6 = vsel %vm11295_vm3, %v11214_v53, %v11359_v17 }
 0x6a3   :  { %17735 = vmatmul.msk.f32.gmra.mxu2 %vm96_vm1, %v20394_v34  ;;  %17738 = vmatmul.msk.f32.gmra.mxu3 %vm96_vm1, %v20394_v34 }
 0x6a4   :  { %v11148_v35 = vpop.f32.mrf.mxu2  ;;  %v11171_v36 = vpop.f32.mrf.mxu3 }
 0x6a5   :  { %vm11324_vm4 = vcmp.gt.f32.partialorder %v11148_v35, 0.0  ;;  %v11388_v4 = vmul.f32 0.01, %v11148_v35  ;;  %vm11325_vm5 = vcmp.gt.f32.partialorder %v11171_v36, 0.0  ;;  %v11389_v38 = vmul.f32 0.01, %v11171_v36 }
 0x6a7   :  { %v11452_v39 = vsel %vm11324_vm4, %v11148_v35, %v11388_v4  ;;  %v11453_v40 = vsel %vm11325_vm5, %v11171_v36, %v11389_v38  ;;  %17741 = vmatmul.msk.f32.gmra.mxu0 %vm96_vm1, %v20394_v34  ;;  %17744 = vmatmul.msk.f32.gmra.mxu1 %vm96_vm1, %v20394_v34  ;;  %v11194_v63 = vpop.f32.mrf.mxu0  ;;  %v11217_v0 = vpop.f32.mrf.mxu1 }
 0x6a8   :  { %17745 = vmatpush.msk.msra.mxu2 %vm103_vm0, %v11452_v39  ;;  %17748 = vmatpush.msk.msra.mxu3 %vm103_vm0, %v11453_v40  ;;  %vm11326_vm4 = vcmp.gt.f32.partialorder %v11194_v63, 0.0  ;;  %v11390_v1 = vmul.f32 0.01, %v11194_v63  ;;  %vm11327_vm5 = vcmp.gt.f32.partialorder %v11217_v0, 0.0  ;;  %v11391_v2 = vmul.f32 0.01, %v11217_v0 }
 0x6aa   :  { %12176 = vmatpush.msra.mxu2 %v11420_v41  ;;  %12199 = vmatpush.msra.mxu3 %v11421_v43  ;;  %v11454_v62 = vsel %vm11326_vm4, %v11194_v63, %v11390_v1  ;;  %v11455_v54 = vsel %vm11327_vm5, %v11217_v0, %v11391_v2  ;;  %v20572_v43 = vld [vmem:[%s21286_s1 + $0xc8] sm:$0x1f] }
 0x6ab   :  { %17746 = vmatmul.msk.f32.vlgmr.msra.gmra.mxu2 %vm96_vm1, %v20383_v12  ;;  %17749 = vmatmul.msk.f32.vlgmr.msra.gmra.mxu3 %vm96_vm1, %v20383_v12 }
 0x6ac   :  { %v11237_v48 = vpop.f32.mrf.mxu2  ;;  %v11260_v15 = vpop.f32.mrf.mxu3  ;;  %17751 = vmatpush.msk.msrb.mxu0 %vm103_vm0, %v11454_v62  ;;  %17754 = vmatpush.msk.msrb.mxu1 %vm103_vm0, %v11455_v54 }
 0x6ad   :  { %v11360_v55 = vmul.f32 0.01, %v11237_v48  ;;  %v11361_v37 = vmul.f32 0.01, %v11260_v15  ;;  %vm11296_vm14 = vcmp.gt.f32.partialorder %v11237_v48, 0.0  ;;  %vm11297_vm15 = vcmp.gt.f32.partialorder %v11260_v15, 0.0 }
 0x6ae   :  { %12222 = vmatpush.msrb.mxu0 %v11422_v3  ;;  %12245 = vmatpush.msrb.mxu1 %v11423_v6 }
 0x6af   :  { %v11424_v60 = vsel %vm11296_vm14, %v11237_v48, %v11360_v55  ;;  %v11425_v47 = vsel %vm11297_vm15, %v11260_v15, %v11361_v37  ;;  %17752 = vmatmul.msk.f32.vlgmr.msrb.gmra.mxu0 %vm96_vm1, %v20383_v12  ;;  %17755 = vmatmul.msk.f32.vlgmr.msrb.gmra.mxu1 %vm96_vm1, %v20383_v12  ;;  %v11580_v10 = vpop.f32.mrf.mxu0  ;;  %v11603_v11 = vpop.f32.mrf.mxu1 }
 0x6b0   :  { %v12363_v18 = vmul.f32 0.01, %v11580_v10  ;;  %v12364_v19 = vmul.f32 0.01, %v11603_v11  ;;  %vm12299_vm8 = vcmp.gt.f32.partialorder %v11580_v10, 0.0  ;;  %vm12300_vm9 = vcmp.gt.f32.partialorder %v11603_v11, 0.0 }
 0x6b2   :  { %v12427_v36 = vsel %vm12299_vm8, %v11580_v10, %v12363_v18  ;;  %v12428_v4 = vsel %vm12300_vm9, %v11603_v11, %v12364_v19 }
 0x6b3   :  { %17747 = vmatmul.msk.f32.gmra.mxu2 %vm96_vm1, %v20394_v34  ;;  %17750 = vmatmul.msk.f32.gmra.mxu3 %vm96_vm1, %v20394_v34 }
 0x6b4   :  { %v11240_v20 = vpop.f32.mrf.mxu2  ;;  %v11263_v56 = vpop.f32.mrf.mxu3 }
 0x6b5   :  { %vm11328_vm12 = vcmp.gt.f32.partialorder %v11240_v20, 0.0  ;;  %v11392_v25 = vmul.f32 0.01, %v11240_v20  ;;  %vm11329_vm13 = vcmp.gt.f32.partialorder %v11263_v56, 0.0  ;;  %v11393_v42 = vmul.f32 0.01, %v11263_v56 }
 0x6b7   :  { %v11456_v58 = vsel %vm11328_vm12, %v11240_v20, %v11392_v25  ;;  %v11457_v59 = vsel %vm11329_vm13, %v11263_v56, %v11393_v42  ;;  %17753 = vmatmul.msk.f32.gmra.mxu0 %vm96_vm1, %v20394_v34  ;;  %17756 = vmatmul.msk.f32.gmra.mxu1 %vm96_vm1, %v20394_v34  ;;  %v11583_v23 = vpop.f32.mrf.mxu0 }
 0x6b8   :  { %17757 = vmatpush.msk.msrb.mxu2 %vm103_vm0, %v11456_v58  ;;  %17760 = vmatpush.msk.msrb.mxu3 %vm103_vm0, %v11457_v59  ;;  %vm12331_vm12 = vcmp.gt.f32.partialorder %v11583_v23, 0.0  ;;  %v12395_v24 = vmul.f32 0.01, %v11583_v23 }
 0x6ba   :  { %12268 = vmatpush.msrb.mxu2 %v11424_v60  ;;  %12291 = vmatpush.msrb.mxu3 %v11425_v47  ;;  %v12459_v32 = vsel %vm12331_vm12, %v11583_v23, %v12395_v24 }
 0x6bb   :  { %17758 = vmatmul.msk.f32.vlgmr.msrb.gmra.mxu2 %vm96_vm1, %v20383_v12  ;;  %17761 = vmatmul.msk.f32.vlgmr.msrb.gmra.mxu3 %vm96_vm1, %v20383_v12 }
 0x6bc   :  { %17765 = vmatpush.msk.msra.mxu0 %vm103_vm0, %v12459_v32 }
 0x6be   :  { %12611 = vmatpush.msra.mxu0 %v12427_v36 }
 0x6bf   :  { %17766 = vmatmul.msk.f32.vlgmr.msra.gmra.mxu0 %vm96_vm1, %v20554_v31 }
 0x6c3   :  { %17759 = vmatmul.msk.f32.gmra.mxu2 %vm96_vm1, %v20394_v34  ;;  %17762 = vmatmul.msk.f32.gmra.mxu3 %vm96_vm1, %v20394_v34  ;;  %v11606_v34 = vpop.f32.mrf.mxu1 }
 0x6c4   :  { %vm12332_vm13 = vcmp.gt.f32.partialorder %v11606_v34, 0.0  ;;  %v12396_v26 = vmul.f32 0.01, %v11606_v34 }
 0x6c6   :  { %v12460_v33 = vsel %vm12332_vm13, %v11606_v34, %v12396_v26 }
 0x6c7   :  { %17768 = vmatpush.msk.msra.mxu1 %vm103_vm0, %v12460_v33  ;;  %17767 = vmatmul.msk.f32.gmra.mxu0 %vm96_vm1, %v20572_v43 }
 0x6c9   :  { %12634 = vmatpush.msra.mxu1 %v12428_v4 }
 0x6ca   :  { %17769 = vmatmul.msk.f32.vlgmr.msra.gmra.mxu1 %vm96_vm1, %v20554_v31 }
 0x6cc   :  { %v11672_v40 = vpop.f32.mrf.mxu0  ;;  %v11695_v41 = vpop.f32.mrf.mxu1 }
 0x6cd   :  { %v12367_v45 = vmul.f32 0.01, %v11672_v40  ;;  %v12368_v46 = vmul.f32 0.01, %v11695_v41  ;;  %vm12303_vm2 = vcmp.gt.f32.partialorder %v11672_v40, 0.0  ;;  %vm12304_vm3 = vcmp.gt.f32.partialorder %v11695_v41, 0.0 }
 0x6ce   :  { %v11626_v7 = vpop.f32.mrf.mxu2  ;;  %v11649_v9 = vpop.f32.mrf.mxu3 }
 0x6cf   :  { %v12365_v57 = vmul.f32 0.01, %v11626_v7  ;;  %v12366_v14 = vmul.f32 0.01, %v11649_v9  ;;  %vm12301_vm6 = vcmp.gt.f32.partialorder %v11626_v7, 0.0  ;;  %vm12302_vm7 = vcmp.gt.f32.partialorder %v11649_v9, 0.0 }
 0x6d0   :  { %v12431_v25 = vsel %vm12303_vm2, %v11672_v40, %v12367_v45  ;;  %v12432_v42 = vsel %vm12304_vm3, %v11695_v41, %v12368_v46 }
 0x6d1   :  { %v12429_v30 = vsel %vm12301_vm6, %v11626_v7, %v12365_v57  ;;  %v12430_v35 = vsel %vm12302_vm7, %v11649_v9, %v12366_v14 }
 0x6d2   :  { %17770 = vmatmul.msk.f32.gmra.mxu1 %vm96_vm1, %v20572_v43 }
 0x6d4   :  { %v11675_v49 = vpop.f32.mrf.mxu0  ;;  %v11698_v50 = vpop.f32.mrf.mxu1 }
 0x6d5   :  { %vm12335_vm6 = vcmp.gt.f32.partialorder %v11675_v49, 0.0  ;;  %v12399_v51 = vmul.f32 0.01, %v11675_v49  ;;  %vm12336_vm7 = vcmp.gt.f32.partialorder %v11698_v50, 0.0  ;;  %v12400_v28 = vmul.f32 0.01, %v11698_v50 }
 0x6d6   :  { %v11629_v12 = vpop.f32.mrf.mxu2  ;;  %v11652_v16 = vpop.f32.mrf.mxu3 }
 0x6d7   :  { %vm12333_vm10 = vcmp.gt.f32.partialorder %v11629_v12, 0.0  ;;  %v12397_v21 = vmul.f32 0.01, %v11629_v12  ;;  %vm12334_vm11 = vcmp.gt.f32.partialorder %v11652_v16, 0.0  ;;  %v12398_v22 = vmul.f32 0.01, %v11652_v16 }
 0x6d8   :  { %v12463_v37 = vsel %vm12335_vm6, %v11675_v49, %v12399_v51  ;;  %v12464_v20 = vsel %vm12336_vm7, %v11698_v50, %v12400_v28 }
 0x6d9   :  { %v12461_v27 = vsel %vm12333_vm10, %v11629_v12, %v12397_v21  ;;  %v12462_v29 = vsel %vm12334_vm11, %v11652_v16, %v12398_v22  ;;  %17777 = vmatpush.msk.msrb.mxu0 %vm103_vm0, %v12463_v37  ;;  %17780 = vmatpush.msk.msrb.mxu1 %vm103_vm0, %v12464_v20 }
 0x6da   :  { %17771 = vmatpush.msk.msra.mxu2 %vm103_vm0, %v12461_v27  ;;  %17774 = vmatpush.msk.msra.mxu3 %vm103_vm0, %v12462_v29 }
 0x6db   :  { %12703 = vmatpush.msrb.mxu0 %v12431_v25  ;;  %12726 = vmatpush.msrb.mxu1 %v12432_v42 }
 0x6dc   :  { %12657 = vmatpush.msra.mxu2 %v12429_v30  ;;  %12680 = vmatpush.msra.mxu3 %v12430_v35  ;;  %v11764_v60 = vpop.f32.mrf.mxu0  ;;  %v11787_v47 = vpop.f32.mrf.mxu1 }
 0x6dd   :  { %17772 = vmatmul.msk.f32.vlgmr.msra.gmra.mxu2 %vm96_vm1, %v20554_v31  ;;  %17775 = vmatmul.msk.f32.vlgmr.msra.gmra.mxu3 %vm96_vm1, %v20554_v31  ;;  %v12371_v1 = vmul.f32 0.01, %v11764_v60  ;;  %v12372_v2 = vmul.f32 0.01, %v11787_v47  ;;  %vm12307_vm10 = vcmp.gt.f32.partialorder %v11764_v60, 0.0  ;;  %vm12308_vm11 = vcmp.gt.f32.partialorder %v11787_v47, 0.0 }
 0x6de   :  { %v11718_v38 = vpop.f32.mrf.mxu2  ;;  %v11741_v39 = vpop.f32.mrf.mxu3  ;;  %17778 = vmatmul.msk.f32.vlgmr.msrb.gmra.mxu0 %vm96_vm1, %v20554_v31  ;;  %17781 = vmatmul.msk.f32.vlgmr.msrb.gmra.mxu1 %vm96_vm1, %v20554_v31 }
 0x6df   :  { %v12369_v5 = vmul.f32 0.01, %v11718_v38  ;;  %v12370_v13 = vmul.f32 0.01, %v11741_v39  ;;  %vm12305_vm14 = vcmp.gt.f32.partialorder %v11718_v38, 0.0  ;;  %vm12306_vm15 = vcmp.gt.f32.partialorder %v11741_v39, 0.0 }
 0x6e0   :  { %v12435_v18 = vsel %vm12307_vm10, %v11764_v60, %v12371_v1  ;;  %v12436_v19 = vsel %vm12308_vm11, %v11787_v47, %v12372_v2 }
 0x6e1   :  { %v12433_v55 = vsel %vm12305_vm14, %v11718_v38, %v12369_v5  ;;  %v12434_v56 = vsel %vm12306_vm15, %v11741_v39, %v12370_v13 }
 0x6e4   :  { %v11767_v3 = vpop.f32.mrf.mxu0  ;;  %v11790_v6 = vpop.f32.mrf.mxu1 }
 0x6e5   :  { %17773 = vmatmul.msk.f32.gmra.mxu2 %vm96_vm1, %v20572_v43  ;;  %17776 = vmatmul.msk.f32.gmra.mxu3 %vm96_vm1, %v20572_v43  ;;  %vm12339_vm14 = vcmp.gt.f32.partialorder %v11767_v3, 0.0  ;;  %v12403_v7 = vmul.f32 0.01, %v11767_v3  ;;  %vm12340_vm15 = vcmp.gt.f32.partialorder %v11790_v6, 0.0  ;;  %v12404_v9 = vmul.f32 0.01, %v11790_v6 }
 0x6e6   :  { %v11721_v44 = vpop.f32.mrf.mxu2  ;;  %v11744_v8 = vpop.f32.mrf.mxu3  ;;  %17779 = vmatmul.msk.f32.gmra.mxu0 %vm96_vm1, %v20572_v43  ;;  %17782 = vmatmul.msk.f32.gmra.mxu1 %vm96_vm1, %v20572_v43 }
 0x6e7   :  { %vm12337_vm4 = vcmp.gt.f32.partialorder %v11721_v44, 0.0  ;;  %v12401_v48 = vmul.f32 0.01, %v11721_v44  ;;  %vm12338_vm5 = vcmp.gt.f32.partialorder %v11744_v8, 0.0  ;;  %v12402_v15 = vmul.f32 0.01, %v11744_v8 }
 0x6e8   :  { %v12467_v14 = vsel %vm12339_vm14, %v11767_v3, %v12403_v7  ;;  %v12468_v12 = vsel %vm12340_vm15, %v11790_v6, %v12404_v9 }
 0x6e9   :  { %v12465_v52 = vsel %vm12337_vm4, %v11721_v44, %v12401_v48  ;;  %v12466_v53 = vsel %vm12338_vm5, %v11744_v8, %v12402_v15  ;;  %17789 = vmatpush.msk.msra.mxu0 %vm103_vm0, %v12467_v14  ;;  %17792 = vmatpush.msk.msra.mxu1 %vm103_vm0, %v12468_v12 }
 0x6ea   :  { %17783 = vmatpush.msk.msrb.mxu2 %vm103_vm0, %v12465_v52  ;;  %17786 = vmatpush.msk.msrb.mxu3 %vm103_vm0, %v12466_v53 }
 0x6eb   :  { %12795 = vmatpush.msra.mxu0 %v12435_v18  ;;  %12818 = vmatpush.msra.mxu1 %v12436_v19 }
 0x6ec   :  { %12749 = vmatpush.msrb.mxu2 %v12433_v55  ;;  %12772 = vmatpush.msrb.mxu3 %v12434_v56  ;;  %v11856_v23 = vpop.f32.mrf.mxu0  ;;  %v11879_v34 = vpop.f32.mrf.mxu1 }
 0x6ed   :  { %17784 = vmatmul.msk.f32.vlgmr.msrb.gmra.mxu2 %vm96_vm1, %v20554_v31  ;;  %17787 = vmatmul.msk.f32.vlgmr.msrb.gmra.mxu3 %vm96_vm1, %v20554_v31  ;;  %v12375_v30 = vmul.f32 0.01, %v11856_v23  ;;  %v12376_v32 = vmul.f32 0.01, %v11879_v34  ;;  %vm12311_vm4 = vcmp.gt.f32.partialorder %v11856_v23, 0.0  ;;  %vm12312_vm5 = vcmp.gt.f32.partialorder %v11879_v34, 0.0 }
 0x6ee   :  { %v11810_v58 = vpop.f32.mrf.mxu2  ;;  %v11833_v59 = vpop.f32.mrf.mxu3  ;;  %17790 = vmatmul.msk.f32.vlgmr.msra.gmra.mxu0 %vm96_vm1, %v20554_v31  ;;  %17793 = vmatmul.msk.f32.vlgmr.msra.gmra.mxu1 %vm96_vm1, %v20554_v31 }
 0x6ef   :  { %v12373_v61 = vmul.f32 0.01, %v11810_v58  ;;  %v12374_v17 = vmul.f32 0.01, %v11833_v59  ;;  %vm12309_vm8 = vcmp.gt.f32.partialorder %v11810_v58, 0.0  ;;  %vm12310_vm9 = vcmp.gt.f32.partialorder %v11833_v59, 0.0 }
 0x6f0   :  { %v12439_v45 = vsel %vm12311_vm4, %v11856_v23, %v12375_v30  ;;  %v12440_v46 = vsel %vm12312_vm5, %v11879_v34, %v12376_v32 }
 0x6f1   :  { %v12437_v57 = vsel %vm12309_vm8, %v11810_v58, %v12373_v61  ;;  %v12438_v16 = vsel %vm12310_vm9, %v11833_v59, %v12374_v17 }
 0x6f4   :  { %v11859_v36 = vpop.f32.mrf.mxu0  ;;  %v11882_v4 = vpop.f32.mrf.mxu1 }
 0x6f5   :  { %17785 = vmatmul.msk.f32.gmra.mxu2 %vm96_vm1, %v20572_v43  ;;  %17788 = vmatmul.msk.f32.gmra.mxu3 %vm96_vm1, %v20572_v43  ;;  %vm12343_vm8 = vcmp.gt.f32.partialorder %v11859_v36, 0.0  ;;  %v12407_v38 = vmul.f32 0.01, %v11859_v36  ;;  %vm12344_vm9 = vcmp.gt.f32.partialorder %v11882_v4, 0.0  ;;  %v12408_v39 = vmul.f32 0.01, %v11882_v4 }
 0x6f6   :  { %v11813_v63 = vpop.f32.mrf.mxu2  ;;  %v11836_v0 = vpop.f32.mrf.mxu3  ;;  %17791 = vmatmul.msk.f32.gmra.mxu0 %vm96_vm1, %v20572_v43  ;;  %17794 = vmatmul.msk.f32.gmra.mxu1 %vm96_vm1, %v20572_v43 }
 0x6f7   :  { %vm12341_vm12 = vcmp.gt.f32.partialorder %v11813_v63, 0.0  ;;  %v12405_v62 = vmul.f32 0.01, %v11813_v63  ;;  %vm12342_vm13 = vcmp.gt.f32.partialorder %v11836_v0, 0.0  ;;  %v12406_v54 = vmul.f32 0.01, %v11836_v0 }
 0x6f8   :  { %v12471_v13 = vsel %vm12343_vm8, %v11859_v36, %v12407_v38  ;;  %v12472_v44 = vsel %vm12344_vm9, %v11882_v4, %v12408_v39 }
 0x6f9   :  { %v12469_v10 = vsel %vm12341_vm12, %v11813_v63, %v12405_v62  ;;  %v12470_v11 = vsel %vm12342_vm13, %v11836_v0, %v12406_v54  ;;  %17801 = vmatpush.msk.msrb.mxu0 %vm103_vm0, %v12471_v13  ;;  %17804 = vmatpush.msk.msrb.mxu1 %vm103_vm0, %v12472_v44 }
 0x6fa   :  { %17795 = vmatpush.msk.msra.mxu2 %vm103_vm0, %v12469_v10  ;;  %17798 = vmatpush.msk.msra.mxu3 %vm103_vm0, %v12470_v11 }
 0x6fb   :  { %12887 = vmatpush.msrb.mxu0 %v12439_v45  ;;  %12910 = vmatpush.msrb.mxu1 %v12440_v46 }
 0x6fc   :  { %12841 = vmatpush.msra.mxu2 %v12437_v57  ;;  %12864 = vmatpush.msra.mxu3 %v12438_v16  ;;  %v11948_v49 = vpop.f32.mrf.mxu0  ;;  %v11971_v50 = vpop.f32.mrf.mxu1 }
 0x6fd   :  { %17796 = vmatmul.msk.f32.vlgmr.msra.gmra.mxu2 %vm96_vm1, %v20554_v31  ;;  %17799 = vmatmul.msk.f32.vlgmr.msra.gmra.mxu3 %vm96_vm1, %v20554_v31  ;;  %v12379_v55 = vmul.f32 0.01, %v11948_v49  ;;  %v12380_v37 = vmul.f32 0.01, %v11971_v50  ;;  %vm12315_vm12 = vcmp.gt.f32.partialorder %v11948_v49, 0.0  ;;  %vm12316_vm13 = vcmp.gt.f32.partialorder %v11971_v50, 0.0 }
 0x6fe   :  { %v11902_v21 = vpop.f32.mrf.mxu2  ;;  %v11925_v22 = vpop.f32.mrf.mxu3  ;;  %17802 = vmatmul.msk.f32.vlgmr.msrb.gmra.mxu0 %vm96_vm1, %v20554_v31  ;;  %17805 = vmatmul.msk.f32.vlgmr.msrb.gmra.mxu1 %vm96_vm1, %v20554_v31 }
 0x6ff   :  { %v12377_v24 = vmul.f32 0.01, %v11902_v21  ;;  %v12378_v26 = vmul.f32 0.01, %v11925_v22  ;;  %vm12313_vm2 = vcmp.gt.f32.partialorder %v11902_v21, 0.0  ;;  %vm12314_vm3 = vcmp.gt.f32.partialorder %v11925_v22, 0.0 }
 0x700   :  { %v12443_v1 = vsel %vm12315_vm12, %v11948_v49, %v12379_v55  ;;  %v12444_v2 = vsel %vm12316_vm13, %v11971_v50, %v12380_v37 }
 0x701   :  { %v12441_v5 = vsel %vm12313_vm2, %v11902_v21, %v12377_v24  ;;  %v12442_v8 = vsel %vm12314_vm3, %v11925_v22, %v12378_v26 }
 0x704   :  { %v11951_v25 = vpop.f32.mrf.mxu0  ;;  %v11974_v42 = vpop.f32.mrf.mxu1 }
 0x705   :  { %17797 = vmatmul.msk.f32.gmra.mxu2 %vm96_vm1, %v20572_v43  ;;  %17800 = vmatmul.msk.f32.gmra.mxu3 %vm96_vm1, %v20572_v43  ;;  %vm12347_vm2 = vcmp.gt.f32.partialorder %v11951_v25, 0.0  ;;  %v12411_v58 = vmul.f32 0.01, %v11951_v25  ;;  %vm12348_vm3 = vcmp.gt.f32.partialorder %v11974_v42, 0.0  ;;  %v12412_v59 = vmul.f32 0.01, %v11974_v42 }
 0x706   :  { %v11905_v27 = vpop.f32.mrf.mxu2  ;;  %v11928_v29 = vpop.f32.mrf.mxu3  ;;  %17803 = vmatmul.msk.f32.gmra.mxu0 %vm96_vm1, %v20572_v43  ;;  %17806 = vmatmul.msk.f32.gmra.mxu1 %vm96_vm1, %v20572_v43 }
 0x707   :  { %vm12345_vm6 = vcmp.gt.f32.partialorder %v11905_v27, 0.0  ;;  %v12409_v33 = vmul.f32 0.01, %v11905_v27  ;;  %vm12346_vm7 = vcmp.gt.f32.partialorder %v11928_v29, 0.0  ;;  %v12410_v35 = vmul.f32 0.01, %v11928_v29 }
 0x708   :  { %v12475_v17 = vsel %vm12347_vm2, %v11951_v25, %v12411_v58  ;;  %v12476_v63 = vsel %vm12348_vm3, %v11974_v42, %v12412_v59 }
 0x709   :  { %v12473_v40 = vsel %vm12345_vm6, %v11905_v27, %v12409_v33  ;;  %v12474_v41 = vsel %vm12346_vm7, %v11928_v29, %v12410_v35  ;;  %17813 = vmatpush.msk.msra.mxu0 %vm103_vm0, %v12475_v17  ;;  %17816 = vmatpush.msk.msra.mxu1 %vm103_vm0, %v12476_v63 }
 0x70a   :  { %17807 = vmatpush.msk.msrb.mxu2 %vm103_vm0, %v12473_v40  ;;  %17810 = vmatpush.msk.msrb.mxu3 %vm103_vm0, %v12474_v41 }
 0x70b   :  { %12979 = vmatpush.msra.mxu0 %v12443_v1  ;;  %13002 = vmatpush.msra.mxu1 %v12444_v2 }
 0x70c   :  { %12933 = vmatpush.msrb.mxu2 %v12441_v5  ;;  %12956 = vmatpush.msrb.mxu3 %v12442_v8  ;;  %v12040_v3 = vpop.f32.mrf.mxu0  ;;  %v12063_v6 = vpop.f32.mrf.mxu1 }
 0x70d   :  { %17808 = vmatmul.msk.f32.vlgmr.msrb.gmra.mxu2 %vm96_vm1, %v20554_v31  ;;  %17811 = vmatmul.msk.f32.vlgmr.msrb.gmra.mxu3 %vm96_vm1, %v20554_v31  ;;  %v12383_v57 = vmul.f32 0.01, %v12040_v3  ;;  %v12384_v14 = vmul.f32 0.01, %v12063_v6  ;;  %vm12319_vm6 = vcmp.gt.f32.partialorder %v12040_v3, 0.0  ;;  %vm12320_vm7 = vcmp.gt.f32.partialorder %v12063_v6, 0.0 }
 0x70e   :  { %v11994_v48 = vpop.f32.mrf.mxu2  ;;  %v12017_v15 = vpop.f32.mrf.mxu3  ;;  %17814 = vmatmul.msk.f32.vlgmr.msra.gmra.mxu0 %vm96_vm1, %v20554_v31  ;;  %17817 = vmatmul.msk.f32.vlgmr.msra.gmra.mxu1 %vm96_vm1, %v20554_v31 }
 0x70f   :  { %v12381_v51 = vmul.f32 0.01, %v11994_v48  ;;  %v12382_v28 = vmul.f32 0.01, %v12017_v15  ;;  %vm12317_vm10 = vcmp.gt.f32.partialorder %v11994_v48, 0.0  ;;  %vm12318_vm11 = vcmp.gt.f32.partialorder %v12017_v15, 0.0 }
 0x710   :  { %v12447_v30 = vsel %vm12319_vm6, %v12040_v3, %v12383_v57  ;;  %v12448_v32 = vsel %vm12320_vm7, %v12063_v6, %v12384_v14 }
 0x711   :  { %v12445_v61 = vsel %vm12317_vm10, %v11994_v48, %v12381_v51  ;;  %v12446_v0 = vsel %vm12318_vm11, %v12017_v15, %v12382_v28 }
 0x714   :  { %v12043_v18 = vpop.f32.mrf.mxu0  ;;  %v12066_v19 = vpop.f32.mrf.mxu1 }
 0x715   :  { %17809 = vmatmul.msk.f32.gmra.mxu2 %vm96_vm1, %v20572_v43  ;;  %17812 = vmatmul.msk.f32.gmra.mxu3 %vm96_vm1, %v20572_v43  ;;  %vm12351_vm10 = vcmp.gt.f32.partialorder %v12043_v18, 0.0  ;;  %v12415_v21 = vmul.f32 0.01, %v12043_v18  ;;  %vm12352_vm11 = vcmp.gt.f32.partialorder %v12066_v19, 0.0  ;;  %v12416_v22 = vmul.f32 0.01, %v12066_v19 }
 0x716   :  { %v11997_v52 = vpop.f32.mrf.mxu2  ;;  %v12020_v53 = vpop.f32.mrf.mxu3  ;;  %17815 = vmatmul.msk.f32.gmra.mxu0 %vm96_vm1, %v20572_v43  ;;  %17818 = vmatmul.msk.f32.gmra.mxu1 %vm96_vm1, %v20572_v43 }
 0x717   :  { %vm12349_vm14 = vcmp.gt.f32.partialorder %v11997_v52, 0.0  ;;  %v12413_v20 = vmul.f32 0.01, %v11997_v52  ;;  %vm12350_vm15 = vcmp.gt.f32.partialorder %v12020_v53, 0.0  ;;  %v12414_v56 = vmul.f32 0.01, %v12020_v53 }
 0x718   :  { %v12479_v26 = vsel %vm12351_vm10, %v12043_v18, %v12415_v21  ;;  %v12480_v27 = vsel %vm12352_vm11, %v12066_v19, %v12416_v22 }
 0x719   :  { %v12477_v60 = vsel %vm12349_vm14, %v11997_v52, %v12413_v20  ;;  %v12478_v47 = vsel %vm12350_vm15, %v12020_v53, %v12414_v56  ;;  %17825 = vmatpush.msk.msrb.mxu0 %vm103_vm0, %v12479_v26  ;;  %17828 = vmatpush.msk.msrb.mxu1 %vm103_vm0, %v12480_v27 }
 0x71a   :  { %17819 = vmatpush.msk.msra.mxu2 %vm103_vm0, %v12477_v60  ;;  %17822 = vmatpush.msk.msra.mxu3 %vm103_vm0, %v12478_v47 }
 0x71b   :  { %13071 = vmatpush.msrb.mxu0 %v12447_v30  ;;  %13094 = vmatpush.msrb.mxu1 %v12448_v32 }
 0x71c   :  { %13025 = vmatpush.msra.mxu2 %v12445_v61  ;;  %13048 = vmatpush.msra.mxu3 %v12446_v0  ;;  %v12132_v36 = vpop.f32.mrf.mxu0  ;;  %v12155_v4 = vpop.f32.mrf.mxu1 }
 0x71d   :  { %17820 = vmatmul.msk.f32.vlgmr.msra.gmra.mxu2 %vm96_vm1, %v20554_v31  ;;  %17823 = vmatmul.msk.f32.vlgmr.msra.gmra.mxu3 %vm96_vm1, %v20554_v31  ;;  %v12387_v5 = vmul.f32 0.01, %v12132_v36  ;;  %v12388_v13 = vmul.f32 0.01, %v12155_v4  ;;  %vm12323_vm14 = vcmp.gt.f32.partialorder %v12132_v36, 0.0  ;;  %vm12324_vm15 = vcmp.gt.f32.partialorder %v12155_v4, 0.0 }
 0x71e   :  { %v12086_v62 = vpop.f32.mrf.mxu2  ;;  %v12109_v54 = vpop.f32.mrf.mxu3  ;;  %17826 = vmatmul.msk.f32.vlgmr.msrb.gmra.mxu0 %vm96_vm1, %v20554_v31  ;;  %17829 = vmatmul.msk.f32.vlgmr.msrb.gmra.mxu1 %vm96_vm1, %v20554_v31 }
 0x71f   :  { %v12385_v7 = vmul.f32 0.01, %v12086_v62  ;;  %v12386_v9 = vmul.f32 0.01, %v12109_v54  ;;  %vm12321_vm4 = vcmp.gt.f32.partialorder %v12086_v62, 0.0  ;;  %vm12322_vm5 = vcmp.gt.f32.partialorder %v12109_v54, 0.0 }
 0x720   :  { %v12451_v55 = vsel %vm12323_vm14, %v12132_v36, %v12387_v5  ;;  %v12452_v37 = vsel %vm12324_vm15, %v12155_v4, %v12388_v13 }
 0x721   :  { %v12449_v24 = vsel %vm12321_vm4, %v12086_v62, %v12385_v7  ;;  %v12450_v29 = vsel %vm12322_vm5, %v12109_v54, %v12386_v9 }
 0x724   :  { %v12135_v45 = vpop.f32.mrf.mxu0  ;;  %v12158_v46 = vpop.f32.mrf.mxu1 }
 0x725   :  { %17821 = vmatmul.msk.f32.gmra.mxu2 %vm96_vm1, %v20572_v43  ;;  %17824 = vmatmul.msk.f32.gmra.mxu3 %vm96_vm1, %v20572_v43  ;;  %vm12355_vm4 = vcmp.gt.f32.partialorder %v12135_v45, 0.0  ;;  %v12419_v48 = vmul.f32 0.01, %v12135_v45  ;;  %vm12356_vm5 = vcmp.gt.f32.partialorder %v12158_v46, 0.0  ;;  %v12420_v15 = vmul.f32 0.01, %v12158_v46 }
 0x726   :  { %v12089_v10 = vpop.f32.mrf.mxu2  ;;  %v12112_v11 = vpop.f32.mrf.mxu3  ;;  %17827 = vmatmul.msk.f32.gmra.mxu0 %vm96_vm1, %v20572_v43  ;;  %17830 = vmatmul.msk.f32.gmra.mxu1 %vm96_vm1, %v20572_v43 }
 0x727   :  { %vm12353_vm8 = vcmp.gt.f32.partialorder %v12089_v10, 0.0  ;;  %v12417_v12 = vmul.f32 0.01, %v12089_v10  ;;  %vm12354_vm9 = vcmp.gt.f32.partialorder %v12112_v11, 0.0  ;;  %v12418_v16 = vmul.f32 0.01, %v12112_v11 }
 0x728   :  { %v12483_v28 = vsel %vm12355_vm4, %v12135_v45, %v12419_v48  ;;  %v12484_v52 = vsel %vm12356_vm5, %v12158_v46, %v12420_v15  ;;  %v20770_v48 = vld [vmem:[%s21286_s1 + $0xd8] sm:$0x1f] }
 0x729   :  { %v12481_v23 = vsel %vm12353_vm8, %v12089_v10, %v12417_v12  ;;  %v12482_v34 = vsel %vm12354_vm9, %v12112_v11, %v12418_v16  ;;  %17837 = vmatpush.msk.msra.mxu0 %vm103_vm0, %v12483_v28  ;;  %17840 = vmatpush.msk.msra.mxu1 %vm103_vm0, %v12484_v52 }
 0x72a   :  { %17831 = vmatpush.msk.msrb.mxu2 %vm103_vm0, %v12481_v23  ;;  %17834 = vmatpush.msk.msrb.mxu3 %vm103_vm0, %v12482_v34 }
 0x72b   :  { %13163 = vmatpush.msra.mxu0 %v12451_v55  ;;  %13186 = vmatpush.msra.mxu1 %v12452_v37 }
 0x72c   :  { %13117 = vmatpush.msrb.mxu2 %v12449_v24  ;;  %13140 = vmatpush.msrb.mxu3 %v12450_v29  ;;  %v12224_v25 = vpop.f32.mrf.mxu0  ;;  %v12247_v42 = vpop.f32.mrf.mxu1 }
 0x72d   :  { %17832 = vmatmul.msk.f32.vlgmr.msrb.gmra.mxu2 %vm96_vm1, %v20554_v31  ;;  %17835 = vmatmul.msk.f32.vlgmr.msrb.gmra.mxu3 %vm96_vm1, %v20554_v31  ;;  %v12391_v61 = vmul.f32 0.01, %v12224_v25  ;;  %v12392_v17 = vmul.f32 0.01, %v12247_v42  ;;  %vm12327_vm8 = vcmp.gt.f32.partialorder %v12224_v25, 0.0  ;;  %vm12328_vm9 = vcmp.gt.f32.partialorder %v12247_v42, 0.0 }
 0x72e   :  { %v12178_v33 = vpop.f32.mrf.mxu2  ;;  %v12201_v35 = vpop.f32.mrf.mxu3  ;;  %17838 = vmatmul.msk.f32.vlgmr.msra.gmra.mxu0 %vm96_vm1, %v20554_v31  ;;  %17841 = vmatmul.msk.f32.vlgmr.msra.gmra.mxu1 %vm96_vm1, %v20554_v31 }
 0x72f   :  { %v12389_v38 = vmul.f32 0.01, %v12178_v33  ;;  %v12390_v39 = vmul.f32 0.01, %v12201_v35  ;;  %vm12325_vm12 = vcmp.gt.f32.partialorder %v12178_v33, 0.0  ;;  %vm12326_vm13 = vcmp.gt.f32.partialorder %v12201_v35, 0.0 }
 0x730   :  { %v12455_v57 = vsel %vm12327_vm8, %v12224_v25, %v12391_v61  ;;  %v12456_v14 = vsel %vm12328_vm9, %v12247_v42, %v12392_v17 }
 0x731   :  { %v12453_v51 = vsel %vm12325_vm12, %v12178_v33, %v12389_v38  ;;  %v12454_v53 = vsel %vm12326_vm13, %v12201_v35, %v12390_v39  ;;  %v20755_v38 = vld [vmem:[%s21286_s1 + $0xd0] sm:$0xff] }
 0x734   :  { %v12227_v1 = vpop.f32.mrf.mxu0  ;;  %v12250_v2 = vpop.f32.mrf.mxu1 }
 0x735   :  { %17833 = vmatmul.msk.f32.gmra.mxu2 %vm96_vm1, %v20572_v43  ;;  %17836 = vmatmul.msk.f32.gmra.mxu3 %vm96_vm1, %v20572_v43  ;;  %vm12359_vm12 = vcmp.gt.f32.partialorder %v12227_v1, 0.0  ;;  %v12423_v62 = vmul.f32 0.01, %v12227_v1  ;;  %vm12360_vm13 = vcmp.gt.f32.partialorder %v12250_v2, 0.0  ;;  %v12424_v54 = vmul.f32 0.01, %v12250_v2 }
 0x736   :  { %v12181_v40 = vpop.f32.mrf.mxu2  ;;  %v12204_v41 = vpop.f32.mrf.mxu3  ;;  %17839 = vmatmul.msk.f32.gmra.mxu0 %vm96_vm1, %v20572_v43  ;;  %17842 = vmatmul.msk.f32.gmra.mxu1 %vm96_vm1, %v20572_v43 }
 0x737   :  { %vm12357_vm2 = vcmp.gt.f32.partialorder %v12181_v40, 0.0  ;;  %v12421_v44 = vmul.f32 0.01, %v12181_v40  ;;  %vm12358_vm3 = vcmp.gt.f32.partialorder %v12204_v41, 0.0  ;;  %v12422_v8 = vmul.f32 0.01, %v12204_v41 }
 0x738   :  { %v12487_v9 = vsel %vm12359_vm12, %v12227_v1, %v12423_v62  ;;  %v12488_v10 = vsel %vm12360_vm13, %v12250_v2, %v12424_v54 }
 0x739   :  { %v12485_v49 = vsel %vm12357_vm2, %v12181_v40, %v12421_v44  ;;  %v12486_v50 = vsel %vm12358_vm3, %v12204_v41, %v12422_v8  ;;  %17849 = vmatpush.msk.msrb.mxu0 %vm103_vm0, %v12487_v9  ;;  %17852 = vmatpush.msk.msrb.mxu1 %vm103_vm0, %v12488_v10 }
 0x73a   :  { %17843 = vmatpush.msk.msra.mxu2 %vm103_vm0, %v12485_v49  ;;  %17846 = vmatpush.msk.msra.mxu3 %vm103_vm0, %v12486_v50 }
 0x73b   :  { %13255 = vmatpush.msrb.mxu0 %v12455_v57  ;;  %13278 = vmatpush.msrb.mxu1 %v12456_v14 }
 0x73c   :  { %13209 = vmatpush.msra.mxu2 %v12453_v51  ;;  %13232 = vmatpush.msra.mxu3 %v12454_v53  ;;  %v12613_v12 = vpop.f32.mrf.mxu0 }
 0x73d   :  { %17844 = vmatmul.msk.f32.vlgmr.msra.gmra.mxu2 %vm96_vm1, %v20554_v31  ;;  %17847 = vmatmul.msk.f32.vlgmr.msra.gmra.mxu3 %vm96_vm1, %v20554_v31  ;;  %v13396_v21 = vmul.f32 0.01, %v12613_v12  ;;  %vm13332_vm14 = vcmp.gt.f32.partialorder %v12613_v12, 0.0 }
 0x73e   :  { %v12270_v20 = vpop.f32.mrf.mxu2  ;;  %v12293_v56 = vpop.f32.mrf.mxu3  ;;  %17850 = vmatmul.msk.f32.vlgmr.msrb.gmra.mxu0 %vm96_vm1, %v20554_v31  ;;  %17853 = vmatmul.msk.f32.vlgmr.msrb.gmra.mxu1 %vm96_vm1, %v20554_v31 }
 0x73f   :  { %v12393_v58 = vmul.f32 0.01, %v12270_v20  ;;  %v12394_v59 = vmul.f32 0.01, %v12293_v56  ;;  %vm12329_vm6 = vcmp.gt.f32.partialorder %v12270_v20, 0.0  ;;  %vm12330_vm7 = vcmp.gt.f32.partialorder %v12293_v56, 0.0 }
 0x740   :  { %v13460_v29 = vsel %vm13332_vm14, %v12613_v12, %v13396_v21 }
 0x741   :  { %v12457_v7 = vsel %vm12329_vm6, %v12270_v20, %v12393_v58  ;;  %v12458_v11 = vsel %vm12330_vm7, %v12293_v56, %v12394_v59 }
 0x744   :  { %v12616_v23 = vpop.f32.mrf.mxu0 }
 0x745   :  { %17845 = vmatmul.msk.f32.gmra.mxu2 %vm96_vm1, %v20572_v43  ;;  %17848 = vmatmul.msk.f32.gmra.mxu3 %vm96_vm1, %v20572_v43  ;;  %vm13364_vm2 = vcmp.gt.f32.partialorder %v12616_v23, 0.0  ;;  %v13428_v34 = vmul.f32 0.01, %v12616_v23 }
 0x746   :  { %v12273_v60 = vpop.f32.mrf.mxu2  ;;  %v12296_v47 = vpop.f32.mrf.mxu3  ;;  %17851 = vmatmul.msk.f32.gmra.mxu0 %vm96_vm1, %v20572_v43  ;;  %17854 = vmatmul.msk.f32.gmra.mxu1 %vm96_vm1, %v20572_v43 }
 0x747   :  { %vm12361_vm10 = vcmp.gt.f32.partialorder %v12273_v60, 0.0  ;;  %v12425_v63 = vmul.f32 0.01, %v12273_v60  ;;  %vm12362_vm11 = vcmp.gt.f32.partialorder %v12296_v47, 0.0  ;;  %v12426_v0 = vmul.f32 0.01, %v12296_v47  ;;  %v12636_v16 = vpop.f32.mrf.mxu1 }
 0x748   :  { %v13397_v22 = vmul.f32 0.01, %v12636_v16  ;;  %vm13333_vm15 = vcmp.gt.f32.partialorder %v12636_v16, 0.0  ;;  %v13492_v26 = vsel %vm13364_vm2, %v12616_v23, %v13428_v34 }
 0x749   :  { %v12489_v3 = vsel %vm12361_vm10, %v12273_v60, %v12425_v63  ;;  %v12490_v6 = vsel %vm12362_vm11, %v12296_v47, %v12426_v0  ;;  %17863 = vmatpush.msk.msra.mxu0 %vm103_vm0, %v13492_v26 }
 0x74a   :  { %17855 = vmatpush.msk.msrb.mxu2 %vm103_vm0, %v12489_v3  ;;  %17858 = vmatpush.msk.msrb.mxu3 %vm103_vm0, %v12490_v6  ;;  %v13461_v30 = vsel %vm13333_vm15, %v12636_v16, %v13397_v22 }
 0x74b   :  { %13644 = vmatpush.msra.mxu0 %v13460_v29 }
 0x74c   :  { %13301 = vmatpush.msrb.mxu2 %v12457_v7  ;;  %13324 = vmatpush.msrb.mxu3 %v12458_v11 }
 0x74d   :  { %17856 = vmatmul.msk.f32.vlgmr.msrb.gmra.mxu2 %vm96_vm1, %v20554_v31  ;;  %17859 = vmatmul.msk.f32.vlgmr.msrb.gmra.mxu3 %vm96_vm1, %v20554_v31 }
 0x74e   :  { %17864 = vmatmul.msk.f32.vlgmr.msra.gmra.mxu0 %vm96_vm1, %v20755_v38 }
 0x74f   :  { %v12639_v31 = vpop.f32.mrf.mxu1 }
 0x750   :  { %vm13365_vm3 = vcmp.gt.f32.partialorder %v12639_v31, 0.0  ;;  %v13429_v24 = vmul.f32 0.01, %v12639_v31 }
 0x752   :  { %v13493_v27 = vsel %vm13365_vm3, %v12639_v31, %v13429_v24 }
 0x753   :  { %17866 = vmatpush.msk.msra.mxu1 %vm103_vm0, %v13493_v27 }
 0x755   :  { %17857 = vmatmul.msk.f32.gmra.mxu2 %vm96_vm1, %v20572_v43  ;;  %17860 = vmatmul.msk.f32.gmra.mxu3 %vm96_vm1, %v20572_v43 }
 0x756   :  { %13667 = vmatpush.msra.mxu1 %v13461_v30  ;;  %17865 = vmatmul.msk.f32.gmra.mxu0 %vm96_vm1, %v20770_v48 }
 0x757   :  { %17867 = vmatmul.msk.f32.vlgmr.msra.gmra.mxu1 %vm96_vm1, %v20755_v38 }
 0x75b   :  { %v12705_v41 = vpop.f32.mrf.mxu0  ;;  %v12728_v5 = vpop.f32.mrf.mxu1 }
 0x75c   :  { %v13400_v46 = vmul.f32 0.01, %v12705_v41  ;;  %v13401_v15 = vmul.f32 0.01, %v12728_v5  ;;  %vm13336_vm8 = vcmp.gt.f32.partialorder %v12705_v41, 0.0  ;;  %vm13337_vm9 = vcmp.gt.f32.partialorder %v12728_v5, 0.0 }
 0x75e   :  { %v13464_v52 = vsel %vm13336_vm8, %v12705_v41, %v13400_v46  ;;  %v13465_v37 = vsel %vm13337_vm9, %v12728_v5, %v13401_v15 }
 0x75f   :  { %17868 = vmatmul.msk.f32.gmra.mxu1 %vm96_vm1, %v20770_v48 }
 0x760   :  { %v12659_v18 = vpop.f32.mrf.mxu2  ;;  %v12682_v19 = vpop.f32.mrf.mxu3 }
 0x761   :  { %v13398_v32 = vmul.f32 0.01, %v12659_v18  ;;  %v13399_v43 = vmul.f32 0.01, %v12682_v19  ;;  %vm13334_vm6 = vcmp.gt.f32.partialorder %v12659_v18, 0.0  ;;  %vm13335_vm7 = vcmp.gt.f32.partialorder %v12682_v19, 0.0 }
 0x763   :  { %v13462_v13 = vsel %vm13334_vm6, %v12659_v18, %v13398_v32  ;;  %v13463_v44 = vsel %vm13335_vm7, %v12682_v19, %v13399_v43  ;;  %v12708_v49 = vpop.f32.mrf.mxu0  ;;  %v12731_v50 = vpop.f32.mrf.mxu1 }
 0x764   :  { %vm13368_vm10 = vcmp.gt.f32.partialorder %v12708_v49, 0.0  ;;  %v13432_v51 = vmul.f32 0.01, %v12708_v49  ;;  %vm13369_vm11 = vcmp.gt.f32.partialorder %v12731_v50, 0.0  ;;  %v13433_v28 = vmul.f32 0.01, %v12731_v50 }
 0x766   :  { %v13496_v53 = vsel %vm13368_vm10, %v12708_v49, %v13432_v51  ;;  %v13497_v55 = vsel %vm13369_vm11, %v12731_v50, %v13433_v28 }
 0x767   :  { %17875 = vmatpush.msk.msrb.mxu0 %vm103_vm0, %v13496_v53  ;;  %17878 = vmatpush.msk.msrb.mxu1 %vm103_vm0, %v13497_v55 }
 0x768   :  { %v12662_v33 = vpop.f32.mrf.mxu2  ;;  %v12685_v35 = vpop.f32.mrf.mxu3 }
 0x769   :  { %vm13366_vm4 = vcmp.gt.f32.partialorder %v12662_v33, 0.0  ;;  %v13430_v36 = vmul.f32 0.01, %v12662_v33  ;;  %vm13367_vm5 = vcmp.gt.f32.partialorder %v12685_v35, 0.0  ;;  %v13431_v4 = vmul.f32 0.01, %v12685_v35  ;;  %13736 = vmatpush.msrb.mxu0 %v13464_v52  ;;  %13759 = vmatpush.msrb.mxu1 %v13465_v37 }
 0x76a   :  { %17876 = vmatmul.msk.f32.vlgmr.msrb.gmra.mxu0 %vm96_vm1, %v20755_v38  ;;  %17879 = vmatmul.msk.f32.vlgmr.msrb.gmra.mxu1 %vm96_vm1, %v20755_v38 }
 0x76b   :  { %v13494_v39 = vsel %vm13366_vm4, %v12662_v33, %v13430_v36  ;;  %v13495_v40 = vsel %vm13367_vm5, %v12685_v35, %v13431_v4  ;;  %v12797_v61 = vpop.f32.mrf.mxu0  ;;  %v12820_v17 = vpop.f32.mrf.mxu1 }
 0x76c   :  { %17869 = vmatpush.msk.msra.mxu2 %vm103_vm0, %v13494_v39  ;;  %17872 = vmatpush.msk.msra.mxu3 %vm103_vm0, %v13495_v40  ;;  %v13404_v62 = vmul.f32 0.01, %v12797_v61  ;;  %v13405_v54 = vmul.f32 0.01, %v12820_v17  ;;  %vm13340_vm2 = vcmp.gt.f32.partialorder %v12797_v61, 0.0  ;;  %vm13341_vm3 = vcmp.gt.f32.partialorder %v12820_v17, 0.0 }
 0x76e   :  { %13690 = vmatpush.msra.mxu2 %v13462_v13  ;;  %13713 = vmatpush.msra.mxu3 %v13463_v44  ;;  %v13468_v10 = vsel %vm13340_vm2, %v12797_v61, %v13404_v62  ;;  %v13469_v14 = vsel %vm13341_vm3, %v12820_v17, %v13405_v54 }
 0x76f   :  { %17870 = vmatmul.msk.f32.vlgmr.msra.gmra.mxu2 %vm96_vm1, %v20755_v38  ;;  %17873 = vmatmul.msk.f32.vlgmr.msra.gmra.mxu3 %vm96_vm1, %v20755_v38 }
 0x770   :  { %v12751_v8 = vpop.f32.mrf.mxu2  ;;  %v12774_v45 = vpop.f32.mrf.mxu3 }
 0x771   :  { %v13402_v20 = vmul.f32 0.01, %v12751_v8  ;;  %v13403_v56 = vmul.f32 0.01, %v12774_v45  ;;  %vm13338_vm14 = vcmp.gt.f32.partialorder %v12751_v8, 0.0  ;;  %vm13339_vm15 = vcmp.gt.f32.partialorder %v12774_v45, 0.0 }
 0x772   :  { %17877 = vmatmul.msk.f32.gmra.mxu0 %vm96_vm1, %v20770_v48  ;;  %17880 = vmatmul.msk.f32.gmra.mxu1 %vm96_vm1, %v20770_v48 }
 0x773   :  { %v13466_v63 = vsel %vm13338_vm14, %v12751_v8, %v13402_v20  ;;  %v13467_v0 = vsel %vm13339_vm15, %v12774_v45, %v13403_v56  ;;  %v12800_v3 = vpop.f32.mrf.mxu0  ;;  %v12823_v6 = vpop.f32.mrf.mxu1 }
 0x774   :  { %vm13372_vm4 = vcmp.gt.f32.partialorder %v12800_v3, 0.0  ;;  %v13436_v7 = vmul.f32 0.01, %v12800_v3  ;;  %vm13373_vm5 = vcmp.gt.f32.partialorder %v12823_v6, 0.0  ;;  %v13437_v9 = vmul.f32 0.01, %v12823_v6 }
 0x776   :  { %v13500_v11 = vsel %vm13372_vm4, %v12800_v3, %v13436_v7  ;;  %v13501_v57 = vsel %vm13373_vm5, %v12823_v6, %v13437_v9 }
 0x777   :  { %17871 = vmatmul.msk.f32.gmra.mxu2 %vm96_vm1, %v20770_v48  ;;  %17874 = vmatmul.msk.f32.gmra.mxu3 %vm96_vm1, %v20770_v48 }
 0x778   :  { %v12754_v25 = vpop.f32.mrf.mxu2  ;;  %v12777_v42 = vpop.f32.mrf.mxu3  ;;  %17887 = vmatpush.msk.msra.mxu0 %vm103_vm0, %v13500_v11  ;;  %17890 = vmatpush.msk.msra.mxu1 %vm103_vm0, %v13501_v57 }
 0x779   :  { %vm13370_vm12 = vcmp.gt.f32.partialorder %v12754_v25, 0.0  ;;  %v13434_v58 = vmul.f32 0.01, %v12754_v25  ;;  %vm13371_vm13 = vcmp.gt.f32.partialorder %v12777_v42, 0.0  ;;  %v13435_v59 = vmul.f32 0.01, %v12777_v42 }
 0x77a   :  { %13828 = vmatpush.msra.mxu0 %v13468_v10  ;;  %13851 = vmatpush.msra.mxu1 %v13469_v14 }
 0x77b   :  { %v13498_v60 = vsel %vm13370_vm12, %v12754_v25, %v13434_v58  ;;  %v13499_v47 = vsel %vm13371_vm13, %v12777_v42, %v13435_v59  ;;  %17888 = vmatmul.msk.f32.vlgmr.msra.gmra.mxu0 %vm96_vm1, %v20755_v38  ;;  %17891 = vmatmul.msk.f32.vlgmr.msra.gmra.mxu1 %vm96_vm1, %v20755_v38  ;;  %v12889_v34 = vpop.f32.mrf.mxu0  ;;  %v12912_v24 = vpop.f32.mrf.mxu1 }
 0x77c   :  { %17881 = vmatpush.msk.msrb.mxu2 %vm103_vm0, %v13498_v60  ;;  %17884 = vmatpush.msk.msrb.mxu3 %vm103_vm0, %v13499_v47  ;;  %v13408_v32 = vmul.f32 0.01, %v12889_v34  ;;  %v13409_v43 = vmul.f32 0.01, %v12912_v24  ;;  %vm13344_vm10 = vcmp.gt.f32.partialorder %v12889_v34, 0.0  ;;  %vm13345_vm11 = vcmp.gt.f32.partialorder %v12912_v24, 0.0 }
 0x77e   :  { %13782 = vmatpush.msrb.mxu2 %v13466_v63  ;;  %13805 = vmatpush.msrb.mxu3 %v13467_v0  ;;  %v13472_v39 = vsel %vm13344_vm10, %v12889_v34, %v13408_v32  ;;  %v13473_v5 = vsel %vm13345_vm11, %v12912_v24, %v13409_v43 }
 0x77f   :  { %17882 = vmatmul.msk.f32.vlgmr.msrb.gmra.mxu2 %vm96_vm1, %v20755_v38  ;;  %17885 = vmatmul.msk.f32.vlgmr.msrb.gmra.mxu3 %vm96_vm1, %v20755_v38 }
 0x780   :  { %v12843_v1 = vpop.f32.mrf.mxu2  ;;  %v12866_v2 = vpop.f32.mrf.mxu3 }
 0x781   :  { %v13406_v12 = vmul.f32 0.01, %v12843_v1  ;;  %v13407_v16 = vmul.f32 0.01, %v12866_v2  ;;  %vm13342_vm8 = vcmp.gt.f32.partialorder %v12843_v1, 0.0  ;;  %vm13343_vm9 = vcmp.gt.f32.partialorder %v12866_v2, 0.0 }
 0x783   :  { %v13470_v26 = vsel %vm13342_vm8, %v12843_v1, %v13406_v12  ;;  %v13471_v27 = vsel %vm13343_vm9, %v12866_v2, %v13407_v16  ;;  %17889 = vmatmul.msk.f32.gmra.mxu0 %vm96_vm1, %v20770_v48  ;;  %17892 = vmatmul.msk.f32.gmra.mxu1 %vm96_vm1, %v20770_v48  ;;  %v12892_v33 = vpop.f32.mrf.mxu0  ;;  %v12915_v35 = vpop.f32.mrf.mxu1 }
 0x784   :  { %vm13376_vm12 = vcmp.gt.f32.partialorder %v12892_v33, 0.0  ;;  %v13440_v36 = vmul.f32 0.01, %v12892_v33  ;;  %vm13377_vm13 = vcmp.gt.f32.partialorder %v12915_v35, 0.0  ;;  %v13441_v4 = vmul.f32 0.01, %v12915_v35 }
 0x786   :  { %v13504_v40 = vsel %vm13376_vm12, %v12892_v33, %v13440_v36  ;;  %v13505_v41 = vsel %vm13377_vm13, %v12915_v35, %v13441_v4 }
 0x787   :  { %17883 = vmatmul.msk.f32.gmra.mxu2 %vm96_vm1, %v20770_v48  ;;  %17886 = vmatmul.msk.f32.gmra.mxu3 %vm96_vm1, %v20770_v48 }
 0x788   :  { %v12846_v18 = vpop.f32.mrf.mxu2  ;;  %v12869_v19 = vpop.f32.mrf.mxu3  ;;  %17899 = vmatpush.msk.msrb.mxu0 %vm103_vm0, %v13504_v40  ;;  %17902 = vmatpush.msk.msrb.mxu1 %vm103_vm0, %v13505_v41 }
 0x789   :  { %vm13374_vm6 = vcmp.gt.f32.partialorder %v12846_v18, 0.0  ;;  %v13438_v21 = vmul.f32 0.01, %v12846_v18  ;;  %vm13375_vm7 = vcmp.gt.f32.partialorder %v12869_v19, 0.0  ;;  %v13439_v22 = vmul.f32 0.01, %v12869_v19 }
 0x78a   :  { %13920 = vmatpush.msrb.mxu0 %v13472_v39  ;;  %13943 = vmatpush.msrb.mxu1 %v13473_v5 }
 0x78b   :  { %v13502_v23 = vsel %vm13374_vm6, %v12846_v18, %v13438_v21  ;;  %v13503_v31 = vsel %vm13375_vm7, %v12869_v19, %v13439_v22  ;;  %17900 = vmatmul.msk.f32.vlgmr.msrb.gmra.mxu0 %vm96_vm1, %v20755_v38  ;;  %17903 = vmatmul.msk.f32.vlgmr.msrb.gmra.mxu1 %vm96_vm1, %v20755_v38  ;;  %v12981_v51 = vpop.f32.mrf.mxu0  ;;  %v13004_v28 = vpop.f32.mrf.mxu1 }
 0x78c   :  { %17893 = vmatpush.msk.msra.mxu2 %vm103_vm0, %v13502_v23  ;;  %17896 = vmatpush.msk.msra.mxu3 %vm103_vm0, %v13503_v31  ;;  %v13412_v20 = vmul.f32 0.01, %v12981_v51  ;;  %v13413_v56 = vmul.f32 0.01, %v13004_v28  ;;  %vm13348_vm4 = vcmp.gt.f32.partialorder %v12981_v51, 0.0  ;;  %vm13349_vm5 = vcmp.gt.f32.partialorder %v13004_v28, 0.0 }
 0x78e   :  { %13874 = vmatpush.msra.mxu2 %v13470_v26  ;;  %13897 = vmatpush.msra.mxu3 %v13471_v27  ;;  %v13476_v60 = vsel %vm13348_vm4, %v12981_v51, %v13412_v20  ;;  %v13477_v17 = vsel %vm13349_vm5, %v13004_v28, %v13413_v56 }
 0x78f   :  { %17894 = vmatmul.msk.f32.vlgmr.msra.gmra.mxu2 %vm96_vm1, %v20755_v38  ;;  %17897 = vmatmul.msk.f32.vlgmr.msra.gmra.mxu3 %vm96_vm1, %v20755_v38 }
 0x790   :  { %v12935_v29 = vpop.f32.mrf.mxu2  ;;  %v12958_v30 = vpop.f32.mrf.mxu3 }
 0x791   :  { %v13410_v13 = vmul.f32 0.01, %v12935_v29  ;;  %v13411_v44 = vmul.f32 0.01, %v12958_v30  ;;  %vm13346_vm2 = vcmp.gt.f32.partialorder %v12935_v29, 0.0  ;;  %vm13347_vm3 = vcmp.gt.f32.partialorder %v12958_v30, 0.0 }
 0x793   :  { %v13474_v52 = vsel %vm13346_vm2, %v12935_v29, %v13410_v13  ;;  %v13475_v53 = vsel %vm13347_vm3, %v12958_v30, %v13411_v44  ;;  %17901 = vmatmul.msk.f32.gmra.mxu0 %vm96_vm1, %v20770_v48  ;;  %17904 = vmatmul.msk.f32.gmra.mxu1 %vm96_vm1, %v20770_v48  ;;  %v12984_v25 = vpop.f32.mrf.mxu0  ;;  %v13007_v42 = vpop.f32.mrf.mxu1 }
 0x794   :  { %vm13380_vm6 = vcmp.gt.f32.partialorder %v12984_v25, 0.0  ;;  %v13444_v58 = vmul.f32 0.01, %v12984_v25  ;;  %vm13381_vm7 = vcmp.gt.f32.partialorder %v13007_v42, 0.0  ;;  %v13445_v59 = vmul.f32 0.01, %v13007_v42 }
 0x796   :  { %v13508_v47 = vsel %vm13380_vm6, %v12984_v25, %v13444_v58  ;;  %v13509_v61 = vsel %vm13381_vm7, %v13007_v42, %v13445_v59 }
 0x797   :  { %17895 = vmatmul.msk.f32.gmra.mxu2 %vm96_vm1, %v20770_v48  ;;  %17898 = vmatmul.msk.f32.gmra.mxu3 %vm96_vm1, %v20770_v48 }
 0x798   :  { %v12938_v8 = vpop.f32.mrf.mxu2  ;;  %v12961_v45 = vpop.f32.mrf.mxu3  ;;  %17911 = vmatpush.msk.msra.mxu0 %vm103_vm0, %v13508_v47  ;;  %17914 = vmatpush.msk.msra.mxu1 %vm103_vm0, %v13509_v61 }
 0x799   :  { %vm13378_vm14 = vcmp.gt.f32.partialorder %v12938_v8, 0.0  ;;  %v13442_v46 = vmul.f32 0.01, %v12938_v8  ;;  %vm13379_vm15 = vcmp.gt.f32.partialorder %v12961_v45, 0.0  ;;  %v13443_v15 = vmul.f32 0.01, %v12961_v45 }
 0x79a   :  { %14012 = vmatpush.msra.mxu0 %v13476_v60  ;;  %14035 = vmatpush.msra.mxu1 %v13477_v17 }
 0x79b   :  { %v13506_v49 = vsel %vm13378_vm14, %v12938_v8, %v13442_v46  ;;  %v13507_v50 = vsel %vm13379_vm15, %v12961_v45, %v13443_v15  ;;  %17912 = vmatmul.msk.f32.vlgmr.msra.gmra.mxu0 %vm96_vm1, %v20755_v38  ;;  %17915 = vmatmul.msk.f32.vlgmr.msra.gmra.mxu1 %vm96_vm1, %v20755_v38  ;;  %v13073_v7 = vpop.f32.mrf.mxu0  ;;  %v13096_v9 = vpop.f32.mrf.mxu1 }
 0x79c   :  { %17905 = vmatpush.msk.msrb.mxu2 %vm103_vm0, %v13506_v49  ;;  %17908 = vmatpush.msk.msrb.mxu3 %vm103_vm0, %v13507_v50  ;;  %v13416_v12 = vmul.f32 0.01, %v13073_v7  ;;  %v13417_v16 = vmul.f32 0.01, %v13096_v9  ;;  %vm13352_vm12 = vcmp.gt.f32.partialorder %v13073_v7, 0.0  ;;  %vm13353_vm13 = vcmp.gt.f32.partialorder %v13096_v9, 0.0 }
 0x79e   :  { %13966 = vmatpush.msrb.mxu2 %v13474_v52  ;;  %13989 = vmatpush.msrb.mxu3 %v13475_v53  ;;  %v13480_v23 = vsel %vm13352_vm12, %v13073_v7, %v13416_v12  ;;  %v13481_v24 = vsel %vm13353_vm13, %v13096_v9, %v13417_v16 }
 0x79f   :  { %17906 = vmatmul.msk.f32.vlgmr.msrb.gmra.mxu2 %vm96_vm1, %v20755_v38  ;;  %17909 = vmatmul.msk.f32.vlgmr.msrb.gmra.mxu3 %vm96_vm1, %v20755_v38 }
 0x7a0   :  { %v13027_v55 = vpop.f32.mrf.mxu2  ;;  %v13050_v37 = vpop.f32.mrf.mxu3 }
 0x7a1   :  { %v13414_v63 = vmul.f32 0.01, %v13027_v55  ;;  %v13415_v0 = vmul.f32 0.01, %v13050_v37  ;;  %vm13350_vm10 = vcmp.gt.f32.partialorder %v13027_v55, 0.0  ;;  %vm13351_vm11 = vcmp.gt.f32.partialorder %v13050_v37, 0.0 }
 0x7a3   :  { %v13478_v10 = vsel %vm13350_vm10, %v13027_v55, %v13414_v63  ;;  %v13479_v11 = vsel %vm13351_vm11, %v13050_v37, %v13415_v0  ;;  %17913 = vmatmul.msk.f32.gmra.mxu0 %vm96_vm1, %v20770_v48  ;;  %17916 = vmatmul.msk.f32.gmra.mxu1 %vm96_vm1, %v20770_v48  ;;  %v13076_v18 = vpop.f32.mrf.mxu0  ;;  %v13099_v19 = vpop.f32.mrf.mxu1 }
 0x7a4   :  { %vm13384_vm14 = vcmp.gt.f32.partialorder %v13076_v18, 0.0  ;;  %v13448_v21 = vmul.f32 0.01, %v13076_v18  ;;  %vm13385_vm15 = vcmp.gt.f32.partialorder %v13099_v19, 0.0  ;;  %v13449_v22 = vmul.f32 0.01, %v13099_v19 }
 0x7a6   :  { %v13512_v31 = vsel %vm13384_vm14, %v13076_v18, %v13448_v21  ;;  %v13513_v34 = vsel %vm13385_vm15, %v13099_v19, %v13449_v22 }
 0x7a7   :  { %17907 = vmatmul.msk.f32.gmra.mxu2 %vm96_vm1, %v20770_v48  ;;  %17910 = vmatmul.msk.f32.gmra.mxu3 %vm96_vm1, %v20770_v48 }
 0x7a8   :  { %v13030_v1 = vpop.f32.mrf.mxu2  ;;  %v13053_v2 = vpop.f32.mrf.mxu3  ;;  %17923 = vmatpush.msk.msrb.mxu0 %vm103_vm0, %v13512_v31  ;;  %17926 = vmatpush.msk.msrb.mxu1 %vm103_vm0, %v13513_v34 }
 0x7a9   :  { %vm13382_vm8 = vcmp.gt.f32.partialorder %v13030_v1, 0.0  ;;  %v13446_v62 = vmul.f32 0.01, %v13030_v1  ;;  %vm13383_vm9 = vcmp.gt.f32.partialorder %v13053_v2, 0.0  ;;  %v13447_v54 = vmul.f32 0.01, %v13053_v2 }
 0x7aa   :  { %14104 = vmatpush.msrb.mxu0 %v13480_v23  ;;  %14127 = vmatpush.msrb.mxu1 %v13481_v24 }
 0x7ab   :  { %v13510_v3 = vsel %vm13382_vm8, %v13030_v1, %v13446_v62  ;;  %v13511_v6 = vsel %vm13383_vm9, %v13053_v2, %v13447_v54  ;;  %17924 = vmatmul.msk.f32.vlgmr.msrb.gmra.mxu0 %vm96_vm1, %v20755_v38  ;;  %17927 = vmatmul.msk.f32.vlgmr.msrb.gmra.mxu1 %vm96_vm1, %v20755_v38  ;;  %v13165_v36 = vpop.f32.mrf.mxu0  ;;  %v13188_v4 = vpop.f32.mrf.mxu1 }
 0x7ac   :  { %17917 = vmatpush.msk.msra.mxu2 %vm103_vm0, %v13510_v3  ;;  %17920 = vmatpush.msk.msra.mxu3 %vm103_vm0, %v13511_v6  ;;  %v13420_v13 = vmul.f32 0.01, %v13165_v36  ;;  %v13421_v44 = vmul.f32 0.01, %v13188_v4  ;;  %vm13356_vm6 = vcmp.gt.f32.partialorder %v13165_v36, 0.0  ;;  %vm13357_vm7 = vcmp.gt.f32.partialorder %v13188_v4, 0.0 }
 0x7ae   :  { %14058 = vmatpush.msra.mxu2 %v13478_v10  ;;  %14081 = vmatpush.msra.mxu3 %v13479_v11  ;;  %v13484_v49 = vsel %vm13356_vm6, %v13165_v36, %v13420_v13  ;;  %v13485_v28 = vsel %vm13357_vm7, %v13188_v4, %v13421_v44 }
 0x7af   :  { %17918 = vmatmul.msk.f32.vlgmr.msra.gmra.mxu2 %vm96_vm1, %v20755_v38  ;;  %17921 = vmatmul.msk.f32.vlgmr.msra.gmra.mxu3 %vm96_vm1, %v20755_v38 }
 0x7b0   :  { %v13119_v57 = vpop.f32.mrf.mxu2  ;;  %v13142_v14 = vpop.f32.mrf.mxu3 }
 0x7b1   :  { %v13418_v26 = vmul.f32 0.01, %v13119_v57  ;;  %v13419_v27 = vmul.f32 0.01, %v13142_v14  ;;  %vm13354_vm4 = vcmp.gt.f32.partialorder %v13119_v57, 0.0  ;;  %vm13355_vm5 = vcmp.gt.f32.partialorder %v13142_v14, 0.0 }
 0x7b3   :  { %v13482_v39 = vsel %vm13354_vm4, %v13119_v57, %v13418_v26  ;;  %v13483_v40 = vsel %vm13355_vm5, %v13142_v14, %v13419_v27  ;;  %17925 = vmatmul.msk.f32.gmra.mxu0 %vm96_vm1, %v20770_v48  ;;  %17928 = vmatmul.msk.f32.gmra.mxu1 %vm96_vm1, %v20770_v48  ;;  %v13168_v8 = vpop.f32.mrf.mxu0  ;;  %v13191_v45 = vpop.f32.mrf.mxu1 }
 0x7b4   :  { %vm13388_vm8 = vcmp.gt.f32.partialorder %v13168_v8, 0.0  ;;  %v13452_v46 = vmul.f32 0.01, %v13168_v8  ;;  %vm13389_vm9 = vcmp.gt.f32.partialorder %v13191_v45, 0.0  ;;  %v13453_v15 = vmul.f32 0.01, %v13191_v45 }
 0x7b6   :  { %v13516_v50 = vsel %vm13388_vm8, %v13168_v8, %v13452_v46  ;;  %v13517_v51 = vsel %vm13389_vm9, %v13191_v45, %v13453_v15  ;;  %v20934_v45 = vld [vmem:[%s21286_s1 + $0xe8] sm:$0x1f] }
 0x7b7   :  { %17919 = vmatmul.msk.f32.gmra.mxu2 %vm96_vm1, %v20770_v48  ;;  %17922 = vmatmul.msk.f32.gmra.mxu3 %vm96_vm1, %v20770_v48 }
 0x7b8   :  { %v13122_v29 = vpop.f32.mrf.mxu2  ;;  %v13145_v30 = vpop.f32.mrf.mxu3  ;;  %17935 = vmatpush.msk.msra.mxu0 %vm103_vm0, %v13516_v50  ;;  %17938 = vmatpush.msk.msra.mxu1 %vm103_vm0, %v13517_v51 }
 0x7b9   :  { %vm13386_vm2 = vcmp.gt.f32.partialorder %v13122_v29, 0.0  ;;  %v13450_v32 = vmul.f32 0.01, %v13122_v29  ;;  %vm13387_vm3 = vcmp.gt.f32.partialorder %v13145_v30, 0.0  ;;  %v13451_v43 = vmul.f32 0.01, %v13145_v30 }
 0x7ba   :  { %14196 = vmatpush.msra.mxu0 %v13484_v49  ;;  %14219 = vmatpush.msra.mxu1 %v13485_v28 }
 0x7bb   :  { %v13514_v33 = vsel %vm13386_vm2, %v13122_v29, %v13450_v32  ;;  %v13515_v35 = vsel %vm13387_vm3, %v13145_v30, %v13451_v43  ;;  %17936 = vmatmul.msk.f32.vlgmr.msra.gmra.mxu0 %vm96_vm1, %v20755_v38  ;;  %17939 = vmatmul.msk.f32.vlgmr.msra.gmra.mxu1 %vm96_vm1, %v20755_v38  ;;  %v13257_v58 = vpop.f32.mrf.mxu0  ;;  %v13280_v59 = vpop.f32.mrf.mxu1 }
 0x7bc   :  { %17929 = vmatpush.msk.msrb.mxu2 %vm103_vm0, %v13514_v33  ;;  %17932 = vmatpush.msk.msrb.mxu3 %vm103_vm0, %v13515_v35  ;;  %v13424_v63 = vmul.f32 0.01, %v13257_v58  ;;  %v13425_v0 = vmul.f32 0.01, %v13280_v59  ;;  %vm13360_vm14 = vcmp.gt.f32.partialorder %v13257_v58, 0.0  ;;  %vm13361_vm15 = vcmp.gt.f32.partialorder %v13280_v59, 0.0 }
 0x7be   :  { %14150 = vmatpush.msrb.mxu2 %v13482_v39  ;;  %14173 = vmatpush.msrb.mxu3 %v13483_v40  ;;  %v13488_v3 = vsel %vm13360_vm14, %v13257_v58, %v13424_v63  ;;  %v13489_v9 = vsel %vm13361_vm15, %v13280_v59, %v13425_v0 }
 0x7bf   :  { %17930 = vmatmul.msk.f32.vlgmr.msrb.gmra.mxu2 %vm96_vm1, %v20755_v38  ;;  %17933 = vmatmul.msk.f32.vlgmr.msrb.gmra.mxu3 %vm96_vm1, %v20755_v38 }
 0x7c0   :  { %v13211_v41 = vpop.f32.mrf.mxu2  ;;  %v13234_v5 = vpop.f32.mrf.mxu3 }
 0x7c1   :  { %v13422_v52 = vmul.f32 0.01, %v13211_v41  ;;  %v13423_v53 = vmul.f32 0.01, %v13234_v5  ;;  %vm13358_vm12 = vcmp.gt.f32.partialorder %v13211_v41, 0.0  ;;  %vm13359_vm13 = vcmp.gt.f32.partialorder %v13234_v5, 0.0 }
 0x7c3   :  { %v13486_v60 = vsel %vm13358_vm12, %v13211_v41, %v13422_v52  ;;  %v13487_v47 = vsel %vm13359_vm13, %v13234_v5, %v13423_v53  ;;  %17937 = vmatmul.msk.f32.gmra.mxu0 %vm96_vm1, %v20770_v48  ;;  %17940 = vmatmul.msk.f32.gmra.mxu1 %vm96_vm1, %v20770_v48  ;;  %v13260_v1 = vpop.f32.mrf.mxu0  ;;  %v13283_v2 = vpop.f32.mrf.mxu1 }
 0x7c4   :  { %vm13392_vm2 = vcmp.gt.f32.partialorder %v13260_v1, 0.0  ;;  %v13456_v62 = vmul.f32 0.01, %v13260_v1  ;;  %vm13393_vm3 = vcmp.gt.f32.partialorder %v13283_v2, 0.0  ;;  %v13457_v54 = vmul.f32 0.01, %v13283_v2 }
 0x7c6   :  { %v13520_v6 = vsel %vm13392_vm2, %v13260_v1, %v13456_v62  ;;  %v13521_v7 = vsel %vm13393_vm3, %v13283_v2, %v13457_v54 }
 0x7c7   :  { %17931 = vmatmul.msk.f32.gmra.mxu2 %vm96_vm1, %v20770_v48  ;;  %17934 = vmatmul.msk.f32.gmra.mxu3 %vm96_vm1, %v20770_v48 }
 0x7c8   :  { %v13214_v55 = vpop.f32.mrf.mxu2  ;;  %v13237_v37 = vpop.f32.mrf.mxu3  ;;  %17947 = vmatpush.msk.msrb.mxu0 %vm103_vm0, %v13520_v6  ;;  %17950 = vmatpush.msk.msrb.mxu1 %vm103_vm0, %v13521_v7 }
 0x7c9   :  { %vm13390_vm10 = vcmp.gt.f32.partialorder %v13214_v55, 0.0  ;;  %v13454_v20 = vmul.f32 0.01, %v13214_v55  ;;  %vm13391_vm11 = vcmp.gt.f32.partialorder %v13237_v37, 0.0  ;;  %v13455_v56 = vmul.f32 0.01, %v13237_v37 }
 0x7ca   :  { %14288 = vmatpush.msrb.mxu0 %v13488_v3  ;;  %14311 = vmatpush.msrb.mxu1 %v13489_v9 }
 0x7cb   :  { %v13518_v25 = vsel %vm13390_vm10, %v13214_v55, %v13454_v20  ;;  %v13519_v42 = vsel %vm13391_vm11, %v13237_v37, %v13455_v56  ;;  %17948 = vmatmul.msk.f32.vlgmr.msrb.gmra.mxu0 %vm96_vm1, %v20755_v38  ;;  %17951 = vmatmul.msk.f32.vlgmr.msrb.gmra.mxu1 %vm96_vm1, %v20755_v38  ;;  %v13646_v23 = vpop.f32.mrf.mxu0 }
 0x7cc   :  { %17941 = vmatpush.msk.msra.mxu2 %vm103_vm0, %v13518_v25  ;;  %17944 = vmatpush.msk.msra.mxu3 %vm103_vm0, %v13519_v42  ;;  %v14429_v34 = vmul.f32 0.01, %v13646_v23  ;;  %vm14365_vm8 = vcmp.gt.f32.partialorder %v13646_v23, 0.0 }
 0x7ce   :  { %14242 = vmatpush.msra.mxu2 %v13486_v60  ;;  %14265 = vmatpush.msra.mxu3 %v13487_v47  ;;  %v14493_v35 = vsel %vm14365_vm8, %v13646_v23, %v14429_v34 }
 0x7cf   :  { %17942 = vmatmul.msk.f32.vlgmr.msra.gmra.mxu2 %vm96_vm1, %v20755_v38  ;;  %17945 = vmatmul.msk.f32.vlgmr.msra.gmra.mxu3 %vm96_vm1, %v20755_v38 }
 0x7d0   :  { %v13303_v61 = vpop.f32.mrf.mxu2  ;;  %v13326_v17 = vpop.f32.mrf.mxu3 }
 0x7d1   :  { %v13426_v10 = vmul.f32 0.01, %v13303_v61  ;;  %v13427_v11 = vmul.f32 0.01, %v13326_v17  ;;  %vm13362_vm6 = vcmp.gt.f32.partialorder %v13303_v61, 0.0  ;;  %vm13363_vm7 = vcmp.gt.f32.partialorder %v13326_v17, 0.0 }
 0x7d3   :  { %v13490_v21 = vsel %vm13362_vm6, %v13303_v61, %v13426_v10  ;;  %v13491_v22 = vsel %vm13363_vm7, %v13326_v17, %v13427_v11  ;;  %17949 = vmatmul.msk.f32.gmra.mxu0 %vm96_vm1, %v20770_v48  ;;  %17952 = vmatmul.msk.f32.gmra.mxu1 %vm96_vm1, %v20770_v48  ;;  %v13649_v26 = vpop.f32.mrf.mxu0 }
 0x7d4   :  { %v13669_v31 = vpop.f32.mrf.mxu1  ;;  %vm14397_vm10 = vcmp.gt.f32.partialorder %v13649_v26, 0.0 }
 0x7d5   :  { %v14430_v24 = vmul.f32 0.01, %v13669_v31  ;;  %vm14366_vm9 = vcmp.gt.f32.partialorder %v13669_v31, 0.0 }
 0x7d7   :  { %17943 = vmatmul.msk.f32.gmra.mxu2 %vm96_vm1, %v20770_v48  ;;  %17946 = vmatmul.msk.f32.gmra.mxu3 %vm96_vm1, %v20770_v48  ;;  %v14494_v36 = vsel %vm14366_vm9, %v13669_v31, %v14430_v24 }
 0x7d8   :  { %v13306_v57 = vpop.f32.mrf.mxu2  ;;  %v13329_v14 = vpop.f32.mrf.mxu3 }
 0x7d9   :  { %vm13394_vm4 = vcmp.gt.f32.partialorder %v13306_v57, 0.0  ;;  %v13458_v12 = vmul.f32 0.01, %v13306_v57  ;;  %vm13395_vm5 = vcmp.gt.f32.partialorder %v13329_v14, 0.0  ;;  %v13459_v16 = vmul.f32 0.01, %v13329_v14 }
 0x7db   :  { %v13522_v18 = vsel %vm13394_vm4, %v13306_v57, %v13458_v12  ;;  %v13523_v19 = vsel %vm13395_vm5, %v13329_v14, %v13459_v16 }
 0x7dc   :  { %17953 = vmatpush.msk.msrb.mxu2 %vm103_vm0, %v13522_v18  ;;  %17956 = vmatpush.msk.msrb.mxu3 %vm103_vm0, %v13523_v19  ;;  %v13672_v27 = vpop.f32.mrf.mxu1 }
 0x7dd   :  { %vm14398_vm11 = vcmp.gt.f32.partialorder %v13672_v27, 0.0  ;;  %v14462_v29 = vmul.f32 0.01, %v13672_v27 }
 0x7de   :  { %14334 = vmatpush.msrb.mxu2 %v13490_v21  ;;  %14357 = vmatpush.msrb.mxu3 %v13491_v22 }
 0x7df   :  { %17954 = vmatmul.msk.f32.vlgmr.msrb.gmra.mxu2 %vm96_vm1, %v20755_v38  ;;  %17957 = vmatmul.msk.f32.vlgmr.msrb.gmra.mxu3 %vm96_vm1, %v20755_v38  ;;  %v14461_v38 = vmul.f32 0.01, %v13649_v26  ;;  %v14526_v33 = vsel %vm14398_vm11, %v13672_v27, %v14462_v29 }
 0x7e0   :  { %17964 = vmatpush.msk.msra.mxu1 %vm103_vm0, %v14526_v33 }
 0x7e1   :  { %v14525_v43 = vsel %vm14397_vm10, %v13649_v26, %v14461_v38 }
 0x7e2   :  { %17961 = vmatpush.msk.msra.mxu0 %vm103_vm0, %v14525_v43  ;;  %14700 = vmatpush.msra.mxu1 %v14494_v36 }
 0x7e4   :  { %14677 = vmatpush.msra.mxu0 %v14493_v35 }
 0x7e7   :  { %17955 = vmatmul.msk.f32.gmra.mxu2 %vm96_vm1, %v20770_v48  ;;  %17958 = vmatmul.msk.f32.gmra.mxu3 %vm96_vm1, %v20770_v48  ;;  %v20925_v48 = vld [vmem:[%s21286_s1 + $0xe0] sm:$0xff]  ;;  %v13738_v4 = vpop.f32.mrf.mxu0  ;;  %v13761_v39 = vpop.f32.mrf.mxu1 }
 0x7e8   :  { %17962 = vmatmul.msk.f32.vlgmr.msra.gmra.mxu0 %vm96_vm1, %v20925_v48  ;;  %17965 = vmatmul.msk.f32.vlgmr.msra.gmra.mxu1 %vm96_vm1, %v20925_v48  ;;  %v14433_v51 = vmul.f32 0.01, %v13738_v4  ;;  %v14434_v28 = vmul.f32 0.01, %v13761_v39  ;;  %vm14369_vm2 = vcmp.gt.f32.partialorder %v13738_v4, 0.0  ;;  %vm14370_vm3 = vcmp.gt.f32.partialorder %v13761_v39, 0.0 }
 0x7ea   :  { %v14497_v58 = vsel %vm14369_vm2, %v13738_v4, %v14433_v51  ;;  %v14498_v59 = vsel %vm14370_vm3, %v13761_v39, %v14434_v28 }
 0x7ef   :  { %v13741_v52 = vpop.f32.mrf.mxu0  ;;  %v13764_v53 = vpop.f32.mrf.mxu1 }
 0x7f0   :  { %17963 = vmatmul.msk.f32.gmra.mxu0 %vm96_vm1, %v20934_v45  ;;  %17966 = vmatmul.msk.f32.gmra.mxu1 %vm96_vm1, %v20934_v45  ;;  %vm14401_vm4 = vcmp.gt.f32.partialorder %v13741_v52, 0.0  ;;  %v14465_v55 = vmul.f32 0.01, %v13741_v52  ;;  %vm14402_vm5 = vcmp.gt.f32.partialorder %v13764_v53, 0.0  ;;  %v14466_v37 = vmul.f32 0.01, %v13764_v53 }
 0x7f2   :  { %v13692_v30 = vpop.f32.mrf.mxu2  ;;  %v13715_v32 = vpop.f32.mrf.mxu3  ;;  %v14529_v25 = vsel %vm14401_vm4, %v13741_v52, %v14465_v55  ;;  %v14530_v42 = vsel %vm14402_vm5, %v13764_v53, %v14466_v37 }
 0x7f3   :  { %v14431_v40 = vmul.f32 0.01, %v13692_v30  ;;  %v14432_v41 = vmul.f32 0.01, %v13715_v32  ;;  %vm14367_vm14 = vcmp.gt.f32.partialorder %v13692_v30, 0.0  ;;  %vm14368_vm15 = vcmp.gt.f32.partialorder %v13715_v32, 0.0  ;;  %17973 = vmatpush.msk.msrb.mxu0 %vm103_vm0, %v14529_v25  ;;  %17976 = vmatpush.msk.msrb.mxu1 %vm103_vm0, %v14530_v42 }
 0x7f5   :  { %v14495_v49 = vsel %vm14367_vm14, %v13692_v30, %v14431_v40  ;;  %v14496_v50 = vsel %vm14368_vm15, %v13715_v32, %v14432_v41  ;;  %14769 = vmatpush.msrb.mxu0 %v14497_v58  ;;  %14792 = vmatpush.msrb.mxu1 %v14498_v59 }
 0x7f8   :  { %17974 = vmatmul.msk.f32.vlgmr.msrb.gmra.mxu0 %vm96_vm1, %v20925_v48  ;;  %17977 = vmatmul.msk.f32.vlgmr.msrb.gmra.mxu1 %vm96_vm1, %v20925_v48  ;;  %v13830_v60 = vpop.f32.mrf.mxu0  ;;  %v13853_v47 = vpop.f32.mrf.mxu1 }
 0x7f9   :  { %v14437_v7 = vmul.f32 0.01, %v13830_v60  ;;  %v14438_v9 = vmul.f32 0.01, %v13853_v47  ;;  %vm14373_vm10 = vcmp.gt.f32.partialorder %v13830_v60, 0.0  ;;  %vm14374_vm11 = vcmp.gt.f32.partialorder %v13853_v47, 0.0 }
 0x7fa   :  { %v13695_v5 = vpop.f32.mrf.mxu2  ;;  %v13718_v13 = vpop.f32.mrf.mxu3 }
 0x7fb   :  { %vm14399_vm12 = vcmp.gt.f32.partialorder %v13695_v5, 0.0  ;;  %v14463_v44 = vmul.f32 0.01, %v13695_v5  ;;  %vm14400_vm13 = vcmp.gt.f32.partialorder %v13718_v13, 0.0  ;;  %v14464_v8 = vmul.f32 0.01, %v13718_v13 }
 0x7fc   :  { %v14501_v21 = vsel %vm14373_vm10, %v13830_v60, %v14437_v7  ;;  %v14502_v22 = vsel %vm14374_vm11, %v13853_v47, %v14438_v9 }
 0x7fd   :  { %v14527_v46 = vsel %vm14399_vm12, %v13695_v5, %v14463_v44  ;;  %v14528_v15 = vsel %vm14400_vm13, %v13718_v13, %v14464_v8 }
 0x7fe   :  { %17967 = vmatpush.msk.msra.mxu2 %vm103_vm0, %v14527_v46  ;;  %17970 = vmatpush.msk.msra.mxu3 %vm103_vm0, %v14528_v15 }
 0x800   :  { %14723 = vmatpush.msra.mxu2 %v14495_v49  ;;  %14746 = vmatpush.msra.mxu3 %v14496_v50  ;;  %v13833_v10 = vpop.f32.mrf.mxu0  ;;  %v13856_v11 = vpop.f32.mrf.mxu1 }
 0x801   :  { %17968 = vmatmul.msk.f32.vlgmr.msra.gmra.mxu2 %vm96_vm1, %v20925_v48  ;;  %17971 = vmatmul.msk.f32.vlgmr.msra.gmra.mxu3 %vm96_vm1, %v20925_v48  ;;  %vm14405_vm12 = vcmp.gt.f32.partialorder %v13833_v10, 0.0  ;;  %v14469_v57 = vmul.f32 0.01, %v13833_v10  ;;  %vm14406_vm13 = vcmp.gt.f32.partialorder %v13856_v11, 0.0  ;;  %v14470_v14 = vmul.f32 0.01, %v13856_v11 }
 0x802   :  { %v13784_v20 = vpop.f32.mrf.mxu2  ;;  %v13807_v56 = vpop.f32.mrf.mxu3  ;;  %17975 = vmatmul.msk.f32.gmra.mxu0 %vm96_vm1, %v20934_v45  ;;  %17978 = vmatmul.msk.f32.gmra.mxu1 %vm96_vm1, %v20934_v45 }
 0x803   :  { %v14435_v61 = vmul.f32 0.01, %v13784_v20  ;;  %v14436_v17 = vmul.f32 0.01, %v13807_v56  ;;  %vm14371_vm8 = vcmp.gt.f32.partialorder %v13784_v20, 0.0  ;;  %vm14372_vm9 = vcmp.gt.f32.partialorder %v13807_v56, 0.0 }
 0x804   :  { %v14533_v18 = vsel %vm14405_vm12, %v13833_v10, %v14469_v57  ;;  %v14534_v19 = vsel %vm14406_vm13, %v13856_v11, %v14470_v14 }
 0x805   :  { %v14499_v3 = vsel %vm14371_vm8, %v13784_v20, %v14435_v61  ;;  %v14500_v6 = vsel %vm14372_vm9, %v13807_v56, %v14436_v17  ;;  %17985 = vmatpush.msk.msra.mxu0 %vm103_vm0, %v14533_v18  ;;  %17988 = vmatpush.msk.msra.mxu1 %vm103_vm0, %v14534_v19 }
 0x807   :  { %14861 = vmatpush.msra.mxu0 %v14501_v21  ;;  %14884 = vmatpush.msra.mxu1 %v14502_v22 }
 0x808   :  { %v13922_v23 = vpop.f32.mrf.mxu0  ;;  %v13945_v31 = vpop.f32.mrf.mxu1 }
 0x809   :  { %17969 = vmatmul.msk.f32.gmra.mxu2 %vm96_vm1, %v20934_v45  ;;  %17972 = vmatmul.msk.f32.gmra.mxu3 %vm96_vm1, %v20934_v45  ;;  %v14441_v35 = vmul.f32 0.01, %v13922_v23  ;;  %v14442_v36 = vmul.f32 0.01, %v13945_v31  ;;  %vm14377_vm4 = vcmp.gt.f32.partialorder %v13922_v23, 0.0  ;;  %vm14378_vm5 = vcmp.gt.f32.partialorder %v13945_v31, 0.0 }
 0x80a   :  { %v13787_v63 = vpop.f32.mrf.mxu2  ;;  %v13810_v0 = vpop.f32.mrf.mxu3  ;;  %17986 = vmatmul.msk.f32.vlgmr.msra.gmra.mxu0 %vm96_vm1, %v20925_v48  ;;  %17989 = vmatmul.msk.f32.vlgmr.msra.gmra.mxu1 %vm96_vm1, %v20925_v48 }
 0x80b   :  { %vm14403_vm6 = vcmp.gt.f32.partialorder %v13787_v63, 0.0  ;;  %v14467_v1 = vmul.f32 0.01, %v13787_v63  ;;  %vm14404_vm7 = vcmp.gt.f32.partialorder %v13810_v0, 0.0  ;;  %v14468_v2 = vmul.f32 0.01, %v13810_v0 }
 0x80c   :  { %v14505_v46 = vsel %vm14377_vm4, %v13922_v23, %v14441_v35  ;;  %v14506_v15 = vsel %vm14378_vm5, %v13945_v31, %v14442_v36 }
 0x80d   :  { %v14531_v62 = vsel %vm14403_vm6, %v13787_v63, %v14467_v1  ;;  %v14532_v54 = vsel %vm14404_vm7, %v13810_v0, %v14468_v2 }
 0x80e   :  { %17979 = vmatpush.msk.msrb.mxu2 %vm103_vm0, %v14531_v62  ;;  %17982 = vmatpush.msk.msrb.mxu3 %vm103_vm0, %v14532_v54 }
 0x810   :  { %14815 = vmatpush.msrb.mxu2 %v14499_v3  ;;  %14838 = vmatpush.msrb.mxu3 %v14500_v6  ;;  %v13925_v4 = vpop.f32.mrf.mxu0  ;;  %v13948_v39 = vpop.f32.mrf.mxu1 }
 0x811   :  { %17980 = vmatmul.msk.f32.vlgmr.msrb.gmra.mxu2 %vm96_vm1, %v20925_v48  ;;  %17983 = vmatmul.msk.f32.vlgmr.msrb.gmra.mxu3 %vm96_vm1, %v20925_v48  ;;  %vm14409_vm6 = vcmp.gt.f32.partialorder %v13925_v4, 0.0  ;;  %v14473_v40 = vmul.f32 0.01, %v13925_v4  ;;  %vm14410_vm7 = vcmp.gt.f32.partialorder %v13948_v39, 0.0  ;;  %v14474_v41 = vmul.f32 0.01, %v13948_v39 }
 0x812   :  { %v13876_v12 = vpop.f32.mrf.mxu2  ;;  %v13899_v16 = vpop.f32.mrf.mxu3  ;;  %17987 = vmatmul.msk.f32.gmra.mxu0 %vm96_vm1, %v20934_v45  ;;  %17990 = vmatmul.msk.f32.gmra.mxu1 %vm96_vm1, %v20934_v45 }
 0x813   :  { %v14439_v34 = vmul.f32 0.01, %v13876_v12  ;;  %v14440_v24 = vmul.f32 0.01, %v13899_v16  ;;  %vm14375_vm2 = vcmp.gt.f32.partialorder %v13876_v12, 0.0  ;;  %vm14376_vm3 = vcmp.gt.f32.partialorder %v13899_v16, 0.0 }
 0x814   :  { %v14537_v44 = vsel %vm14409_vm6, %v13925_v4, %v14473_v40  ;;  %v14538_v8 = vsel %vm14410_vm7, %v13948_v39, %v14474_v41 }
 0x815   :  { %v14503_v43 = vsel %vm14375_vm2, %v13876_v12, %v14439_v34  ;;  %v14504_v33 = vsel %vm14376_vm3, %v13899_v16, %v14440_v24  ;;  %17997 = vmatpush.msk.msrb.mxu0 %vm103_vm0, %v14537_v44  ;;  %18000 = vmatpush.msk.msrb.mxu1 %vm103_vm0, %v14538_v8 }
 0x817   :  { %14953 = vmatpush.msrb.mxu0 %v14505_v46  ;;  %14976 = vmatpush.msrb.mxu1 %v14506_v15 }
 0x818   :  { %v14014_v49 = vpop.f32.mrf.mxu0  ;;  %v14037_v50 = vpop.f32.mrf.mxu1 }
 0x819   :  { %17981 = vmatmul.msk.f32.gmra.mxu2 %vm96_vm1, %v20934_v45  ;;  %17984 = vmatmul.msk.f32.gmra.mxu3 %vm96_vm1, %v20934_v45  ;;  %v14445_v58 = vmul.f32 0.01, %v14014_v49  ;;  %v14446_v59 = vmul.f32 0.01, %v14037_v50  ;;  %vm14381_vm12 = vcmp.gt.f32.partialorder %v14014_v49, 0.0  ;;  %vm14382_vm13 = vcmp.gt.f32.partialorder %v14037_v50, 0.0 }
 0x81a   :  { %v13879_v26 = vpop.f32.mrf.mxu2  ;;  %v13902_v27 = vpop.f32.mrf.mxu3  ;;  %17998 = vmatmul.msk.f32.vlgmr.msrb.gmra.mxu0 %vm96_vm1, %v20925_v48  ;;  %18001 = vmatmul.msk.f32.vlgmr.msrb.gmra.mxu1 %vm96_vm1, %v20925_v48 }
 0x81b   :  { %vm14407_vm14 = vcmp.gt.f32.partialorder %v13879_v26, 0.0  ;;  %v14471_v38 = vmul.f32 0.01, %v13879_v26  ;;  %vm14408_vm15 = vcmp.gt.f32.partialorder %v13902_v27, 0.0  ;;  %v14472_v29 = vmul.f32 0.01, %v13902_v27 }
 0x81c   :  { %v14509_v62 = vsel %vm14381_vm12, %v14014_v49, %v14445_v58  ;;  %v14510_v54 = vsel %vm14382_vm13, %v14037_v50, %v14446_v59 }
 0x81d   :  { %v14535_v30 = vsel %vm14407_vm14, %v13879_v26, %v14471_v38  ;;  %v14536_v32 = vsel %vm14408_vm15, %v13902_v27, %v14472_v29 }
 0x81e   :  { %17991 = vmatpush.msk.msra.mxu2 %vm103_vm0, %v14535_v30  ;;  %17994 = vmatpush.msk.msra.mxu3 %vm103_vm0, %v14536_v32 }
 0x820   :  { %14907 = vmatpush.msra.mxu2 %v14503_v43  ;;  %14930 = vmatpush.msra.mxu3 %v14504_v33  ;;  %v14017_v60 = vpop.f32.mrf.mxu0  ;;  %v14040_v47 = vpop.f32.mrf.mxu1 }
 0x821   :  { %17992 = vmatmul.msk.f32.vlgmr.msra.gmra.mxu2 %vm96_vm1, %v20925_v48  ;;  %17995 = vmatmul.msk.f32.vlgmr.msra.gmra.mxu3 %vm96_vm1, %v20925_v48  ;;  %vm14413_vm14 = vcmp.gt.f32.partialorder %v14017_v60, 0.0  ;;  %v14477_v61 = vmul.f32 0.01, %v14017_v60  ;;  %vm14414_vm15 = vcmp.gt.f32.partialorder %v14040_v47, 0.0  ;;  %v14478_v17 = vmul.f32 0.01, %v14040_v47 }
 0x822   :  { %v13968_v5 = vpop.f32.mrf.mxu2  ;;  %v13991_v13 = vpop.f32.mrf.mxu3  ;;  %17999 = vmatmul.msk.f32.gmra.mxu0 %vm96_vm1, %v20934_v45  ;;  %18002 = vmatmul.msk.f32.gmra.mxu1 %vm96_vm1, %v20934_v45 }
 0x823   :  { %v14443_v51 = vmul.f32 0.01, %v13968_v5  ;;  %v14444_v28 = vmul.f32 0.01, %v13991_v13  ;;  %vm14379_vm10 = vcmp.gt.f32.partialorder %v13968_v5, 0.0  ;;  %vm14380_vm11 = vcmp.gt.f32.partialorder %v13991_v13, 0.0 }
 0x824   :  { %v14541_v1 = vsel %vm14413_vm14, %v14017_v60, %v14477_v61  ;;  %v14542_v2 = vsel %vm14414_vm15, %v14040_v47, %v14478_v17 }
 0x825   :  { %v14507_v25 = vsel %vm14379_vm10, %v13968_v5, %v14443_v51  ;;  %v14508_v42 = vsel %vm14380_vm11, %v13991_v13, %v14444_v28  ;;  %18009 = vmatpush.msk.msra.mxu0 %vm103_vm0, %v14541_v1  ;;  %18012 = vmatpush.msk.msra.mxu1 %vm103_vm0, %v14542_v2 }
 0x827   :  { %15045 = vmatpush.msra.mxu0 %v14509_v62  ;;  %15068 = vmatpush.msra.mxu1 %v14510_v54 }
 0x828   :  { %v14106_v3 = vpop.f32.mrf.mxu0  ;;  %v14129_v6 = vpop.f32.mrf.mxu1 }
 0x829   :  { %17993 = vmatmul.msk.f32.gmra.mxu2 %vm96_vm1, %v20934_v45  ;;  %17996 = vmatmul.msk.f32.gmra.mxu3 %vm96_vm1, %v20934_v45  ;;  %v14449_v21 = vmul.f32 0.01, %v14106_v3  ;;  %v14450_v22 = vmul.f32 0.01, %v14129_v6  ;;  %vm14385_vm6 = vcmp.gt.f32.partialorder %v14106_v3, 0.0  ;;  %vm14386_vm7 = vcmp.gt.f32.partialorder %v14129_v6, 0.0 }
 0x82a   :  { %v13971_v52 = vpop.f32.mrf.mxu2  ;;  %v13994_v53 = vpop.f32.mrf.mxu3  ;;  %18010 = vmatmul.msk.f32.vlgmr.msra.gmra.mxu0 %vm96_vm1, %v20925_v48  ;;  %18013 = vmatmul.msk.f32.vlgmr.msra.gmra.mxu1 %vm96_vm1, %v20925_v48 }
 0x82b   :  { %vm14411_vm8 = vcmp.gt.f32.partialorder %v13971_v52, 0.0  ;;  %v14475_v55 = vmul.f32 0.01, %v13971_v52  ;;  %vm14412_vm9 = vcmp.gt.f32.partialorder %v13994_v53, 0.0  ;;  %v14476_v37 = vmul.f32 0.01, %v13994_v53 }
 0x82c   :  { %v14513_v30 = vsel %vm14385_vm6, %v14106_v3, %v14449_v21  ;;  %v14514_v32 = vsel %vm14386_vm7, %v14129_v6, %v14450_v22 }
 0x82d   :  { %v14539_v20 = vsel %vm14411_vm8, %v13971_v52, %v14475_v55  ;;  %v14540_v56 = vsel %vm14412_vm9, %v13994_v53, %v14476_v37 }
 0x82e   :  { %18003 = vmatpush.msk.msrb.mxu2 %vm103_vm0, %v14539_v20  ;;  %18006 = vmatpush.msk.msrb.mxu3 %vm103_vm0, %v14540_v56 }
 0x830   :  { %14999 = vmatpush.msrb.mxu2 %v14507_v25  ;;  %15022 = vmatpush.msrb.mxu3 %v14508_v42  ;;  %v14109_v23 = vpop.f32.mrf.mxu0  ;;  %v14132_v31 = vpop.f32.mrf.mxu1 }
 0x831   :  { %18004 = vmatmul.msk.f32.vlgmr.msrb.gmra.mxu2 %vm96_vm1, %v20925_v48  ;;  %18007 = vmatmul.msk.f32.vlgmr.msrb.gmra.mxu3 %vm96_vm1, %v20925_v48  ;;  %vm14417_vm8 = vcmp.gt.f32.partialorder %v14109_v23, 0.0  ;;  %v14481_v34 = vmul.f32 0.01, %v14109_v23  ;;  %vm14418_vm9 = vcmp.gt.f32.partialorder %v14132_v31, 0.0  ;;  %v14482_v24 = vmul.f32 0.01, %v14132_v31 }
 0x832   :  { %v14060_v63 = vpop.f32.mrf.mxu2  ;;  %v14083_v0 = vpop.f32.mrf.mxu3  ;;  %18011 = vmatmul.msk.f32.gmra.mxu0 %vm96_vm1, %v20934_v45  ;;  %18014 = vmatmul.msk.f32.gmra.mxu1 %vm96_vm1, %v20934_v45 }
 0x833   :  { %v14447_v7 = vmul.f32 0.01, %v14060_v63  ;;  %v14448_v9 = vmul.f32 0.01, %v14083_v0  ;;  %vm14383_vm4 = vcmp.gt.f32.partialorder %v14060_v63, 0.0  ;;  %vm14384_vm5 = vcmp.gt.f32.partialorder %v14083_v0, 0.0 }
 0x834   :  { %v14545_v38 = vsel %vm14417_vm8, %v14109_v23, %v14481_v34  ;;  %v14546_v29 = vsel %vm14418_vm9, %v14132_v31, %v14482_v24 }
 0x835   :  { %v14511_v18 = vsel %vm14383_vm4, %v14060_v63, %v14447_v7  ;;  %v14512_v19 = vsel %vm14384_vm5, %v14083_v0, %v14448_v9  ;;  %18021 = vmatpush.msk.msrb.mxu0 %vm103_vm0, %v14545_v38  ;;  %18024 = vmatpush.msk.msrb.mxu1 %vm103_vm0, %v14546_v29 }
 0x837   :  { %15137 = vmatpush.msrb.mxu0 %v14513_v30  ;;  %15160 = vmatpush.msrb.mxu1 %v14514_v32 }
 0x838   :  { %v14198_v43 = vpop.f32.mrf.mxu0  ;;  %v14221_v33 = vpop.f32.mrf.mxu1 }
 0x839   :  { %18005 = vmatmul.msk.f32.gmra.mxu2 %vm96_vm1, %v20934_v45  ;;  %18008 = vmatmul.msk.f32.gmra.mxu3 %vm96_vm1, %v20934_v45  ;;  %v14453_v46 = vmul.f32 0.01, %v14198_v43  ;;  %v14454_v15 = vmul.f32 0.01, %v14221_v33  ;;  %vm14389_vm14 = vcmp.gt.f32.partialorder %v14198_v43, 0.0  ;;  %vm14390_vm15 = vcmp.gt.f32.partialorder %v14221_v33, 0.0 }
 0x83a   :  { %v14063_v10 = vpop.f32.mrf.mxu2  ;;  %v14086_v11 = vpop.f32.mrf.mxu3  ;;  %18022 = vmatmul.msk.f32.vlgmr.msrb.gmra.mxu0 %vm96_vm1, %v20925_v48  ;;  %18025 = vmatmul.msk.f32.vlgmr.msrb.gmra.mxu1 %vm96_vm1, %v20925_v48 }
 0x83b   :  { %vm14415_vm2 = vcmp.gt.f32.partialorder %v14063_v10, 0.0  ;;  %v14479_v57 = vmul.f32 0.01, %v14063_v10  ;;  %vm14416_vm3 = vcmp.gt.f32.partialorder %v14086_v11, 0.0  ;;  %v14480_v14 = vmul.f32 0.01, %v14086_v11 }
 0x83c   :  { %v14517_v20 = vsel %vm14389_vm14, %v14198_v43, %v14453_v46  ;;  %v14518_v56 = vsel %vm14390_vm15, %v14221_v33, %v14454_v15 }
 0x83d   :  { %v14543_v12 = vsel %vm14415_vm2, %v14063_v10, %v14479_v57  ;;  %v14544_v16 = vsel %vm14416_vm3, %v14086_v11, %v14480_v14 }
 0x83e   :  { %18015 = vmatpush.msk.msra.mxu2 %vm103_vm0, %v14543_v12  ;;  %18018 = vmatpush.msk.msra.mxu3 %vm103_vm0, %v14544_v16 }
 0x840   :  { %15091 = vmatpush.msra.mxu2 %v14511_v18  ;;  %15114 = vmatpush.msra.mxu3 %v14512_v19  ;;  %v14201_v49 = vpop.f32.mrf.mxu0  ;;  %v14224_v50 = vpop.f32.mrf.mxu1 }
 0x841   :  { %18016 = vmatmul.msk.f32.vlgmr.msra.gmra.mxu2 %vm96_vm1, %v20925_v48  ;;  %18019 = vmatmul.msk.f32.vlgmr.msra.gmra.mxu3 %vm96_vm1, %v20925_v48  ;;  %vm14421_vm2 = vcmp.gt.f32.partialorder %v14201_v49, 0.0  ;;  %v14485_v51 = vmul.f32 0.01, %v14201_v49  ;;  %vm14422_vm3 = vcmp.gt.f32.partialorder %v14224_v50, 0.0  ;;  %v14486_v28 = vmul.f32 0.01, %v14224_v50 }
 0x842   :  { %v14152_v26 = vpop.f32.mrf.mxu2  ;;  %v14175_v27 = vpop.f32.mrf.mxu3  ;;  %18023 = vmatmul.msk.f32.gmra.mxu0 %vm96_vm1, %v20934_v45  ;;  %18026 = vmatmul.msk.f32.gmra.mxu1 %vm96_vm1, %v20934_v45 }
 0x843   :  { %v14451_v35 = vmul.f32 0.01, %v14152_v26  ;;  %v14452_v36 = vmul.f32 0.01, %v14175_v27  ;;  %vm14387_vm12 = vcmp.gt.f32.partialorder %v14152_v26, 0.0  ;;  %vm14388_vm13 = vcmp.gt.f32.partialorder %v14175_v27, 0.0 }
 0x844   :  { %v14549_v55 = vsel %vm14421_vm2, %v14201_v49, %v14485_v51  ;;  %v14550_v37 = vsel %vm14422_vm3, %v14224_v50, %v14486_v28 }
 0x845   :  { %v14515_v44 = vsel %vm14387_vm12, %v14152_v26, %v14451_v35  ;;  %v14516_v8 = vsel %vm14388_vm13, %v14175_v27, %v14452_v36  ;;  %18033 = vmatpush.msk.msra.mxu0 %vm103_vm0, %v14549_v55  ;;  %18036 = vmatpush.msk.msra.mxu1 %vm103_vm0, %v14550_v37 }
 0x847   :  { %15229 = vmatpush.msra.mxu0 %v14517_v20  ;;  %15252 = vmatpush.msra.mxu1 %v14518_v56 }
 0x848   :  { %v14290_v25 = vpop.f32.mrf.mxu0  ;;  %v14313_v42 = vpop.f32.mrf.mxu1 }
 0x849   :  { %18017 = vmatmul.msk.f32.gmra.mxu2 %vm96_vm1, %v20934_v45  ;;  %18020 = vmatmul.msk.f32.gmra.mxu3 %vm96_vm1, %v20934_v45  ;;  %v14457_v62 = vmul.f32 0.01, %v14290_v25  ;;  %v14458_v54 = vmul.f32 0.01, %v14313_v42  ;;  %vm14393_vm8 = vcmp.gt.f32.partialorder %v14290_v25, 0.0  ;;  %vm14394_vm9 = vcmp.gt.f32.partialorder %v14313_v42, 0.0 }
 0x84a   :  { %v14155_v4 = vpop.f32.mrf.mxu2  ;;  %v14178_v39 = vpop.f32.mrf.mxu3  ;;  %18034 = vmatmul.msk.f32.vlgmr.msra.gmra.mxu0 %vm96_vm1, %v20925_v48  ;;  %18037 = vmatmul.msk.f32.vlgmr.msra.gmra.mxu1 %vm96_vm1, %v20925_v48 }
 0x84b   :  { %vm14419_vm10 = vcmp.gt.f32.partialorder %v14155_v4, 0.0  ;;  %v14483_v40 = vmul.f32 0.01, %v14155_v4  ;;  %vm14420_vm11 = vcmp.gt.f32.partialorder %v14178_v39, 0.0  ;;  %v14484_v41 = vmul.f32 0.01, %v14178_v39 }
 0x84c   :  { %v14521_v12 = vsel %vm14393_vm8, %v14290_v25, %v14457_v62  ;;  %v14522_v16 = vsel %vm14394_vm9, %v14313_v42, %v14458_v54 }
 0x84d   :  { %v14547_v5 = vsel %vm14419_vm10, %v14155_v4, %v14483_v40  ;;  %v14548_v13 = vsel %vm14420_vm11, %v14178_v39, %v14484_v41 }
 0x84e   :  { %18027 = vmatpush.msk.msrb.mxu2 %vm103_vm0, %v14547_v5  ;;  %18030 = vmatpush.msk.msrb.mxu3 %vm103_vm0, %v14548_v13 }
 0x850   :  { %15183 = vmatpush.msrb.mxu2 %v14515_v44  ;;  %15206 = vmatpush.msrb.mxu3 %v14516_v8  ;;  %v14293_v3 = vpop.f32.mrf.mxu0  ;;  %v14316_v6 = vpop.f32.mrf.mxu1  ;;  %v21095_v44 = vld [vmem:[%s21287_s2] sm:$0x1] }
 0x851   :  { %18028 = vmatmul.msk.f32.vlgmr.msrb.gmra.mxu2 %vm96_vm1, %v20925_v48  ;;  %18031 = vmatmul.msk.f32.vlgmr.msrb.gmra.mxu3 %vm96_vm1, %v20925_v48  ;;  %vm14425_vm10 = vcmp.gt.f32.partialorder %v14293_v3, 0.0  ;;  %v14489_v7 = vmul.f32 0.01, %v14293_v3  ;;  %vm14426_vm11 = vcmp.gt.f32.partialorder %v14316_v6, 0.0  ;;  %v14490_v9 = vmul.f32 0.01, %v14316_v6 }
 0x852   :  { %v14244_v52 = vpop.f32.mrf.mxu2  ;;  %v14267_v53 = vpop.f32.mrf.mxu3  ;;  %18035 = vmatmul.msk.f32.gmra.mxu0 %vm96_vm1, %v20934_v45  ;;  %18038 = vmatmul.msk.f32.gmra.mxu1 %vm96_vm1, %v20934_v45 }
 0x853   :  { %v14455_v58 = vmul.f32 0.01, %v14244_v52  ;;  %v14456_v59 = vmul.f32 0.01, %v14267_v53  ;;  %vm14391_vm6 = vcmp.gt.f32.partialorder %v14244_v52, 0.0  ;;  %vm14392_vm7 = vcmp.gt.f32.partialorder %v14267_v53, 0.0 }
 0x854   :  { %v14553_v57 = vsel %vm14425_vm10, %v14293_v3, %v14489_v7  ;;  %v14554_v14 = vsel %vm14426_vm11, %v14316_v6, %v14490_v9 }
 0x855   :  { %v14519_v1 = vsel %vm14391_vm6, %v14244_v52, %v14455_v58  ;;  %v14520_v2 = vsel %vm14392_vm7, %v14267_v53, %v14456_v59  ;;  %18045 = vmatpush.msk.msrb.mxu0 %vm103_vm0, %v14553_v57  ;;  %18048 = vmatpush.msk.msrb.mxu1 %vm103_vm0, %v14554_v14 }
 0x857   :  { %15321 = vmatpush.msrb.mxu0 %v14521_v12  ;;  %15344 = vmatpush.msrb.mxu1 %v14522_v16 }
 0x859   :  { %18029 = vmatmul.msk.f32.gmra.mxu2 %vm96_vm1, %v20934_v45  ;;  %18032 = vmatmul.msk.f32.gmra.mxu3 %vm96_vm1, %v20934_v45 }
 0x85a   :  { %v14247_v60 = vpop.f32.mrf.mxu2  ;;  %v14270_v47 = vpop.f32.mrf.mxu3  ;;  %18046 = vmatmul.msk.f32.vlgmr.msrb.gmra.mxu0 %vm96_vm1, %v20925_v48  ;;  %18049 = vmatmul.msk.f32.vlgmr.msrb.gmra.mxu1 %vm96_vm1, %v20925_v48 }
 0x85b   :  { %vm14423_vm4 = vcmp.gt.f32.partialorder %v14247_v60, 0.0  ;;  %v14487_v61 = vmul.f32 0.01, %v14247_v60  ;;  %vm14424_vm5 = vcmp.gt.f32.partialorder %v14270_v47, 0.0  ;;  %v14488_v17 = vmul.f32 0.01, %v14270_v47 }
 0x85d   :  { %v14551_v63 = vsel %vm14423_vm4, %v14247_v60, %v14487_v61  ;;  %v14552_v0 = vsel %vm14424_vm5, %v14270_v47, %v14488_v17 }
 0x85e   :  { %18039 = vmatpush.msk.msra.mxu2 %vm103_vm0, %v14551_v63  ;;  %18042 = vmatpush.msk.msra.mxu3 %vm103_vm0, %v14552_v0 }
 0x860   :  { %15275 = vmatpush.msra.mxu2 %v14519_v1  ;;  %15298 = vmatpush.msra.mxu3 %v14520_v2 }
 0x861   :  { %18040 = vmatmul.msk.f32.vlgmr.msra.gmra.mxu2 %vm96_vm1, %v20925_v48  ;;  %18043 = vmatmul.msk.f32.vlgmr.msra.gmra.mxu3 %vm96_vm1, %v20925_v48 }
 0x862   :  { %v14336_v10 = vpop.f32.mrf.mxu2  ;;  %v14359_v11 = vpop.f32.mrf.mxu3  ;;  %18047 = vmatmul.msk.f32.gmra.mxu0 %vm96_vm1, %v20934_v45  ;;  %18050 = vmatmul.msk.f32.gmra.mxu1 %vm96_vm1, %v20934_v45 }
 0x863   :  { %v14459_v18 = vmul.f32 0.01, %v14336_v10  ;;  %v14460_v19 = vmul.f32 0.01, %v14359_v11  ;;  %vm14395_vm14 = vcmp.gt.f32.partialorder %v14336_v10, 0.0  ;;  %vm14396_vm15 = vcmp.gt.f32.partialorder %v14359_v11, 0.0 }
 0x865   :  { %v14523_v26 = vsel %vm14395_vm14, %v14336_v10, %v14459_v18  ;;  %v14524_v27 = vsel %vm14396_vm15, %v14359_v11, %v14460_v19  ;;  %v14679_v38 = vpop.f32.mrf.mxu0  ;;  %v14702_v29 = vpop.f32.mrf.mxu1 }
 0x866   :  { %v15462_v30 = vmul.f32 0.01, %v14679_v38  ;;  %v15463_v32 = vmul.f32 0.01, %v14702_v29  ;;  %vm15398_vm2 = vcmp.gt.f32.partialorder %v14679_v38, 0.0  ;;  %vm15399_vm3 = vcmp.gt.f32.partialorder %v14702_v29, 0.0 }
 0x868   :  { %v15526_v39 = vsel %vm15398_vm2, %v14679_v38, %v15462_v30  ;;  %v15527_v40 = vsel %vm15399_vm3, %v14702_v29, %v15463_v32 }
 0x869   :  { %18041 = vmatmul.msk.f32.gmra.mxu2 %vm96_vm1, %v20934_v45  ;;  %18044 = vmatmul.msk.f32.gmra.mxu3 %vm96_vm1, %v20934_v45 }
 0x86a   :  { %v14339_v21 = vpop.f32.mrf.mxu2  ;;  %v14362_v22 = vpop.f32.mrf.mxu3 }
 0x86b   :  { %vm14427_vm12 = vcmp.gt.f32.partialorder %v14339_v21, 0.0  ;;  %v14491_v23 = vmul.f32 0.01, %v14339_v21  ;;  %vm14428_vm13 = vcmp.gt.f32.partialorder %v14362_v22, 0.0  ;;  %v14492_v31 = vmul.f32 0.01, %v14362_v22 }
 0x86d   :  { %v14555_v34 = vsel %vm14427_vm12, %v14339_v21, %v14491_v23  ;;  %v14556_v24 = vsel %vm14428_vm13, %v14362_v22, %v14492_v31  ;;  %v14682_v43 = vpop.f32.mrf.mxu0  ;;  %v14705_v33 = vpop.f32.mrf.mxu1 }
 0x86e   :  { %18051 = vmatpush.msk.msrb.mxu2 %vm103_vm0, %v14555_v34  ;;  %18054 = vmatpush.msk.msrb.mxu3 %vm103_vm0, %v14556_v24  ;;  %vm15430_vm4 = vcmp.gt.f32.partialorder %v14682_v43, 0.0  ;;  %v15494_v35 = vmul.f32 0.01, %v14682_v43  ;;  %vm15431_vm5 = vcmp.gt.f32.partialorder %v14705_v33, 0.0  ;;  %v15495_v36 = vmul.f32 0.01, %v14705_v33 }
 0x870   :  { %15367 = vmatpush.msrb.mxu2 %v14523_v26  ;;  %15390 = vmatpush.msrb.mxu3 %v14524_v27  ;;  %v15558_v4 = vsel %vm15430_vm4, %v14682_v43, %v15494_v35 }
 0x871   :  { %18052 = vmatmul.msk.f32.vlgmr.msrb.gmra.mxu2 %vm96_vm1, %v20925_v48  ;;  %18055 = vmatmul.msk.f32.vlgmr.msrb.gmra.mxu3 %vm96_vm1, %v20925_v48  ;;  %v15559_v48 = vsel %vm15431_vm5, %v14705_v33, %v15495_v36 }
 0x872   :  { %18057 = vmatpush.msk.msra.mxu0 %vm103_vm0, %v15558_v4  ;;  %18059 = vmatpush.msk.msra.mxu1 %vm103_vm0, %v15559_v48 }
 0x874   :  { %15705 = vmatpush.msra.mxu0 %v15526_v39  ;;  %15725 = vmatpush.msra.mxu1 %v15527_v40 }
 0x875   :  { %v14771_v5 = vpop.f32.mrf.mxu0  ;;  %v14794_v13 = vpop.f32.mrf.mxu1  ;;  %18058 = vmatmul.msk.f32.vlgmr.msra.gmra.mxu0 %vm96_vm1, %v21095_v44  ;;  %18060 = vmatmul.msk.f32.vlgmr.msra.gmra.mxu1 %vm96_vm1, %v21095_v44 }
 0x876   :  { %v15466_v46 = vmul.f32 0.01, %v14771_v5  ;;  %vm15402_vm8 = vcmp.gt.f32.partialorder %v14771_v5, 0.0  ;;  %vm15403_vm9 = vcmp.gt.f32.partialorder %v14794_v13, 0.0  ;;  %v15467_v51 = vmul.f32 0.01, %v14794_v13 }
 0x878   :  { %v15530_v42 = vsel %vm15402_vm8, %v14771_v5, %v15466_v46  ;;  %v15531_v60 = vsel %vm15403_vm9, %v14794_v13, %v15467_v51 }
 0x879   :  { %18053 = vmatmul.msk.f32.gmra.mxu2 %vm96_vm1, %v20934_v45  ;;  %18056 = vmatmul.msk.f32.gmra.mxu3 %vm96_vm1, %v20934_v45 }
 0x87f   :  { %v14774_v53 = vpop.f32.mrf.mxu0  ;;  %v14797_v55 = vpop.f32.mrf.mxu1 }
 0x880   :  { %vm15434_vm12 = vcmp.gt.f32.partialorder %v14774_v53, 0.0  ;;  %v15498_v37 = vmul.f32 0.01, %v14774_v53  ;;  %vm15435_vm13 = vcmp.gt.f32.partialorder %v14797_v55, 0.0  ;;  %v15499_v20 = vmul.f32 0.01, %v14797_v55 }
 0x882   :  { %v15562_v58 = vsel %vm15434_vm12, %v14774_v53, %v15498_v37  ;;  %v15563_v59 = vsel %vm15435_vm13, %v14797_v55, %v15499_v20 }
 0x883   :  { %18065 = vmatpush.msk.msrb.mxu0 %vm103_vm0, %v15562_v58  ;;  %18067 = vmatpush.msk.msrb.mxu1 %vm103_vm0, %v15563_v59 }
 0x884   :  { %v14725_v45 = vpop.f32.mrf.mxu2  ;;  %v14748_v41 = vpop.f32.mrf.mxu3 }
 0x885   :  { %vm15400_vm6 = vcmp.gt.f32.partialorder %v14725_v45, 0.0  ;;  %v15464_v8 = vmul.f32 0.01, %v14725_v45  ;;  %vm15401_vm7 = vcmp.gt.f32.partialorder %v14748_v41, 0.0  ;;  %v15465_v15 = vmul.f32 0.01, %v14748_v41  ;;  %15785 = vmatpush.msrb.mxu0 %v15530_v42  ;;  %15805 = vmatpush.msrb.mxu1 %v15531_v60 }
 0x886   :  { %18066 = vmatmul.msk.f32.vlgmr.msrb.gmra.mxu0 %vm96_vm1, %v21095_v44  ;;  %18068 = vmatmul.msk.f32.vlgmr.msrb.gmra.mxu1 %vm96_vm1, %v21095_v44 }
 0x887   :  { %v15528_v47 = vsel %vm15400_vm6, %v14725_v45, %v15464_v8  ;;  %v15529_v61 = vsel %vm15401_vm7, %v14748_v41, %v15465_v15  ;;  %v14863_v0 = vpop.f32.mrf.mxu0  ;;  %v14886_v1 = vpop.f32.mrf.mxu1 }
 0x888   :  { %v15470_v62 = vmul.f32 0.01, %v14863_v0  ;;  %vm15406_vm2 = vcmp.gt.f32.partialorder %v14863_v0, 0.0  ;;  %vm15407_vm3 = vcmp.gt.f32.partialorder %v14886_v1, 0.0  ;;  %v15471_v7 = vmul.f32 0.01, %v14886_v1 }
 0x88a   :  { %v15534_v19 = vsel %vm15406_vm2, %v14863_v0, %v15470_v62  ;;  %v15535_v23 = vsel %vm15407_vm3, %v14886_v1, %v15471_v7 }
 0x88c   :  { %v14728_v49 = vpop.f32.mrf.mxu2  ;;  %v14751_v50 = vpop.f32.mrf.mxu3 }
 0x88d   :  { %vm15432_vm10 = vcmp.gt.f32.partialorder %v14728_v49, 0.0  ;;  %v15496_v28 = vmul.f32 0.01, %v14728_v49  ;;  %vm15433_vm11 = vcmp.gt.f32.partialorder %v14751_v50, 0.0  ;;  %v15497_v52 = vmul.f32 0.01, %v14751_v50 }
 0x88f   :  { %v15560_v56 = vsel %vm15432_vm10, %v14728_v49, %v15496_v28  ;;  %v15561_v25 = vsel %vm15433_vm11, %v14751_v50, %v15497_v52  ;;  %v14866_v11 = vpop.f32.mrf.mxu0  ;;  %v14889_v57 = vpop.f32.mrf.mxu1 }
 0x890   :  { %18061 = vmatpush.msk.msra.mxu2 %vm103_vm0, %v15560_v56  ;;  %18063 = vmatpush.msk.msra.mxu3 %vm103_vm0, %v15561_v25  ;;  %vm15438_vm6 = vcmp.gt.f32.partialorder %v14866_v11, 0.0  ;;  %v15502_v14 = vmul.f32 0.01, %v14866_v11  ;;  %vm15439_vm7 = vcmp.gt.f32.partialorder %v14889_v57, 0.0  ;;  %v15503_v12 = vmul.f32 0.01, %v14889_v57 }
 0x892   :  { %15745 = vmatpush.msra.mxu2 %v15528_v47  ;;  %15765 = vmatpush.msra.mxu3 %v15529_v61  ;;  %v15566_v21 = vsel %vm15438_vm6, %v14866_v11, %v15502_v14  ;;  %v15567_v22 = vsel %vm15439_vm7, %v14889_v57, %v15503_v12 }
 0x893   :  { %18062 = vmatmul.msk.f32.vlgmr.msra.gmra.mxu2 %vm96_vm1, %v21095_v44  ;;  %18064 = vmatmul.msk.f32.vlgmr.msra.gmra.mxu3 %vm96_vm1, %v21095_v44 }
 0x894   :  { %v14817_v17 = vpop.f32.mrf.mxu2  ;;  %v14840_v63 = vpop.f32.mrf.mxu3  ;;  %18073 = vmatpush.msk.msra.mxu0 %vm103_vm0, %v15566_v21  ;;  %18075 = vmatpush.msk.msra.mxu1 %vm103_vm0, %v15567_v22 }
 0x895   :  { %vm15404_vm14 = vcmp.gt.f32.partialorder %v14817_v17, 0.0  ;;  %v15468_v2 = vmul.f32 0.01, %v14817_v17  ;;  %vm15405_vm15 = vcmp.gt.f32.partialorder %v14840_v63, 0.0  ;;  %v15469_v54 = vmul.f32 0.01, %v14840_v63 }
 0x896   :  { %15865 = vmatpush.msra.mxu0 %v15534_v19  ;;  %15885 = vmatpush.msra.mxu1 %v15535_v23 }
 0x897   :  { %v15532_v31 = vsel %vm15404_vm14, %v14817_v17, %v15468_v2  ;;  %v15533_v34 = vsel %vm15405_vm15, %v14840_v63, %v15469_v54  ;;  %v14955_v27 = vpop.f32.mrf.mxu0  ;;  %v14978_v38 = vpop.f32.mrf.mxu1  ;;  %18074 = vmatmul.msk.f32.vlgmr.msra.gmra.mxu0 %vm96_vm1, %v21095_v44  ;;  %18076 = vmatmul.msk.f32.vlgmr.msra.gmra.mxu1 %vm96_vm1, %v21095_v44 }
 0x898   :  { %v15474_v30 = vmul.f32 0.01, %v14955_v27  ;;  %vm15410_vm10 = vcmp.gt.f32.partialorder %v14955_v27, 0.0  ;;  %vm15411_vm11 = vcmp.gt.f32.partialorder %v14978_v38, 0.0  ;;  %v15475_v35 = vmul.f32 0.01, %v14978_v38 }
 0x89a   :  { %v15538_v13 = vsel %vm15410_vm10, %v14955_v27, %v15474_v30  ;;  %v15539_v15 = vsel %vm15411_vm11, %v14978_v38, %v15475_v35 }
 0x89c   :  { %v14820_v3 = vpop.f32.mrf.mxu2  ;;  %v14843_v6 = vpop.f32.mrf.mxu3 }
 0x89d   :  { %vm15436_vm4 = vcmp.gt.f32.partialorder %v14820_v3, 0.0  ;;  %v15500_v9 = vmul.f32 0.01, %v14820_v3  ;;  %vm15437_vm5 = vcmp.gt.f32.partialorder %v14843_v6, 0.0  ;;  %v15501_v10 = vmul.f32 0.01, %v14843_v6 }
 0x89f   :  { %v15564_v16 = vsel %vm15436_vm4, %v14820_v3, %v15500_v9  ;;  %v15565_v18 = vsel %vm15437_vm5, %v14843_v6, %v15501_v10  ;;  %v14958_v48 = vpop.f32.mrf.mxu0  ;;  %v14981_v39 = vpop.f32.mrf.mxu1 }
 0x8a0   :  { %18069 = vmatpush.msk.msrb.mxu2 %vm103_vm0, %v15564_v16  ;;  %18071 = vmatpush.msk.msrb.mxu3 %vm103_vm0, %v15565_v18  ;;  %vm15442_vm14 = vcmp.gt.f32.partialorder %v14958_v48, 0.0  ;;  %v15506_v40 = vmul.f32 0.01, %v14958_v48  ;;  %vm15443_vm15 = vcmp.gt.f32.partialorder %v14981_v39, 0.0  ;;  %v15507_v45 = vmul.f32 0.01, %v14981_v39 }
 0x8a2   :  { %15825 = vmatpush.msrb.mxu2 %v15532_v31  ;;  %15845 = vmatpush.msrb.mxu3 %v15533_v34  ;;  %v15570_v8 = vsel %vm15442_vm14, %v14958_v48, %v15506_v40  ;;  %v15571_v46 = vsel %vm15443_vm15, %v14981_v39, %v15507_v45 }
 0x8a3   :  { %18070 = vmatmul.msk.f32.vlgmr.msrb.gmra.mxu2 %vm96_vm1, %v21095_v44  ;;  %18072 = vmatmul.msk.f32.vlgmr.msrb.gmra.mxu3 %vm96_vm1, %v21095_v44 }
 0x8a4   :  { %v14909_v24 = vpop.f32.mrf.mxu2  ;;  %v14932_v26 = vpop.f32.mrf.mxu3  ;;  %18081 = vmatpush.msk.msrb.mxu0 %vm103_vm0, %v15570_v8  ;;  %18083 = vmatpush.msk.msrb.mxu1 %vm103_vm0, %v15571_v46 }
 0x8a5   :  { %vm15408_vm8 = vcmp.gt.f32.partialorder %v14909_v24, 0.0  ;;  %v15472_v29 = vmul.f32 0.01, %v14909_v24  ;;  %vm15409_vm9 = vcmp.gt.f32.partialorder %v14932_v26, 0.0  ;;  %v15473_v32 = vmul.f32 0.01, %v14932_v26 }
 0x8a6   :  { %15945 = vmatpush.msrb.mxu0 %v15538_v13  ;;  %15965 = vmatpush.msrb.mxu1 %v15539_v15 }
 0x8a7   :  { %v15536_v49 = vsel %vm15408_vm8, %v14909_v24, %v15472_v29  ;;  %v15537_v50 = vsel %vm15409_vm9, %v14932_v26, %v15473_v32  ;;  %v15047_v52 = vpop.f32.mrf.mxu0  ;;  %v15070_v53 = vpop.f32.mrf.mxu1  ;;  %18082 = vmatmul.msk.f32.vlgmr.msrb.gmra.mxu0 %vm96_vm1, %v21095_v44  ;;  %18084 = vmatmul.msk.f32.vlgmr.msrb.gmra.mxu1 %vm96_vm1, %v21095_v44 }
 0x8a8   :  { %v15478_v37 = vmul.f32 0.01, %v15047_v52  ;;  %vm15414_vm4 = vcmp.gt.f32.partialorder %v15047_v52, 0.0  ;;  %vm15415_vm5 = vcmp.gt.f32.partialorder %v15070_v53, 0.0  ;;  %v15479_v42 = vmul.f32 0.01, %v15070_v53 }
 0x8aa   :  { %v15542_v1 = vsel %vm15414_vm4, %v15047_v52, %v15478_v37  ;;  %v15543_v54 = vsel %vm15415_vm5, %v15070_v53, %v15479_v42 }
 0x8ac   :  { %v14912_v43 = vpop.f32.mrf.mxu2  ;;  %v14935_v33 = vpop.f32.mrf.mxu3 }
 0x8ad   :  { %vm15440_vm12 = vcmp.gt.f32.partialorder %v14912_v43, 0.0  ;;  %v15504_v36 = vmul.f32 0.01, %v14912_v43  ;;  %vm15441_vm13 = vcmp.gt.f32.partialorder %v14935_v33, 0.0  ;;  %v15505_v4 = vmul.f32 0.01, %v14935_v33 }
 0x8af   :  { %v15568_v41 = vsel %vm15440_vm12, %v14912_v43, %v15504_v36  ;;  %v15569_v5 = vsel %vm15441_vm13, %v14935_v33, %v15505_v4  ;;  %v15050_v60 = vpop.f32.mrf.mxu0  ;;  %v15073_v47 = vpop.f32.mrf.mxu1 }
 0x8b0   :  { %18077 = vmatpush.msk.msra.mxu2 %vm103_vm0, %v15568_v41  ;;  %18079 = vmatpush.msk.msra.mxu3 %vm103_vm0, %v15569_v5  ;;  %vm15446_vm8 = vcmp.gt.f32.partialorder %v15050_v60, 0.0  ;;  %v15510_v61 = vmul.f32 0.01, %v15050_v60  ;;  %vm15447_vm9 = vcmp.gt.f32.partialorder %v15073_v47, 0.0  ;;  %v15511_v17 = vmul.f32 0.01, %v15073_v47 }
 0x8b2   :  { %15905 = vmatpush.msra.mxu2 %v15536_v49  ;;  %15925 = vmatpush.msra.mxu3 %v15537_v50  ;;  %v15574_v2 = vsel %vm15446_vm8, %v15050_v60, %v15510_v61  ;;  %v15575_v62 = vsel %vm15447_vm9, %v15073_v47, %v15511_v17 }
 0x8b3   :  { %18078 = vmatmul.msk.f32.vlgmr.msra.gmra.mxu2 %vm96_vm1, %v21095_v44  ;;  %18080 = vmatmul.msk.f32.vlgmr.msra.gmra.mxu3 %vm96_vm1, %v21095_v44 }
 0x8b4   :  { %v15001_v51 = vpop.f32.mrf.mxu2  ;;  %v15024_v28 = vpop.f32.mrf.mxu3  ;;  %18089 = vmatpush.msk.msra.mxu0 %vm103_vm0, %v15574_v2  ;;  %18091 = vmatpush.msk.msra.mxu1 %vm103_vm0, %v15575_v62 }
 0x8b5   :  { %vm15412_vm2 = vcmp.gt.f32.partialorder %v15001_v51, 0.0  ;;  %v15476_v55 = vmul.f32 0.01, %v15001_v51  ;;  %vm15413_vm3 = vcmp.gt.f32.partialorder %v15024_v28, 0.0  ;;  %v15477_v20 = vmul.f32 0.01, %v15024_v28 }
 0x8b6   :  { %16025 = vmatpush.msra.mxu0 %v15542_v1  ;;  %16045 = vmatpush.msra.mxu1 %v15543_v54 }
 0x8b7   :  { %v15540_v3 = vsel %vm15412_vm2, %v15001_v51, %v15476_v55  ;;  %v15541_v6 = vsel %vm15413_vm3, %v15024_v28, %v15477_v20  ;;  %v15139_v10 = vpop.f32.mrf.mxu0  ;;  %v15162_v11 = vpop.f32.mrf.mxu1  ;;  %18090 = vmatmul.msk.f32.vlgmr.msra.gmra.mxu0 %vm96_vm1, %v21095_v44  ;;  %18092 = vmatmul.msk.f32.vlgmr.msra.gmra.mxu1 %vm96_vm1, %v21095_v44 }
 0x8b8   :  { %vm15418_vm12 = vcmp.gt.f32.partialorder %v15139_v10, 0.0  ;;  %v15482_v18 = vmul.f32 0.01, %v15139_v10  ;;  %vm15419_vm13 = vcmp.gt.f32.partialorder %v15162_v11, 0.0  ;;  %v15483_v19 = vmul.f32 0.01, %v15162_v11 }
 0x8ba   :  { %v15546_v43 = vsel %vm15418_vm12, %v15139_v10, %v15482_v18  ;;  %v15547_v33 = vsel %vm15419_vm13, %v15162_v11, %v15483_v19 }
 0x8bc   :  { %v15004_v56 = vpop.f32.mrf.mxu2  ;;  %v15027_v25 = vpop.f32.mrf.mxu3 }
 0x8bd   :  { %vm15444_vm6 = vcmp.gt.f32.partialorder %v15004_v56, 0.0  ;;  %v15508_v58 = vmul.f32 0.01, %v15004_v56  ;;  %vm15445_vm7 = vcmp.gt.f32.partialorder %v15027_v25, 0.0  ;;  %v15509_v59 = vmul.f32 0.01, %v15027_v25 }
 0x8bf   :  { %v15572_v63 = vsel %vm15444_vm6, %v15004_v56, %v15508_v58  ;;  %v15573_v0 = vsel %vm15445_vm7, %v15027_v25, %v15509_v59  ;;  %v15142_v23 = vpop.f32.mrf.mxu0  ;;  %v15165_v31 = vpop.f32.mrf.mxu1 }
 0x8c0   :  { %18085 = vmatpush.msk.msrb.mxu2 %vm103_vm0, %v15572_v63  ;;  %18087 = vmatpush.msk.msrb.mxu3 %vm103_vm0, %v15573_v0  ;;  %vm15450_vm2 = vcmp.gt.f32.partialorder %v15142_v23, 0.0  ;;  %v15514_v34 = vmul.f32 0.01, %v15142_v23  ;;  %vm15451_vm3 = vcmp.gt.f32.partialorder %v15165_v31, 0.0  ;;  %v15515_v24 = vmul.f32 0.01, %v15165_v31 }
 0x8c2   :  { %15985 = vmatpush.msrb.mxu2 %v15540_v3  ;;  %16005 = vmatpush.msrb.mxu3 %v15541_v6  ;;  %v15578_v29 = vsel %vm15450_vm2, %v15142_v23, %v15514_v34  ;;  %v15579_v30 = vsel %vm15451_vm3, %v15165_v31, %v15515_v24 }
 0x8c3   :  { %18086 = vmatmul.msk.f32.vlgmr.msrb.gmra.mxu2 %vm96_vm1, %v21095_v44  ;;  %18088 = vmatmul.msk.f32.vlgmr.msrb.gmra.mxu3 %vm96_vm1, %v21095_v44 }
 0x8c4   :  { %v15093_v7 = vpop.f32.mrf.mxu2  ;;  %v15116_v9 = vpop.f32.mrf.mxu3  ;;  %18097 = vmatpush.msk.msrb.mxu0 %vm103_vm0, %v15578_v29  ;;  %18099 = vmatpush.msk.msrb.mxu1 %vm103_vm0, %v15579_v30 }
 0x8c5   :  { %vm15416_vm10 = vcmp.gt.f32.partialorder %v15093_v7, 0.0  ;;  %v15480_v57 = vmul.f32 0.01, %v15093_v7  ;;  %vm15417_vm11 = vcmp.gt.f32.partialorder %v15116_v9, 0.0  ;;  %v15481_v14 = vmul.f32 0.01, %v15116_v9 }
 0x8c6   :  { %16105 = vmatpush.msrb.mxu0 %v15546_v43  ;;  %16125 = vmatpush.msrb.mxu1 %v15547_v33  ;;  %v18160_v33 = vmov 2.0  }
 0x8c7   :  { %v15544_v38 = vsel %vm15416_vm10, %v15093_v7, %v15480_v57  ;;  %v15545_v32 = vsel %vm15417_vm11, %v15116_v9, %v15481_v14  ;;  %v15231_v4 = vpop.f32.mrf.mxu0  ;;  %v15254_v48 = vpop.f32.mrf.mxu1  ;;  %18098 = vmatmul.msk.f32.vlgmr.msrb.gmra.mxu0 %vm96_vm1, %v21095_v44  ;;  %18100 = vmatmul.msk.f32.vlgmr.msrb.gmra.mxu1 %vm96_vm1, %v21095_v44  ;;  %18158 = vrcp.f32 %v18160_v33 }
 0x8c8   :  { %vm15422_vm6 = vcmp.gt.f32.partialorder %v15231_v4, 0.0  ;;  %v15486_v5 = vmul.f32 0.01, %v15231_v4  ;;  %vm15423_vm7 = vcmp.gt.f32.partialorder %v15254_v48, 0.0  ;;  %v15487_v13 = vmul.f32 0.01, %v15254_v48 }
 0x8ca   :  { %v15550_v56 = vsel %vm15422_vm6, %v15231_v4, %v15486_v5  ;;  %v15551_v25 = vsel %vm15423_vm7, %v15254_v48, %v15487_v13 }
 0x8cc   :  { %v15096_v12 = vpop.f32.mrf.mxu2  ;;  %v15119_v16 = vpop.f32.mrf.mxu3 }
 0x8cd   :  { %vm15448_vm14 = vcmp.gt.f32.partialorder %v15096_v12, 0.0  ;;  %v15512_v21 = vmul.f32 0.01, %v15096_v12  ;;  %vm15449_vm15 = vcmp.gt.f32.partialorder %v15119_v16, 0.0  ;;  %v15513_v22 = vmul.f32 0.01, %v15119_v16  ;;  %v18159_v4 = vpop.eup %18158 }
 0x8cf   :  { %v15576_v26 = vsel %vm15448_vm14, %v15096_v12, %v15512_v21  ;;  %v15577_v27 = vsel %vm15449_vm15, %v15119_v16, %v15513_v22  ;;  %v15234_v15 = vpop.f32.mrf.mxu0  ;;  %v15257_v49 = vpop.f32.mrf.mxu1 }
 0x8d0   :  { %18093 = vmatpush.msk.msra.mxu2 %vm103_vm0, %v15576_v26  ;;  %18095 = vmatpush.msk.msra.mxu3 %vm103_vm0, %v15577_v27  ;;  %vm15454_vm10 = vcmp.gt.f32.partialorder %v15234_v15, 0.0  ;;  %v15518_v50 = vmul.f32 0.01, %v15234_v15  ;;  %vm15455_vm11 = vcmp.gt.f32.partialorder %v15257_v49, 0.0  ;;  %v15519_v51 = vmul.f32 0.01, %v15257_v49 }
 0x8d2   :  { %16065 = vmatpush.msra.mxu2 %v15544_v38  ;;  %16085 = vmatpush.msra.mxu3 %v15545_v32  ;;  %v15582_v55 = vsel %vm15454_vm10, %v15234_v15, %v15518_v50  ;;  %v15583_v37 = vsel %vm15455_vm11, %v15257_v49, %v15519_v51  ;;  %vm16458_vm10 = vcmask 1041408   ;;  %vm16460_vm11 = vcmask 1044484  }
 0x8d3   :  { %18094 = vmatmul.msk.f32.vlgmr.msra.gmra.mxu2 %vm96_vm1, %v21095_v44  ;;  %18096 = vmatmul.msk.f32.vlgmr.msra.gmra.mxu3 %vm96_vm1, %v21095_v44 }
 0x8d4   :  { %v15185_v35 = vpop.f32.mrf.mxu2  ;;  %v15208_v36 = vpop.f32.mrf.mxu3  ;;  %18105 = vmatpush.msk.msra.mxu0 %vm103_vm0, %v15582_v55  ;;  %18107 = vmatpush.msk.msra.mxu1 %vm103_vm0, %v15583_v37 }
 0x8d5   :  { %vm15420_vm4 = vcmp.gt.f32.partialorder %v15185_v35, 0.0  ;;  %v15484_v39 = vmul.f32 0.01, %v15185_v35  ;;  %vm15421_vm5 = vcmp.gt.f32.partialorder %v15208_v36, 0.0  ;;  %v15485_v40 = vmul.f32 0.01, %v15208_v36 }
 0x8d6   :  { %16185 = vmatpush.msra.mxu0 %v15550_v56  ;;  %16205 = vmatpush.msra.mxu1 %v15551_v25  ;;  %v16582_v25 = vld [vmem:[%s21285_s0 + $0x105] ss:$8 sm:$0xf0] }
 0x8d7   :  { %v15548_v53 = vsel %vm15420_vm4, %v15185_v35, %v15484_v39  ;;  %v15549_v20 = vsel %vm15421_vm5, %v15208_v36, %v15485_v40  ;;  %v15323_v59 = vpop.f32.mrf.mxu0  ;;  %v15346_v60 = vpop.f32.mrf.mxu1  ;;  %18106 = vmatmul.msk.f32.vlgmr.msra.gmra.mxu0 %vm96_vm1, %v21095_v44  ;;  %18108 = vmatmul.msk.f32.vlgmr.msra.gmra.mxu1 %vm96_vm1, %v21095_v44 }
 0x8d8   :  { %vm15426_vm14 = vcmp.gt.f32.partialorder %v15323_v59, 0.0  ;;  %v15490_v0 = vmul.f32 0.01, %v15323_v59  ;;  %vm15427_vm15 = vcmp.gt.f32.partialorder %v15346_v60, 0.0  ;;  %v15491_v1 = vmul.f32 0.01, %v15346_v60 }
 0x8da   :  { %v15554_v16 = vsel %vm15426_vm14, %v15323_v59, %v15490_v0  ;;  %v15555_v18 = vsel %vm15427_vm15, %v15346_v60, %v15491_v1  ;;  %vm16466_vm14 = vcmask 1043456   ;;  %vm16507_vm15 = vweird.f32 %v18159_v4 }
 0x8dc   :  { %v15188_v45 = vpop.f32.mrf.mxu2  ;;  %v15211_v41 = vpop.f32.mrf.mxu3 }
 0x8dd   :  { %vm15452_vm8 = vcmp.gt.f32.partialorder %v15188_v45, 0.0  ;;  %v15516_v8 = vmul.f32 0.01, %v15188_v45  ;;  %vm15453_vm9 = vcmp.gt.f32.partialorder %v15211_v41, 0.0  ;;  %v15517_v46 = vmul.f32 0.01, %v15211_v41 }
 0x8df   :  { %v15580_v28 = vsel %vm15452_vm8, %v15188_v45, %v15516_v8  ;;  %v15581_v52 = vsel %vm15453_vm9, %v15211_v41, %v15517_v46  ;;  %v15326_v54 = vpop.f32.mrf.mxu0  ;;  %v15349_v3 = vpop.f32.mrf.mxu1  ;;  %v16503_v8 = vmul.f32 2.0, %v18159_v4 }
 0x8e0   :  { %18101 = vmatpush.msk.msrb.mxu2 %vm103_vm0, %v15580_v28  ;;  %18103 = vmatpush.msk.msrb.mxu3 %vm103_vm0, %v15581_v52  ;;  %vm15458_vm4 = vcmp.gt.f32.partialorder %v15326_v54, 0.0  ;;  %v15522_v6 = vmul.f32 0.01, %v15326_v54  ;;  %vm15459_vm5 = vcmp.gt.f32.partialorder %v15349_v3, 0.0  ;;  %v15523_v7 = vmul.f32 0.01, %v15349_v3 }
 0x8e1   :  { %v16504_v28 = vsub.f32 1.0, %v16503_v8 }
 0x8e2   :  { %16145 = vmatpush.msrb.mxu2 %v15548_v53  ;;  %16165 = vmatpush.msrb.mxu3 %v15549_v20  ;;  %v15586_v57 = vsel %vm15458_vm4, %v15326_v54, %v15522_v6  ;;  %v15587_v14 = vsel %vm15459_vm5, %v15349_v3, %v15523_v7  ;;  %v16581_v53 = vld [vmem:[%s21285_s0 + $0x105] ss:$8 sm:$0xf] }
 0x8e3   :  { %18102 = vmatmul.msk.f32.vlgmr.msrb.gmra.mxu2 %vm96_vm1, %v21095_v44  ;;  %18104 = vmatmul.msk.f32.vlgmr.msrb.gmra.mxu3 %vm96_vm1, %v21095_v44 }
 0x8e4   :  { %v15277_v42 = vpop.f32.mrf.mxu2  ;;  %v15300_v58 = vpop.f32.mrf.mxu3  ;;  %18113 = vmatpush.msk.msrb.mxu0 %vm103_vm0, %v15586_v57  ;;  %18115 = vmatpush.msk.msrb.mxu1 %vm103_vm0, %v15587_v14 }
 0x8e5   :  { %vm15424_vm12 = vcmp.gt.f32.partialorder %v15277_v42, 0.0  ;;  %v15488_v47 = vmul.f32 0.01, %v15277_v42  ;;  %vm15425_vm13 = vcmp.gt.f32.partialorder %v15300_v58, 0.0  ;;  %v15489_v61 = vmul.f32 0.01, %v15300_v58 }
 0x8e6   :  { %16265 = vmatpush.msrb.mxu0 %v15554_v16  ;;  %16285 = vmatpush.msrb.mxu1 %v15555_v18 }
 0x8e7   :  { %v15552_v11 = vsel %vm15424_vm12, %v15277_v42, %v15488_v47  ;;  %v15553_v12 = vsel %vm15425_vm13, %v15300_v58, %v15489_v61  ;;  %18114 = vmatmul.msk.f32.vlgmr.msrb.gmra.mxu0 %vm96_vm1, %v21095_v44  ;;  %18116 = vmatmul.msk.f32.vlgmr.msrb.gmra.mxu1 %vm96_vm1, %v21095_v44  ;;  %vm16462_vm12 = vcmask 1046534   ;;  %vm16464_vm13 = vcmask 1045508  }
 0x8e8   :  { %v16505_v47 = vmul.f32 %v18159_v4, %v16504_v28 }
 0x8ec   :  { %v15280_v17 = vpop.f32.mrf.mxu2  ;;  %v15303_v63 = vpop.f32.mrf.mxu3 }
 0x8ed   :  { %vm15456_vm2 = vcmp.gt.f32.partialorder %v15280_v17, 0.0  ;;  %v15520_v2 = vmul.f32 0.01, %v15280_v17  ;;  %vm15457_vm3 = vcmp.gt.f32.partialorder %v15303_v63, 0.0  ;;  %v15521_v62 = vmul.f32 0.01, %v15303_v63 }
 0x8ef   :  { %v15584_v9 = vsel %vm15456_vm2, %v15280_v17, %v15520_v2  ;;  %v15585_v10 = vsel %vm15457_vm3, %v15303_v63, %v15521_v62  ;;  %v81_v17 = vor.u32 %v16582_v25, %v16581_v53  ;;  %v16506_v2 = vadd.f32 %v18159_v4, %v16505_v47 }
 0x8f0   :  { %18109 = vmatpush.msk.msra.mxu2 %vm103_vm0, %v15584_v9  ;;  %18111 = vmatpush.msk.msra.mxu3 %vm103_vm0, %v15585_v10 }
 0x8f1   :  { %v21228_v3 = vsel %vm16507_vm15, %v18159_v4, %v16506_v2 }
 0x8f2   :  { %16225 = vmatpush.msra.mxu2 %v15552_v11  ;;  %16245 = vmatpush.msra.mxu3 %v15553_v12  ;;  %v15707_v32 = vpop.f32.mrf.mxu0  ;;  %v15727_v43 = vpop.f32.mrf.mxu1 }
 0x8f3   :  { %18110 = vmatmul.msk.f32.vlgmr.msra.gmra.mxu2 %vm96_vm1, %v21095_v44  ;;  %18112 = vmatmul.msk.f32.vlgmr.msra.gmra.mxu3 %vm96_vm1, %v21095_v44  ;;  %v18122_v40 = vclamps-f32 %v15727_v43, 1.0  ;;  %v18121_v46 = vclamps-f32 %v15707_v32, 1.0 }
 0x8f4   :  { %v15369_v19 = vpop.f32.mrf.mxu2  ;;  %v15392_v21 = vpop.f32.mrf.mxu3 }
 0x8f5   :  { %v15492_v22 = vmul.f32 0.01, %v15369_v19  ;;  %v15493_v23 = vmul.f32 0.01, %v15392_v21  ;;  %vm15428_vm8 = vcmp.gt.f32.partialorder %v15369_v19, 0.0  ;;  %vm15429_vm9 = vcmp.gt.f32.partialorder %v15392_v21, 0.0 }
 0x8f6   :  { %v16426_v15 = vrot.slane %v18122_v40, 7 }
 0x8f7   :  { %v15556_v29 = vsel %vm15428_vm8, %v15369_v19, %v15492_v22  ;;  %v15557_v30 = vsel %vm15429_vm9, %v15392_v21, %v15493_v23 }
 0x8fc   :  { %v15372_v31 = vpop.f32.mrf.mxu2  ;;  %v15395_v34 = vpop.f32.mrf.mxu3 }
 0x8fd   :  { %vm15460_vm6 = vcmp.gt.f32.partialorder %v15372_v31, 0.0  ;;  %v15524_v24 = vmul.f32 0.01, %v15372_v31  ;;  %vm15461_vm7 = vcmp.gt.f32.partialorder %v15395_v34, 0.0  ;;  %v15525_v26 = vmul.f32 0.01, %v15395_v34 }
 0x8ff   :  { %v15588_v27 = vsel %vm15460_vm6, %v15372_v31, %v15524_v24  ;;  %v15589_v38 = vsel %vm15461_vm7, %v15395_v34, %v15525_v26 }
 0x900   :  { %18117 = vmatpush.msk.msrb.mxu2 %vm103_vm0, %v15588_v27  ;;  %18119 = vmatpush.msk.msrb.mxu3 %vm103_vm0, %v15589_v38  ;;  %vm16454_vm0 = vcmask 1040384  }
 0x901   :  { %v16455_v37 = vsel %vm16454_vm0, %v18121_v46, %v16426_v15 }
 0x902   :  { %16305 = vmatpush.msrb.mxu2 %v15556_v29  ;;  %16325 = vmatpush.msrb.mxu3 %v15557_v30 }
 0x903   :  { %18118 = vmatmul.msk.f32.vlgmr.msrb.gmra.mxu2 %vm96_vm1, %v21095_v44  ;;  %18120 = vmatmul.msk.f32.vlgmr.msrb.gmra.mxu3 %vm96_vm1, %v21095_v44  ;;  %v15787_v48 = vpop.f32.mrf.mxu0  ;;  %v15807_v39 = vpop.f32.mrf.mxu1  ;;  %vm16456_vm1 = vcmask 1042434  }
 0x904   :  { %v18125_v5 = vclamps-f32 %v15787_v48, 1.0  ;;  %v18126_v13 = vclamps-f32 %v15807_v39, 1.0  ;;  %v16583_v48 = vld [vmem:[%s21285_s0 + $0x145] ss:$8 sm:$0xf] }
 0x906   :  { %v16429_v44 = vrot.slane %v18125_v5, 4  ;;  %v16430_v51 = vrot.slane %v18126_v13, 3  ;;  %v16584_v5 = vld [vmem:[%s21285_s0 + $0x145] ss:$8 sm:$0xf0] }
 0x908   :  { %v16461_v58 = vsel %vm16460_vm11, %v16429_v44, %v16430_v51 }
 0x914   :  { %v15867_v9 = vpop.f32.mrf.mxu0  ;;  %v15887_v10 = vpop.f32.mrf.mxu1 }
 0x915   :  { %v18130_v31 = vclamps-f32 %v15887_v10, 1.0  ;;  %v18129_v30 = vclamps-f32 %v15867_v9, 1.0 }
 0x916   :  { %v15747_v35 = vpop.f32.mrf.mxu2  ;;  %v15767_v36 = vpop.f32.mrf.mxu3 }
 0x917   :  { %v18123_v45 = vclamps-f32 %v15747_v35, 1.0  ;;  %v18124_v41 = vclamps-f32 %v15767_v36, 1.0  ;;  %v16433_v32 = vrot.slane %v18130_v31, 7 }
 0x919   :  { %v16427_v49 = vrot.slane %v18123_v45, 6  ;;  %v16428_v50 = vrot.slane %v18124_v41, 5  ;;  %v16468_v40 = vsel %vm16454_vm0, %v18129_v30, %v16433_v32 }
 0x91b   :  { %v16457_v20 = vsel %vm16456_vm1, %v16427_v49, %v16428_v50  ;;  %v85_v50 = vor.u32 %v16584_v5, %v16583_v48 }
 0x91c   :  { %v16459_v61 = vsel %vm16458_vm10, %v16455_v37, %v16457_v20 }
 0x924   :  { %v15947_v22 = vpop.f32.mrf.mxu0  ;;  %v15967_v23 = vpop.f32.mrf.mxu1 }
 0x925   :  { %v18133_v27 = vclamps-f32 %v15947_v22, 1.0  ;;  %v18134_v38 = vclamps-f32 %v15967_v23, 1.0 }
 0x926   :  { %v15827_v52 = vpop.f32.mrf.mxu2  ;;  %v15847_v55 = vpop.f32.mrf.mxu3 }
 0x927   :  { %v18127_v56 = vclamps-f32 %v15827_v52, 1.0  ;;  %v18128_v42 = vclamps-f32 %v15847_v55, 1.0  ;;  %v16436_v35 = vrot.slane %v18133_v27, 4  ;;  %v16437_v36 = vrot.slane %v18134_v38, 3 }
 0x929   :  { %v16431_v59 = vrot.slane %v18127_v56, 2  ;;  %v16432_v60 = vrot.slane %v18128_v42, 1  ;;  %v16471_v8 = vsel %vm16460_vm11, %v16436_v35, %v16437_v36 }
 0x92b   :  { %v16463_v63 = vsel %vm16462_vm12, %v16431_v59, %v16432_v60 }
 0x92c   :  { %v16465_v0 = vsel %vm16464_vm13, %v16461_v58, %v16463_v63 }
 0x92d   :  { %v16467_v1 = vsel %vm16466_vm14, %v16459_v61, %v16465_v0 }
 0x92e   :  { %v16493_v62 = vsub.f32 %v81_v17, %v16467_v1 }
 0x930   :  { %v16497_v54 = vadd.f32 1.0, %v16493_v62 }
 0x932   :  { %v16501_v6 = vand.u32 2147483647, %v16497_v54  ;;  %v16516_v12 = vand.u32 2147483648, %v16497_v54 }
 0x934   :  { %v16509_v7 = vmul.f32 %v21228_v3, %v16501_v6  ;;  %v16027_v37 = vpop.f32.mrf.mxu0  ;;  %v16047_v20 = vpop.f32.mrf.mxu1 }
 0x935   :  { %v18138_v1 = vclamps-f32 %v16047_v20, 1.0  ;;  %v18137_v9 = vclamps-f32 %v16027_v37, 1.0 }
 0x936   :  { %v16510_v11 = vfloor.f32 %v16509_v7  ;;  %v15907_v16 = vpop.f32.mrf.mxu2  ;;  %v15927_v18 = vpop.f32.mrf.mxu3 }
 0x937   :  { %v18131_v34 = vclamps-f32 %v15907_v16, 1.0  ;;  %v18132_v24 = vclamps-f32 %v15927_v18, 1.0 }
 0x938   :  { %v16511_v57 = vmul.f32 2.0, %v16510_v11  ;;  %v16440_v11 = vrot.slane %v18138_v1, 7 }
 0x939   :  { %v16434_v43 = vrot.slane %v18131_v34, 6  ;;  %v16435_v33 = vrot.slane %v18132_v24, 5  ;;  %v16586_v34 = vld [vmem:[%s21285_s0 + $0x185] ss:$8 sm:$0xf0] }
 0x93a   :  { %v16512_v14 = vsub.f32 %v16501_v6, %v16511_v57  ;;  %v16475_v22 = vsel %vm16454_vm0, %v18137_v9, %v16440_v11 }
 0x93b   :  { %v16469_v45 = vsel %vm16456_vm1, %v16434_v43, %v16435_v33 }
 0x93c   :  { %vm16513_vm2 = vcmp.eq.f32.partialorder %v16512_v14, 2.0  ;;  %v16470_v49 = vsel %vm16458_vm10, %v16468_v40, %v16469_v45 }
 0x93d   :  { %v16514_v19 = vsel %vm16513_vm2, 0.0, %v16512_v14 }
 0x93e   :  { %v16515_v21 = vand.u32 2147483647, %v16514_v19  ;;  %v16585_v19 = vld [vmem:[%s21285_s0 + $0x185] ss:$8 sm:$0xf] }
 0x93f   :  { %v89_v30 = vor.u32 %v16586_v34, %v16585_v19 }
 0x940   :  { %v16517_v26 = vor.u32 %v16516_v12, %v16515_v21 }
 0x942   :  { %v18153_v29 = vadd.f32 -1.0, %v16517_v26 }
 0x944   :  { %16573 = vst [vmem:[%s21288_s3] sm:$0xff] %v18153_v29  ;;  %v16107_v17 = vpop.f32.mrf.mxu0  ;;  %v16127_v63 = vpop.f32.mrf.mxu1 }
 0x945   :  { %v18141_v6 = vclamps-f32 %v16107_v17, 1.0  ;;  %v18142_v7 = vclamps-f32 %v16127_v63, 1.0 }
 0x946   :  { %v15987_v4 = vpop.f32.mrf.mxu2  ;;  %v16007_v39 = vpop.f32.mrf.mxu3 }
 0x947   :  { %v18135_v41 = vclamps-f32 %v15987_v4, 1.0  ;;  %v18136_v13 = vclamps-f32 %v16007_v39, 1.0  ;;  %v16443_v12 = vrot.slane %v18141_v6, 4  ;;  %v16444_v16 = vrot.slane %v18142_v7, 3 }
 0x949   :  { %v16438_v46 = vrot.slane %v18135_v41, 2  ;;  %v16439_v15 = vrot.slane %v18136_v13, 1  ;;  %v16478_v26 = vsel %vm16460_vm11, %v16443_v12, %v16444_v16 }
 0x94b   :  { %v16472_v44 = vsel %vm16462_vm12, %v16438_v46, %v16439_v15 }
 0x94c   :  { %v16473_v51 = vsel %vm16464_vm13, %v16471_v8, %v16472_v44 }
 0x94d   :  { %v16474_v28 = vsel %vm16466_vm14, %v16470_v49, %v16473_v51 }
 0x94e   :  { %v16494_v52 = vsub.f32 %v85_v50, %v16474_v28 }
 0x950   :  { %v16498_v53 = vadd.f32 1.0, %v16494_v52 }
 0x952   :  { %v16518_v55 = vand.u32 2147483647, %v16498_v53  ;;  %v16533_v47 = vand.u32 2147483648, %v16498_v53 }
 0x954   :  { %v16526_v56 = vmul.f32 %v16518_v55, %v21228_v3  ;;  %v16187_v48 = vpop.f32.mrf.mxu0  ;;  %v16207_v40 = vpop.f32.mrf.mxu1 }
 0x955   :  { %v18146_v28 = vclamps-f32 %v16207_v40, 1.0 }
 0x956   :  { %v16527_v25 = vfloor.f32 %v16526_v56  ;;  %v16067_v59 = vpop.f32.mrf.mxu2  ;;  %v16087_v60 = vpop.f32.mrf.mxu3  ;;  %v18145_v56 = vclamps-f32 %v16187_v48, 1.0 }
 0x957   :  { %v18139_v2 = vclamps-f32 %v16067_v59, 1.0  ;;  %v18140_v62 = vclamps-f32 %v16087_v60, 1.0 }
 0x958   :  { %v16528_v42 = vmul.f32 2.0, %v16527_v25  ;;  %v16447_v25 = vrot.slane %v18146_v28, 7 }
 0x959   :  { %v16441_v57 = vrot.slane %v18139_v2, 6  ;;  %v16442_v14 = vrot.slane %v18140_v62, 5 }
 0x95a   :  { %v16529_v58 = vsub.f32 %v16518_v55, %v16528_v42  ;;  %v16482_v2 = vsel %vm16454_vm0, %v18145_v56, %v16447_v25 }
 0x95b   :  { %v16476_v23 = vsel %vm16456_vm1, %v16441_v57, %v16442_v14 }
 0x95c   :  { %vm16530_vm3 = vcmp.eq.f32.partialorder %v16529_v58, 2.0  ;;  %v16477_v29 = vsel %vm16458_vm10, %v16475_v22, %v16476_v23 }
 0x95d   :  { %v16531_v61 = vsel %vm16530_vm3, 0.0, %v16529_v58 }
 0x95e   :  { %v16532_v0 = vand.u32 2147483647, %v16531_v61  ;;  %v16587_v61 = vld [vmem:[%s21285_s0 + $0x1c5] ss:$8 sm:$0xf] }
 0x960   :  { %v16534_v54 = vor.u32 %v16533_v47, %v16532_v0  ;;  %v16588_v0 = vld [vmem:[%s21285_s0 + $0x1c5] ss:$8 sm:$0xf0] }
 0x961   :  { %v93_v9 = vor.u32 %v16588_v0, %v16587_v61 }
 0x962   :  { %v18154_v10 = vadd.f32 -1.0, %v16534_v54 }
 0x964   :  { %16574 = vst [vmem:[%s21288_s3 + $0x8] sm:$0xff] %v18154_v10  ;;  %v16267_v8 = vpop.f32.mrf.mxu0  ;;  %v16287_v46 = vpop.f32.mrf.mxu1 }
 0x965   :  { %v18149_v55 = vclamps-f32 %v16267_v8, 1.0  ;;  %v18150_v37 = vclamps-f32 %v16287_v46, 1.0 }
 0x966   :  { %v16147_v18 = vpop.f32.mrf.mxu2  ;;  %v16167_v21 = vpop.f32.mrf.mxu3 }
 0x967   :  { %v18143_v31 = vclamps-f32 %v16147_v18, 1.0  ;;  %v18144_v24 = vclamps-f32 %v16167_v21, 1.0  ;;  %v16450_v59 = vrot.slane %v18149_v55, 4  ;;  %v16451_v60 = vrot.slane %v18150_v37, 3 }
 0x969   :  { %v16445_v27 = vrot.slane %v18143_v31, 2  ;;  %v16446_v38 = vrot.slane %v18144_v24, 1  ;;  %v16485_v54 = vsel %vm16460_vm11, %v16450_v59, %v16451_v60 }
 0x96b   :  { %v16479_v32 = vsel %vm16462_vm12, %v16445_v27, %v16446_v38 }
 0x96c   :  { %v16480_v43 = vsel %vm16464_vm13, %v16478_v26, %v16479_v32 }
 0x96d   :  { %v16481_v33 = vsel %vm16466_vm14, %v16477_v29, %v16480_v43 }
 0x96e   :  { %v16495_v35 = vsub.f32 %v89_v30, %v16481_v33 }
 0x970   :  { %v16499_v36 = vadd.f32 1.0, %v16495_v35 }
 0x972   :  { %v16535_v4 = vand.u32 2147483647, %v16499_v36  ;;  %v16550_v49 = vand.u32 2147483648, %v16499_v36 }
 0x974   :  { %v16543_v39 = vmul.f32 %v16535_v4, %v21228_v3 }
 0x976   :  { %v16544_v45 = vfloor.f32 %v16543_v39  ;;  %v16227_v50 = vpop.f32.mrf.mxu2  ;;  %v16247_v44 = vpop.f32.mrf.mxu3 }
 0x977   :  { %v18147_v52 = vclamps-f32 %v16227_v50, 1.0  ;;  %v18148_v53 = vclamps-f32 %v16247_v44, 1.0 }
 0x978   :  { %v16545_v41 = vmul.f32 2.0, %v16544_v45 }
 0x979   :  { %v16448_v42 = vrot.slane %v18147_v52, 6  ;;  %v16449_v58 = vrot.slane %v18148_v53, 5 }
 0x97a   :  { %v16546_v5 = vsub.f32 %v16535_v4, %v16545_v41 }
 0x97b   :  { %v16483_v62 = vsel %vm16456_vm1, %v16448_v42, %v16449_v58 }
 0x97c   :  { %vm16547_vm4 = vcmp.eq.f32.partialorder %v16546_v5, 2.0  ;;  %v16484_v11 = vsel %vm16458_vm10, %v16482_v2, %v16483_v62 }
 0x97d   :  { %v16548_v13 = vsel %vm16547_vm4, 0.0, %v16546_v5 }
 0x97e   :  { %v16549_v15 = vand.u32 2147483647, %v16548_v13 }
 0x980   :  { %v16551_v51 = vor.u32 %v16550_v49, %v16549_v15 }
 0x982   :  { %v18155_v20 = vadd.f32 -1.0, %v16551_v51 }
 0x984   :  { %16575 = vst [vmem:[%s21288_s3 + $0x10] sm:$0xff] %v18155_v20 }
 0x986   :  { %v16307_v47 = vpop.f32.mrf.mxu2  ;;  %v16327_v17 = vpop.f32.mrf.mxu3 }
 0x987   :  { %v18151_v63 = vclamps-f32 %v16307_v47, 1.0  ;;  %v18152_v1 = vclamps-f32 %v16327_v17, 1.0 }
 0x989   :  { %v16452_v6 = vrot.slane %v18151_v63, 2  ;;  %v16453_v7 = vrot.slane %v18152_v1, 1 }
 0x98b   :  { %v16486_v10 = vsel %vm16462_vm12, %v16452_v6, %v16453_v7 }
 0x98c   :  { %v16487_v57 = vsel %vm16464_vm13, %v16485_v54, %v16486_v10 }
 0x98d   :  { %v16488_v14 = vsel %vm16466_vm14, %v16484_v11, %v16487_v57 }
 0x98e   :  { %v16496_v12 = vsub.f32 %v93_v9, %v16488_v14 }
 0x990   :  { %v16500_v16 = vadd.f32 1.0, %v16496_v12 }
 0x992   :  { %v16552_v18 = vand.u32 2147483647, %v16500_v16  ;;  %v16567_v24 = vand.u32 2147483648, %v16500_v16 }
 0x994   :  { %v16560_v19 = vmul.f32 %v16552_v18, %v21228_v3 }
 0x996   :  { %v16561_v21 = vfloor.f32 %v16560_v19 }
 0x998   :  { %v16562_v22 = vmul.f32 2.0, %v16561_v21 }
 0x99a   :  { %v16563_v23 = vsub.f32 %v16552_v18, %v16562_v22 }
 0x99c   :  { %vm16564_vm5 = vcmp.eq.f32.partialorder %v16563_v23, 2.0 }
 0x99d   :  { %v16565_v31 = vsel %vm16564_vm5, 0.0, %v16563_v23 }
 0x99e   :  { %v16566_v34 = vand.u32 2147483647, %v16565_v31 }
 0x9a0   :  { %v16568_v26 = vor.u32 %v16567_v24, %v16566_v34 }
 0x9a2   :  { %v18156_v27 = vadd.f32 -1.0, %v16568_v26 }
 0x9a4   :  { %16576 = vst [vmem:[%s21288_s3 + $0x18] sm:$0xff] %v18156_v27 }

</bundles_post_ra>
